<compile_context>
chip_gen: v6e
topology: v6e:2x2x1
jax: 0.10.0
libtpu: 0.0.40
codegen_flags: <defaults>
</compile_context>

<pallas_src>
import jax
import jax.numpy as jnp
from jax.experimental import pallas as pl
from jax.experimental.pallas import tpu as pltpu


# ----------------------------------------------------------------------------
# 3x3 'same' conv + bias + ReLU for one image (one MXU matmul via in-VMEM im2col)
# ----------------------------------------------------------------------------
def _conv3x3_relu(p_ref, w_ref, b_ref, a_ref, H, W, Cin):
    """p_ref : (H+2, W+2, Cin) zero-padded NHWC input (VMEM scratch)
       w_ref : (9*Cin, Cout)   im2col-reshaped HWIO weight
       b_ref : (1, Cout)       bias
       a_ref : (H*W, Cout)     ReLU'd conv output, row = y*W + x
    """
    HW = H * W
    # q lane index = dx*Cin + c
    q = jnp.concatenate([p_ref[:, pl.ds(dx, W), :] for dx in range(3)], axis=-1)
    # pat lane index = (dy*3 + dx)*Cin + c == row order of w.reshape(9*Cin, Cout)
    pat = jnp.concatenate(
        [q[dy:dy + H].reshape(HW, 3 * Cin) for dy in range(3)], axis=-1)
    acc = jnp.dot(pat, w_ref[...], preferred_element_type=jnp.float32)
    a_ref[...] = jnp.maximum(acc + b_ref[...], 0.0)            # bias + ReLU


# ----------------------------------------------------------------------------
# Fused conv tower: conv1 + ReLU + pool + conv2 + ReLU + pool (per image)
# ----------------------------------------------------------------------------
def conv_tower_kernel(x_ref, w1_ref, b1_ref, w2_ref, b2_ref, o_ref,
                      p1_ref, a1_ref, p2_ref, a2_ref):
    # ---- conv1: 32x32x3 -> ReLU -> 2x2 max-pool -> 16x16x32 ----
    p1_ref[...] = jnp.zeros(p1_ref.shape, p1_ref.dtype)        # zero halo per step
    p1_ref[pl.ds(1, 32), pl.ds(1, 32), :] = x_ref[0]           #  (megacore-safe)
    _conv3x3_relu(p1_ref, w1_ref, b1_ref, a1_ref, 32, 32, 3)
    # width pairs via stride-2 sublane reads; height pairs via reshape + max (VPU only)
    w1max = jnp.maximum(a1_ref[pl.ds(0, 512, stride=2), :],
                        a1_ref[pl.ds(1, 512, stride=2), :])    # (512,32), row = y*16+px
    h1 = jnp.max(w1max.reshape(16, 2, 16, 32), axis=1)         # (16,16,32)

    # ---- conv2: 16x16x32 -> ReLU -> 2x2 max-pool -> lane-packed (8,4,128) ----
    p2_ref[...] = jnp.zeros(p2_ref.shape, p2_ref.dtype)
    p2_ref[pl.ds(1, 16), pl.ds(1, 16), :] = h1
    _conv3x3_relu(p2_ref, w2_ref, b2_ref, a2_ref, 16, 16, 32)
    # a2 row = y*16 + x.  Decompose x = 4*t + 2*q + s (t: pooled-x pair, q: parity,
    # s: in-pool column).  A stride-4 sublane read at offset 2q+s yields a (64,64)
    # slab with row = 4*y + t, so max over s is the width pool for parity q.
    m_even = jnp.maximum(a2_ref[pl.ds(0, 64, stride=4), :],
                         a2_ref[pl.ds(1, 64, stride=4), :])    # q = 0 (even pooled x)
    m_odd  = jnp.maximum(a2_ref[pl.ds(2, 64, stride=4), :],
                         a2_ref[pl.ds(3, 64, stride=4), :])    # q = 1 (odd pooled x)
    h_even = jnp.max(m_even.reshape(8, 2, 4, 64), axis=1)      # (8,4,64): (py, t, c)
    h_odd  = jnp.max(m_odd.reshape(8, 2, 4, 64), axis=1)
    # lane-pack the two parities: lane = q*64 + c  ->  flat order py*512 + px*64 + c
    # (identical NHWC flatten order as before; fc1 row permutation is unchanged)
    o_ref[0] = jnp.concatenate([h_even, h_odd], axis=-1)       # (8,4,128) full-lane store


def conv_tower(x_nhwc, w1c, b1, w2c, b2):
    B = x_nhwc.shape[0]
    return pl.pallas_call(
        conv_tower_kernel,
        out_shape=jax.ShapeDtypeStruct((B, 8, 4, 128), jnp.float32),
        grid=(B,),
        in_specs=[
            pl.BlockSpec((1, 32, 32, 3), lambda b: (b, 0, 0, 0)),
            pl.BlockSpec((27, 32), lambda b: (0, 0)),
            pl.BlockSpec((1, 32), lambda b: (0, 0)),
            pl.BlockSpec((288, 64), lambda b: (0, 0)),
            pl.BlockSpec((1, 64), lambda b: (0, 0)),
        ],
        out_specs=pl.BlockSpec((1, 8, 4, 128), lambda b: (b, 0, 0, 0)),
        scratch_shapes=[
            pltpu.VMEM((34, 34, 3), jnp.float32),     # padded conv1 input
            pltpu.VMEM((32 * 32, 32), jnp.float32),   # conv1 ReLU output
            pltpu.VMEM((18, 18, 32), jnp.float32),    # padded conv2 input
            pltpu.VMEM((16 * 16, 64), jnp.float32),   # conv2 ReLU output
        ],
        compiler_params=pltpu.CompilerParams(dimension_semantics=("parallel",)),
    )(x_nhwc, w1c, b1, w2c, b2)


# ----------------------------------------------------------------------------
# Fused fc1 + ReLU + fc2 head (whole batch at once)
# ----------------------------------------------------------------------------
def mlp_kernel(x_ref, w1_ref, b1_ref, w2_ref, b2_ref, o_ref):
    h = jnp.dot(x_ref[...], w1_ref[...], preferred_element_type=jnp.float32)
    h = jnp.maximum(h + b1_ref[...], 0.0)
    o_ref[...] = (jnp.dot(h, w2_ref[...], preferred_element_type=jnp.float32)
                  + b2_ref[...])


def mlp_head(x, w1, b1, w2, b2):
    B, D = x.shape
    H1 = w1.shape[1]
    O = w2.shape[1]
    return pl.pallas_call(
        mlp_kernel,
        out_shape=jax.ShapeDtypeStruct((B, O), jnp.float32),
        grid=(1,),
        in_specs=[
            pl.BlockSpec((B, D), lambda i: (0, 0)),
            pl.BlockSpec((D, H1), lambda i: (0, 0)),
            pl.BlockSpec((1, H1), lambda i: (0, 0)),
            pl.BlockSpec((H1, O), lambda i: (0, 0)),
            pl.BlockSpec((1, O), lambda i: (0, 0)),
        ],
        out_specs=pl.BlockSpec((B, O), lambda i: (0, 0)),
        compiler_params=pltpu.CompilerParams(dimension_semantics=("arbitrary",)),
    )(x, w1, b1, w2, b2)
    # TODO(synk): optionally cast wf1 to bf16 (f32 accumulate) to halve its HBM
    # stream; kept f32 here to preserve the module's exact forward numerics.


# ----------------------------------------------------------------------------
# Parameter prep (one-time, outside the forward), forward pass, reference
# ----------------------------------------------------------------------------
def prepare_params(params):
    """Reshape/permute weights into kernel-ready form (done once, off the hot path)."""
    wf1p = (params["wf1"].reshape(64, 8, 8, 128)     # torch NCHW flatten order (c, y, x)
            .transpose(1, 2, 0, 3)                   # -> NHWC flatten order (y, x, c)
            .reshape(64 * 8 * 8, 128))
    return {
        "w1c": params["w1"].reshape(27, 32),         # (3,3,3,32)  -> (9*Cin, Cout)
        "b1": params["b1"].reshape(1, 32),
        "w2c": params["w2"].reshape(288, 64),        # (3,3,32,64) -> (9*Cin, Cout)
        "b2": params["b2"].reshape(1, 64),
        "wf1": wf1p,
        "bf1": params["bf1"].reshape(1, 128),
        "wf2": params["wf2"],
        "bf2": params["bf2"].reshape(1, 10),
    }


@jax.jit
def neural_net_forward(x, kp):
    x = x.reshape(-1, 3, 32, 32)                     # mirrors x.view(-1, 3, 32, 32)
    B = x.shape[0]
    x_nhwc = jnp.transpose(x, (0, 2, 3, 1))          # NCHW -> NHWC (tiny, input only)
    conv_out = conv_tower(x_nhwc, kp["w1c"], kp["b1"], kp["w2c"], kp["b2"])
    flat = conv_out.reshape(B, 64 * 8 * 8)           # zero-copy: already (y, x, c) order
    return mlp_head(flat, kp["wf1"], kp["bf1"], kp["wf2"], kp["bf2"])


def reference_forward(x, params):
    hp = jax.lax.Precision.HIGHEST

    def conv2d(x_nchw, w_hwio, b):
        y = jax.lax.conv_general_dilated(
            x_nchw, w_hwio, window_strides=(1, 1), padding=((1, 1), (1, 1)),
            dimension_numbers=("NCHW", "HWIO", "NCHW"), precision=hp)
        return y + b[None, :, None, None]

    def maxpool(x_nchw):
        return jax.lax.reduce_window(x_nchw, -jnp.inf, jax.lax.max,
                                     (1, 1, 2, 2), (1, 1, 2, 2), "VALID")

    x = x.reshape(-1, 3, 32, 32)
    h = maxpool(jax.nn.relu(conv2d(x, params["w1"], params["b1"])))
    h = maxpool(jax.nn.relu(conv2d(h, params["w2"], params["b2"])))
    h = h.reshape(h.shape[0], -1)
    h = jax.nn.relu(jnp.dot(h, params["wf1"], precision=hp) + params["bf1"])
    return jnp.dot(h, params["wf2"], precision=hp) + params["bf2"]


def init_params(key):
    ks = jax.random.split(key, 8)
    f32 = jnp.float32
    return {
        "w1": jax.random.normal(ks[0], (3, 3, 3, 32), f32) / jnp.sqrt(27.0),
        "b1": 0.01 * jax.random.normal(ks[1], (32,), f32),
        "w2": jax.random.normal(ks[2], (3, 3, 32, 64), f32) / jnp.sqrt(288.0),
        "b2": 0.01 * jax.random.normal(ks[3], (64,), f32),
        "wf1": jax.random.normal(ks[4], (64 * 8 * 8, 128), f32) / jnp.sqrt(4096.0),
        "bf1": 0.01 * jax.random.normal(ks[5], (128,), f32),
        "wf2": jax.random.normal(ks[6], (128, 10), f32) / jnp.sqrt(128.0),
        "bf2": 0.01 * jax.random.normal(ks[7], (10,), f32),
    }


if __name__ == "__main__":
    key = jax.random.PRNGKey(0)
    pkey, xkey = jax.random.split(key)
    params = init_params(pkey)
    kparams = prepare_params(params)                  # one-time weight prep
    x = jax.random.normal(xkey, (2, 3, 32, 32), jnp.float32)   # batch=2 CIFAR input

    out = neural_net_forward(x, kparams)
    out = jax.block_until_ready(out)
    assert out.shape == (2, 10) and out.dtype == jnp.float32

    ref = jax.block_until_ready(reference_forward(x, params))
    err = float(jnp.max(jnp.abs(out - ref)))
    scale = float(jnp.max(jnp.abs(ref))) + 1e-6
    if err / scale > 2e-2:
        raise AssertionError(f"Pallas/ref mismatch: max abs err {err}, ref scale {scale}")

    print("KERNEL_OK")
</pallas_src>

<mosaic_0001>
module attributes {stable_mosaic.version = 11 : i64} {
  func.func @conv_tower_kernel(%arg0: i32, %arg1: memref<1x32x32x3xf32, #tpu.memory_space<vmem>>, %arg2: memref<27x32xf32, #tpu.memory_space<vmem>>, %arg3: memref<1x32xf32, #tpu.memory_space<vmem>>, %arg4: memref<288x64xf32, #tpu.memory_space<vmem>>, %arg5: memref<1x64xf32, #tpu.memory_space<vmem>>, %arg6: memref<1x8x4x128xf32, #tpu.memory_space<vmem>>, %arg7: memref<34x34x3xf32, #tpu.memory_space<vmem>>, %arg8: memref<1024x32xf32, #tpu.memory_space<vmem>>, %arg9: memref<18x18x32xf32, #tpu.memory_space<vmem>>, %arg10: memref<256x64xf32, #tpu.memory_space<vmem>>) attributes {dimension_semantics = [#tpu.dimension_semantics<parallel>], iteration_bounds = array<i64: 2>, scalar_prefetch = 0 : i64, scratch_operands = 4 : i64, tpu.core_type = #tpu.core_type<tc>, window_params = [{transform_indices = @transform_0, window_bounds = array<i64: 1, 32, 32, 3>}, {pipeline_mode = #tpu.pipeline_mode<synchronous>, transform_indices = @transform_1, window_bounds = array<i64: 27, 32>}, {pipeline_mode = #tpu.pipeline_mode<synchronous>, transform_indices = @transform_2, window_bounds = array<i64: 1, 32>}, {pipeline_mode = #tpu.pipeline_mode<synchronous>, transform_indices = @transform_3, window_bounds = array<i64: 288, 64>}, {pipeline_mode = #tpu.pipeline_mode<synchronous>, transform_indices = @transform_4, window_bounds = array<i64: 1, 64>}, {transform_indices = @transform_5, window_bounds = array<i64: 1, 8, 4, 128>}]} {
    %cst = arith.constant 0.000000e+00 : f32
    %0 = vector.broadcast %cst : f32 to vector<34x34x3xf32>
    %c0 = arith.constant 0 : index
    %c0_0 = arith.constant 0 : index
    %c0_1 = arith.constant 0 : index
    %1 = vector.load %arg7[%c0, %c0_0, %c0_1] : memref<34x34x3xf32, #tpu.memory_space<vmem>>, vector<34x34x3xf32>
    tpu.vector_store %arg7[%c0, %c0_0, %c0_1], %0 {strides = array<i32>} : memref<34x34x3xf32, #tpu.memory_space<vmem>>, vector<34x34x3xf32>,
    %c0_2 = arith.constant 0 : index
    %c0_3 = arith.constant 0 : index
    %c0_4 = arith.constant 0 : index
    %c0_5 = arith.constant 0 : index
    %2 = vector.load %arg1[%c0_2, %c0_3, %c0_4, %c0_5] : memref<1x32x32x3xf32, #tpu.memory_space<vmem>>, vector<1x32x32x3xf32>
    %3 = vector.shape_cast %2 : vector<1x32x32x3xf32> to vector<32x32x3xf32>
    %c1 = arith.constant 1 : index
    %c1_6 = arith.constant 1 : index
    %c0_7 = arith.constant 0 : index
    %4 = vector.load %arg7[%c1, %c1_6, %c0_7] : memref<34x34x3xf32, #tpu.memory_space<vmem>>, vector<32x32x3xf32>
    tpu.vector_store %arg7[%c1, %c1_6, %c0_7], %3 {strides = array<i32>} : memref<34x34x3xf32, #tpu.memory_space<vmem>>, vector<32x32x3xf32>,
    %c0_8 = arith.constant 0 : index
    %c0_9 = arith.constant 0 : index
    %c0_10 = arith.constant 0 : index
    %5 = vector.load %arg7[%c0_8, %c0_9, %c0_10] : memref<34x34x3xf32, #tpu.memory_space<vmem>>, vector<34x32x3xf32>
    %c0_11 = arith.constant 0 : index
    %c1_12 = arith.constant 1 : index
    %c0_13 = arith.constant 0 : index
    %6 = vector.load %arg7[%c0_11, %c1_12, %c0_13] : memref<34x34x3xf32, #tpu.memory_space<vmem>>, vector<34x32x3xf32>
    %c0_14 = arith.constant 0 : index
    %c2 = arith.constant 2 : index
    %c0_15 = arith.constant 0 : index
    %7 = vector.load %arg7[%c0_14, %c2, %c0_15] : memref<34x34x3xf32, #tpu.memory_space<vmem>>, vector<34x32x3xf32>
    %8 = tpu.concatenate %5, %6, %7 in 2 : vector<34x32x3xf32>, vector<34x32x3xf32>, vector<34x32x3xf32> -> vector<34x32x9xf32>
    %9 = vector.extract_strided_slice %8 {offsets = [0, 0, 0], sizes = [32, 32, 9], strides = [1, 1, 1]} : vector<34x32x9xf32> to vector<32x32x9xf32>
    %10 = vector.shape_cast %9 : vector<32x32x9xf32> to vector<1024x9xf32>
    %11 = vector.extract_strided_slice %8 {offsets = [1, 0, 0], sizes = [32, 32, 9], strides = [1, 1, 1]} : vector<34x32x9xf32> to vector<32x32x9xf32>
    %12 = vector.shape_cast %11 : vector<32x32x9xf32> to vector<1024x9xf32>
    %13 = vector.extract_strided_slice %8 {offsets = [2, 0, 0], sizes = [32, 32, 9], strides = [1, 1, 1]} : vector<34x32x9xf32> to vector<32x32x9xf32>
    %14 = vector.shape_cast %13 : vector<32x32x9xf32> to vector<1024x9xf32>
    %15 = tpu.concatenate %10, %12, %14 in 1 : vector<1024x9xf32>, vector<1024x9xf32>, vector<1024x9xf32> -> vector<1024x27xf32>
    %c0_16 = arith.constant 0 : index
    %c0_17 = arith.constant 0 : index
    %16 = vector.load %arg2[%c0_16, %c0_17] : memref<27x32xf32, #tpu.memory_space<vmem>>, vector<27x32xf32>
    %cst_18 = arith.constant dense<0.000000e+00> : vector<1024x32xf32>
    %17 = tpu.matmul %15, %16, %cst_18 {dimension_numbers = #tpu.dot_dimension_numbers<[1], [0], [0], [1], [0, 0, 1, 1], [], []>} : vector<1024x27xf32>, vector<27x32xf32>, vector<1024x32xf32> -> vector<1024x32xf32>
    %c0_19 = arith.constant 0 : index
    %c0_20 = arith.constant 0 : index
    %18 = vector.load %arg3[%c0_19, %c0_20] : memref<1x32xf32, #tpu.memory_space<vmem>>, vector<1x32xf32>
    %19 = vector.broadcast %18 : vector<1x32xf32> to vector<1024x32xf32>
    %20 = arith.addf %17, %19 : vector<1024x32xf32>
    %cst_21 = arith.constant 0.000000e+00 : f32
    %21 = vector.broadcast %cst_21 : f32 to vector<1024x32xf32>
    %22 = arith.maximumf %20, %21 : vector<1024x32xf32>
    %c0_22 = arith.constant 0 : index
    %c0_23 = arith.constant 0 : index
    %23 = vector.load %arg8[%c0_22, %c0_23] : memref<1024x32xf32, #tpu.memory_space<vmem>>, vector<1024x32xf32>
    tpu.vector_store %arg8[%c0_22, %c0_23], %22 {strides = array<i32>} : memref<1024x32xf32, #tpu.memory_space<vmem>>, vector<1024x32xf32>,
    %c0_24 = arith.constant 0 : index
    %c0_25 = arith.constant 0 : index
    %24 = tpu.strided_load %arg8[%c0_24, %c0_25] {strides = array<i32: 2, 1>} : memref<1024x32xf32, #tpu.memory_space<vmem>>, vector<512x32xf32>
    %c1_26 = arith.constant 1 : index
    %c0_27 = arith.constant 0 : index
    %25 = tpu.strided_load %arg8[%c1_26, %c0_27] {strides = array<i32: 2, 1>} : memref<1024x32xf32, #tpu.memory_space<vmem>>, vector<512x32xf32>
    %26 = arith.maximumf %24, %25 : vector<512x32xf32>
    %27 = vector.shape_cast %26 : vector<512x32xf32> to vector<16x2x16x32xf32>
    %cst_28 = arith.constant dense<0xFF800000> : vector<16x16x32xf32>
    %28 = vector.multi_reduction <maximumf>, %27, %cst_28 [1] : vector<16x2x16x32xf32> to vector<16x16x32xf32>
    %cst_29 = arith.constant 0.000000e+00 : f32
    %29 = vector.broadcast %cst_29 : f32 to vector<18x18x32xf32>
    %c0_30 = arith.constant 0 : index
    %c0_31 = arith.constant 0 : index
    %c0_32 = arith.constant 0 : index
    %30 = vector.load %arg9[%c0_30, %c0_31, %c0_32] : memref<18x18x32xf32, #tpu.memory_space<vmem>>, vector<18x18x32xf32>
    tpu.vector_store %arg9[%c0_30, %c0_31, %c0_32], %29 {strides = array<i32>} : memref<18x18x32xf32, #tpu.memory_space<vmem>>, vector<18x18x32xf32>,
    %c1_33 = arith.constant 1 : index
    %c1_34 = arith.constant 1 : index
    %c0_35 = arith.constant 0 : index
    %31 = vector.load %arg9[%c1_33, %c1_34, %c0_35] : memref<18x18x32xf32, #tpu.memory_space<vmem>>, vector<16x16x32xf32>
    tpu.vector_store %arg9[%c1_33, %c1_34, %c0_35], %28 {strides = array<i32>} : memref<18x18x32xf32, #tpu.memory_space<vmem>>, vector<16x16x32xf32>,
    %c0_36 = arith.constant 0 : index
    %c0_37 = arith.constant 0 : index
    %c0_38 = arith.constant 0 : index
    %32 = vector.load %arg9[%c0_36, %c0_37, %c0_38] : memref<18x18x32xf32, #tpu.memory_space<vmem>>, vector<18x16x32xf32>
    %c0_39 = arith.constant 0 : index
    %c1_40 = arith.constant 1 : index
    %c0_41 = arith.constant 0 : index
    %33 = vector.load %arg9[%c0_39, %c1_40, %c0_41] : memref<18x18x32xf32, #tpu.memory_space<vmem>>, vector<18x16x32xf32>
    %c0_42 = arith.constant 0 : index
    %c2_43 = arith.constant 2 : index
    %c0_44 = arith.constant 0 : index
    %34 = vector.load %arg9[%c0_42, %c2_43, %c0_44] : memref<18x18x32xf32, #tpu.memory_space<vmem>>, vector<18x16x32xf32>
    %35 = tpu.concatenate %32, %33, %34 in 2 : vector<18x16x32xf32>, vector<18x16x32xf32>, vector<18x16x32xf32> -> vector<18x16x96xf32>
    %36 = vector.extract_strided_slice %35 {offsets = [0, 0, 0], sizes = [16, 16, 96], strides = [1, 1, 1]} : vector<18x16x96xf32> to vector<16x16x96xf32>
    %37 = vector.shape_cast %36 : vector<16x16x96xf32> to vector<256x96xf32>
    %38 = vector.extract_strided_slice %35 {offsets = [1, 0, 0], sizes = [16, 16, 96], strides = [1, 1, 1]} : vector<18x16x96xf32> to vector<16x16x96xf32>
    %39 = vector.shape_cast %38 : vector<16x16x96xf32> to vector<256x96xf32>
    %40 = vector.extract_strided_slice %35 {offsets = [2, 0, 0], sizes = [16, 16, 96], strides = [1, 1, 1]} : vector<18x16x96xf32> to vector<16x16x96xf32>
    %41 = vector.shape_cast %40 : vector<16x16x96xf32> to vector<256x96xf32>
    %42 = tpu.concatenate %37, %39, %41 in 1 : vector<256x96xf32>, vector<256x96xf32>, vector<256x96xf32> -> vector<256x288xf32>
    %c0_45 = arith.constant 0 : index
    %c0_46 = arith.constant 0 : index
    %43 = vector.load %arg4[%c0_45, %c0_46] : memref<288x64xf32, #tpu.memory_space<vmem>>, vector<288x64xf32>
    %cst_47 = arith.constant dense<0.000000e+00> : vector<256x64xf32>
    %44 = tpu.matmul %42, %43, %cst_47 {dimension_numbers = #tpu.dot_dimension_numbers<[1], [0], [0], [1], [0, 0, 1, 1], [], []>} : vector<256x288xf32>, vector<288x64xf32>, vector<256x64xf32> -> vector<256x64xf32>
    %c0_48 = arith.constant 0 : index
    %c0_49 = arith.constant 0 : index
    %45 = vector.load %arg5[%c0_48, %c0_49] : memref<1x64xf32, #tpu.memory_space<vmem>>, vector<1x64xf32>
    %46 = vector.broadcast %45 : vector<1x64xf32> to vector<256x64xf32>
    %47 = arith.addf %44, %46 : vector<256x64xf32>
    %cst_50 = arith.constant 0.000000e+00 : f32
    %48 = vector.broadcast %cst_50 : f32 to vector<256x64xf32>
    %49 = arith.maximumf %47, %48 : vector<256x64xf32>
    %c0_51 = arith.constant 0 : index
    %c0_52 = arith.constant 0 : index
    %50 = vector.load %arg10[%c0_51, %c0_52] : memref<256x64xf32, #tpu.memory_space<vmem>>, vector<256x64xf32>
    tpu.vector_store %arg10[%c0_51, %c0_52], %49 {strides = array<i32>} : memref<256x64xf32, #tpu.memory_space<vmem>>, vector<256x64xf32>,
    %c0_53 = arith.constant 0 : index
    %c0_54 = arith.constant 0 : index
    %51 = tpu.strided_load %arg10[%c0_53, %c0_54] {strides = array<i32: 4, 1>} : memref<256x64xf32, #tpu.memory_space<vmem>>, vector<64x64xf32>
    %c1_55 = arith.constant 1 : index
    %c0_56 = arith.constant 0 : index
    %52 = tpu.strided_load %arg10[%c1_55, %c0_56] {strides = array<i32: 4, 1>} : memref<256x64xf32, #tpu.memory_space<vmem>>, vector<64x64xf32>
    %53 = arith.maximumf %51, %52 : vector<64x64xf32>
    %c2_57 = arith.constant 2 : index
    %c0_58 = arith.constant 0 : index
    %54 = tpu.strided_load %arg10[%c2_57, %c0_58] {strides = array<i32: 4, 1>} : memref<256x64xf32, #tpu.memory_space<vmem>>, vector<64x64xf32>
    %c3 = arith.constant 3 : index
    %c0_59 = arith.constant 0 : index
    %55 = tpu.strided_load %arg10[%c3, %c0_59] {strides = array<i32: 4, 1>} : memref<256x64xf32, #tpu.memory_space<vmem>>, vector<64x64xf32>
    %56 = arith.maximumf %54, %55 : vector<64x64xf32>
    %57 = vector.shape_cast %53 : vector<64x64xf32> to vector<8x2x4x64xf32>
    %cst_60 = arith.constant dense<0xFF800000> : vector<8x4x64xf32>
    %58 = vector.multi_reduction <maximumf>, %57, %cst_60 [1] : vector<8x2x4x64xf32> to vector<8x4x64xf32>
    %59 = vector.shape_cast %56 : vector<64x64xf32> to vector<8x2x4x64xf32>
    %cst_61 = arith.constant dense<0xFF800000> : vector<8x4x64xf32>
    %60 = vector.multi_reduction <maximumf>, %59, %cst_61 [1] : vector<8x2x4x64xf32> to vector<8x4x64xf32>
    %61 = tpu.concatenate %58, %60 in 2 : vector<8x4x64xf32>, vector<8x4x64xf32> -> vector<8x4x128xf32>
    %c0_62 = arith.constant 0 : index
    %c0_63 = arith.constant 0 : index
    %c0_64 = arith.constant 0 : index
    %c0_65 = arith.constant 0 : index
    %62 = vector.load %arg6[%c0_62, %c0_63, %c0_64, %c0_65] : memref<1x8x4x128xf32, #tpu.memory_space<vmem>>, vector<1x8x4x128xf32>
    %63 = vector.shape_cast %62 : vector<1x8x4x128xf32> to vector<8x4x128xf32>
    %64 = vector.shape_cast %61 : vector<8x4x128xf32> to vector<1x8x4x128xf32>
    tpu.vector_store %arg6[%c0_62, %c0_63, %c0_64, %c0_65], %64 {strides = array<i32>} : memref<1x8x4x128xf32, #tpu.memory_space<vmem>>, vector<1x8x4x128xf32>,
    return
  }
  func.func @transform_0(%arg0: i32) -> (i32, i32, i32, i32) {
    %c0_i32 = arith.constant 0 : i32
    %c0_i32_0 = arith.constant 0 : i32
    %c0_i32_1 = arith.constant 0 : i32
    %c0_i32_2 = arith.constant 0 : i32
    return %arg0, %c0_i32, %c0_i32_0, %c0_i32_1 : i32, i32, i32, i32
  }
  func.func @transform_1(%arg0: i32) -> (i32, i32) {
    %c0_i32 = arith.constant 0 : i32
    %c0_i32_0 = arith.constant 0 : i32
    %c0_i32_1 = arith.constant 0 : i32
    return %c0_i32, %c0_i32_0 : i32, i32
  }
  func.func @transform_2(%arg0: i32) -> (i32, i32) {
    %c0_i32 = arith.constant 0 : i32
    %c0_i32_0 = arith.constant 0 : i32
    %c0_i32_1 = arith.constant 0 : i32
    return %c0_i32, %c0_i32_0 : i32, i32
  }
  func.func @transform_3(%arg0: i32) -> (i32, i32) {
    %c0_i32 = arith.constant 0 : i32
    %c0_i32_0 = arith.constant 0 : i32
    %c0_i32_1 = arith.constant 0 : i32
    return %c0_i32, %c0_i32_0 : i32, i32
  }
  func.func @transform_4(%arg0: i32) -> (i32, i32) {
    %c0_i32 = arith.constant 0 : i32
    %c0_i32_0 = arith.constant 0 : i32
    %c0_i32_1 = arith.constant 0 : i32
    return %c0_i32, %c0_i32_0 : i32, i32
  }
  func.func @transform_5(%arg0: i32) -> (i32, i32, i32, i32) {
    %c0_i32 = arith.constant 0 : i32
    %c0_i32_0 = arith.constant 0 : i32
    %c0_i32_1 = arith.constant 0 : i32
    %c0_i32_2 = arith.constant 0 : i32
    return %arg0, %c0_i32, %c0_i32_0, %c0_i32_1 : i32, i32, i32, i32
  }
}

module attributes {stable_mosaic.version = 11 : i64} {
  func.func @mlp_kernel(%arg0: i32, %arg1: memref<2x4096xf32, #tpu.memory_space<vmem>>, %arg2: memref<4096x128xf32, #tpu.memory_space<vmem>>, %arg3: memref<1x128xf32, #tpu.memory_space<vmem>>, %arg4: memref<128x10xf32, #tpu.memory_space<vmem>>, %arg5: memref<1x10xf32, #tpu.memory_space<vmem>>, %arg6: memref<2x10xf32, #tpu.memory_space<vmem>>) attributes {dimension_semantics = [#tpu.dimension_semantics<arbitrary>], iteration_bounds = array<i64: 1>, scalar_prefetch = 0 : i64, scratch_operands = 0 : i64, tpu.core_type = #tpu.core_type<tc>, window_params = [{pipeline_mode = #tpu.pipeline_mode<synchronous>, transform_indices = @transform_0, window_bounds = array<i64: 2, 4096>}, {pipeline_mode = #tpu.pipeline_mode<synchronous>, transform_indices = @transform_1, window_bounds = array<i64: 4096, 128>}, {pipeline_mode = #tpu.pipeline_mode<synchronous>, transform_indices = @transform_2, window_bounds = array<i64: 1, 128>}, {pipeline_mode = #tpu.pipeline_mode<synchronous>, transform_indices = @transform_3, window_bounds = array<i64: 128, 10>}, {pipeline_mode = #tpu.pipeline_mode<synchronous>, transform_indices = @transform_4, window_bounds = array<i64: 1, 10>}, {pipeline_mode = #tpu.pipeline_mode<synchronous>, transform_indices = @transform_5, window_bounds = array<i64: 2, 10>}]} {
    %c0 = arith.constant 0 : index
    %c0_0 = arith.constant 0 : index
    %0 = vector.load %arg1[%c0, %c0_0] : memref<2x4096xf32, #tpu.memory_space<vmem>>, vector<2x4096xf32>
    %c0_1 = arith.constant 0 : index
    %c0_2 = arith.constant 0 : index
    %1 = vector.load %arg2[%c0_1, %c0_2] : memref<4096x128xf32, #tpu.memory_space<vmem>>, vector<4096x128xf32>
    %cst = arith.constant dense<0.000000e+00> : vector<2x128xf32>
    %2 = tpu.matmul %0, %1, %cst {dimension_numbers = #tpu.dot_dimension_numbers<[1], [0], [0], [1], [0, 0, 1, 1], [], []>} : vector<2x4096xf32>, vector<4096x128xf32>, vector<2x128xf32> -> vector<2x128xf32>
    %c0_3 = arith.constant 0 : index
    %c0_4 = arith.constant 0 : index
    %3 = vector.load %arg3[%c0_3, %c0_4] : memref<1x128xf32, #tpu.memory_space<vmem>>, vector<1x128xf32>
    %4 = vector.broadcast %3 : vector<1x128xf32> to vector<2x128xf32>
    %5 = arith.addf %2, %4 : vector<2x128xf32>
    %cst_5 = arith.constant 0.000000e+00 : f32
    %6 = vector.broadcast %cst_5 : f32 to vector<2x128xf32>
    %7 = arith.maximumf %5, %6 : vector<2x128xf32>
    %c0_6 = arith.constant 0 : index
    %c0_7 = arith.constant 0 : index
    %8 = vector.load %arg4[%c0_6, %c0_7] : memref<128x10xf32, #tpu.memory_space<vmem>>, vector<128x10xf32>
    %cst_8 = arith.constant dense<0.000000e+00> : vector<2x10xf32>
    %9 = tpu.matmul %7, %8, %cst_8 {dimension_numbers = #tpu.dot_dimension_numbers<[1], [0], [0], [1], [0, 0, 1, 1], [], []>} : vector<2x128xf32>, vector<128x10xf32>, vector<2x10xf32> -> vector<2x10xf32>
    %c0_9 = arith.constant 0 : index
    %c0_10 = arith.constant 0 : index
    %10 = vector.load %arg5[%c0_9, %c0_10] : memref<1x10xf32, #tpu.memory_space<vmem>>, vector<1x10xf32>
    %11 = vector.broadcast %10 : vector<1x10xf32> to vector<2x10xf32>
    %12 = arith.addf %9, %11 : vector<2x10xf32>
    %c0_11 = arith.constant 0 : index
    %c0_12 = arith.constant 0 : index
    %13 = vector.load %arg6[%c0_11, %c0_12] : memref<2x10xf32, #tpu.memory_space<vmem>>, vector<2x10xf32>
    tpu.vector_store %arg6[%c0_11, %c0_12], %12 {strides = array<i32>} : memref<2x10xf32, #tpu.memory_space<vmem>>, vector<2x10xf32>,
    return
  }
  func.func @transform_0(%arg0: i32) -> (i32, i32) {
    %c0_i32 = arith.constant 0 : i32
    %c0_i32_0 = arith.constant 0 : i32
    %c0_i32_1 = arith.constant 0 : i32
    return %c0_i32, %c0_i32_0 : i32, i32
  }
  func.func @transform_1(%arg0: i32) -> (i32, i32) {
    %c0_i32 = arith.constant 0 : i32
    %c0_i32_0 = arith.constant 0 : i32
    %c0_i32_1 = arith.constant 0 : i32
    return %c0_i32, %c0_i32_0 : i32, i32
  }
  func.func @transform_2(%arg0: i32) -> (i32, i32) {
    %c0_i32 = arith.constant 0 : i32
    %c0_i32_0 = arith.constant 0 : i32
    %c0_i32_1 = arith.constant 0 : i32
    return %c0_i32, %c0_i32_0 : i32, i32
  }
  func.func @transform_3(%arg0: i32) -> (i32, i32) {
    %c0_i32 = arith.constant 0 : i32
    %c0_i32_0 = arith.constant 0 : i32
    %c0_i32_1 = arith.constant 0 : i32
    return %c0_i32, %c0_i32_0 : i32, i32
  }
  func.func @transform_4(%arg0: i32) -> (i32, i32) {
    %c0_i32 = arith.constant 0 : i32
    %c0_i32_0 = arith.constant 0 : i32
    %c0_i32_1 = arith.constant 0 : i32
    return %c0_i32, %c0_i32_0 : i32, i32
  }
  func.func @transform_5(%arg0: i32) -> (i32, i32) {
    %c0_i32 = arith.constant 0 : i32
    %c0_i32_0 = arith.constant 0 : i32
    %c0_i32_1 = arith.constant 0 : i32
    return %c0_i32, %c0_i32_0 : i32, i32
  }
}

</mosaic_0001>

<bundles_post_ra>
// kernel: neural_net_forward.3
= control target key start
LH: loop header
LB: loop body
LE: loop exit
PB: predicated region body
PF: predicated region fallthrough
CT: control target
= control target key end

     0   :  { %v2602_v30 = vmov 1983009808   ;;  %v560_v32 = vlaneseq  ;;  %s4271_s0 = inlined_call_operand.vmem [shape: f32[2,4096], index: 0, kind: input, shape index: {}]   ;;  %s4272_s1 = inlined_call_operand.vmem [shape: f32[4096,128], index: 1, kind: input, shape index: {}]   ;;  %s4273_s2 = inlined_call_operand.vmem [shape: f32[1,128], index: 2, kind: input, shape index: {}]   ;;  %s4274_s3 = inlined_call_operand.vmem [shape: f32[128,10], index: 3, kind: input, shape index: {}]   ;;  %s4275_s4 = inlined_call_operand.vmem [shape: f32[1,10], index: 4, kind: input, shape index: {}]   ;;  %s4276_s5 = inlined_call_operand.hbm [shape: f32[2,10], index: 5, kind: output, shape index: {}]  }
   0x1   :  { %v60_v0 = vld [vmem:[%s4272_s1 + $0xf8] sm:$0xff]  ;;  %v59_v4 = vld [vmem:[%s4272_s1 + $0xf0] sm:$0xff]  ;;  %v58_v8 = vld [vmem:[%s4272_s1 + $0xe8] sm:$0xff]  ;;  %v558_v31 = vunpack.c.l.s4 %v2602_v30 }
   0x2   :  { %v92_v1 = vld [vmem:[%s4272_s1 + $0x1f8] sm:$0xff]  ;;  %1956 = vmatprep.subr.mxu0 %v60_v0  ;;  %v91_v5 = vld [vmem:[%s4272_s1 + $0x1f0] sm:$0xff]  ;;  %v90_v9 = vld [vmem:[%s4272_s1 + $0x1e8] sm:$0xff]  ;;  %v561_v42 = vshrl.u32 %v560_v32, 7 }
   0x3   :  { %v44_v2 = vld [vmem:[%s4272_s1 + $0x78] sm:$0xff]  ;;  %1991 = vmatprep.subr.mxu1 %v92_v1  ;;  %v43_v6 = vld [vmem:[%s4272_s1 + $0x70] sm:$0xff]  ;;  %v42_v10 = vld [vmem:[%s4272_s1 + $0x68] sm:$0xff]  ;;  %v559_v41 = vunpack.c.0.s8 %v558_v31 }
   0x4   :  { %v76_v3 = vld [vmem:[%s4272_s1 + $0x178] sm:$0xff]  ;;  %1957 = vmatpush3.msra.mxu0 %v44_v2  ;;  %v75_v7 = vld [vmem:[%s4272_s1 + $0x170] sm:$0xff]  ;;  %v74_v11 = vld [vmem:[%s4272_s1 + $0x168] sm:$0xff] }
   0x5   :  { %1992 = vmatpush3.msra.mxu1 %v76_v3  ;;  %1958 = vmatprep.subr.mxu0 %v59_v4  ;;  %v57_v12 = vld [vmem:[%s4272_s1 + $0xe0] sm:$0xff]  ;;  %v56_v16 = vld [vmem:[%s4272_s1 + $0xd8] sm:$0xff]  ;;  %v55_v20 = vld [vmem:[%s4272_s1 + $0xd0] sm:$0xff]  ;;  %v2774_v51 = vsub.s32 %v559_v41, %v561_v42 }
   0x6   :  { %1993 = vmatprep.subr.mxu1 %v91_v5  ;;  %1959 = vmatpush3.msra.mxu0 %v43_v6  ;;  %v89_v13 = vld [vmem:[%s4272_s1 + $0x1e0] sm:$0xff]  ;;  %v88_v17 = vld [vmem:[%s4272_s1 + $0x1d8] sm:$0xff]  ;;  %v87_v21 = vld [vmem:[%s4272_s1 + $0x1d0] sm:$0xff] }
   0x7   :  { %1994 = vmatpush3.msra.mxu1 %v75_v7  ;;  %1960 = vmatprep.subr.mxu0 %v58_v8  ;;  %v41_v14 = vld [vmem:[%s4272_s1 + $0x60] sm:$0xff]  ;;  %v40_v18 = vld [vmem:[%s4272_s1 + $0x58] sm:$0xff]  ;;  %v39_v22 = vld [vmem:[%s4272_s1 + $0x50] sm:$0xff] }
   0x8   :  { %1995 = vmatprep.subr.mxu1 %v90_v9  ;;  %v73_v15 = vld [vmem:[%s4272_s1 + $0x160] sm:$0xff]  ;;  %1961 = vmatpush3.msra.mxu0 %v42_v10  ;;  %v72_v19 = vld [vmem:[%s4272_s1 + $0x158] sm:$0xff]  ;;  %v71_v23 = vld [vmem:[%s4272_s1 + $0x150] sm:$0xff] }
   0x9   :  { %1996 = vmatpush3.msra.mxu1 %v74_v11  ;;  %1962 = vmatprep.subr.mxu0 %v57_v12  ;;  %v54_v24 = vld [vmem:[%s4272_s1 + $0xc8] sm:$0xff]  ;;  %v53_v28 = vld [vmem:[%s4272_s1 + $0xc0] sm:$0xff]  ;;  %v52_v35 = vld [vmem:[%s4272_s1 + $0xb8] sm:$0xff] }
   0xa   :  { %1997 = vmatprep.subr.mxu1 %v89_v13  ;;  %1963 = vmatpush3.msra.mxu0 %v41_v14  ;;  %v86_v25 = vld [vmem:[%s4272_s1 + $0x1c8] sm:$0xff]  ;;  %v85_v29 = vld [vmem:[%s4272_s1 + $0x1c0] sm:$0xff]  ;;  %v84_v36 = vld [vmem:[%s4272_s1 + $0x1b8] sm:$0xff] }
   0xb   :  { %1998 = vmatpush3.msra.mxu1 %v73_v15  ;;  %1964 = vmatprep.subr.mxu0 %v56_v16  ;;  %v38_v26 = vld [vmem:[%s4272_s1 + $0x48] sm:$0xff]  ;;  %v37_v33 = vld [vmem:[%s4272_s1 + $0x40] sm:$0xff]  ;;  %v36_v37 = vld [vmem:[%s4272_s1 + $0x38] sm:$0xff] }
   0xc   :  { %1999 = vmatprep.subr.mxu1 %v88_v17  ;;  %1965 = vmatpush3.msra.mxu0 %v40_v18  ;;  %v70_v27 = vld [vmem:[%s4272_s1 + $0x148] sm:$0xff]  ;;  %v69_v34 = vld [vmem:[%s4272_s1 + $0x140] sm:$0xff]  ;;  %v68_v38 = vld [vmem:[%s4272_s1 + $0x138] sm:$0xff] }
   0xd   :  { %2000 = vmatpush3.msra.mxu1 %v72_v19  ;;  %1966 = vmatprep.subr.mxu0 %v55_v20  ;;  %v51_v39 = vld [vmem:[%s4272_s1 + $0xb0] sm:$0xff]  ;;  %v50_v45 = vld [vmem:[%s4272_s1 + $0xa8] sm:$0xff]  ;;  %v49_v49 = vld [vmem:[%s4272_s1 + $0xa0] sm:$0xff] }
   0xe   :  { %2001 = vmatprep.subr.mxu1 %v87_v21  ;;  %1967 = vmatpush3.msra.mxu0 %v39_v22  ;;  %v83_v40 = vld [vmem:[%s4272_s1 + $0x1b0] sm:$0xff]  ;;  %v82_v46 = vld [vmem:[%s4272_s1 + $0x1a8] sm:$0xff]  ;;  %v81_v50 = vld [vmem:[%s4272_s1 + $0x1a0] sm:$0xff] }
   0xf   :  { %2002 = vmatpush3.msra.mxu1 %v71_v23  ;;  %1968 = vmatprep.subr.mxu0 %v54_v24  ;;  %v35_v43 = vld [vmem:[%s4272_s1 + $0x30] sm:$0xff]  ;;  %v34_v47 = vld [vmem:[%s4272_s1 + $0x28] sm:$0xff]  ;;  %v33_v52 = vld [vmem:[%s4272_s1 + $0x20] sm:$0xff] }
  0x10   :  { %2003 = vmatprep.subr.mxu1 %v86_v25  ;;  %1969 = vmatpush3.msra.mxu0 %v38_v26  ;;  %v67_v44 = vld [vmem:[%s4272_s1 + $0x130] sm:$0xff]  ;;  %v66_v48 = vld [vmem:[%s4272_s1 + $0x128] sm:$0xff]  ;;  %v65_v53 = vld [vmem:[%s4272_s1 + $0x120] sm:$0xff] }
  0x11   :  { %2004 = vmatpush3.msra.mxu1 %v70_v27  ;;  %1970 = vmatprep.subr.mxu0 %v53_v28  ;;  %v21_v54 = vld [vmem:[%s4271_s0] sm:$0xff]  ;;  %v48_v55 = vld [vmem:[%s4272_s1 + $0x98] sm:$0xff]  ;;  %v47_v60 = vld [vmem:[%s4272_s1 + $0x90] sm:$0xff] }
  0x12   :  { %2005 = vmatprep.subr.mxu1 %v85_v29  ;;  %1971 = vmatpush3.msra.mxu0 %v37_v33  ;;  %v80_v56 = vld [vmem:[%s4272_s1 + $0x198] sm:$0xff]  ;;  %v556_v57 = vcombine.high %v21_v54, %v21_v54  ;;  %v79_v61 = vld [vmem:[%s4272_s1 + $0x190] sm:$0xff]  ;;  %v563_v62 = vrot.slane %v21_v54, %v2774_v51  ;;  %v46_v1 = vld [vmem:[%s4272_s1 + $0x88] sm:$0xff] }
  0x13   :  { %2006 = vmatpush3.msra.mxu1 %v69_v34  ;;  %1972 = vmatprep.subr.mxu0 %v52_v35  ;;  %v32_v58 = vld [vmem:[%s4272_s1 + $0x18] sm:$0xff]  ;;  %v31_v63 = vld [vmem:[%s4272_s1 + $0x10] sm:$0xff]  ;;  %v78_v2 = vld [vmem:[%s4272_s1 + $0x188] sm:$0xff] }
  0x14   :  { %2007 = vmatprep.subr.mxu1 %v84_v36  ;;  %1973 = vmatpush3.msra.mxu0 %v36_v37  ;;  %v64_v59 = vld [vmem:[%s4272_s1 + $0x118] sm:$0xff]  ;;  %v63_v0 = vld [vmem:[%s4272_s1 + $0x110] sm:$0xff]  ;;  %v570_v3 = vrot.slane %v556_v57, %v2774_v51  ;;  %v30_v4 = vld [vmem:[%s4272_s1 + $0x8] sm:$0xff]  ;;  %v571_v8 = vcombine.high %v563_v62, %v563_v62 }
  0x15   :  { %2008 = vmatpush3.msra.mxu1 %v68_v38  ;;  %1974 = vmatprep.subr.mxu0 %v51_v39  ;;  %v62_v5 = vld [vmem:[%s4272_s1 + $0x108] sm:$0xff]  ;;  %v45_v6 = vld [vmem:[%s4272_s1 + $0x80] sm:$0xff]  ;;  %v124_v12 = vld [vmem:[%s4272_s1 + $0x2f8] sm:$0xff] }
  0x16   :  { %2009 = vmatprep.subr.mxu1 %v83_v40  ;;  %1975 = vmatpush3.msra.mxu0 %v35_v43  ;;  %v77_v7 = vld [vmem:[%s4272_s1 + $0x180] sm:$0xff]  ;;  %v572_v11 = vcombine.high %v570_v3, %v570_v3  ;;  %v156_v13 = vld [vmem:[%s4272_s1 + $0x3f8] sm:$0xff]  ;;  %v123_v16 = vld [vmem:[%s4272_s1 + $0x2f0] sm:$0xff] }
  0x17   :  { %2010 = vmatpush3.msra.mxu1 %v67_v44  ;;  %1976 = vmatprep.subr.mxu0 %v50_v45  ;;  %v29_v9 = vld [vmem:[%s4272_s1] sm:$0xff]  ;;  %v108_v14 = vld [vmem:[%s4272_s1 + $0x278] sm:$0xff]  ;;  %v155_v17 = vld [vmem:[%s4272_s1 + $0x3f0] sm:$0xff] }
  0x18   :  { %2011 = vmatprep.subr.mxu1 %v82_v46  ;;  %1977 = vmatpush3.msra.mxu0 %v34_v47  ;;  %v61_v10 = vld [vmem:[%s4272_s1 + $0x100] sm:$0xff]  ;;  %v140_v15 = vld [vmem:[%s4272_s1 + $0x378] sm:$0xff]  ;;  %v107_v18 = vld [vmem:[%s4272_s1 + $0x270] sm:$0xff] }
  0x19   :  { %2012 = vmatpush3.msra.mxu1 %v66_v48  ;;  %1978 = vmatprep.subr.mxu0 %v49_v49  ;;  %v139_v19 = vld [vmem:[%s4272_s1 + $0x370] sm:$0xff]  ;;  %v122_v20 = vld [vmem:[%s4272_s1 + $0x2e8] sm:$0xff]  ;;  %v121_v24 = vld [vmem:[%s4272_s1 + $0x2e0] sm:$0xff] }
  0x1a   :  { %2013 = vmatprep.subr.mxu1 %v81_v50  ;;  %1979 = vmatpush3.msra.mxu0 %v33_v52  ;;  %v154_v21 = vld [vmem:[%s4272_s1 + $0x3e8] sm:$0xff]  ;;  %v153_v25 = vld [vmem:[%s4272_s1 + $0x3e0] sm:$0xff]  ;;  %v120_v28 = vld [vmem:[%s4272_s1 + $0x2d8] sm:$0xff] }
  0x1b   :  { %2014 = vmatpush3.msra.mxu1 %v65_v53  ;;  %1980 = vmatprep.subr.mxu0 %v48_v55  ;;  %v106_v22 = vld [vmem:[%s4272_s1 + $0x268] sm:$0xff]  ;;  %v105_v26 = vld [vmem:[%s4272_s1 + $0x260] sm:$0xff]  ;;  %v152_v29 = vld [vmem:[%s4272_s1 + $0x3d8] sm:$0xff] }
  0x1c   :  { %2015 = vmatprep.subr.mxu1 %v80_v56  ;;  %1981 = vmatpush3.msra.mxu0 %v32_v58  ;;  %v138_v23 = vld [vmem:[%s4272_s1 + $0x368] sm:$0xff]  ;;  %v137_v27 = vld [vmem:[%s4272_s1 + $0x360] sm:$0xff]  ;;  %v104_v30 = vld [vmem:[%s4272_s1 + $0x258] sm:$0xff] }
  0x1d   :  { %2016 = vmatpush3.msra.mxu1 %v64_v59  ;;  %1982 = vmatprep.subr.mxu0 %v47_v60  ;;  %v136_v31 = vld [vmem:[%s4272_s1 + $0x358] sm:$0xff]  ;;  %v119_v32 = vld [vmem:[%s4272_s1 + $0x2d0] sm:$0xff]  ;;  %v118_v36 = vld [vmem:[%s4272_s1 + $0x2c8] sm:$0xff] }
  0x1e   :  { %2017 = vmatprep.subr.mxu1 %v79_v61  ;;  %1983 = vmatpush3.msra.mxu0 %v31_v63  ;;  %v151_v33 = vld [vmem:[%s4272_s1 + $0x3d0] sm:$0xff]  ;;  %v150_v37 = vld [vmem:[%s4272_s1 + $0x3c8] sm:$0xff]  ;;  %v117_v40 = vld [vmem:[%s4272_s1 + $0x2c0] sm:$0xff] }
  0x1f   :  { %2018 = vmatpush3.msra.mxu1 %v63_v0  ;;  %1984 = vmatprep.subr.mxu0 %v46_v1  ;;  %v103_v34 = vld [vmem:[%s4272_s1 + $0x250] sm:$0xff]  ;;  %v102_v38 = vld [vmem:[%s4272_s1 + $0x248] sm:$0xff]  ;;  %v149_v41 = vld [vmem:[%s4272_s1 + $0x3c0] sm:$0xff] }
  0x20   :  { %2019 = vmatprep.subr.mxu1 %v78_v2  ;;  %1985 = vmatpush3.msra.mxu0 %v30_v4  ;;  %v135_v35 = vld [vmem:[%s4272_s1 + $0x350] sm:$0xff]  ;;  %v134_v39 = vld [vmem:[%s4272_s1 + $0x348] sm:$0xff]  ;;  %v101_v42 = vld [vmem:[%s4272_s1 + $0x240] sm:$0xff] }
  0x21   :  { %2020 = vmatpush3.msra.mxu1 %v62_v5  ;;  %1986 = vmatprep.subr.mxu0 %v45_v6  ;;  %v133_v43 = vld [vmem:[%s4272_s1 + $0x340] sm:$0xff]  ;;  %v116_v44 = vld [vmem:[%s4272_s1 + $0x2b8] sm:$0xff]  ;;  %v115_v48 = vld [vmem:[%s4272_s1 + $0x2b0] sm:$0xff] }
  0x22   :  { %2021 = vmatprep.subr.mxu1 %v77_v7  ;;  %1987 = vmatpush3.msra.mxu0 %v29_v9  ;;  %v148_v45 = vld [vmem:[%s4272_s1 + $0x3b8] sm:$0xff]  ;;  %v147_v49 = vld [vmem:[%s4272_s1 + $0x3b0] sm:$0xff]  ;;  %v114_v53 = vld [vmem:[%s4272_s1 + $0x2a8] sm:$0xff] }
  0x23   :  { %788 = vmatprep.mubr.f32.mxu0 %v571_v8  ;;  %2022 = vmatpush3.msra.mxu1 %v61_v10  ;;  %v100_v46 = vld [vmem:[%s4272_s1 + $0x238] sm:$0xff]  ;;  %v99_v50 = vld [vmem:[%s4272_s1 + $0x230] sm:$0xff]  ;;  %v146_v54 = vld [vmem:[%s4272_s1 + $0x3a8] sm:$0xff] }
  0x24   :  { %789 = vmatmul.mubr.f32.vlgmr.msra.gmra.mxu0 %v563_v62  ;;  %858 = vmatprep.mubr.f32.mxu1 %v572_v11  ;;  %v132_v47 = vld [vmem:[%s4272_s1 + $0x338] sm:$0xff]  ;;  %v131_v52 = vld [vmem:[%s4272_s1 + $0x330] sm:$0xff]  ;;  %v98_v55 = vld [vmem:[%s4272_s1 + $0x228] sm:$0xff] }
  0x25   :  { %2026 = vmatprep.subr.mxu0 %v124_v12  ;;  %2061 = vmatprep.subr.mxu1 %v156_v13  ;;  %v130_v56 = vld [vmem:[%s4272_s1 + $0x328] sm:$0xff]  ;;  %v113_v58 = vld [vmem:[%s4272_s1 + $0x2a0] sm:$0xff]  ;;  %v112_v62 = vld [vmem:[%s4272_s1 + $0x298] sm:$0xff] }
  0x26   :  { %859 = vmatmul.mubr.f32.vlgmr.msra.gmra.mxu1 %v570_v3  ;;  %2027 = vmatpush3.msra.mxu0 %v108_v14  ;;  %v22_v57 = vld [vmem:[%s4271_s0 + $0x8] sm:$0xff]  ;;  %v145_v59 = vld [vmem:[%s4272_s1 + $0x3a0] sm:$0xff]  ;;  %v144_v63 = vld [vmem:[%s4272_s1 + $0x398] sm:$0xff] }
  0x27   :  { %2062 = vmatpush3.msra.mxu1 %v140_v15  ;;  %2028 = vmatprep.subr.mxu0 %v123_v16  ;;  %v97_v60 = vld [vmem:[%s4272_s1 + $0x220] sm:$0xff]  ;;  %v573_v0 = vcombine.high %v22_v57, %v22_v57  ;;  %v96_v1 = vld [vmem:[%s4272_s1 + $0x218] sm:$0xff]  ;;  %v111_v3 = vld [vmem:[%s4272_s1 + $0x290] sm:$0xff]  ;;  %v580_v5 = vrot.slane %v22_v57, %v2774_v51 }
  0x28   :  { %2063 = vmatprep.subr.mxu1 %v155_v17  ;;  %2029 = vmatpush3.msra.mxu0 %v107_v18  ;;  %v129_v61 = vld [vmem:[%s4272_s1 + $0x320] sm:$0xff]  ;;  %v128_v2 = vld [vmem:[%s4272_s1 + $0x318] sm:$0xff]  ;;  %v143_v4 = vld [vmem:[%s4272_s1 + $0x390] sm:$0xff] }
  0x29   :  { %2064 = vmatpush3.msra.mxu1 %v139_v19  ;;  %2030 = vmatprep.subr.mxu0 %v122_v20  ;;  %v95_v6 = vld [vmem:[%s4272_s1 + $0x210] sm:$0xff]  ;;  %v110_v8 = vld [vmem:[%s4272_s1 + $0x288] sm:$0xff]  ;;  %v587_v10 = vrot.slane %v573_v0, %v2774_v51  ;;  %v109_v13 = vld [vmem:[%s4272_s1 + $0x280] sm:$0xff]  ;;  %v588_v15 = vcombine.high %v580_v5, %v580_v5 }
  0x2a   :  { %2065 = vmatprep.subr.mxu1 %v154_v21  ;;  %2031 = vmatpush3.msra.mxu0 %v106_v22  ;;  %v127_v7 = vld [vmem:[%s4272_s1 + $0x310] sm:$0xff]  ;;  %v142_v9 = vld [vmem:[%s4272_s1 + $0x388] sm:$0xff]  ;;  %v141_v14 = vld [vmem:[%s4272_s1 + $0x380] sm:$0xff] }
  0x2b   :  { %2066 = vmatpush3.msra.mxu1 %v138_v23  ;;  %2032 = vmatprep.subr.mxu0 %v121_v24  ;;  %v94_v11 = vld [vmem:[%s4272_s1 + $0x208] sm:$0xff]  ;;  %v93_v16 = vld [vmem:[%s4272_s1 + $0x200] sm:$0xff]  ;;  %v589_v18 = vcombine.high %v587_v10, %v587_v10  ;;  %v188_v19 = vld [vmem:[%s4272_s1 + $0x4f8] sm:$0xff] }
  0x2c   :  { %2067 = vmatprep.subr.mxu1 %v153_v25  ;;  %2033 = vmatpush3.msra.mxu0 %v105_v26  ;;  %v126_v12 = vld [vmem:[%s4272_s1 + $0x308] sm:$0xff]  ;;  %v125_v17 = vld [vmem:[%s4272_s1 + $0x300] sm:$0xff]  ;;  %v220_v20 = vld [vmem:[%s4272_s1 + $0x5f8] sm:$0xff] }
  0x2d   :  { %2068 = vmatpush3.msra.mxu1 %v137_v27  ;;  %2034 = vmatprep.subr.mxu0 %v120_v28  ;;  %v172_v21 = vld [vmem:[%s4272_s1 + $0x478] sm:$0xff]  ;;  %v187_v23 = vld [vmem:[%s4272_s1 + $0x4f0] sm:$0xff]  ;;  %v186_v27 = vld [vmem:[%s4272_s1 + $0x4e8] sm:$0xff] }
  0x2e   :  { %2069 = vmatprep.subr.mxu1 %v152_v29  ;;  %2035 = vmatpush3.msra.mxu0 %v104_v30  ;;  %v204_v22 = vld [vmem:[%s4272_s1 + $0x578] sm:$0xff]  ;;  %v219_v24 = vld [vmem:[%s4272_s1 + $0x5f0] sm:$0xff]  ;;  %v218_v28 = vld [vmem:[%s4272_s1 + $0x5e8] sm:$0xff] }
  0x2f   :  { %2070 = vmatpush3.msra.mxu1 %v136_v31  ;;  %2036 = vmatprep.subr.mxu0 %v119_v32  ;;  %v171_v25 = vld [vmem:[%s4272_s1 + $0x470] sm:$0xff]  ;;  %v170_v29 = vld [vmem:[%s4272_s1 + $0x468] sm:$0xff]  ;;  %v185_v31 = vld [vmem:[%s4272_s1 + $0x4e0] sm:$0xff] }
  0x30   :  { %2071 = vmatprep.subr.mxu1 %v151_v33  ;;  %2037 = vmatpush3.msra.mxu0 %v103_v34  ;;  %v203_v26 = vld [vmem:[%s4272_s1 + $0x570] sm:$0xff]  ;;  %v202_v30 = vld [vmem:[%s4272_s1 + $0x568] sm:$0xff]  ;;  %v217_v32 = vld [vmem:[%s4272_s1 + $0x5e0] sm:$0xff] }
  0x31   :  { %2072 = vmatpush3.msra.mxu1 %v135_v35  ;;  %2038 = vmatprep.subr.mxu0 %v118_v36  ;;  %v169_v33 = vld [vmem:[%s4272_s1 + $0x460] sm:$0xff]  ;;  %v184_v35 = vld [vmem:[%s4272_s1 + $0x4d8] sm:$0xff]  ;;  %v211_v57 = vld [vmem:[%s4272_s1 + $0x5b0] sm:$0xff] }
  0x32   :  { %2073 = vmatprep.subr.mxu1 %v150_v37  ;;  %2039 = vmatpush3.msra.mxu0 %v102_v38  ;;  %v201_v34 = vld [vmem:[%s4272_s1 + $0x560] sm:$0xff]  ;;  %v216_v36 = vld [vmem:[%s4272_s1 + $0x5d8] sm:$0xff]  ;;  %v23_v0 = vld [vmem:[%s4271_s0 + $0x10] sm:$0xff] }
  0x33   :  { %2074 = vmatpush3.msra.mxu1 %v134_v39  ;;  %2040 = vmatprep.subr.mxu0 %v117_v40  ;;  %v168_v37 = vld [vmem:[%s4272_s1 + $0x458] sm:$0xff]  ;;  %v183_v39 = vld [vmem:[%s4272_s1 + $0x4d0] sm:$0xff] }
  0x34   :  { %2075 = vmatprep.subr.mxu1 %v149_v41  ;;  %2041 = vmatpush3.msra.mxu0 %v101_v42  ;;  %v200_v38 = vld [vmem:[%s4272_s1 + $0x558] sm:$0xff]  ;;  %v215_v40 = vld [vmem:[%s4272_s1 + $0x5d0] sm:$0xff] }
  0x35   :  { %2076 = vmatpush3.msra.mxu1 %v133_v43  ;;  %2042 = vmatprep.subr.mxu0 %v116_v44  ;;  %v167_v41 = vld [vmem:[%s4272_s1 + $0x450] sm:$0xff]  ;;  %v182_v43 = vld [vmem:[%s4272_s1 + $0x4c8] sm:$0xff] }
  0x36   :  { %2077 = vmatprep.subr.mxu1 %v148_v45  ;;  %2043 = vmatpush3.msra.mxu0 %v100_v46  ;;  %v199_v42 = vld [vmem:[%s4272_s1 + $0x550] sm:$0xff]  ;;  %v214_v44 = vld [vmem:[%s4272_s1 + $0x5c8] sm:$0xff] }
  0x37   :  { %2078 = vmatpush3.msra.mxu1 %v132_v47  ;;  %2044 = vmatprep.subr.mxu0 %v115_v48  ;;  %v166_v45 = vld [vmem:[%s4272_s1 + $0x448] sm:$0xff]  ;;  %v181_v47 = vld [vmem:[%s4272_s1 + $0x4c0] sm:$0xff] }
  0x38   :  { %2079 = vmatprep.subr.mxu1 %v147_v49  ;;  %2045 = vmatpush3.msra.mxu0 %v99_v50  ;;  %v198_v46 = vld [vmem:[%s4272_s1 + $0x548] sm:$0xff]  ;;  %v213_v48 = vld [vmem:[%s4272_s1 + $0x5c0] sm:$0xff] }
  0x39   :  { %2080 = vmatpush3.msra.mxu1 %v131_v52  ;;  %2046 = vmatprep.subr.mxu0 %v114_v53  ;;  %v165_v49 = vld [vmem:[%s4272_s1 + $0x440] sm:$0xff]  ;;  %v180_v52 = vld [vmem:[%s4272_s1 + $0x4b8] sm:$0xff] }
  0x3a   :  { %2081 = vmatprep.subr.mxu1 %v146_v54  ;;  %2047 = vmatpush3.msra.mxu0 %v98_v55  ;;  %v197_v50 = vld [vmem:[%s4272_s1 + $0x540] sm:$0xff]  ;;  %v212_v53 = vld [vmem:[%s4272_s1 + $0x5b8] sm:$0xff] }
  0x3b   :  { %2082 = vmatpush3.msra.mxu1 %v130_v56  ;;  %2048 = vmatprep.subr.mxu0 %v113_v58  ;;  %v164_v54 = vld [vmem:[%s4272_s1 + $0x438] sm:$0xff]  ;;  %v179_v56 = vld [vmem:[%s4272_s1 + $0x4b0] sm:$0xff] }
  0x3c   :  { %2083 = vmatprep.subr.mxu1 %v145_v59  ;;  %2049 = vmatpush3.msra.mxu0 %v97_v60  ;;  %v196_v55 = vld [vmem:[%s4272_s1 + $0x538] sm:$0xff]  ;;  %v163_v58 = vld [vmem:[%s4272_s1 + $0x430] sm:$0xff]  ;;  %v178_v60 = vld [vmem:[%s4272_s1 + $0x4a8] sm:$0xff] }
  0x3d   :  { %2084 = vmatpush3.msra.mxu1 %v129_v61  ;;  %2050 = vmatprep.subr.mxu0 %v112_v62  ;;  %v195_v59 = vld [vmem:[%s4272_s1 + $0x530] sm:$0xff]  ;;  %v210_v61 = vld [vmem:[%s4272_s1 + $0x5a8] sm:$0xff] }
  0x3e   :  { %2085 = vmatprep.subr.mxu1 %v144_v63  ;;  %2051 = vmatpush3.msra.mxu0 %v96_v1  ;;  %v162_v62 = vld [vmem:[%s4272_s1 + $0x428] sm:$0xff]  ;;  %v177_v1 = vld [vmem:[%s4272_s1 + $0x4a0] sm:$0xff] }
  0x3f   :  { %2086 = vmatpush3.msra.mxu1 %v128_v2  ;;  %2052 = vmatprep.subr.mxu0 %v111_v3  ;;  %v194_v63 = vld [vmem:[%s4272_s1 + $0x528] sm:$0xff]  ;;  %v209_v2 = vld [vmem:[%s4272_s1 + $0x5a0] sm:$0xff] }
  0x40   :  { %2087 = vmatprep.subr.mxu1 %v143_v4  ;;  %2053 = vmatpush3.msra.mxu0 %v95_v6  ;;  %v161_v3 = vld [vmem:[%s4272_s1 + $0x420] sm:$0xff]  ;;  %v208_v6 = vld [vmem:[%s4272_s1 + $0x598] sm:$0xff] }
  0x41   :  { %2088 = vmatpush3.msra.mxu1 %v127_v7  ;;  %2054 = vmatprep.subr.mxu0 %v110_v8  ;;  %v193_v4 = vld [vmem:[%s4272_s1 + $0x520] sm:$0xff]  ;;  %v590_v7 = vcombine.high %v23_v0, %v23_v0  ;;  %v160_v8 = vld [vmem:[%s4272_s1 + $0x418] sm:$0xff] }
  0x42   :  { %2089 = vmatprep.subr.mxu1 %v142_v9  ;;  %2055 = vmatpush3.msra.mxu0 %v94_v11  ;;  %v192_v9 = vld [vmem:[%s4272_s1 + $0x518] sm:$0xff]  ;;  %v207_v11 = vld [vmem:[%s4272_s1 + $0x590] sm:$0xff] }
  0x43   :  { %2090 = vmatpush3.msra.mxu1 %v126_v12  ;;  %2056 = vmatprep.subr.mxu0 %v109_v13  ;;  %v597_v12 = vrot.slane %v23_v0, %v2774_v51  ;;  %v159_v13 = vld [vmem:[%s4272_s1 + $0x410] sm:$0xff] }
  0x44   :  { %2091 = vmatprep.subr.mxu1 %v141_v14  ;;  %2057 = vmatpush3.msra.mxu0 %v93_v16  ;;  %v191_v14 = vld [vmem:[%s4272_s1 + $0x510] sm:$0xff]  ;;  %v206_v16 = vld [vmem:[%s4272_s1 + $0x588] sm:$0xff] }
  0x45   :  { %928 = vmatprep.mubr.f32.mxu0 %v588_v15  ;;  %2092 = vmatpush3.msra.mxu1 %v125_v17  ;;  %v174_v15 = vld [vmem:[%s4272_s1 + $0x488] sm:$0xff]  ;;  %v604_v17 = vrot.slane %v590_v7, %v2774_v51  ;;  %v275_v0 = vld [vmem:[%s4272_s1 + $0x7b0] sm:$0xff]  ;;  %v24_v7 = vld [vmem:[%s4271_s0 + $0x18] sm:$0xff] }
  0x46   :  { %929 = vmatmul.mubr.f32.vlgmr.msra.gmra.mxu0 %v580_v5  ;;  %998 = vmatprep.mubr.f32.mxu1 %v589_v18  ;;  %v176_v5 = vld [vmem:[%s4272_s1 + $0x498] sm:$0xff]  ;;  %v158_v18 = vld [vmem:[%s4272_s1 + $0x408] sm:$0xff] }
  0x47   :  { %2096 = vmatprep.subr.mxu0 %v188_v19  ;;  %2131 = vmatprep.subr.mxu1 %v220_v20  ;;  %v190_v19 = vld [vmem:[%s4272_s1 + $0x508] sm:$0xff]  ;;  %v173_v20 = vld [vmem:[%s4272_s1 + $0x480] sm:$0xff] }
  0x48   :  { %999 = vmatmul.mubr.f32.vlgmr.msra.gmra.mxu1 %v587_v10  ;;  %2097 = vmatpush3.msra.mxu0 %v172_v21  ;;  %v175_v10 = vld [vmem:[%s4272_s1 + $0x490] sm:$0xff]  ;;  %v205_v21 = vld [vmem:[%s4272_s1 + $0x580] sm:$0xff] }
  0x49   :  { %2132 = vmatpush3.msra.mxu1 %v204_v22  ;;  %2098 = vmatprep.subr.mxu0 %v187_v23  ;;  %v605_v22 = vcombine.high %v597_v12, %v597_v12  ;;  %v157_v23 = vld [vmem:[%s4272_s1 + $0x400] sm:$0xff] }
  0x4a   :  { %2133 = vmatprep.subr.mxu1 %v219_v24  ;;  %2099 = vmatpush3.msra.mxu0 %v171_v25  ;;  %v189_v24 = vld [vmem:[%s4272_s1 + $0x500] sm:$0xff]  ;;  %v606_v25 = vcombine.high %v604_v17, %v604_v17 }
  0x4b   :  { %2134 = vmatpush3.msra.mxu1 %v203_v26  ;;  %2100 = vmatprep.subr.mxu0 %v186_v27  ;;  %v252_v26 = vld [vmem:[%s4272_s1 + $0x6f8] sm:$0xff] }
  0x4c   :  { %2135 = vmatprep.subr.mxu1 %v218_v28  ;;  %2101 = vmatpush3.msra.mxu0 %v170_v29  ;;  %v284_v27 = vld [vmem:[%s4272_s1 + $0x7f8] sm:$0xff] }
  0x4d   :  { %2136 = vmatpush3.msra.mxu1 %v202_v30  ;;  %2102 = vmatprep.subr.mxu0 %v185_v31  ;;  %v236_v28 = vld [vmem:[%s4272_s1 + $0x678] sm:$0xff]  ;;  %v251_v30 = vld [vmem:[%s4272_s1 + $0x6f0] sm:$0xff] }
  0x4e   :  { %2137 = vmatprep.subr.mxu1 %v217_v32  ;;  %2103 = vmatpush3.msra.mxu0 %v169_v33  ;;  %v268_v29 = vld [vmem:[%s4272_s1 + $0x778] sm:$0xff]  ;;  %v283_v31 = vld [vmem:[%s4272_s1 + $0x7f0] sm:$0xff] }
  0x4f   :  { %2138 = vmatpush3.msra.mxu1 %v201_v34  ;;  %2104 = vmatprep.subr.mxu0 %v184_v35  ;;  %v235_v32 = vld [vmem:[%s4272_s1 + $0x670] sm:$0xff]  ;;  %v250_v34 = vld [vmem:[%s4272_s1 + $0x6e8] sm:$0xff] }
  0x50   :  { %2139 = vmatprep.subr.mxu1 %v216_v36  ;;  %2105 = vmatpush3.msra.mxu0 %v168_v37  ;;  %v267_v33 = vld [vmem:[%s4272_s1 + $0x770] sm:$0xff]  ;;  %v282_v35 = vld [vmem:[%s4272_s1 + $0x7e8] sm:$0xff] }
  0x51   :  { %2140 = vmatpush3.msra.mxu1 %v200_v38  ;;  %2106 = vmatprep.subr.mxu0 %v183_v39  ;;  %v234_v36 = vld [vmem:[%s4272_s1 + $0x668] sm:$0xff]  ;;  %v249_v38 = vld [vmem:[%s4272_s1 + $0x6e0] sm:$0xff] }
  0x52   :  { %2141 = vmatprep.subr.mxu1 %v215_v40  ;;  %2107 = vmatpush3.msra.mxu0 %v167_v41  ;;  %v266_v37 = vld [vmem:[%s4272_s1 + $0x768] sm:$0xff]  ;;  %v281_v39 = vld [vmem:[%s4272_s1 + $0x7e0] sm:$0xff] }
  0x53   :  { %2142 = vmatpush3.msra.mxu1 %v199_v42  ;;  %2108 = vmatprep.subr.mxu0 %v182_v43  ;;  %v233_v40 = vld [vmem:[%s4272_s1 + $0x660] sm:$0xff]  ;;  %v248_v42 = vld [vmem:[%s4272_s1 + $0x6d8] sm:$0xff] }
  0x54   :  { %2143 = vmatprep.subr.mxu1 %v214_v44  ;;  %2109 = vmatpush3.msra.mxu0 %v166_v45  ;;  %v265_v41 = vld [vmem:[%s4272_s1 + $0x760] sm:$0xff]  ;;  %v280_v43 = vld [vmem:[%s4272_s1 + $0x7d8] sm:$0xff] }
  0x55   :  { %2144 = vmatpush3.msra.mxu1 %v198_v46  ;;  %2110 = vmatprep.subr.mxu0 %v181_v47  ;;  %v232_v44 = vld [vmem:[%s4272_s1 + $0x658] sm:$0xff]  ;;  %v247_v46 = vld [vmem:[%s4272_s1 + $0x6d0] sm:$0xff] }
  0x56   :  { %2145 = vmatprep.subr.mxu1 %v213_v48  ;;  %2111 = vmatpush3.msra.mxu0 %v165_v49  ;;  %v264_v45 = vld [vmem:[%s4272_s1 + $0x758] sm:$0xff]  ;;  %v279_v47 = vld [vmem:[%s4272_s1 + $0x7d0] sm:$0xff] }
  0x57   :  { %2146 = vmatpush3.msra.mxu1 %v197_v50  ;;  %2112 = vmatprep.subr.mxu0 %v180_v52  ;;  %v231_v48 = vld [vmem:[%s4272_s1 + $0x650] sm:$0xff]  ;;  %v246_v50 = vld [vmem:[%s4272_s1 + $0x6c8] sm:$0xff] }
  0x58   :  { %2147 = vmatprep.subr.mxu1 %v212_v53  ;;  %2113 = vmatpush3.msra.mxu0 %v164_v54  ;;  %v263_v49 = vld [vmem:[%s4272_s1 + $0x750] sm:$0xff]  ;;  %v278_v52 = vld [vmem:[%s4272_s1 + $0x7c8] sm:$0xff] }
  0x59   :  { %2148 = vmatpush3.msra.mxu1 %v196_v55  ;;  %2114 = vmatprep.subr.mxu0 %v179_v56  ;;  %v230_v53 = vld [vmem:[%s4272_s1 + $0x648] sm:$0xff]  ;;  %v245_v55 = vld [vmem:[%s4272_s1 + $0x6c0] sm:$0xff] }
  0x5a   :  { %2149 = vmatprep.subr.mxu1 %v211_v57  ;;  %2115 = vmatpush3.msra.mxu0 %v163_v58  ;;  %v262_v54 = vld [vmem:[%s4272_s1 + $0x748] sm:$0xff]  ;;  %v277_v56 = vld [vmem:[%s4272_s1 + $0x7c0] sm:$0xff] }
  0x5b   :  { %2150 = vmatpush3.msra.mxu1 %v195_v59  ;;  %2116 = vmatprep.subr.mxu0 %v178_v60  ;;  %v229_v57 = vld [vmem:[%s4272_s1 + $0x640] sm:$0xff]  ;;  %v244_v59 = vld [vmem:[%s4272_s1 + $0x6b8] sm:$0xff] }
  0x5c   :  { %2151 = vmatprep.subr.mxu1 %v210_v61  ;;  %2117 = vmatpush3.msra.mxu0 %v162_v62  ;;  %v261_v58 = vld [vmem:[%s4272_s1 + $0x740] sm:$0xff]  ;;  %v276_v60 = vld [vmem:[%s4272_s1 + $0x7b8] sm:$0xff] }
  0x5d   :  { %2152 = vmatpush3.msra.mxu1 %v194_v63  ;;  %2118 = vmatprep.subr.mxu0 %v177_v1  ;;  %v228_v61 = vld [vmem:[%s4272_s1 + $0x638] sm:$0xff]  ;;  %v243_v63 = vld [vmem:[%s4272_s1 + $0x6b0] sm:$0xff] }
  0x5e   :  { %2153 = vmatprep.subr.mxu1 %v209_v2  ;;  %2119 = vmatpush3.msra.mxu0 %v161_v3  ;;  %v260_v62 = vld [vmem:[%s4272_s1 + $0x738] sm:$0xff]  ;;  %v227_v1 = vld [vmem:[%s4272_s1 + $0x630] sm:$0xff]  ;;  %v242_v3 = vld [vmem:[%s4272_s1 + $0x6a8] sm:$0xff] }
  0x5f   :  { %2154 = vmatpush3.msra.mxu1 %v193_v4  ;;  %2120 = vmatprep.subr.mxu0 %v176_v5  ;;  %v259_v2 = vld [vmem:[%s4272_s1 + $0x730] sm:$0xff]  ;;  %v274_v4 = vld [vmem:[%s4272_s1 + $0x7a8] sm:$0xff] }
  0x60   :  { %2155 = vmatprep.subr.mxu1 %v208_v6  ;;  %2121 = vmatpush3.msra.mxu0 %v160_v8  ;;  %v226_v5 = vld [vmem:[%s4272_s1 + $0x628] sm:$0xff]  ;;  %v241_v8 = vld [vmem:[%s4272_s1 + $0x6a0] sm:$0xff] }
  0x61   :  { %2156 = vmatpush3.msra.mxu1 %v192_v9  ;;  %2122 = vmatprep.subr.mxu0 %v175_v10  ;;  %v258_v6 = vld [vmem:[%s4272_s1 + $0x728] sm:$0xff]  ;;  %v273_v9 = vld [vmem:[%s4272_s1 + $0x7a0] sm:$0xff] }
  0x62   :  { %2157 = vmatprep.subr.mxu1 %v207_v11  ;;  %2123 = vmatpush3.msra.mxu0 %v159_v13  ;;  %v225_v10 = vld [vmem:[%s4272_s1 + $0x620] sm:$0xff]  ;;  %v272_v13 = vld [vmem:[%s4272_s1 + $0x798] sm:$0xff] }
  0x63   :  { %2158 = vmatpush3.msra.mxu1 %v191_v14  ;;  %2124 = vmatprep.subr.mxu0 %v174_v15  ;;  %v257_v11 = vld [vmem:[%s4272_s1 + $0x720] sm:$0xff]  ;;  %v607_v14 = vcombine.high %v24_v7, %v24_v7  ;;  %v224_v15 = vld [vmem:[%s4272_s1 + $0x618] sm:$0xff] }
  0x64   :  { %2159 = vmatprep.subr.mxu1 %v206_v16  ;;  %2125 = vmatpush3.msra.mxu0 %v158_v18  ;;  %v256_v16 = vld [vmem:[%s4272_s1 + $0x718] sm:$0xff]  ;;  %v271_v18 = vld [vmem:[%s4272_s1 + $0x790] sm:$0xff] }
  0x65   :  { %2160 = vmatpush3.msra.mxu1 %v190_v19  ;;  %2126 = vmatprep.subr.mxu0 %v173_v20  ;;  %v614_v19 = vrot.slane %v24_v7, %v2774_v51  ;;  %v223_v20 = vld [vmem:[%s4272_s1 + $0x610] sm:$0xff] }
  0x66   :  { %2161 = vmatprep.subr.mxu1 %v205_v21  ;;  %2127 = vmatpush3.msra.mxu0 %v157_v23  ;;  %v255_v21 = vld [vmem:[%s4272_s1 + $0x710] sm:$0xff]  ;;  %v270_v23 = vld [vmem:[%s4272_s1 + $0x788] sm:$0xff] }
  0x67   :  { %1068 = vmatprep.mubr.f32.mxu0 %v605_v22  ;;  %2162 = vmatpush3.msra.mxu1 %v189_v24  ;;  %v238_v22 = vld [vmem:[%s4272_s1 + $0x688] sm:$0xff]  ;;  %v621_v24 = vrot.slane %v607_v14, %v2774_v51  ;;  %v339_v7 = vld [vmem:[%s4272_s1 + $0x9b0] sm:$0xff]  ;;  %v25_v14 = vld [vmem:[%s4271_s0 + $0x20] sm:$0xff] }
  0x68   :  { %1069 = vmatmul.mubr.f32.vlgmr.msra.gmra.mxu0 %v597_v12  ;;  %1138 = vmatprep.mubr.f32.mxu1 %v606_v25  ;;  %v240_v12 = vld [vmem:[%s4272_s1 + $0x698] sm:$0xff]  ;;  %v222_v25 = vld [vmem:[%s4272_s1 + $0x608] sm:$0xff] }
  0x69   :  { %2166 = vmatprep.subr.mxu0 %v252_v26  ;;  %2201 = vmatprep.subr.mxu1 %v284_v27  ;;  %v254_v26 = vld [vmem:[%s4272_s1 + $0x708] sm:$0xff]  ;;  %v237_v27 = vld [vmem:[%s4272_s1 + $0x680] sm:$0xff] }
  0x6a   :  { %1139 = vmatmul.mubr.f32.vlgmr.msra.gmra.mxu1 %v604_v17  ;;  %2167 = vmatpush3.msra.mxu0 %v236_v28  ;;  %v239_v17 = vld [vmem:[%s4272_s1 + $0x690] sm:$0xff]  ;;  %v269_v28 = vld [vmem:[%s4272_s1 + $0x780] sm:$0xff] }
  0x6b   :  { %2202 = vmatpush3.msra.mxu1 %v268_v29  ;;  %2168 = vmatprep.subr.mxu0 %v251_v30  ;;  %v622_v29 = vcombine.high %v614_v19, %v614_v19  ;;  %v221_v30 = vld [vmem:[%s4272_s1 + $0x600] sm:$0xff] }
  0x6c   :  { %2203 = vmatprep.subr.mxu1 %v283_v31  ;;  %2169 = vmatpush3.msra.mxu0 %v235_v32  ;;  %v253_v31 = vld [vmem:[%s4272_s1 + $0x700] sm:$0xff]  ;;  %v623_v32 = vcombine.high %v621_v24, %v621_v24 }
  0x6d   :  { %2204 = vmatpush3.msra.mxu1 %v267_v33  ;;  %2170 = vmatprep.subr.mxu0 %v250_v34  ;;  %v316_v33 = vld [vmem:[%s4272_s1 + $0x8f8] sm:$0xff] }
  0x6e   :  { %2205 = vmatprep.subr.mxu1 %v282_v35  ;;  %2171 = vmatpush3.msra.mxu0 %v234_v36  ;;  %v348_v34 = vld [vmem:[%s4272_s1 + $0x9f8] sm:$0xff] }
  0x6f   :  { %2206 = vmatpush3.msra.mxu1 %v266_v37  ;;  %2172 = vmatprep.subr.mxu0 %v249_v38  ;;  %v300_v35 = vld [vmem:[%s4272_s1 + $0x878] sm:$0xff]  ;;  %v315_v37 = vld [vmem:[%s4272_s1 + $0x8f0] sm:$0xff] }
  0x70   :  { %2207 = vmatprep.subr.mxu1 %v281_v39  ;;  %2173 = vmatpush3.msra.mxu0 %v233_v40  ;;  %v332_v36 = vld [vmem:[%s4272_s1 + $0x978] sm:$0xff]  ;;  %v347_v38 = vld [vmem:[%s4272_s1 + $0x9f0] sm:$0xff] }
  0x71   :  { %2208 = vmatpush3.msra.mxu1 %v265_v41  ;;  %2174 = vmatprep.subr.mxu0 %v248_v42  ;;  %v299_v39 = vld [vmem:[%s4272_s1 + $0x870] sm:$0xff]  ;;  %v314_v41 = vld [vmem:[%s4272_s1 + $0x8e8] sm:$0xff] }
  0x72   :  { %2209 = vmatprep.subr.mxu1 %v280_v43  ;;  %2175 = vmatpush3.msra.mxu0 %v232_v44  ;;  %v331_v40 = vld [vmem:[%s4272_s1 + $0x970] sm:$0xff]  ;;  %v346_v42 = vld [vmem:[%s4272_s1 + $0x9e8] sm:$0xff] }
  0x73   :  { %2210 = vmatpush3.msra.mxu1 %v264_v45  ;;  %2176 = vmatprep.subr.mxu0 %v247_v46  ;;  %v298_v43 = vld [vmem:[%s4272_s1 + $0x868] sm:$0xff]  ;;  %v313_v45 = vld [vmem:[%s4272_s1 + $0x8e0] sm:$0xff] }
  0x74   :  { %2211 = vmatprep.subr.mxu1 %v279_v47  ;;  %2177 = vmatpush3.msra.mxu0 %v231_v48  ;;  %v330_v44 = vld [vmem:[%s4272_s1 + $0x968] sm:$0xff]  ;;  %v345_v46 = vld [vmem:[%s4272_s1 + $0x9e0] sm:$0xff] }
  0x75   :  { %2212 = vmatpush3.msra.mxu1 %v263_v49  ;;  %2178 = vmatprep.subr.mxu0 %v246_v50  ;;  %v297_v47 = vld [vmem:[%s4272_s1 + $0x860] sm:$0xff]  ;;  %v312_v49 = vld [vmem:[%s4272_s1 + $0x8d8] sm:$0xff] }
  0x76   :  { %2213 = vmatprep.subr.mxu1 %v278_v52  ;;  %2179 = vmatpush3.msra.mxu0 %v230_v53  ;;  %v329_v48 = vld [vmem:[%s4272_s1 + $0x960] sm:$0xff]  ;;  %v344_v50 = vld [vmem:[%s4272_s1 + $0x9d8] sm:$0xff] }
  0x77   :  { %2214 = vmatpush3.msra.mxu1 %v262_v54  ;;  %2180 = vmatprep.subr.mxu0 %v245_v55  ;;  %v296_v52 = vld [vmem:[%s4272_s1 + $0x858] sm:$0xff]  ;;  %v311_v54 = vld [vmem:[%s4272_s1 + $0x8d0] sm:$0xff] }
  0x78   :  { %2215 = vmatprep.subr.mxu1 %v277_v56  ;;  %2181 = vmatpush3.msra.mxu0 %v229_v57  ;;  %v328_v53 = vld [vmem:[%s4272_s1 + $0x958] sm:$0xff]  ;;  %v343_v55 = vld [vmem:[%s4272_s1 + $0x9d0] sm:$0xff] }
  0x79   :  { %2216 = vmatpush3.msra.mxu1 %v261_v58  ;;  %2182 = vmatprep.subr.mxu0 %v244_v59  ;;  %v295_v56 = vld [vmem:[%s4272_s1 + $0x850] sm:$0xff]  ;;  %v310_v58 = vld [vmem:[%s4272_s1 + $0x8c8] sm:$0xff] }
  0x7a   :  { %2217 = vmatprep.subr.mxu1 %v276_v60  ;;  %2183 = vmatpush3.msra.mxu0 %v228_v61  ;;  %v327_v57 = vld [vmem:[%s4272_s1 + $0x950] sm:$0xff]  ;;  %v342_v59 = vld [vmem:[%s4272_s1 + $0x9c8] sm:$0xff] }
  0x7b   :  { %2218 = vmatpush3.msra.mxu1 %v260_v62  ;;  %2184 = vmatprep.subr.mxu0 %v243_v63  ;;  %v294_v60 = vld [vmem:[%s4272_s1 + $0x848] sm:$0xff]  ;;  %v309_v62 = vld [vmem:[%s4272_s1 + $0x8c0] sm:$0xff] }
  0x7c   :  { %2219 = vmatprep.subr.mxu1 %v275_v0  ;;  %2185 = vmatpush3.msra.mxu0 %v227_v1  ;;  %v326_v61 = vld [vmem:[%s4272_s1 + $0x948] sm:$0xff]  ;;  %v341_v63 = vld [vmem:[%s4272_s1 + $0x9c0] sm:$0xff] }
  0x7d   :  { %2220 = vmatpush3.msra.mxu1 %v259_v2  ;;  %2186 = vmatprep.subr.mxu0 %v242_v3  ;;  %v293_v0 = vld [vmem:[%s4272_s1 + $0x840] sm:$0xff]  ;;  %v308_v2 = vld [vmem:[%s4272_s1 + $0x8b8] sm:$0xff] }
  0x7e   :  { %2221 = vmatprep.subr.mxu1 %v274_v4  ;;  %2187 = vmatpush3.msra.mxu0 %v226_v5  ;;  %v325_v1 = vld [vmem:[%s4272_s1 + $0x940] sm:$0xff]  ;;  %v340_v3 = vld [vmem:[%s4272_s1 + $0x9b8] sm:$0xff] }
  0x7f   :  { %2222 = vmatpush3.msra.mxu1 %v258_v6  ;;  %2188 = vmatprep.subr.mxu0 %v241_v8  ;;  %v292_v4 = vld [vmem:[%s4272_s1 + $0x838] sm:$0xff]  ;;  %v307_v6 = vld [vmem:[%s4272_s1 + $0x8b0] sm:$0xff] }
  0x80   :  { %2223 = vmatprep.subr.mxu1 %v273_v9  ;;  %2189 = vmatpush3.msra.mxu0 %v225_v10  ;;  %v324_v5 = vld [vmem:[%s4272_s1 + $0x938] sm:$0xff]  ;;  %v291_v8 = vld [vmem:[%s4272_s1 + $0x830] sm:$0xff]  ;;  %v306_v10 = vld [vmem:[%s4272_s1 + $0x8a8] sm:$0xff] }
  0x81   :  { %2224 = vmatpush3.msra.mxu1 %v257_v11  ;;  %2190 = vmatprep.subr.mxu0 %v240_v12  ;;  %v323_v9 = vld [vmem:[%s4272_s1 + $0x930] sm:$0xff]  ;;  %v338_v11 = vld [vmem:[%s4272_s1 + $0x9a8] sm:$0xff] }
  0x82   :  { %2225 = vmatprep.subr.mxu1 %v272_v13  ;;  %2191 = vmatpush3.msra.mxu0 %v224_v15  ;;  %v290_v12 = vld [vmem:[%s4272_s1 + $0x828] sm:$0xff]  ;;  %v305_v15 = vld [vmem:[%s4272_s1 + $0x8a0] sm:$0xff] }
  0x83   :  { %2226 = vmatpush3.msra.mxu1 %v256_v16  ;;  %2192 = vmatprep.subr.mxu0 %v239_v17  ;;  %v322_v13 = vld [vmem:[%s4272_s1 + $0x928] sm:$0xff]  ;;  %v337_v16 = vld [vmem:[%s4272_s1 + $0x9a0] sm:$0xff] }
  0x84   :  { %2227 = vmatprep.subr.mxu1 %v271_v18  ;;  %2193 = vmatpush3.msra.mxu0 %v223_v20  ;;  %v289_v17 = vld [vmem:[%s4272_s1 + $0x820] sm:$0xff]  ;;  %v336_v20 = vld [vmem:[%s4272_s1 + $0x998] sm:$0xff] }
  0x85   :  { %2228 = vmatpush3.msra.mxu1 %v255_v21  ;;  %2194 = vmatprep.subr.mxu0 %v238_v22  ;;  %v321_v18 = vld [vmem:[%s4272_s1 + $0x920] sm:$0xff]  ;;  %v624_v21 = vcombine.high %v25_v14, %v25_v14  ;;  %v288_v22 = vld [vmem:[%s4272_s1 + $0x818] sm:$0xff] }
  0x86   :  { %2229 = vmatprep.subr.mxu1 %v270_v23  ;;  %2195 = vmatpush3.msra.mxu0 %v222_v25  ;;  %v320_v23 = vld [vmem:[%s4272_s1 + $0x918] sm:$0xff]  ;;  %v335_v25 = vld [vmem:[%s4272_s1 + $0x990] sm:$0xff] }
  0x87   :  { %2230 = vmatpush3.msra.mxu1 %v254_v26  ;;  %2196 = vmatprep.subr.mxu0 %v237_v27  ;;  %v631_v26 = vrot.slane %v25_v14, %v2774_v51  ;;  %v287_v27 = vld [vmem:[%s4272_s1 + $0x810] sm:$0xff] }
  0x88   :  { %2231 = vmatprep.subr.mxu1 %v269_v28  ;;  %2197 = vmatpush3.msra.mxu0 %v221_v30  ;;  %v319_v28 = vld [vmem:[%s4272_s1 + $0x910] sm:$0xff]  ;;  %v334_v30 = vld [vmem:[%s4272_s1 + $0x988] sm:$0xff] }
  0x89   :  { %1208 = vmatprep.mubr.f32.mxu0 %v622_v29  ;;  %2232 = vmatpush3.msra.mxu1 %v253_v31  ;;  %v302_v29 = vld [vmem:[%s4272_s1 + $0x888] sm:$0xff]  ;;  %v638_v31 = vrot.slane %v624_v21, %v2774_v51 }
  0x8a   :  { %1209 = vmatmul.mubr.f32.vlgmr.msra.gmra.mxu0 %v614_v19  ;;  %1278 = vmatprep.mubr.f32.mxu1 %v623_v32  ;;  %v304_v19 = vld [vmem:[%s4272_s1 + $0x898] sm:$0xff]  ;;  %v286_v32 = vld [vmem:[%s4272_s1 + $0x808] sm:$0xff] }
  0x8b   :  { %2236 = vmatprep.subr.mxu0 %v316_v33  ;;  %2271 = vmatprep.subr.mxu1 %v348_v34  ;;  %v318_v33 = vld [vmem:[%s4272_s1 + $0x908] sm:$0xff]  ;;  %v301_v34 = vld [vmem:[%s4272_s1 + $0x880] sm:$0xff] }
  0x8c   :  { %1279 = vmatmul.mubr.f32.vlgmr.msra.gmra.mxu1 %v621_v24  ;;  %2237 = vmatpush3.msra.mxu0 %v300_v35  ;;  %v303_v24 = vld [vmem:[%s4272_s1 + $0x890] sm:$0xff]  ;;  %v333_v35 = vld [vmem:[%s4272_s1 + $0x980] sm:$0xff] }
  0x8d   :  { %2272 = vmatpush3.msra.mxu1 %v332_v36  ;;  %2238 = vmatprep.subr.mxu0 %v315_v37  ;;  %v639_v36 = vcombine.high %v631_v26, %v631_v26  ;;  %v285_v37 = vld [vmem:[%s4272_s1 + $0x800] sm:$0xff] }
  0x8e   :  { %2273 = vmatprep.subr.mxu1 %v347_v38  ;;  %2239 = vmatpush3.msra.mxu0 %v299_v39  ;;  %v317_v38 = vld [vmem:[%s4272_s1 + $0x900] sm:$0xff]  ;;  %v640_v39 = vcombine.high %v638_v31, %v638_v31 }
  0x8f   :  { %2274 = vmatpush3.msra.mxu1 %v331_v40  ;;  %2240 = vmatprep.subr.mxu0 %v314_v41  ;;  %v380_v40 = vld [vmem:[%s4272_s1 + $0xaf8] sm:$0xff] }
  0x90   :  { %2275 = vmatprep.subr.mxu1 %v346_v42  ;;  %2241 = vmatpush3.msra.mxu0 %v298_v43  ;;  %v412_v41 = vld [vmem:[%s4272_s1 + $0xbf8] sm:$0xff] }
  0x91   :  { %2276 = vmatpush3.msra.mxu1 %v330_v44  ;;  %2242 = vmatprep.subr.mxu0 %v313_v45  ;;  %v364_v42 = vld [vmem:[%s4272_s1 + $0xa78] sm:$0xff]  ;;  %v379_v44 = vld [vmem:[%s4272_s1 + $0xaf0] sm:$0xff] }
  0x92   :  { %2277 = vmatprep.subr.mxu1 %v345_v46  ;;  %2243 = vmatpush3.msra.mxu0 %v297_v47  ;;  %v396_v43 = vld [vmem:[%s4272_s1 + $0xb78] sm:$0xff]  ;;  %v411_v45 = vld [vmem:[%s4272_s1 + $0xbf0] sm:$0xff] }
  0x93   :  { %2278 = vmatpush3.msra.mxu1 %v329_v48  ;;  %2244 = vmatprep.subr.mxu0 %v312_v49  ;;  %v363_v46 = vld [vmem:[%s4272_s1 + $0xa70] sm:$0xff]  ;;  %v378_v48 = vld [vmem:[%s4272_s1 + $0xae8] sm:$0xff] }
  0x94   :  { %2279 = vmatprep.subr.mxu1 %v344_v50  ;;  %2245 = vmatpush3.msra.mxu0 %v296_v52  ;;  %v395_v47 = vld [vmem:[%s4272_s1 + $0xb70] sm:$0xff]  ;;  %v410_v49 = vld [vmem:[%s4272_s1 + $0xbe8] sm:$0xff] }
  0x95   :  { %2280 = vmatpush3.msra.mxu1 %v328_v53  ;;  %2246 = vmatprep.subr.mxu0 %v311_v54  ;;  %v362_v50 = vld [vmem:[%s4272_s1 + $0xa68] sm:$0xff] }
  0x96   :  { %2281 = vmatprep.subr.mxu1 %v343_v55  ;;  %2247 = vmatpush3.msra.mxu0 %v295_v56  ;;  %v394_v52 = vld [vmem:[%s4272_s1 + $0xb68] sm:$0xff] }
  0x97   :  { %2282 = vmatpush3.msra.mxu1 %v327_v57  ;;  %2248 = vmatprep.subr.mxu0 %v310_v58 }
  0x98   :  { %2283 = vmatprep.subr.mxu1 %v342_v59  ;;  %2249 = vmatpush3.msra.mxu0 %v294_v60 }
  0x99   :  { %2284 = vmatpush3.msra.mxu1 %v326_v61  ;;  %2250 = vmatprep.subr.mxu0 %v309_v62 }
  0x9a   :  { %2285 = vmatprep.subr.mxu1 %v341_v63  ;;  %2251 = vmatpush3.msra.mxu0 %v293_v0 }
  0x9b   :  { %2286 = vmatpush3.msra.mxu1 %v325_v1  ;;  %2252 = vmatprep.subr.mxu0 %v308_v2 }
  0x9c   :  { %2287 = vmatprep.subr.mxu1 %v340_v3  ;;  %2253 = vmatpush3.msra.mxu0 %v292_v4 }
  0x9d   :  { %2288 = vmatpush3.msra.mxu1 %v324_v5  ;;  %2254 = vmatprep.subr.mxu0 %v307_v6 }
  0x9e   :  { %2289 = vmatprep.subr.mxu1 %v339_v7  ;;  %2255 = vmatpush3.msra.mxu0 %v291_v8 }
  0x9f   :  { %2290 = vmatpush3.msra.mxu1 %v323_v9  ;;  %2256 = vmatprep.subr.mxu0 %v306_v10 }
  0xa0   :  { %2291 = vmatprep.subr.mxu1 %v338_v11  ;;  %2257 = vmatpush3.msra.mxu0 %v290_v12 }
  0xa1   :  { %2292 = vmatpush3.msra.mxu1 %v322_v13  ;;  %2258 = vmatprep.subr.mxu0 %v305_v15 }
  0xa2   :  { %2293 = vmatprep.subr.mxu1 %v337_v16  ;;  %2259 = vmatpush3.msra.mxu0 %v289_v17 }
  0xa3   :  { %2294 = vmatpush3.msra.mxu1 %v321_v18  ;;  %2260 = vmatprep.subr.mxu0 %v304_v19 }
  0xa4   :  { %2295 = vmatprep.subr.mxu1 %v336_v20  ;;  %2261 = vmatpush3.msra.mxu0 %v288_v22 }
  0xa5   :  { %2296 = vmatpush3.msra.mxu1 %v320_v23  ;;  %2262 = vmatprep.subr.mxu0 %v303_v24 }
  0xa6   :  { %2297 = vmatprep.subr.mxu1 %v335_v25  ;;  %2263 = vmatpush3.msra.mxu0 %v287_v27 }
  0xa7   :  { %2298 = vmatpush3.msra.mxu1 %v319_v28  ;;  %2264 = vmatprep.subr.mxu0 %v302_v29 }
  0xa8   :  { %2299 = vmatprep.subr.mxu1 %v334_v30  ;;  %2265 = vmatpush3.msra.mxu0 %v286_v32 }
  0xa9   :  { %2300 = vmatpush3.msra.mxu1 %v318_v33  ;;  %2266 = vmatprep.subr.mxu0 %v301_v34 }
  0xaa   :  { %2301 = vmatprep.subr.mxu1 %v333_v35  ;;  %2267 = vmatpush3.msra.mxu0 %v285_v37 }
  0xab   :  { %1348 = vmatprep.mubr.f32.mxu0 %v639_v36  ;;  %2302 = vmatpush3.msra.mxu1 %v317_v38 }
  0xac   :  { %1349 = vmatmul.mubr.f32.vlgmr.msra.gmra.mxu0 %v631_v26  ;;  %1418 = vmatprep.mubr.f32.mxu1 %v640_v39 }
  0xad   :  { %2306 = vmatprep.subr.mxu0 %v380_v40  ;;  %2341 = vmatprep.subr.mxu1 %v412_v41 }
  0xae   :  { %1419 = vmatmul.mubr.f32.vlgmr.msra.gmra.mxu1 %v638_v31  ;;  %2307 = vmatpush3.msra.mxu0 %v364_v42 }
  0xaf   :  { %2342 = vmatpush3.msra.mxu1 %v396_v43  ;;  %2308 = vmatprep.subr.mxu0 %v379_v44 }
  0xb0   :  { %2343 = vmatprep.subr.mxu1 %v411_v45 }
  0xb1   :  { %10 = vsyncpa [#allocation3], 0  ;;  %2309 = vmatpush3.msra.mxu0 %v363_v46  ;;  %2344 = vmatpush3.msra.mxu1 %v395_v47  ;;  %v377_v53 = vld [vmem:[%s4272_s1 + $0xae0] sm:$0xff]  ;;  %v376_v57 = vld [vmem:[%s4272_s1 + $0xad8] sm:$0xff]  ;;  %vm2604_vm0 = vmmov 0   ;;  %s2605_s12 = smov [#allocation2]  }
  0xb2   :  { %v409_v54 = vld [vmem:[%s4272_s1 + $0xbe0] sm:$0xff]  ;;  %2310 = vmatprep.subr.mxu0 %v378_v48  ;;  %2345 = vmatprep.subr.mxu1 %v410_v49  ;;  %v408_v58 = vld [vmem:[%s4272_s1 + $0xbd8] sm:$0xff]  ;;  %v375_v61 = vld [vmem:[%s4272_s1 + $0xad0] sm:$0xff]  ;;  %s1946_s13 = sshll.u32 %s2605_s12, 4  ;;  %vm1938_vm1 = vcmask 74752   ;;  %s1947_s13 = int_to_ptr.vmem [resolvable:$true] %s1946_s13 }
  0xb3   :  { %v361_v55 = vld [vmem:[%s4272_s1 + $0xa60] sm:$0xff]  ;;  %2311 = vmatpush3.msra.mxu0 %v362_v50  ;;  %2346 = vmatpush3.msra.mxu1 %v394_v52  ;;  %v360_v59 = vld [vmem:[%s4272_s1 + $0xa58] sm:$0xff]  ;;  %v407_v62 = vld [vmem:[%s4272_s1 + $0xbd0] sm:$0xff]  ;;  %s2580_s14 = scalar_lea.vmem %s1947_s13, 32  ;;  %p2585_p1 = scmp.lt.s32.totalorder %s1947_s13, %s1947_s13 }
  0xb4   :  { %v393_v56 = vld [vmem:[%s4272_s1 + $0xb60] sm:$0xff]  ;;  %2312 = vmatprep.subr.mxu0 %v377_v53  ;;  %2347 = vmatprep.subr.mxu1 %v409_v54  ;;  %v392_v60 = vld [vmem:[%s4272_s1 + $0xb58] sm:$0xff]  ;;  %v359_v63 = vld [vmem:[%s4272_s1 + $0xa50] sm:$0xff]  ;;  %p2581_p0 = scmp.ne.s32.totalorder %s1947_s13, %s2580_s14  ;;  %p2586_p2 = scmp.lt.s32.totalorder %s2580_s14, %s2580_s14 }
  0xb5   :  { %2313 = vmatpush3.msra.mxu0 %v361_v55  ;;  %2348 = vmatpush3.msra.mxu1 %v393_v56  ;;  %v391_v0 = vld [vmem:[%s4272_s1 + $0xb50] sm:$0xff]  ;;  %v374_v1 = vld [vmem:[%s4272_s1 + $0xac8] sm:$0xff]  ;;  %v373_v5 = vld [vmem:[%s4272_s1 + $0xac0] sm:$0xff] }
  0xb6   :  { %2314 = vmatprep.subr.mxu0 %v376_v57  ;;  %2349 = vmatprep.subr.mxu1 %v408_v58  ;;  %v406_v2 = vld [vmem:[%s4272_s1 + $0xbc8] sm:$0xff]  ;;  %v405_v6 = vld [vmem:[%s4272_s1 + $0xbc0] sm:$0xff]  ;;  %v372_v9 = vld [vmem:[%s4272_s1 + $0xab8] sm:$0xff]  ;;  %p2587_p3 = por %p2586_p2, %p2585_p1 }
  0xb7   :  { %2315 = vmatpush3.msra.mxu0 %v360_v59  ;;  %2350 = vmatpush3.msra.mxu1 %v392_v60  ;;  %v358_v3 = vld [vmem:[%s4272_s1 + $0xa48] sm:$0xff]  ;;  %v357_v7 = vld [vmem:[%s4272_s1 + $0xa40] sm:$0xff]  ;;  %v404_v10 = vld [vmem:[%s4272_s1 + $0xbb8] sm:$0xff] }
  0xb8   :  { %2316 = vmatprep.subr.mxu0 %v375_v61  ;;  %2351 = vmatprep.subr.mxu1 %v407_v62  ;;  %v390_v4 = vld [vmem:[%s4272_s1 + $0xb48] sm:$0xff]  ;;  %v389_v8 = vld [vmem:[%s4272_s1 + $0xb40] sm:$0xff]  ;;  %v356_v11 = vld [vmem:[%s4272_s1 + $0xa38] sm:$0xff]  ;;  %p2588_p4 = pnand %p2587_p3, %p2581_p0 }
  0xb9   :  { %2317 = vmatpush3.msra.mxu0 %v359_v63  ;;  %2352 = vmatpush3.msra.mxu1 %v391_v0  ;;  %v388_v12 = vld [vmem:[%s4272_s1 + $0xb38] sm:$0xff]  ;;  %v371_v13 = vld [vmem:[%s4272_s1 + $0xab0] sm:$0xff]  ;;  %v370_v17 = vld [vmem:[%s4272_s1 + $0xaa8] sm:$0xff] }
  0xba   :  { %2318 = vmatprep.subr.mxu0 %v374_v1  ;;  %2353 = vmatprep.subr.mxu1 %v406_v2  ;;  %v403_v14 = vld [vmem:[%s4272_s1 + $0xbb0] sm:$0xff]  ;;  %v402_v18 = vld [vmem:[%s4272_s1 + $0xba8] sm:$0xff]  ;;  %v369_v22 = vld [vmem:[%s4272_s1 + $0xaa0] sm:$0xff] }
  0xbb   :  { %2319 = vmatpush3.msra.mxu0 %v358_v3  ;;  %2354 = vmatpush3.msra.mxu1 %v390_v4  ;;  %v355_v15 = vld [vmem:[%s4272_s1 + $0xa30] sm:$0xff]  ;;  %v354_v19 = vld [vmem:[%s4272_s1 + $0xa28] sm:$0xff]  ;;  %v401_v23 = vld [vmem:[%s4272_s1 + $0xba0] sm:$0xff] }
  0xbc   :  { %2320 = vmatprep.subr.mxu0 %v373_v5  ;;  %2355 = vmatprep.subr.mxu1 %v405_v6  ;;  %v387_v16 = vld [vmem:[%s4272_s1 + $0xb30] sm:$0xff]  ;;  %v386_v20 = vld [vmem:[%s4272_s1 + $0xb28] sm:$0xff]  ;;  %v353_v24 = vld [vmem:[%s4272_s1 + $0xa20] sm:$0xff] }
  0xbd   :  { %2321 = vmatpush3.msra.mxu0 %v357_v7  ;;  %2356 = vmatpush3.msra.mxu1 %v389_v8  ;;  %v26_v21 = vld [vmem:[%s4271_s0 + $0x28] sm:$0xff]  ;;  %v385_v25 = vld [vmem:[%s4272_s1 + $0xb20] sm:$0xff]  ;;  %v368_v26 = vld [vmem:[%s4272_s1 + $0xa98] sm:$0xff] }
  0xbe   :  { %2322 = vmatprep.subr.mxu0 %v372_v9  ;;  %2357 = vmatprep.subr.mxu1 %v404_v10  ;;  %v400_v27 = vld [vmem:[%s4272_s1 + $0xb98] sm:$0xff]  ;;  %v641_v28 = vcombine.high %v26_v21, %v26_v21  ;;  %v367_v31 = vld [vmem:[%s4272_s1 + $0xa90] sm:$0xff]  ;;  %v648_v33 = vrot.slane %v26_v21, %v2774_v51  ;;  %v366_v36 = vld [vmem:[%s4272_s1 + $0xa88] sm:$0xff] }
  0xbf   :  { %2323 = vmatpush3.msra.mxu0 %v356_v11  ;;  %2358 = vmatpush3.msra.mxu1 %v388_v12  ;;  %v352_v29 = vld [vmem:[%s4272_s1 + $0xa18] sm:$0xff]  ;;  %v399_v32 = vld [vmem:[%s4272_s1 + $0xb90] sm:$0xff]  ;;  %v398_v37 = vld [vmem:[%s4272_s1 + $0xb88] sm:$0xff] }
  0xc0   :  { %2324 = vmatprep.subr.mxu0 %v371_v13  ;;  %2359 = vmatprep.subr.mxu1 %v403_v14  ;;  %v384_v30 = vld [vmem:[%s4272_s1 + $0xb18] sm:$0xff]  ;;  %v351_v34 = vld [vmem:[%s4272_s1 + $0xa10] sm:$0xff]  ;;  %v655_v38 = vrot.slane %v641_v28, %v2774_v51  ;;  %v350_v39 = vld [vmem:[%s4272_s1 + $0xa08] sm:$0xff]  ;;  %v656_v43 = vcombine.high %v648_v33, %v648_v33 }
  0xc1   :  { %2325 = vmatpush3.msra.mxu0 %v355_v15  ;;  %2360 = vmatpush3.msra.mxu1 %v387_v16  ;;  %v383_v35 = vld [vmem:[%s4272_s1 + $0xb10] sm:$0xff]  ;;  %v382_v40 = vld [vmem:[%s4272_s1 + $0xb08] sm:$0xff]  ;;  %v365_v41 = vld [vmem:[%s4272_s1 + $0xa80] sm:$0xff] }
  0xc2   :  { %2326 = vmatprep.subr.mxu0 %v370_v17  ;;  %2361 = vmatprep.subr.mxu1 %v402_v18  ;;  %v397_v42 = vld [vmem:[%s4272_s1 + $0xb80] sm:$0xff]  ;;  %v657_v46 = vcombine.high %v655_v38, %v655_v38  ;;  %v444_v47 = vld [vmem:[%s4272_s1 + $0xcf8] sm:$0xff]  ;;  %v443_v52 = vld [vmem:[%s4272_s1 + $0xcf0] sm:$0xff] }
  0xc3   :  { %2327 = vmatpush3.msra.mxu0 %v354_v19  ;;  %2362 = vmatpush3.msra.mxu1 %v386_v20  ;;  %v349_v44 = vld [vmem:[%s4272_s1 + $0xa00] sm:$0xff]  ;;  %v476_v48 = vld [vmem:[%s4272_s1 + $0xdf8] sm:$0xff]  ;;  %v475_v53 = vld [vmem:[%s4272_s1 + $0xdf0] sm:$0xff] }
  0xc4   :  { %2328 = vmatprep.subr.mxu0 %v369_v22  ;;  %2363 = vmatprep.subr.mxu1 %v401_v23  ;;  %v381_v45 = vld [vmem:[%s4272_s1 + $0xb00] sm:$0xff]  ;;  %v428_v49 = vld [vmem:[%s4272_s1 + $0xc78] sm:$0xff]  ;;  %v427_v54 = vld [vmem:[%s4272_s1 + $0xc70] sm:$0xff] }
  0xc5   :  { %2329 = vmatpush3.msra.mxu0 %v353_v24  ;;  %2364 = vmatpush3.msra.mxu1 %v385_v25  ;;  %v460_v50 = vld [vmem:[%s4272_s1 + $0xd78] sm:$0xff]  ;;  %v459_v55 = vld [vmem:[%s4272_s1 + $0xd70] sm:$0xff]  ;;  %v442_v56 = vld [vmem:[%s4272_s1 + $0xce8] sm:$0xff] }
  0xc6   :  { %2330 = vmatprep.subr.mxu0 %v368_v26  ;;  %2365 = vmatprep.subr.mxu1 %v400_v27  ;;  %v474_v57 = vld [vmem:[%s4272_s1 + $0xde8] sm:$0xff]  ;;  %v441_v60 = vld [vmem:[%s4272_s1 + $0xce0] sm:$0xff]  ;;  %v440_v0 = vld [vmem:[%s4272_s1 + $0xcd8] sm:$0xff] }
  0xc7   :  { %2331 = vmatpush3.msra.mxu0 %v352_v29  ;;  %2366 = vmatpush3.msra.mxu1 %v384_v30  ;;  %v426_v58 = vld [vmem:[%s4272_s1 + $0xc68] sm:$0xff]  ;;  %v473_v61 = vld [vmem:[%s4272_s1 + $0xde0] sm:$0xff]  ;;  %v472_v1 = vld [vmem:[%s4272_s1 + $0xdd8] sm:$0xff] }
  0xc8   :  { %2332 = vmatprep.subr.mxu0 %v367_v31  ;;  %2367 = vmatprep.subr.mxu1 %v399_v32  ;;  %v458_v59 = vld [vmem:[%s4272_s1 + $0xd68] sm:$0xff]  ;;  %v425_v62 = vld [vmem:[%s4272_s1 + $0xc60] sm:$0xff]  ;;  %v424_v2 = vld [vmem:[%s4272_s1 + $0xc58] sm:$0xff] }
  0xc9   :  { %2333 = vmatpush3.msra.mxu0 %v351_v34  ;;  %2368 = vmatpush3.msra.mxu1 %v383_v35  ;;  %v457_v63 = vld [vmem:[%s4272_s1 + $0xd60] sm:$0xff]  ;;  %v456_v3 = vld [vmem:[%s4272_s1 + $0xd58] sm:$0xff]  ;;  %v439_v4 = vld [vmem:[%s4272_s1 + $0xcd0] sm:$0xff] }
  0xca   :  { %2334 = vmatprep.subr.mxu0 %v366_v36  ;;  %2369 = vmatprep.subr.mxu1 %v398_v37  ;;  %v471_v5 = vld [vmem:[%s4272_s1 + $0xdd0] sm:$0xff]  ;;  %v438_v8 = vld [vmem:[%s4272_s1 + $0xcc8] sm:$0xff]  ;;  %v437_v12 = vld [vmem:[%s4272_s1 + $0xcc0] sm:$0xff] }
  0xcb   :  { %2335 = vmatpush3.msra.mxu0 %v350_v39  ;;  %2370 = vmatpush3.msra.mxu1 %v382_v40  ;;  %v423_v6 = vld [vmem:[%s4272_s1 + $0xc50] sm:$0xff]  ;;  %v470_v9 = vld [vmem:[%s4272_s1 + $0xdc8] sm:$0xff]  ;;  %v469_v13 = vld [vmem:[%s4272_s1 + $0xdc0] sm:$0xff] }
  0xcc   :  { %2336 = vmatprep.subr.mxu0 %v365_v41  ;;  %2371 = vmatprep.subr.mxu1 %v397_v42  ;;  %v455_v7 = vld [vmem:[%s4272_s1 + $0xd50] sm:$0xff]  ;;  %v422_v10 = vld [vmem:[%s4272_s1 + $0xc48] sm:$0xff]  ;;  %v421_v14 = vld [vmem:[%s4272_s1 + $0xc40] sm:$0xff] }
  0xcd   :  { %2337 = vmatpush3.msra.mxu0 %v349_v44  ;;  %1488 = vmatprep.mubr.f32.mxu0 %v656_v43  ;;  %v454_v11 = vld [vmem:[%s4272_s1 + $0xd48] sm:$0xff]  ;;  %v453_v15 = vld [vmem:[%s4272_s1 + $0xd40] sm:$0xff]  ;;  %v436_v16 = vld [vmem:[%s4272_s1 + $0xcb8] sm:$0xff] }
  0xce   :  { %2372 = vmatpush3.msra.mxu1 %v381_v45  ;;  %1489 = vmatmul.mubr.f32.vlgmr.msra.gmra.mxu0 %v648_v33  ;;  %v468_v17 = vld [vmem:[%s4272_s1 + $0xdb8] sm:$0xff]  ;;  %v435_v20 = vld [vmem:[%s4272_s1 + $0xcb0] sm:$0xff]  ;;  %v434_v24 = vld [vmem:[%s4272_s1 + $0xca8] sm:$0xff] }
  0xcf   :  { %1558 = vmatprep.mubr.f32.mxu1 %v657_v46  ;;  %2376 = vmatprep.subr.mxu0 %v444_v47  ;;  %v420_v18 = vld [vmem:[%s4272_s1 + $0xc38] sm:$0xff]  ;;  %v467_v21 = vld [vmem:[%s4272_s1 + $0xdb0] sm:$0xff]  ;;  %v466_v25 = vld [vmem:[%s4272_s1 + $0xda8] sm:$0xff] }
  0xd0   :  { %2411 = vmatprep.subr.mxu1 %v476_v48  ;;  %1559 = vmatmul.mubr.f32.vlgmr.msra.gmra.mxu1 %v655_v38  ;;  %v452_v19 = vld [vmem:[%s4272_s1 + $0xd38] sm:$0xff]  ;;  %v419_v22 = vld [vmem:[%s4272_s1 + $0xc30] sm:$0xff]  ;;  %v418_v26 = vld [vmem:[%s4272_s1 + $0xc28] sm:$0xff] }
  0xd1   :  { %2377 = vmatpush3.msra.mxu0 %v428_v49  ;;  %2412 = vmatpush3.msra.mxu1 %v460_v50  ;;  %v451_v23 = vld [vmem:[%s4272_s1 + $0xd30] sm:$0xff]  ;;  %v450_v27 = vld [vmem:[%s4272_s1 + $0xd28] sm:$0xff]  ;;  %v433_v29 = vld [vmem:[%s4272_s1 + $0xca0] sm:$0xff] }
  0xd2   :  { %2378 = vmatprep.subr.mxu0 %v443_v52  ;;  %2413 = vmatprep.subr.mxu1 %v475_v53  ;;  %v27_v28 = vld [vmem:[%s4271_s0 + $0x30] sm:$0xff]  ;;  %v465_v30 = vld [vmem:[%s4272_s1 + $0xda0] sm:$0xff]  ;;  %v432_v33 = vld [vmem:[%s4272_s1 + $0xc98] sm:$0xff] }
  0xd3   :  { %2379 = vmatpush3.msra.mxu0 %v427_v54  ;;  %2414 = vmatpush3.msra.mxu1 %v459_v55  ;;  %v417_v31 = vld [vmem:[%s4272_s1 + $0xc20] sm:$0xff]  ;;  %v464_v34 = vld [vmem:[%s4272_s1 + $0xd98] sm:$0xff]  ;;  %v658_v35 = vcombine.high %v27_v28, %v27_v28  ;;  %v431_v38 = vld [vmem:[%s4272_s1 + $0xc90] sm:$0xff]  ;;  %v665_v40 = vrot.slane %v27_v28, %v2774_v51 }
  0xd4   :  { %2380 = vmatprep.subr.mxu0 %v442_v56  ;;  %2415 = vmatprep.subr.mxu1 %v474_v57  ;;  %v449_v32 = vld [vmem:[%s4272_s1 + $0xd20] sm:$0xff]  ;;  %v416_v36 = vld [vmem:[%s4272_s1 + $0xc18] sm:$0xff]  ;;  %v463_v39 = vld [vmem:[%s4272_s1 + $0xd90] sm:$0xff] }
  0xd5   :  { %2381 = vmatpush3.msra.mxu0 %v426_v58  ;;  %2416 = vmatpush3.msra.mxu1 %v458_v59  ;;  %v448_v37 = vld [vmem:[%s4272_s1 + $0xd18] sm:$0xff]  ;;  %v415_v41 = vld [vmem:[%s4272_s1 + $0xc10] sm:$0xff]  ;;  %v430_v43 = vld [vmem:[%s4272_s1 + $0xc88] sm:$0xff]  ;;  %v672_v45 = vrot.slane %v658_v35, %v2774_v51  ;;  %v673_v50 = vcombine.high %v665_v40, %v665_v40 }
  0xd6   :  { %2382 = vmatprep.subr.mxu0 %v441_v60  ;;  %2417 = vmatprep.subr.mxu1 %v473_v61  ;;  %v447_v42 = vld [vmem:[%s4272_s1 + $0xd10] sm:$0xff]  ;;  %v462_v44 = vld [vmem:[%s4272_s1 + $0xd88] sm:$0xff]  ;;  %v429_v48 = vld [vmem:[%s4272_s1 + $0xc80] sm:$0xff] }
  0xd7   :  { %2383 = vmatpush3.msra.mxu0 %v425_v62  ;;  %2418 = vmatpush3.msra.mxu1 %v457_v63  ;;  %v414_v46 = vld [vmem:[%s4272_s1 + $0xc08] sm:$0xff]  ;;  %v461_v49 = vld [vmem:[%s4272_s1 + $0xd80] sm:$0xff]  ;;  %v674_v54 = vcombine.high %v672_v45, %v672_v45  ;;  %v508_v55 = vld [vmem:[%s4272_s1 + $0xef8] sm:$0xff] }
  0xd8   :  { %2384 = vmatprep.subr.mxu0 %v440_v0  ;;  %2419 = vmatprep.subr.mxu1 %v472_v1  ;;  %v446_v47 = vld [vmem:[%s4272_s1 + $0xd08] sm:$0xff]  ;;  %v413_v52 = vld [vmem:[%s4272_s1 + $0xc00] sm:$0xff]  ;;  %v540_v56 = vld [vmem:[%s4272_s1 + $0xff8] sm:$0xff] }
  0xd9   :  { %2385 = vmatpush3.msra.mxu0 %v424_v2  ;;  %2420 = vmatpush3.msra.mxu1 %v456_v3  ;;  %v445_v53 = vld [vmem:[%s4272_s1 + $0xd00] sm:$0xff]  ;;  %v492_v57 = vld [vmem:[%s4272_s1 + $0xe78] sm:$0xff]  ;;  %v507_v59 = vld [vmem:[%s4272_s1 + $0xef0] sm:$0xff] }
  0xda   :  { %2386 = vmatprep.subr.mxu0 %v439_v4  ;;  %2421 = vmatprep.subr.mxu1 %v471_v5  ;;  %v524_v58 = vld [vmem:[%s4272_s1 + $0xf78] sm:$0xff]  ;;  %v539_v60 = vld [vmem:[%s4272_s1 + $0xff0] sm:$0xff]  ;;  %v506_v63 = vld [vmem:[%s4272_s1 + $0xee8] sm:$0xff] }
  0xdb   :  { %2387 = vmatpush3.msra.mxu0 %v423_v6  ;;  %2422 = vmatpush3.msra.mxu1 %v455_v7  ;;  %v491_v61 = vld [vmem:[%s4272_s1 + $0xe70] sm:$0xff]  ;;  %v538_v0 = vld [vmem:[%s4272_s1 + $0xfe8] sm:$0xff]  ;;  %v505_v3 = vld [vmem:[%s4272_s1 + $0xee0] sm:$0xff] }
  0xdc   :  { %2388 = vmatprep.subr.mxu0 %v438_v8  ;;  %2423 = vmatprep.subr.mxu1 %v470_v9  ;;  %v523_v62 = vld [vmem:[%s4272_s1 + $0xf70] sm:$0xff]  ;;  %v490_v1 = vld [vmem:[%s4272_s1 + $0xe68] sm:$0xff]  ;;  %v537_v4 = vld [vmem:[%s4272_s1 + $0xfe0] sm:$0xff] }
  0xdd   :  { %2389 = vmatpush3.msra.mxu0 %v422_v10  ;;  %2424 = vmatpush3.msra.mxu1 %v454_v11  ;;  %v522_v2 = vld [vmem:[%s4272_s1 + $0xf68] sm:$0xff]  ;;  %v489_v5 = vld [vmem:[%s4272_s1 + $0xe60] sm:$0xff]  ;;  %v504_v7 = vld [vmem:[%s4272_s1 + $0xed8] sm:$0xff] }
  0xde   :  { %2390 = vmatprep.subr.mxu0 %v437_v12  ;;  %2425 = vmatprep.subr.mxu1 %v469_v13  ;;  %v521_v6 = vld [vmem:[%s4272_s1 + $0xf60] sm:$0xff]  ;;  %v536_v8 = vld [vmem:[%s4272_s1 + $0xfd8] sm:$0xff]  ;;  %v503_v11 = vld [vmem:[%s4272_s1 + $0xed0] sm:$0xff] }
  0xdf   :  { %2391 = vmatpush3.msra.mxu0 %v421_v14  ;;  %2426 = vmatpush3.msra.mxu1 %v453_v15  ;;  %v488_v9 = vld [vmem:[%s4272_s1 + $0xe58] sm:$0xff]  ;;  %v535_v12 = vld [vmem:[%s4272_s1 + $0xfd0] sm:$0xff]  ;;  %v502_v15 = vld [vmem:[%s4272_s1 + $0xec8] sm:$0xff] }
  0xe0   :  { %2392 = vmatprep.subr.mxu0 %v436_v16  ;;  %2427 = vmatprep.subr.mxu1 %v468_v17  ;;  %v520_v10 = vld [vmem:[%s4272_s1 + $0xf58] sm:$0xff]  ;;  %v487_v13 = vld [vmem:[%s4272_s1 + $0xe50] sm:$0xff]  ;;  %v534_v16 = vld [vmem:[%s4272_s1 + $0xfc8] sm:$0xff] }
  0xe1   :  { %2393 = vmatpush3.msra.mxu0 %v420_v18  ;;  %2428 = vmatpush3.msra.mxu1 %v452_v19  ;;  %v519_v14 = vld [vmem:[%s4272_s1 + $0xf50] sm:$0xff]  ;;  %v486_v17 = vld [vmem:[%s4272_s1 + $0xe48] sm:$0xff]  ;;  %v501_v19 = vld [vmem:[%s4272_s1 + $0xec0] sm:$0xff] }
  0xe2   :  { %2394 = vmatprep.subr.mxu0 %v435_v20  ;;  %2429 = vmatprep.subr.mxu1 %v467_v21  ;;  %v518_v18 = vld [vmem:[%s4272_s1 + $0xf48] sm:$0xff]  ;;  %v533_v20 = vld [vmem:[%s4272_s1 + $0xfc0] sm:$0xff]  ;;  %v531_v28 = vld [vmem:[%s4272_s1 + $0xfb0] sm:$0xff] }
  0xe3   :  { %2395 = vmatpush3.msra.mxu0 %v419_v22  ;;  %2430 = vmatpush3.msra.mxu1 %v451_v23  ;;  %v485_v21 = vld [vmem:[%s4272_s1 + $0xe40] sm:$0xff]  ;;  %v500_v23 = vld [vmem:[%s4272_s1 + $0xeb8] sm:$0xff]  ;;  %v514_v35 = vld [vmem:[%s4272_s1 + $0xf28] sm:$0xff] }
  0xe4   :  { %2396 = vmatprep.subr.mxu0 %v434_v24  ;;  %2431 = vmatprep.subr.mxu1 %v466_v25  ;;  %v517_v22 = vld [vmem:[%s4272_s1 + $0xf40] sm:$0xff]  ;;  %v532_v24 = vld [vmem:[%s4272_s1 + $0xfb8] sm:$0xff] }
  0xe5   :  { %2397 = vmatpush3.msra.mxu0 %v418_v26  ;;  %2432 = vmatpush3.msra.mxu1 %v450_v27  ;;  %v484_v25 = vld [vmem:[%s4272_s1 + $0xe38] sm:$0xff]  ;;  %v499_v27 = vld [vmem:[%s4272_s1 + $0xeb0] sm:$0xff] }
  0xe6   :  { %2398 = vmatprep.subr.mxu0 %v433_v29  ;;  %2433 = vmatprep.subr.mxu1 %v465_v30  ;;  %v516_v26 = vld [vmem:[%s4272_s1 + $0xf38] sm:$0xff]  ;;  %v483_v29 = vld [vmem:[%s4272_s1 + $0xe30] sm:$0xff] }
  0xe7   :  { %2399 = vmatpush3.msra.mxu0 %v417_v31  ;;  %2434 = vmatpush3.msra.mxu1 %v449_v32  ;;  %v515_v30 = vld [vmem:[%s4272_s1 + $0xf30] sm:$0xff]  ;;  %v498_v31 = vld [vmem:[%s4272_s1 + $0xea8] sm:$0xff] }
  0xe8   :  { %2400 = vmatprep.subr.mxu0 %v432_v33  ;;  %2435 = vmatprep.subr.mxu1 %v464_v34  ;;  %v530_v32 = vld [vmem:[%s4272_s1 + $0xfa8] sm:$0xff]  ;;  %v28_v33 = vld [vmem:[%s4271_s0 + $0x38] sm:$0xff] }
  0xe9   :  { %2401 = vmatpush3.msra.mxu0 %v416_v36  ;;  %2436 = vmatpush3.msra.mxu1 %v448_v37  ;;  %v482_v34 = vld [vmem:[%s4272_s1 + $0xe28] sm:$0xff]  ;;  %v497_v36 = vld [vmem:[%s4272_s1 + $0xea0] sm:$0xff] }
  0xea   :  { %2402 = vmatprep.subr.mxu0 %v431_v38  ;;  %2437 = vmatprep.subr.mxu1 %v463_v39  ;;  %v529_v37 = vld [vmem:[%s4272_s1 + $0xfa0] sm:$0xff] }
  0xeb   :  { %2403 = vmatpush3.msra.mxu0 %v415_v41  ;;  %2438 = vmatpush3.msra.mxu1 %v447_v42  ;;  %v481_v38 = vld [vmem:[%s4272_s1 + $0xe20] sm:$0xff]  ;;  %v496_v41 = vld [vmem:[%s4272_s1 + $0xe98] sm:$0xff] }
  0xec   :  { %2404 = vmatprep.subr.mxu0 %v430_v43  ;;  %2439 = vmatprep.subr.mxu1 %v462_v44  ;;  %v513_v39 = vld [vmem:[%s4272_s1 + $0xf20] sm:$0xff]  ;;  %v528_v42 = vld [vmem:[%s4272_s1 + $0xf98] sm:$0xff] }
  0xed   :  { %2405 = vmatpush3.msra.mxu0 %v414_v46  ;;  %2440 = vmatpush3.msra.mxu1 %v446_v47  ;;  %v480_v43 = vld [vmem:[%s4272_s1 + $0xe18] sm:$0xff]  ;;  %v527_v46 = vld [vmem:[%s4272_s1 + $0xf90] sm:$0xff]  ;;  %v682_v47 = vrot.slane %v28_v33, %v2774_v51 }
  0xee   :  { %2406 = vmatprep.subr.mxu0 %v429_v48  ;;  %2441 = vmatprep.subr.mxu1 %v461_v49  ;;  %v512_v44 = vld [vmem:[%s4272_s1 + $0xf18] sm:$0xff]  ;;  %v479_v48 = vld [vmem:[%s4272_s1 + $0xe10] sm:$0xff] }
  0xef   :  { %2407 = vmatpush3.msra.mxu0 %v413_v52  ;;  %1628 = vmatprep.mubr.f32.mxu0 %v673_v50  ;;  %v511_v49 = vld [vmem:[%s4272_s1 + $0xf10] sm:$0xff]  ;;  %v494_v52 = vld [vmem:[%s4272_s1 + $0xe88] sm:$0xff] }
  0xf0   :  { %2442 = vmatpush3.msra.mxu1 %v445_v53  ;;  %1629 = vmatmul.mubr.f32.vlgmr.msra.gmra.mxu0 %v665_v40  ;;  %v675_v40 = vcombine.high %v28_v33, %v28_v33  ;;  %v526_v53 = vld [vmem:[%s4272_s1 + $0xf88] sm:$0xff] }
  0xf1   :  { %1698 = vmatprep.mubr.f32.mxu1 %v674_v54  ;;  %2446 = vmatprep.subr.mxu0 %v508_v55  ;;  %v478_v54 = vld [vmem:[%s4272_s1 + $0xe08] sm:$0xff]  ;;  %v493_v55 = vld [vmem:[%s4272_s1 + $0xe80] sm:$0xff] }
  0xf2   :  { %2481 = vmatprep.subr.mxu1 %v540_v56  ;;  %1699 = vmatmul.mubr.f32.vlgmr.msra.gmra.mxu1 %v672_v45  ;;  %v495_v45 = vld [vmem:[%s4272_s1 + $0xe90] sm:$0xff]  ;;  %v689_v50 = vrot.slane %v675_v40, %v2774_v51  ;;  %v510_v51 = vld [vmem:[%s4272_s1 + $0xf08] sm:$0xff]  ;;  %v525_v56 = vld [vmem:[%s4272_s1 + $0xf80] sm:$0xff] }
  0xf3   :  { %2447 = vmatpush3.msra.mxu0 %v492_v57  ;;  %2482 = vmatpush3.msra.mxu1 %v524_v58  ;;  %v690_v57 = vcombine.high %v682_v47, %v682_v47  ;;  %v477_v58 = vld [vmem:[%s4272_s1 + $0xe00] sm:$0xff] }
  0xf4   :  { %2448 = vmatprep.subr.mxu0 %v507_v59  ;;  %2483 = vmatprep.subr.mxu1 %v539_v60  ;;  %v691_v59 = vcombine.high %v689_v50, %v689_v50  ;;  %v509_v60 = vld [vmem:[%s4272_s1 + $0xf00] sm:$0xff] }
  0xf5   :  { %2449 = vmatpush3.msra.mxu0 %v491_v61  ;;  %2484 = vmatpush3.msra.mxu1 %v523_v62  ;;  %v1860_v61 = vld [vmem:[%s4274_s3 + $0x78] sm:$0xff]  ;;  %v2603_v62 = vmov 0.0  }
  0xf6   :  { %2450 = vmatprep.subr.mxu0 %v506_v63  ;;  %2485 = vmatprep.subr.mxu1 %v538_v0  ;;  %v1859_v63 = vld [vmem:[%s4274_s3 + $0x70] sm:$0xff]  ;;  %v1858_v0 = vld [vmem:[%s4274_s3 + $0x68] sm:$0xff] }
  0xf7   :  { %2451 = vmatpush3.msra.mxu0 %v490_v1  ;;  %2486 = vmatpush3.msra.mxu1 %v522_v2  ;;  %v1857_v1 = vld [vmem:[%s4274_s3 + $0x60] sm:$0xff]  ;;  %v1856_v2 = vld [vmem:[%s4274_s3 + $0x58] sm:$0xff] }
  0xf8   :  { %2452 = vmatprep.subr.mxu0 %v505_v3  ;;  %2487 = vmatprep.subr.mxu1 %v537_v4  ;;  %v1855_v3 = vld [vmem:[%s4274_s3 + $0x50] sm:$0xff]  ;;  %v1854_v4 = vld [vmem:[%s4274_s3 + $0x48] sm:$0xff] }
  0xf9   :  { %2453 = vmatpush3.msra.mxu0 %v489_v5  ;;  %2488 = vmatpush3.msra.mxu1 %v521_v6  ;;  %v1853_v5 = vld [vmem:[%s4274_s3 + $0x40] sm:$0xff]  ;;  %v1852_v6 = vld [vmem:[%s4274_s3 + $0x38] sm:$0xff] }
  0xfa   :  { %2454 = vmatprep.subr.mxu0 %v504_v7  ;;  %2489 = vmatprep.subr.mxu1 %v536_v8  ;;  %v1851_v7 = vld [vmem:[%s4274_s3 + $0x30] sm:$0xff]  ;;  %v1850_v8 = vld [vmem:[%s4274_s3 + $0x28] sm:$0xff] }
  0xfb   :  { %2455 = vmatpush3.msra.mxu0 %v488_v9  ;;  %2490 = vmatpush3.msra.mxu1 %v520_v10  ;;  %v1849_v9 = vld [vmem:[%s4274_s3 + $0x20] sm:$0xff]  ;;  %v1848_v10 = vld [vmem:[%s4274_s3 + $0x18] sm:$0xff] }
  0xfc   :  { %2456 = vmatprep.subr.mxu0 %v503_v11  ;;  %2491 = vmatprep.subr.mxu1 %v535_v12  ;;  %v1847_v11 = vld [vmem:[%s4274_s3 + $0x10] sm:$0xff]  ;;  %v1846_v12 = vld [vmem:[%s4274_s3 + $0x8] sm:$0xff] }
  0xfd   :  { %2457 = vmatpush3.msra.mxu0 %v487_v13  ;;  %2492 = vmatpush3.msra.mxu1 %v519_v14  ;;  %v1845_v13 = vld [vmem:[%s4274_s3] sm:$0xff]  ;;  %v1988_v14 = vpop.f32.mrf.mxu0 }
  0xfe   :  { %2458 = vmatprep.subr.mxu0 %v502_v15  ;;  %2493 = vmatprep.subr.mxu1 %v534_v16  ;;  %v2023_v15 = vpop.f32.mrf.mxu1 }
  0xff   :  { %2459 = vmatpush3.msra.mxu0 %v486_v17  ;;  %2494 = vmatpush3.msra.mxu1 %v518_v18  ;;  %v1989_v16 = vpop.f32.mrf.mxu0 }
 0x100   :  { %2460 = vmatprep.subr.mxu0 %v501_v19  ;;  %2495 = vmatprep.subr.mxu1 %v533_v20  ;;  %v1990_v18 = vadd.f32 %v1989_v16, %v1988_v14  ;;  %v1954_v19 = vld [vmem:[%s4273_s2] ss:$0 sm:$0xff]  ;;  %v2024_v20 = vpop.f32.mrf.mxu1 }
 0x101   :  { %2461 = vmatpush3.msra.mxu0 %v485_v21  ;;  %2496 = vmatpush3.msra.mxu1 %v517_v22  ;;  %v1955_v16 = vld [vmem:[%s4275_s4] ss:$0 sm:$0xff] }
 0x102   :  { %2462 = vmatprep.subr.mxu0 %v500_v23  ;;  %2497 = vmatprep.subr.mxu1 %v532_v24  ;;  %v791_v23 = vadd.f32 %v1990_v18, %v1954_v19  ;;  %v2025_v24 = vadd.f32 %v2024_v20, %v2023_v15 }
 0x103   :  { %2463 = vmatpush3.msra.mxu0 %v484_v25  ;;  %2498 = vmatpush3.msra.mxu1 %v516_v26 }
 0x104   :  { %2464 = vmatprep.subr.mxu0 %v499_v27  ;;  %2499 = vmatprep.subr.mxu1 %v531_v28  ;;  %v861_v28 = vadd.f32 %v2025_v24, %v791_v23 }
 0x105   :  { %2465 = vmatpush3.msra.mxu0 %v483_v29  ;;  %2500 = vmatpush3.msra.mxu1 %v515_v30 }
 0x106   :  { %2466 = vmatprep.subr.mxu0 %v498_v31  ;;  %2501 = vmatprep.subr.mxu1 %v530_v32  ;;  %v2058_v17 = vpop.f32.mrf.mxu0 }
 0x107   :  { %2467 = vmatpush3.msra.mxu0 %v482_v34  ;;  %2502 = vmatpush3.msra.mxu1 %v514_v35 }
 0x108   :  { %2468 = vmatprep.subr.mxu0 %v497_v36  ;;  %2503 = vmatprep.subr.mxu1 %v529_v37  ;;  %v2093_v21 = vpop.f32.mrf.mxu1  ;;  %v2059_v22 = vpop.f32.mrf.mxu0 }
 0x109   :  { %2469 = vmatpush3.msra.mxu0 %v481_v38  ;;  %2504 = vmatpush3.msra.mxu1 %v513_v39  ;;  %v2060_v26 = vadd.f32 %v2059_v22, %v2058_v17 }
 0x10a   :  { %2470 = vmatprep.subr.mxu0 %v496_v41  ;;  %2505 = vmatprep.subr.mxu1 %v528_v42  ;;  %v2094_v27 = vpop.f32.mrf.mxu1 }
 0x10b   :  { %2471 = vmatpush3.msra.mxu0 %v480_v43  ;;  %2506 = vmatpush3.msra.mxu1 %v512_v44  ;;  %v931_v31 = vadd.f32 %v2060_v26, %v861_v28  ;;  %v2095_v32 = vadd.f32 %v2094_v27, %v2093_v21 }
 0x10c   :  { %2472 = vmatprep.subr.mxu0 %v495_v45  ;;  %2507 = vmatprep.subr.mxu1 %v527_v46 }
 0x10d   :  { %2473 = vmatpush3.msra.mxu0 %v479_v48  ;;  %2508 = vmatpush3.msra.mxu1 %v511_v49  ;;  %v1001_v36 = vadd.f32 %v2095_v32, %v931_v31 }
 0x10e   :  { %2474 = vmatprep.subr.mxu0 %v494_v52  ;;  %2509 = vmatprep.subr.mxu1 %v526_v53 }
 0x10f   :  { %2475 = vmatpush3.msra.mxu0 %v478_v54  ;;  %2510 = vmatpush3.msra.mxu1 %v510_v51 }
 0x110   :  { %2476 = vmatprep.subr.mxu0 %v493_v55  ;;  %2511 = vmatprep.subr.mxu1 %v525_v56 }
 0x111   :  { %2477 = vmatpush3.msra.mxu0 %v477_v58  ;;  %1768 = vmatprep.mubr.f32.mxu0 %v690_v57 }
 0x112   :  { %2512 = vmatpush3.msra.mxu1 %v509_v60  ;;  %1838 = vmatprep.mubr.f32.mxu1 %v691_v59 }
 0x113   :  { %1769 = vmatmul.mubr.f32.vlgmr.msra.gmra.mxu0 %v682_v47  ;;  %1839 = vmatmul.mubr.f32.vlgmr.msra.gmra.mxu1 %v689_v50 }
 0x114   :  { %2533 = vmatprep.subr.mxu0 %v2603_v62  ;;  %2565 = vmatprep.mubr.msk.f32.mxu0 %vm2604_vm0, %v2603_v62 }
 0x115   :  { %2534 = vmatpush3.msra.mxu0 %v1860_v61 }
 0x116   :  { %2535 = vmatprep.subr.mxu0 %v2603_v62 }
 0x117   :  { %2536 = vmatpush3.msra.mxu0 %v1859_v63 }
 0x118   :  { %2537 = vmatprep.subr.mxu0 %v2603_v62 }
 0x119   :  { %2538 = vmatpush3.msra.mxu0 %v1858_v0 }
 0x11a   :  { %2539 = vmatprep.subr.mxu0 %v2603_v62 }
 0x11b   :  { %2540 = vmatpush3.msra.mxu0 %v1857_v1 }
 0x11c   :  { %2541 = vmatprep.subr.mxu0 %v2603_v62 }
 0x11d   :  { %2542 = vmatpush3.msra.mxu0 %v1856_v2 }
 0x11e   :  { %2543 = vmatprep.subr.mxu0 %v2603_v62 }
 0x11f   :  { %2544 = vmatpush3.msra.mxu0 %v1855_v3 }
 0x120   :  { %2545 = vmatprep.subr.mxu0 %v2603_v62 }
 0x121   :  { %2546 = vmatpush3.msra.mxu0 %v1854_v4 }
 0x122   :  { %2547 = vmatprep.subr.mxu0 %v2603_v62 }
 0x123   :  { %2548 = vmatpush3.msra.mxu0 %v1853_v5 }
 0x124   :  { %2549 = vmatprep.subr.mxu0 %v2603_v62 }
 0x125   :  { %2550 = vmatpush3.msra.mxu0 %v1852_v6 }
 0x126   :  { %2551 = vmatprep.subr.mxu0 %v2603_v62 }
 0x127   :  { %2552 = vmatpush3.msra.mxu0 %v1851_v7 }
 0x128   :  { %2553 = vmatprep.subr.mxu0 %v2603_v62  ;;  %v2128_v25 = vpop.f32.mrf.mxu0 }
 0x129   :  { %2554 = vmatpush3.msra.mxu0 %v1850_v8 }
 0x12a   :  { %2555 = vmatprep.subr.mxu0 %v2603_v62  ;;  %v2163_v29 = vpop.f32.mrf.mxu1  ;;  %v2129_v30 = vpop.f32.mrf.mxu0 }
 0x12b   :  { %2556 = vmatpush3.msra.mxu0 %v1849_v9  ;;  %v2130_v34 = vadd.f32 %v2129_v30, %v2128_v25 }
 0x12c   :  { %2557 = vmatprep.subr.mxu0 %v2603_v62  ;;  %v2164_v35 = vpop.f32.mrf.mxu1 }
 0x12d   :  { %2558 = vmatpush3.msra.mxu0 %v1848_v10  ;;  %v1071_v39 = vadd.f32 %v2130_v34, %v1001_v36  ;;  %v2165_v40 = vadd.f32 %v2164_v35, %v2163_v29 }
 0x12e   :  { %2559 = vmatprep.subr.mxu0 %v2603_v62 }
 0x12f   :  { %2560 = vmatpush3.msra.mxu0 %v1847_v11  ;;  %v1141_v44 = vadd.f32 %v2165_v40, %v1071_v39 }
 0x130   :  { %2561 = vmatprep.subr.mxu0 %v2603_v62 }
 0x131   :  { %2562 = vmatpush3.msra.mxu0 %v1846_v12 }
 0x132   :  { %2563 = vmatprep.subr.mxu0 %v2603_v62 }
 0x133   :  { %2564 = vmatpush3.msra.mxu0 %v1845_v13 }
 0x14a   :  { %v2198_v33 = vpop.f32.mrf.mxu0 }
 0x14c   :  { %v2233_v37 = vpop.f32.mrf.mxu1  ;;  %v2199_v38 = vpop.f32.mrf.mxu0 }
 0x14d   :  { %v2200_v42 = vadd.f32 %v2199_v38, %v2198_v33 }
 0x14e   :  { %v2234_v43 = vpop.f32.mrf.mxu1 }
 0x14f   :  { %v1211_v47 = vadd.f32 %v2200_v42, %v1141_v44  ;;  %v2235_v48 = vadd.f32 %v2234_v43, %v2233_v37 }
 0x151   :  { %v1281_v53 = vadd.f32 %v2235_v48, %v1211_v47 }
 0x16c   :  { %v2268_v41 = vpop.f32.mrf.mxu0 }
 0x16e   :  { %v2303_v45 = vpop.f32.mrf.mxu1  ;;  %v2269_v46 = vpop.f32.mrf.mxu0 }
 0x16f   :  { %v2270_v50 = vadd.f32 %v2269_v46, %v2268_v41 }
 0x170   :  { %v2304_v52 = vpop.f32.mrf.mxu1 }
 0x171   :  { %v1351_v55 = vadd.f32 %v2270_v50, %v1281_v53  ;;  %v2305_v56 = vadd.f32 %v2304_v52, %v2303_v45 }
 0x173   :  { %v1421_v60 = vadd.f32 %v2305_v56, %v1351_v55 }
 0x18e   :  { %v2338_v49 = vpop.f32.mrf.mxu0 }
 0x190   :  { %v2373_v54 = vpop.f32.mrf.mxu1  ;;  %v2339_v51 = vpop.f32.mrf.mxu0 }
 0x191   :  { %v2340_v58 = vadd.f32 %v2339_v51, %v2338_v49 }
 0x192   :  { %v2374_v59 = vpop.f32.mrf.mxu1 }
 0x193   :  { %v1491_v63 = vadd.f32 %v2340_v58, %v1421_v60  ;;  %v2375_v0 = vadd.f32 %v2374_v59, %v2373_v54 }
 0x195   :  { %v1561_v3 = vadd.f32 %v2375_v0, %v1491_v63 }
 0x1b0   :  { %v2408_v57 = vpop.f32.mrf.mxu0 }
 0x1b2   :  { %v2443_v61 = vpop.f32.mrf.mxu1  ;;  %v2409_v62 = vpop.f32.mrf.mxu0 }
 0x1b3   :  { %v2410_v1 = vadd.f32 %v2409_v62, %v2408_v57 }
 0x1b4   :  { %v2444_v2 = vpop.f32.mrf.mxu1 }
 0x1b5   :  { %v1631_v4 = vadd.f32 %v2410_v1, %v1561_v3  ;;  %v2445_v5 = vadd.f32 %v2444_v2, %v2443_v61 }
 0x1b7   :  { %v1701_v10 = vadd.f32 %v2445_v5, %v1631_v4 }
 0x1d3   :  { %v2478_v6 = vpop.f32.mrf.mxu0  ;;  %v2513_v7 = vpop.f32.mrf.mxu1 }
 0x1d5   :  { %v2479_v8 = vpop.f32.mrf.mxu0  ;;  %v2514_v9 = vpop.f32.mrf.mxu1 }
 0x1d6   :  { %v2480_v11 = vadd.f32 %v2479_v8, %v2478_v6  ;;  %v2515_v13 = vadd.f32 %v2514_v9, %v2513_v7 }
 0x1d8   :  { %v1771_v12 = vadd.f32 %v2480_v11, %v1701_v10 }
 0x1da   :  { %v1841_v14 = vadd.f32 %v2515_v13, %v1771_v12 }
 0x1dc   :  { %v1844_v15 = vmax.f32 %v1841_v14, 0.0 }
 0x1de   :  { %2566 = vmatmul.mubr.f32.vlgmr.msra.gmra.mxu0 %v1844_v15 }
 0x29e   :  { %v1934_v17 = vpop.f32.mrf.mxu0 }
 0x29f   :  { %v1935_v18 = vadd.f32 %v1955_v16, %v1934_v17 }
 0x2a0   :  { %v2567_v19 = vpop.f32.mrf.mxu0 }
 0x2a1   :  { %1939 = vst.msk [vmem:[#allocation2] sm:$0x3] %vm1938_vm1, %v1935_v18 }
 0x2a2   :  { %2591 = shalt.err (!%p2588_p4)
}
 0x2a3   :  { %1949 = dma.vmem_to_hbm [thread:$0]  %s1947_s13, 32, %s4276_s5, [#allocation3]  }
 0x2a4   :  { %2600 = dma.done.wait [#allocation3], 32  }
 0x2a5   :  { %2601 = vsyncadd [#allocation3], 4294967264 }
 0x2a6   :  { %1953 = vsyncpa [#allocation3], 1 }

// kernel: neural_net_forward.2
= control target key start
LH: loop header
LB: loop body
LE: loop exit
PB: predicated region body
PF: predicated region fallthrough
CT: control target
= control target key end

     0   :  { %10 = vsyncpa [#allocation7], 0  ;;  %s12692_s0 = inlined_call_operand.vmem [shape: f32[2,32,32,3], index: 0, kind: input, shape index: {}]   ;;  %s12693_s1 = inlined_call_operand.hbm [shape: f32[27,32], index: 1, kind: input, shape index: {}]   ;;  %s12694_s2 = inlined_call_operand.hbm [shape: f32[1,32], index: 2, kind: input, shape index: {}]   ;;  %s12695_s3 = inlined_call_operand.vmem [shape: f32[288,64], index: 3, kind: input, shape index: {}]   ;;  %s12696_s4 = inlined_call_operand.hbm [shape: f32[1,64], index: 4, kind: input, shape index: {}]   ;;  %s12697_s5 = inlined_call_operand.vmem [shape: f32[2,8,4,128], index: 5, kind: output, shape index: {}]  }
   0x1   :  { %11 = vsyncpa [#allocation9], 0  ;;  %s8033_s18 = smov 0  }
   0x2 LB: > { %s7990_s19 = smov [#allocation8]   ;;  %s8039_s21 = sadd.s32 4294967295, %s7988_s18   ;;  %s7988_s18 = sphi %s8033_s18, %s17_s18  }
   0x3   : > { %s184_s20 = sshll.u32 %s7990_s19, 4  ;;  %p7179_p0 = scmp.ge.s32.totalorder %s7988_s18, 1  ;;  %s185_s20 = int_to_ptr.vmem [resolvable:$true] %s184_s20 }
   0x4   : > { %p158_p1 = scmp.lt.s32.totalorder %s7988_s18, 3  ;;  %p12698_p2 = scmp.eq.s32.totalorder %s8039_s21, 0 }
   0x5   : > { %s7991_s23 = smov [#allocation6]   ;;  %s7992_s26 = smov [#allocation10]  }
   0x6   : > { %p8044_p3 = pnand %p7179_p0, %p158_p1  ;;  %s170_s24 = sshll.u32 %s7991_s23, 4  ;;  %s171_s24 = int_to_ptr.vmem [resolvable:$true] %s170_s24 }
   0x7   : > { %s198_s27 = sshll.u32 %s7992_s26, 4  ;;  %s7907_s28 = scalar_lea.vmem %s185_s20, 16  ;;  %s8056_s27 = int_to_ptr.vmem [resolvable:$true] %s198_s27 }
   0x8   : > { %s12709_s22 = scalar_select %p8044_p3, 1, 0 }
   0x9   : > { %p7795_p4 = pneg %p8044_p3  ;;  %p7908_p7 = scmp.ne.s32.totalorder %s185_s20, %s7907_s28 }
   0xa   : > { %s7914_s29 = scalar_lea.vmem %s185_s20, 32  ;;  %p7915_p10 = scmp.lt.s32.totalorder %s185_s20, %s185_s20 }
   0xb   : > { %p8052_p5 = pnand %p12698_p2, %p7795_p4  ;;  %p7916_p11 = scmp.lt.s32.totalorder %s7914_s29, %s7907_s28 }
   0xd   : > { %p7898_p6 = pneg %p8052_p5  ;;  %p7917_p12 = por %p7916_p11, %p7915_p10 }
   0xf   : > { %p7910_p8 = pnand %p7908_p7, %p7898_p6 }
  0x11   : > { %p7911_p9 = pneg %p7910_p8 }
  0x13   : > { %p7918_p13 = pnand %p7917_p12, %p7911_p9 }
  0x15   : > { %7921 = shalt.err (!%p7918_p13)
}
  0x16   : > { %7801 = dma.hbm_to_vmem [thread:$0]  (!%p8052_p5), %s12694_s2, 16, %s185_s20, [#allocation9]  }
  0x17   : > { %s7933_s7 = scalar_lea.vmem %s171_s24, 512  ;;  %p7941_p7 = scmp.lt.s32.totalorder %s171_s24, %s171_s24 }
  0x18   : > { %p7934_p0 = scmp.ne.s32.totalorder %s171_s24, %s7933_s7  ;;  %p7942_p8 = scmp.lt.s32.totalorder %s7933_s7, %s7933_s7 }
  0x1a   : > { %p7936_p1 = pnand %p7934_p0, %p7898_p6  ;;  %p7943_p2 = por %p7942_p8, %p7941_p7 }
  0x1c   : > { %p7937_p4 = pneg %p7936_p1 }
  0x1e   : > { %p7944_p3 = pnand %p7943_p2, %p7937_p4 }
  0x20   : > { %7947 = shalt.err (!%p7944_p3)
}
  0x21   : > { %s7993_s8 = smov 128   ;;  %s7994_s9 = smov 8  }
  0x22   : > { %7798 = dma.hbm_to_vmem [thread:$0]  (!%p8052_p5), %s12693_s1, 512, %s171_s24, [#allocation7], %s7993_s8, %s7993_s8, %s7994_s9  }
  0x23   : > { %s7959_s12 = scalar_lea.vmem %s8056_s27, 16  ;;  %s7966_s13 = scalar_lea.vmem %s8056_s27, 32 }
  0x24   : > { %p7960_p9 = scmp.ne.s32.totalorder %s8056_s27, %s7959_s12  ;;  %p7967_p3 = scmp.lt.s32.totalorder %s8056_s27, %s8056_s27 }
  0x25   : > { %p7968_p11 = scmp.lt.s32.totalorder %s7966_s13, %s7959_s12 }
  0x26   : > { %p7962_p10 = pnand %p7960_p9, %p7898_p6 }
  0x27   : > { %p7969_p12 = por %p7968_p11, %p7967_p3 }
  0x28   : > { %p7963_p2 = pneg %p7962_p10 }
  0x2a   : > { %p7970_p13 = pnand %p7969_p12, %p7963_p2 }
  0x2c   : > { %7973 = shalt.err (!%p7970_p13)
}
  0x2d   : > { %7804 = dma.hbm_to_vmem [thread:$0]  (!%p8052_p5), %s12696_s4, 16, %s8056_s27, [#allocation9]  }
  0x2e   : > { %p12711_p0 = scmp.ne.s32.totalorder %s12709_s22, 0 }
  0x30   : > { %219 = sbr.rel (%p12711_p0) target bundleno = 2232 (0x8b8), region = 40 }
  0x35   : > { %p12712_p6 = scmp.eq.s32.totalorder %s8039_s21, 0 }
  0x37   : > { %7979 = dma.done.wait (%p12712_p6), [#allocation7], 512   ;;  %p12713_p1 = pmov %p12712_p6 }
  0x39   : > { %7981 = vsyncadd (%p12713_p1), [#allocation7], 4294966784  ;;  %p12714_p4 = pmov %p12713_p1 }
  0x3a   : > { %p12715_p7 = pmov %p12713_p1 }
  0x3b   : > { %7983 = dma.done.wait (%p12714_p4), [#allocation9], 32  }
  0x3c   : > { %7985 = vsyncadd (%p12715_p7), [#allocation9], 4294967264  ;;  %vm265_vm0 = vcmask 23552   ;;  %vm270_vm1 = vcmask 17408   ;;  %v12700_v0 = vmov 0.0   ;;  %p255_p5 = scmp.lt.s32.totalorder %s8039_s21, 1 }
  0x3d   : > { %268 = vst.msk [vmem:[#allocation2 + $0x10] sm:$0xff] %vm265_vm0, %v12700_v0  ;;  %269 = vst.msk [vmem:[#allocation2 + $0x18] sm:$0xff] %vm265_vm0, %v12700_v0  ;;  %6353 = vmatprep.subr.mxu1 %v12700_v0  ;;  %s7996_s22 = smov 3   ;;  %s7997_s23 = smov 6   ;;  %vm4017_vm2 = vcmask 1042432   ;;  %vm2326_vm3 = vcmask 48128  }
  0x3e   : > { %266 = vst.msk [vmem:[#allocation2] sm:$0xff] %vm265_vm0, %v12700_v0  ;;  %267 = vst.msk [vmem:[#allocation2 + $0x8] sm:$0xff] %vm265_vm0, %v12700_v0  ;;  %s12914_s21 = smov (!%p255_p5, %s8039_s21), 1  ;;  %s7998_s24 = smov 9   ;;  %vm3363_vm4 = vcmask 72704   ;;  %vm3492_vm5 = vcmask 146432  }
  0x3f   : > { %272 = vst.msk [vmem:[#allocation2 + $0x28] sm:$0xff] %vm265_vm0, %v12700_v0  ;;  %273 = vst.msk [vmem:[#allocation2 + $0x30] sm:$0xff] %vm265_vm0, %v12700_v0  ;;  %s7357_s16 = sshll.u32 %s12914_s21, 10  ;;  %s7999_s25 = smov 18   ;;  %vm3632_vm6 = vcmask 220160   ;;  %vm4854_vm7 = vcmask 261120  }
  0x40   : > { %274 = vst.msk [vmem:[#allocation2 + $0x38] sm:$0xff] %vm265_vm0, %v12700_v0  ;;  %275 = vst.msk [vmem:[#allocation2 + $0x40] sm:$0xff] %vm265_vm0, %v12700_v0  ;;  %s8449_s20 = scalar_lea.vmem %s12692_s0, %s7357_s16  ;;  %vm5400_vm8 = vcmask 254976   ;;  %s8000_s26 = smov 32   ;;  %vm5918_vm9 = vcmask 523264   ;;  %vm6181_vm10 = vcmask 785408  }
  0x41   : > { %277 = vst.msk [vmem:[#allocation2 + $0x50] sm:$0xff] %vm265_vm0, %v12700_v0  ;;  %278 = vst.msk [vmem:[#allocation2 + $0x58] sm:$0xff] %vm265_vm0, %v12700_v0  ;;  %v438_v1 = vld [vmem:[%s8449_s20 + $0x8] sm:$0xff]  ;;  %v437_v2 = vld [vmem:[%s8449_s20] sm:$0xff]  ;;  %s8001_s27 = smov 64   ;;  %s8002_s29 = smov 96  }
  0x42   : > { %279 = vst.msk [vmem:[#allocation2 + $0x60] sm:$0xff] %vm265_vm0, %v12700_v0  ;;  %280 = vst.msk [vmem:[#allocation2 + $0x68] sm:$0xff] %vm265_vm0, %v12700_v0  ;;  %v440_v3 = vld [vmem:[%s8449_s20 + $0x18] sm:$0xff]  ;;  %v439_v8 = vld [vmem:[%s8449_s20 + $0x10] sm:$0xff]  ;;  %vm6970_vm11 = vcmask 519168   ;;  %s7358_s12 = sshll.u32 %s12914_s21, 5 }
  0x43   : > { %282 = vst.msk [vmem:[#allocation2 + $0x78] sm:$0xff] %vm265_vm0, %v12700_v0  ;;  %283 = vst.msk [vmem:[#allocation2 + $0x80] sm:$0xff] %vm265_vm0, %v12700_v0  ;;  %v442_v9 = vld [vmem:[%s8449_s20 + $0x28] sm:$0xff]  ;;  %v441_v10 = vld [vmem:[%s8449_s20 + $0x20] sm:$0xff]  ;;  %s12657_s15 = scalar_lea.vmem %s12697_s5, %s7358_s12 }
  0x44   : > { %284 = vst.msk [vmem:[#allocation2 + $0x88] sm:$0xff] %vm265_vm0, %v12700_v0  ;;  %285 = vst.msk [vmem:[#allocation2 + $0x90] sm:$0xff] %vm265_vm0, %v12700_v0  ;;  %v832_v4 = vld [vmem:[#allocation2 + $0x11] sm:$0xff]  ;;  %v446_v13 = vld [vmem:[%s8449_s20 + $0x48] sm:$0xff] }
  0x45   : > { %287 = vst.msk [vmem:[#allocation2 + $0xa0] sm:$0xff] %vm265_vm0, %v12700_v0  ;;  %288 = vst.msk [vmem:[#allocation2 + $0xa8] sm:$0xff] %vm265_vm0, %v12700_v0  ;;  %v830_v5 = vld [vmem:[#allocation2 + $0x1] sm:$0xff]  ;;  %1242 = vrot.lane.b32.xlu1 %v832_v4, %s7996_s22  ;;  %v831_v7 = vld [vmem:[#allocation2 + $0x9] sm:$0xff] }
  0x46   : > { %289 = vst.msk [vmem:[#allocation2 + $0xb0] sm:$0xff] %vm265_vm0, %v12700_v0  ;;  %290 = vst.msk [vmem:[#allocation2 + $0xb8] sm:$0xff] %vm265_vm0, %v12700_v0  ;;  %1238 = vrot.lane.b32.xlu0 %v830_v5, %s7996_s22  ;;  %v444_v11 = vld [vmem:[%s8449_s20 + $0x38] sm:$0xff]  ;;  %v443_v12 = vld [vmem:[%s8449_s20 + $0x30] sm:$0xff] }
  0x47   : > { %292 = vst.msk [vmem:[#allocation2 + $0xc8] sm:$0xff] %vm265_vm0, %v12700_v0  ;;  %293 = vst.msk [vmem:[#allocation2 + $0xd0] sm:$0xff] %vm265_vm0, %v12700_v0  ;;  %v445_v14 = vld [vmem:[%s8449_s20 + $0x40] sm:$0xff]  ;;  %v448_v15 = vld [vmem:[%s8449_s20 + $0x58] sm:$0xff] }
  0x48   : > { %294 = vst.msk [vmem:[#allocation2 + $0xd8] sm:$0xff] %vm265_vm0, %v12700_v0  ;;  %295 = vst.msk [vmem:[#allocation2 + $0xe0] sm:$0xff] %vm265_vm0, %v12700_v0  ;;  %v447_v16 = vld [vmem:[%s8449_s20 + $0x50] sm:$0xff]  ;;  %v450_v17 = vld [vmem:[%s8449_s20 + $0x68] sm:$0xff] }
  0x49   : > { %297 = vst.msk [vmem:[#allocation2 + $0xf0] sm:$0xff] %vm265_vm0, %v12700_v0  ;;  %298 = vst.msk [vmem:[#allocation2 + $0xf8] sm:$0xff] %vm265_vm0, %v12700_v0  ;;  %v449_v18 = vld [vmem:[%s8449_s20 + $0x60] sm:$0xff]  ;;  %v452_v19 = vld [vmem:[%s8449_s20 + $0x78] sm:$0xff] }
  0x4a   : > { %299 = vst.msk [vmem:[#allocation2 + $0x100] sm:$0xff] %vm265_vm0, %v12700_v0  ;;  %300 = vst.msk [vmem:[#allocation2 + $0x108] sm:$0xff] %vm265_vm0, %v12700_v0  ;;  %1240 = vrot.lane.b32.xlu0 %v831_v7, %s7996_s22  ;;  %v451_v20 = vld [vmem:[%s8449_s20 + $0x70] sm:$0xff]  ;;  %v454_v21 = vld [vmem:[%s8449_s20 + $0x88] sm:$0xff] }
  0x4b   : > { %302 = vst.msk [vmem:[#allocation2 + $0x118] sm:$0xff] %vm265_vm0, %v12700_v0  ;;  %303 = vst.msk [vmem:[#allocation2 + $0x120] sm:$0xff] %vm265_vm0, %v12700_v0  ;;  %v453_v22 = vld [vmem:[%s8449_s20 + $0x80] sm:$0xff]  ;;  %v456_v23 = vld [vmem:[%s8449_s20 + $0x98] sm:$0xff] }
  0x4c   : > { %304 = vst.msk [vmem:[#allocation2 + $0x128] sm:$0xff] %vm265_vm0, %v12700_v0  ;;  %305 = vst.msk [vmem:[#allocation2 + $0x130] sm:$0xff] %vm265_vm0, %v12700_v0  ;;  %v455_v26 = vld [vmem:[%s8449_s20 + $0x90] sm:$0xff]  ;;  %v458_v27 = vld [vmem:[%s8449_s20 + $0xa8] sm:$0xff] }
  0x4d   : > { %307 = vst.msk [vmem:[#allocation2 + $0x140] sm:$0xff] %vm265_vm0, %v12700_v0  ;;  %308 = vst.msk [vmem:[#allocation2 + $0x148] sm:$0xff] %vm265_vm0, %v12700_v0  ;;  %v457_v28 = vld [vmem:[%s8449_s20 + $0xa0] sm:$0xff]  ;;  %v460_v29 = vld [vmem:[%s8449_s20 + $0xb8] sm:$0xff] }
  0x4e   : > { %309 = vst.msk [vmem:[#allocation2 + $0x150] sm:$0xff] %vm265_vm0, %v12700_v0  ;;  %310 = vst.msk [vmem:[#allocation2 + $0x158] sm:$0xff] %vm265_vm0, %v12700_v0  ;;  %v459_v32 = vld [vmem:[%s8449_s20 + $0xb0] sm:$0xff]  ;;  %v462_v35 = vld [vmem:[%s8449_s20 + $0xc8] sm:$0xff] }
  0x4f   : > { %312 = vst.msk [vmem:[#allocation2 + $0x168] sm:$0xff] %vm265_vm0, %v12700_v0  ;;  %313 = vst.msk [vmem:[#allocation2 + $0x170] sm:$0xff] %vm265_vm0, %v12700_v0  ;;  %v461_v36 = vld [vmem:[%s8449_s20 + $0xc0] sm:$0xff]  ;;  %v464_v37 = vld [vmem:[%s8449_s20 + $0xd8] sm:$0xff] }
  0x50   : > { %314 = vst.msk [vmem:[#allocation2 + $0x178] sm:$0xff] %vm265_vm0, %v12700_v0  ;;  %315 = vst.msk [vmem:[#allocation2 + $0x180] sm:$0xff] %vm265_vm0, %v12700_v0  ;;  %v463_v40 = vld [vmem:[%s8449_s20 + $0xd0] sm:$0xff]  ;;  %v466_v41 = vld [vmem:[%s8449_s20 + $0xe8] sm:$0xff] }
  0x51   : > { %317 = vst.msk [vmem:[#allocation2 + $0x190] sm:$0xff] %vm265_vm0, %v12700_v0  ;;  %318 = vst.msk [vmem:[#allocation2 + $0x198] sm:$0xff] %vm265_vm0, %v12700_v0  ;;  %v465_v42 = vld [vmem:[%s8449_s20 + $0xe0] sm:$0xff]  ;;  %v468_v43 = vld [vmem:[%s8449_s20 + $0xf8] sm:$0xff] }
  0x52   : > { %319 = vst.msk [vmem:[#allocation2 + $0x1a0] sm:$0xff] %vm265_vm0, %v12700_v0  ;;  %320 = vst.msk [vmem:[#allocation2 + $0x1a8] sm:$0xff] %vm265_vm0, %v12700_v0  ;;  %v467_v44 = vld [vmem:[%s8449_s20 + $0xf0] sm:$0xff]  ;;  %v470_v45 = vld [vmem:[%s8449_s20 + $0x108] sm:$0xff] }
  0x53   : > { %322 = vst.msk [vmem:[#allocation2 + $0x1b8] sm:$0xff] %vm265_vm0, %v12700_v0  ;;  %323 = vst.msk [vmem:[#allocation2 + $0x1c0] sm:$0xff] %vm265_vm0, %v12700_v0  ;;  %v469_v46 = vld [vmem:[%s8449_s20 + $0x100] sm:$0xff]  ;;  %v472_v47 = vld [vmem:[%s8449_s20 + $0x118] sm:$0xff] }
  0x54   : > { %324 = vst.msk [vmem:[#allocation2 + $0x1c8] sm:$0xff] %vm265_vm0, %v12700_v0  ;;  %325 = vst.msk [vmem:[#allocation2 + $0x1d0] sm:$0xff] %vm265_vm0, %v12700_v0  ;;  %v471_v49 = vld [vmem:[%s8449_s20 + $0x110] sm:$0xff]  ;;  %v474_v50 = vld [vmem:[%s8449_s20 + $0x128] sm:$0xff] }
  0x55   : > { %327 = vst.msk [vmem:[#allocation2 + $0x1e0] sm:$0xff] %vm265_vm0, %v12700_v0  ;;  %328 = vst.msk [vmem:[#allocation2 + $0x1e8] sm:$0xff] %vm265_vm0, %v12700_v0  ;;  %v473_v51 = vld [vmem:[%s8449_s20 + $0x120] sm:$0xff]  ;;  %v476_v53 = vld [vmem:[%s8449_s20 + $0x138] sm:$0xff] }
  0x56   : > { %329 = vst.msk [vmem:[#allocation2 + $0x1f0] sm:$0xff] %vm265_vm0, %v12700_v0  ;;  %330 = vst.msk [vmem:[#allocation2 + $0x1f8] sm:$0xff] %vm265_vm0, %v12700_v0  ;;  %v475_v54 = vld [vmem:[%s8449_s20 + $0x130] sm:$0xff]  ;;  %v478_v55 = vld [vmem:[%s8449_s20 + $0x148] sm:$0xff] }
  0x57   : > { %332 = vst.msk [vmem:[#allocation2 + $0x208] sm:$0xff] %vm265_vm0, %v12700_v0  ;;  %333 = vst.msk [vmem:[#allocation2 + $0x210] sm:$0xff] %vm265_vm0, %v12700_v0  ;;  %v477_v56 = vld [vmem:[%s8449_s20 + $0x140] sm:$0xff]  ;;  %v480_v57 = vld [vmem:[%s8449_s20 + $0x158] sm:$0xff] }
  0x58   : > { %334 = vst.msk [vmem:[#allocation2 + $0x218] sm:$0xff] %vm265_vm0, %v12700_v0  ;;  %335 = vst.msk [vmem:[#allocation2 + $0x220] sm:$0xff] %vm265_vm0, %v12700_v0  ;;  %v479_v58 = vld [vmem:[%s8449_s20 + $0x150] sm:$0xff]  ;;  %v482_v59 = vld [vmem:[%s8449_s20 + $0x168] sm:$0xff] }
  0x59   : > { %337 = vst.msk [vmem:[#allocation2 + $0x230] sm:$0xff] %vm265_vm0, %v12700_v0  ;;  %338 = vst.msk [vmem:[#allocation2 + $0x238] sm:$0xff] %vm265_vm0, %v12700_v0  ;;  %v481_v60 = vld [vmem:[%s8449_s20 + $0x160] sm:$0xff]  ;;  %v484_v61 = vld [vmem:[%s8449_s20 + $0x178] sm:$0xff] }
  0x5a   : > { %339 = vst.msk [vmem:[#allocation2 + $0x240] sm:$0xff] %vm265_vm0, %v12700_v0  ;;  %340 = vst.msk [vmem:[#allocation2 + $0x248] sm:$0xff] %vm265_vm0, %v12700_v0  ;;  %v486_v4 = vld [vmem:[%s8449_s20 + $0x188] sm:$0xff]  ;;  %v485_v5 = vld [vmem:[%s8449_s20 + $0x180] sm:$0xff] }
  0x5b   : > { %342 = vst.msk [vmem:[#allocation2 + $0x258] sm:$0xff] %vm265_vm0, %v12700_v0  ;;  %343 = vst.msk [vmem:[#allocation2 + $0x260] sm:$0xff] %vm265_vm0, %v12700_v0 }
  0x5c   : > { %344 = vst.msk [vmem:[#allocation2 + $0x268] sm:$0xff] %vm265_vm0, %v12700_v0  ;;  %345 = vst.msk [vmem:[#allocation2 + $0x270] sm:$0xff] %vm265_vm0, %v12700_v0 }
  0x5d   : > { %347 = vst.msk [vmem:[#allocation2 + $0x280] sm:$0xff] %vm265_vm0, %v12700_v0  ;;  %348 = vst.msk [vmem:[#allocation2 + $0x288] sm:$0xff] %vm265_vm0, %v12700_v0 }
  0x5e   : > { %349 = vst.msk [vmem:[#allocation2 + $0x290] sm:$0xff] %vm265_vm0, %v12700_v0  ;;  %350 = vst.msk [vmem:[#allocation2 + $0x298] sm:$0xff] %vm265_vm0, %v12700_v0 }
  0x5f   : > { %352 = vst.msk [vmem:[#allocation2 + $0x2a8] sm:$0xff] %vm265_vm0, %v12700_v0  ;;  %353 = vst.msk [vmem:[#allocation2 + $0x2b0] sm:$0xff] %vm265_vm0, %v12700_v0 }
  0x60   : > { %354 = vst.msk [vmem:[#allocation2 + $0x2b8] sm:$0xff] %vm265_vm0, %v12700_v0  ;;  %355 = vst.msk [vmem:[#allocation2 + $0x2c0] sm:$0xff] %vm265_vm0, %v12700_v0 }
  0x61   : > { %357 = vst.msk [vmem:[#allocation2 + $0x2d0] sm:$0xff] %vm265_vm0, %v12700_v0  ;;  %358 = vst.msk [vmem:[#allocation2 + $0x2d8] sm:$0xff] %vm265_vm0, %v12700_v0 }
  0x62   : > { %359 = vst.msk [vmem:[#allocation2 + $0x2e0] sm:$0xff] %vm265_vm0, %v12700_v0  ;;  %360 = vst.msk [vmem:[#allocation2 + $0x2e8] sm:$0xff] %vm265_vm0, %v12700_v0 }
  0x63   : > { %362 = vst.msk [vmem:[#allocation2 + $0x2f8] sm:$0xff] %vm265_vm0, %v12700_v0  ;;  %363 = vst.msk [vmem:[#allocation2 + $0x300] sm:$0xff] %vm265_vm0, %v12700_v0 }
  0x64   : > { %364 = vst.msk [vmem:[#allocation2 + $0x308] sm:$0xff] %vm265_vm0, %v12700_v0  ;;  %365 = vst.msk [vmem:[#allocation2 + $0x310] sm:$0xff] %vm265_vm0, %v12700_v0 }
  0x65   : > { %367 = vst.msk [vmem:[#allocation2 + $0x320] sm:$0xff] %vm265_vm0, %v12700_v0  ;;  %368 = vst.msk [vmem:[#allocation2 + $0x328] sm:$0xff] %vm265_vm0, %v12700_v0 }
  0x66   : > { %369 = vst.msk [vmem:[#allocation2 + $0x330] sm:$0xff] %vm265_vm0, %v12700_v0  ;;  %370 = vst.msk [vmem:[#allocation2 + $0x338] sm:$0xff] %vm265_vm0, %v12700_v0 }
  0x67   : > { %372 = vst.msk [vmem:[#allocation2 + $0x348] sm:$0xff] %vm265_vm0, %v12700_v0  ;;  %373 = vst.msk [vmem:[#allocation2 + $0x350] sm:$0xff] %vm265_vm0, %v12700_v0 }
  0x68   : > { %374 = vst.msk [vmem:[#allocation2 + $0x358] sm:$0xff] %vm265_vm0, %v12700_v0  ;;  %375 = vst.msk [vmem:[#allocation2 + $0x360] sm:$0xff] %vm265_vm0, %v12700_v0 }
  0x69   : > { %377 = vst.msk [vmem:[#allocation2 + $0x370] sm:$0xff] %vm265_vm0, %v12700_v0  ;;  %378 = vst.msk [vmem:[#allocation2 + $0x378] sm:$0xff] %vm265_vm0, %v12700_v0 }
  0x6a   : > { %379 = vst.msk [vmem:[#allocation2 + $0x380] sm:$0xff] %vm265_vm0, %v12700_v0  ;;  %380 = vst.msk [vmem:[#allocation2 + $0x388] sm:$0xff] %vm265_vm0, %v12700_v0 }
  0x6b   : > { %382 = vst.msk [vmem:[#allocation2 + $0x398] sm:$0xff] %vm265_vm0, %v12700_v0  ;;  %383 = vst.msk [vmem:[#allocation2 + $0x3a0] sm:$0xff] %vm265_vm0, %v12700_v0 }
  0x6c   : > { %384 = vst.msk [vmem:[#allocation2 + $0x3a8] sm:$0xff] %vm265_vm0, %v12700_v0  ;;  %385 = vst.msk [vmem:[#allocation2 + $0x3b0] sm:$0xff] %vm265_vm0, %v12700_v0 }
  0x6d   : > { %387 = vst.msk [vmem:[#allocation2 + $0x3c0] sm:$0xff] %vm265_vm0, %v12700_v0  ;;  %388 = vst.msk [vmem:[#allocation2 + $0x3c8] sm:$0xff] %vm265_vm0, %v12700_v0 }
  0x6e   : > { %389 = vst.msk [vmem:[#allocation2 + $0x3d0] sm:$0xff] %vm265_vm0, %v12700_v0  ;;  %390 = vst.msk [vmem:[#allocation2 + $0x3d8] sm:$0xff] %vm265_vm0, %v12700_v0 }
  0x6f   : > { %392 = vst.msk [vmem:[#allocation2 + $0x3e8] sm:$0xff] %vm265_vm0, %v12700_v0  ;;  %393 = vst.msk [vmem:[#allocation2 + $0x3f0] sm:$0xff] %vm265_vm0, %v12700_v0 }
  0x70   : > { %394 = vst.msk [vmem:[#allocation2 + $0x3f8] sm:$0xff] %vm265_vm0, %v12700_v0  ;;  %395 = vst.msk [vmem:[#allocation2 + $0x400] sm:$0xff] %vm265_vm0, %v12700_v0 }
  0x71   : > { %397 = vst.msk [vmem:[#allocation2 + $0x410] sm:$0xff] %vm265_vm0, %v12700_v0  ;;  %398 = vst.msk [vmem:[#allocation2 + $0x418] sm:$0xff] %vm265_vm0, %v12700_v0 }
  0x72   : > { %399 = vst.msk [vmem:[#allocation2 + $0x420] sm:$0xff] %vm265_vm0, %v12700_v0  ;;  %400 = vst.msk [vmem:[#allocation2 + $0x428] sm:$0xff] %vm265_vm0, %v12700_v0 }
  0x73   : > { %402 = vst.msk [vmem:[#allocation2 + $0x438] sm:$0xff] %vm265_vm0, %v12700_v0  ;;  %403 = vst.msk [vmem:[#allocation2 + $0x440] sm:$0xff] %vm265_vm0, %v12700_v0 }
  0x74   : > { %404 = vst.msk [vmem:[#allocation2 + $0x448] sm:$0xff] %vm265_vm0, %v12700_v0  ;;  %405 = vst.msk [vmem:[#allocation2 + $0x450] sm:$0xff] %vm265_vm0, %v12700_v0 }
  0x75   : > { %407 = vst.msk [vmem:[#allocation2 + $0x460] sm:$0xff] %vm265_vm0, %v12700_v0  ;;  %408 = vst.msk [vmem:[#allocation2 + $0x468] sm:$0xff] %vm265_vm0, %v12700_v0 }
  0x76   : > { %409 = vst.msk [vmem:[#allocation2 + $0x470] sm:$0xff] %vm265_vm0, %v12700_v0  ;;  %410 = vst.msk [vmem:[#allocation2 + $0x478] sm:$0xff] %vm265_vm0, %v12700_v0 }
  0x77   : > { %412 = vst.msk [vmem:[#allocation2 + $0x488] sm:$0xff] %vm265_vm0, %v12700_v0  ;;  %413 = vst.msk [vmem:[#allocation2 + $0x490] sm:$0xff] %vm265_vm0, %v12700_v0 }
  0x78   : > { %414 = vst.msk [vmem:[#allocation2 + $0x498] sm:$0xff] %vm265_vm0, %v12700_v0  ;;  %415 = vst.msk [vmem:[#allocation2 + $0x4a0] sm:$0xff] %vm265_vm0, %v12700_v0 }
  0x79   : > { %417 = vst.msk [vmem:[#allocation2 + $0x4b0] sm:$0xff] %vm265_vm0, %v12700_v0  ;;  %418 = vst.msk [vmem:[#allocation2 + $0x4b8] sm:$0xff] %vm265_vm0, %v12700_v0 }
  0x7a   : > { %419 = vst.msk [vmem:[#allocation2 + $0x4c0] sm:$0xff] %vm265_vm0, %v12700_v0  ;;  %420 = vst.msk [vmem:[#allocation2 + $0x4c8] sm:$0xff] %vm265_vm0, %v12700_v0 }
  0x7b   : > { %422 = vst.msk [vmem:[#allocation2 + $0x4d8] sm:$0xff] %vm265_vm0, %v12700_v0  ;;  %423 = vst.msk [vmem:[#allocation2 + $0x4e0] sm:$0xff] %vm265_vm0, %v12700_v0 }
  0x7c   : > { %424 = vst.msk [vmem:[#allocation2 + $0x4e8] sm:$0xff] %vm265_vm0, %v12700_v0  ;;  %425 = vst.msk [vmem:[#allocation2 + $0x4f0] sm:$0xff] %vm265_vm0, %v12700_v0 }
  0x7d   : > { %427 = vst.msk [vmem:[#allocation2 + $0x500] sm:$0xff] %vm265_vm0, %v12700_v0  ;;  %428 = vst.msk [vmem:[#allocation2 + $0x508] sm:$0xff] %vm265_vm0, %v12700_v0 }
  0x7e   : > { %429 = vst.msk [vmem:[#allocation2 + $0x510] sm:$0xff] %vm265_vm0, %v12700_v0  ;;  %430 = vst.msk [vmem:[#allocation2 + $0x518] sm:$0xff] %vm265_vm0, %v12700_v0 }
  0x7f   : > { %432 = vst.msk [vmem:[#allocation2 + $0x528] sm:$0xff] %vm265_vm0, %v12700_v0  ;;  %433 = vst.msk [vmem:[#allocation2 + $0x530] sm:$0xff] %vm265_vm0, %v12700_v0 }
  0x80   : > { %434 = vst.msk [vmem:[#allocation2 + $0x538] sm:$0xff] %vm265_vm0, %v12700_v0  ;;  %435 = vst.msk [vmem:[#allocation2 + $0x540] sm:$0xff] %vm265_vm0, %v12700_v0 }
  0x81   : > { %271 = vst.msk [vmem:[#allocation2 + $0x20] sm:$0x3] %vm270_vm1, %v12700_v0  ;;  %276 = vst.msk [vmem:[#allocation2 + $0x48] sm:$0x3] %vm270_vm1, %v12700_v0 }
  0x82   : > { %281 = vst.msk [vmem:[#allocation2 + $0x70] sm:$0x3] %vm270_vm1, %v12700_v0  ;;  %286 = vst.msk [vmem:[#allocation2 + $0x98] sm:$0x3] %vm270_vm1, %v12700_v0 }
  0x83   : > { %291 = vst.msk [vmem:[#allocation2 + $0xc0] sm:$0x3] %vm270_vm1, %v12700_v0  ;;  %296 = vst.msk [vmem:[#allocation2 + $0xe8] sm:$0x3] %vm270_vm1, %v12700_v0 }
  0x84   : > { %301 = vst.msk [vmem:[#allocation2 + $0x110] sm:$0x3] %vm270_vm1, %v12700_v0  ;;  %306 = vst.msk [vmem:[#allocation2 + $0x138] sm:$0x3] %vm270_vm1, %v12700_v0 }
  0x85   : > { %311 = vst.msk [vmem:[#allocation2 + $0x160] sm:$0x3] %vm270_vm1, %v12700_v0  ;;  %316 = vst.msk [vmem:[#allocation2 + $0x188] sm:$0x3] %vm270_vm1, %v12700_v0 }
  0x86   : > { %321 = vst.msk [vmem:[#allocation2 + $0x1b0] sm:$0x3] %vm270_vm1, %v12700_v0  ;;  %326 = vst.msk [vmem:[#allocation2 + $0x1d8] sm:$0x3] %vm270_vm1, %v12700_v0 }
  0x87   : > { %331 = vst.msk [vmem:[#allocation2 + $0x200] sm:$0x3] %vm270_vm1, %v12700_v0  ;;  %336 = vst.msk [vmem:[#allocation2 + $0x228] sm:$0x3] %vm270_vm1, %v12700_v0 }
  0x88   : > { %341 = vst.msk [vmem:[#allocation2 + $0x250] sm:$0x3] %vm270_vm1, %v12700_v0  ;;  %346 = vst.msk [vmem:[#allocation2 + $0x278] sm:$0x3] %vm270_vm1, %v12700_v0  ;;  %v833_v6 = vld [vmem:[#allocation2 + $0x19] sm:$0xff] }
  0x89   : > { %351 = vst.msk [vmem:[#allocation2 + $0x2a0] sm:$0x3] %vm270_vm1, %v12700_v0  ;;  %356 = vst.msk [vmem:[#allocation2 + $0x2c8] sm:$0x3] %vm270_vm1, %v12700_v0  ;;  %1244 = vrot.lane.b32.xlu1 %v833_v6, %s7996_s22  ;;  %v488_v6 = vld [vmem:[%s8449_s20 + $0x198] sm:$0xff] }
  0x8a   : > { %361 = vst.msk [vmem:[#allocation2 + $0x2f0] sm:$0x3] %vm270_vm1, %v12700_v0  ;;  %366 = vst.msk [vmem:[#allocation2 + $0x318] sm:$0x3] %vm270_vm1, %v12700_v0 }
  0x8b   : > { %371 = vst.msk [vmem:[#allocation2 + $0x340] sm:$0x3] %vm270_vm1, %v12700_v0  ;;  %376 = vst.msk [vmem:[#allocation2 + $0x368] sm:$0x3] %vm270_vm1, %v12700_v0 }
  0x8c   : > { %381 = vst.msk [vmem:[#allocation2 + $0x390] sm:$0x3] %vm270_vm1, %v12700_v0  ;;  %386 = vst.msk [vmem:[#allocation2 + $0x3b8] sm:$0x3] %vm270_vm1, %v12700_v0 }
  0x8d   : > { %391 = vst.msk [vmem:[#allocation2 + $0x3e0] sm:$0x3] %vm270_vm1, %v12700_v0  ;;  %396 = vst.msk [vmem:[#allocation2 + $0x408] sm:$0x3] %vm270_vm1, %v12700_v0 }
  0x8e   : > { %401 = vst.msk [vmem:[#allocation2 + $0x430] sm:$0x3] %vm270_vm1, %v12700_v0  ;;  %406 = vst.msk [vmem:[#allocation2 + $0x458] sm:$0x3] %vm270_vm1, %v12700_v0 }
  0x8f   : > { %411 = vst.msk [vmem:[#allocation2 + $0x480] sm:$0x3] %vm270_vm1, %v12700_v0  ;;  %416 = vst.msk [vmem:[#allocation2 + $0x4a8] sm:$0x3] %vm270_vm1, %v12700_v0 }
  0x90   : > { %421 = vst.msk [vmem:[#allocation2 + $0x4d0] sm:$0x3] %vm270_vm1, %v12700_v0  ;;  %426 = vst.msk [vmem:[#allocation2 + $0x4f8] sm:$0x3] %vm270_vm1, %v12700_v0 }
  0x91   : > { %431 = vst.msk [vmem:[#allocation2 + $0x520] sm:$0x3] %vm270_vm1, %v12700_v0  ;;  %436 = vst.msk [vmem:[#allocation2 + $0x548] sm:$0x3] %vm270_vm1, %v12700_v0 }
  0x92   : > { %567 = vst.msk [vmem:[#allocation2 + $0x31] sm:$0xff] %vm265_vm0, %v438_v1  ;;  %566 = vst.msk [vmem:[#allocation2 + $0x29] sm:$0xff] %vm265_vm0, %v437_v2  ;;  %v483_v1 = vld [vmem:[%s8449_s20 + $0x170] sm:$0xff] }
  0x93   : > { %569 = vst.msk [vmem:[#allocation2 + $0x41] sm:$0xff] %vm265_vm0, %v440_v3  ;;  %568 = vst.msk [vmem:[#allocation2 + $0x39] sm:$0xff] %vm265_vm0, %v439_v8  ;;  %v487_v8 = vld [vmem:[%s8449_s20 + $0x190] sm:$0xff] }
  0x94   : > { %571 = vst.msk [vmem:[#allocation2 + $0x59] sm:$0xff] %vm265_vm0, %v442_v9  ;;  %570 = vst.msk [vmem:[#allocation2 + $0x51] sm:$0xff] %vm265_vm0, %v441_v10  ;;  %v490_v9 = vld [vmem:[%s8449_s20 + $0x1a8] sm:$0xff] }
  0x95   : > { %573 = vst.msk [vmem:[#allocation2 + $0x69] sm:$0xff] %vm265_vm0, %v444_v11  ;;  %572 = vst.msk [vmem:[#allocation2 + $0x61] sm:$0xff] %vm265_vm0, %v443_v12  ;;  %v489_v11 = vld [vmem:[%s8449_s20 + $0x1a0] sm:$0xff]  ;;  %v492_v12 = vld [vmem:[%s8449_s20 + $0x1b8] sm:$0xff] }
  0x96   : > { %575 = vst.msk [vmem:[#allocation2 + $0x81] sm:$0xff] %vm265_vm0, %v446_v13  ;;  %574 = vst.msk [vmem:[#allocation2 + $0x79] sm:$0xff] %vm265_vm0, %v445_v14  ;;  %v491_v13 = vld [vmem:[%s8449_s20 + $0x1b0] sm:$0xff]  ;;  %v494_v14 = vld [vmem:[%s8449_s20 + $0x1c8] sm:$0xff] }
  0x97   : > { %577 = vst.msk [vmem:[#allocation2 + $0x91] sm:$0xff] %vm265_vm0, %v448_v15  ;;  %576 = vst.msk [vmem:[#allocation2 + $0x89] sm:$0xff] %vm265_vm0, %v447_v16  ;;  %v493_v15 = vld [vmem:[%s8449_s20 + $0x1c0] sm:$0xff]  ;;  %v496_v16 = vld [vmem:[%s8449_s20 + $0x1d8] sm:$0xff] }
  0x98   : > { %579 = vst.msk [vmem:[#allocation2 + $0xa9] sm:$0xff] %vm265_vm0, %v450_v17  ;;  %578 = vst.msk [vmem:[#allocation2 + $0xa1] sm:$0xff] %vm265_vm0, %v449_v18 }
  0x99   : > { %581 = vst.msk [vmem:[#allocation2 + $0xb9] sm:$0xff] %vm265_vm0, %v452_v19  ;;  %580 = vst.msk [vmem:[#allocation2 + $0xb1] sm:$0xff] %vm265_vm0, %v451_v20  ;;  %v835_v24 = vld [vmem:[#allocation2 + $0x31] sm:$0xff]  ;;  %v834_v25 = vld [vmem:[#allocation2 + $0x29] sm:$0xff] }
  0x9a   : > { %583 = vst.msk [vmem:[#allocation2 + $0xd1] sm:$0xff] %vm265_vm0, %v454_v21  ;;  %582 = vst.msk [vmem:[#allocation2 + $0xc9] sm:$0xff] %vm265_vm0, %v453_v22  ;;  %1248 = vrot.lane.b32.xlu1 %v835_v24, %s7996_s22  ;;  %1246 = vrot.lane.b32.xlu0 %v834_v25, %s7996_s22  ;;  %v837_v30 = vld [vmem:[#allocation2 + $0x41] sm:$0xff]  ;;  %v836_v31 = vld [vmem:[#allocation2 + $0x39] sm:$0xff] }
  0x9b   : > { %585 = vst.msk [vmem:[#allocation2 + $0xe1] sm:$0xff] %vm265_vm0, %v456_v23  ;;  %584 = vst.msk [vmem:[#allocation2 + $0xd9] sm:$0xff] %vm265_vm0, %v455_v26  ;;  %v839_v33 = vld [vmem:[#allocation2 + $0x59] sm:$0xff]  ;;  %v838_v34 = vld [vmem:[#allocation2 + $0x51] sm:$0xff] }
  0x9c   : > { %587 = vst.msk [vmem:[#allocation2 + $0xf9] sm:$0xff] %vm265_vm0, %v458_v27  ;;  %586 = vst.msk [vmem:[#allocation2 + $0xf1] sm:$0xff] %vm265_vm0, %v457_v28  ;;  %v841_v38 = vld [vmem:[#allocation2 + $0x69] sm:$0xff]  ;;  %v840_v39 = vld [vmem:[#allocation2 + $0x61] sm:$0xff] }
  0x9d   : > { %589 = vst.msk [vmem:[#allocation2 + $0x109] sm:$0xff] %vm265_vm0, %v460_v29  ;;  %588 = vst.msk [vmem:[#allocation2 + $0x101] sm:$0xff] %vm265_vm0, %v459_v32  ;;  %v843_v48 = vld [vmem:[#allocation2 + $0x81] sm:$0xff]  ;;  %v842_v52 = vld [vmem:[#allocation2 + $0x79] sm:$0xff] }
  0x9e   : > { %1252 = vrot.lane.b32.xlu1 %v837_v30, %s7996_s22  ;;  %1250 = vrot.lane.b32.xlu0 %v836_v31, %s7996_s22  ;;  %591 = vst.msk [vmem:[#allocation2 + $0x121] sm:$0xff] %vm265_vm0, %v462_v35  ;;  %590 = vst.msk [vmem:[#allocation2 + $0x119] sm:$0xff] %vm265_vm0, %v461_v36  ;;  %v845_v62 = vld [vmem:[#allocation2 + $0x91] sm:$0xff]  ;;  %v844_v63 = vld [vmem:[#allocation2 + $0x89] sm:$0xff] }
  0x9f   : > { %593 = vst.msk [vmem:[#allocation2 + $0x131] sm:$0xff] %vm265_vm0, %v464_v37  ;;  %592 = vst.msk [vmem:[#allocation2 + $0x129] sm:$0xff] %vm265_vm0, %v463_v40  ;;  %v847_v2 = vld [vmem:[#allocation2 + $0xa9] sm:$0xff]  ;;  %v846_v3 = vld [vmem:[#allocation2 + $0xa1] sm:$0xff] }
  0xa0   : > { %595 = vst.msk [vmem:[#allocation2 + $0x149] sm:$0xff] %vm265_vm0, %v466_v41  ;;  %594 = vst.msk [vmem:[#allocation2 + $0x141] sm:$0xff] %vm265_vm0, %v465_v42  ;;  %v849_v7 = vld [vmem:[#allocation2 + $0xb9] sm:$0xff]  ;;  %v848_v10 = vld [vmem:[#allocation2 + $0xb1] sm:$0xff] }
  0xa1   : > { %597 = vst.msk [vmem:[#allocation2 + $0x159] sm:$0xff] %vm265_vm0, %v468_v43  ;;  %596 = vst.msk [vmem:[#allocation2 + $0x151] sm:$0xff] %vm265_vm0, %v467_v44  ;;  %v851_v17 = vld [vmem:[#allocation2 + $0xd1] sm:$0xff]  ;;  %v850_v18 = vld [vmem:[#allocation2 + $0xc9] sm:$0xff] }
  0xa2   : > { %1256 = vrot.lane.b32.xlu1 %v839_v33, %s7996_s22  ;;  %1254 = vrot.lane.b32.xlu0 %v838_v34, %s7996_s22  ;;  %599 = vst.msk [vmem:[#allocation2 + $0x171] sm:$0xff] %vm265_vm0, %v470_v45  ;;  %598 = vst.msk [vmem:[#allocation2 + $0x169] sm:$0xff] %vm265_vm0, %v469_v46  ;;  %v495_v19 = vld [vmem:[%s8449_s20 + $0x1d0] sm:$0xff]  ;;  %v498_v20 = vld [vmem:[%s8449_s20 + $0x1e8] sm:$0xff] }
  0xa3   : > { %601 = vst.msk [vmem:[#allocation2 + $0x181] sm:$0xff] %vm265_vm0, %v472_v47  ;;  %600 = vst.msk [vmem:[#allocation2 + $0x179] sm:$0xff] %vm265_vm0, %v471_v49  ;;  %v497_v21 = vld [vmem:[%s8449_s20 + $0x1e0] sm:$0xff]  ;;  %v500_v24 = vld [vmem:[%s8449_s20 + $0x1f8] sm:$0xff] }
  0xa4   : > { %603 = vst.msk [vmem:[#allocation2 + $0x199] sm:$0xff] %vm265_vm0, %v474_v50  ;;  %602 = vst.msk [vmem:[#allocation2 + $0x191] sm:$0xff] %vm265_vm0, %v473_v51  ;;  %v853_v22 = vld [vmem:[#allocation2 + $0xe1] sm:$0xff]  ;;  %v852_v23 = vld [vmem:[#allocation2 + $0xd9] sm:$0xff] }
  0xa5   : > { %605 = vst.msk [vmem:[#allocation2 + $0x1a9] sm:$0xff] %vm265_vm0, %v476_v53  ;;  %604 = vst.msk [vmem:[#allocation2 + $0x1a1] sm:$0xff] %vm265_vm0, %v475_v54  ;;  %v499_v25 = vld [vmem:[%s8449_s20 + $0x1f0] sm:$0xff]  ;;  %v502_v26 = vld [vmem:[%s8449_s20 + $0x208] sm:$0xff] }
  0xa6   : > { %1260 = vrot.lane.b32.xlu1 %v841_v38, %s7996_s22  ;;  %1258 = vrot.lane.b32.xlu0 %v840_v39, %s7996_s22  ;;  %607 = vst.msk [vmem:[#allocation2 + $0x1c1] sm:$0xff] %vm265_vm0, %v478_v55  ;;  %606 = vst.msk [vmem:[#allocation2 + $0x1b9] sm:$0xff] %vm265_vm0, %v477_v56  ;;  %v501_v27 = vld [vmem:[%s8449_s20 + $0x200] sm:$0xff]  ;;  %v854_v29 = vld [vmem:[#allocation2 + $0xf1] sm:$0xff] }
  0xa7   : > { %609 = vst.msk [vmem:[#allocation2 + $0x1d1] sm:$0xff] %vm265_vm0, %v480_v57  ;;  %608 = vst.msk [vmem:[#allocation2 + $0x1c9] sm:$0xff] %vm265_vm0, %v479_v58  ;;  %v855_v28 = vld [vmem:[#allocation2 + $0xf9] sm:$0xff]  ;;  %v503_v31 = vld [vmem:[%s8449_s20 + $0x210] sm:$0xff] }
  0xa8   : > { %611 = vst.msk [vmem:[#allocation2 + $0x1e9] sm:$0xff] %vm265_vm0, %v482_v59  ;;  %610 = vst.msk [vmem:[#allocation2 + $0x1e1] sm:$0xff] %vm265_vm0, %v481_v60  ;;  %v504_v30 = vld [vmem:[%s8449_s20 + $0x218] sm:$0xff]  ;;  %v506_v32 = vld [vmem:[%s8449_s20 + $0x228] sm:$0xff] }
  0xa9   : > { %613 = vst.msk [vmem:[#allocation2 + $0x1f9] sm:$0xff] %vm265_vm0, %v484_v61  ;;  %612 = vst.msk [vmem:[#allocation2 + $0x1f1] sm:$0xff] %vm265_vm0, %v483_v1  ;;  %v505_v33 = vld [vmem:[%s8449_s20 + $0x220] sm:$0xff]  ;;  %v857_v34 = vld [vmem:[#allocation2 + $0x109] sm:$0xff] }
  0xaa   : > { %1264 = vrot.lane.b32.xlu1 %v843_v48, %s7996_s22  ;;  %1262 = vrot.lane.b32.xlu0 %v842_v52, %s7996_s22  ;;  %615 = vst.msk [vmem:[#allocation2 + $0x211] sm:$0xff] %vm265_vm0, %v486_v4  ;;  %614 = vst.msk [vmem:[#allocation2 + $0x209] sm:$0xff] %vm265_vm0, %v485_v5  ;;  %v856_v35 = vld [vmem:[#allocation2 + $0x101] sm:$0xff]  ;;  %v508_v36 = vld [vmem:[%s8449_s20 + $0x238] sm:$0xff] }
  0xab   : > { %617 = vst.msk [vmem:[#allocation2 + $0x221] sm:$0xff] %vm265_vm0, %v488_v6  ;;  %616 = vst.msk [vmem:[#allocation2 + $0x219] sm:$0xff] %vm265_vm0, %v487_v8  ;;  %v507_v37 = vld [vmem:[%s8449_s20 + $0x230] sm:$0xff]  ;;  %v510_v38 = vld [vmem:[%s8449_s20 + $0x248] sm:$0xff] }
  0xac   : > { %619 = vst.msk [vmem:[#allocation2 + $0x239] sm:$0xff] %vm265_vm0, %v490_v9  ;;  %618 = vst.msk [vmem:[#allocation2 + $0x231] sm:$0xff] %vm265_vm0, %v489_v11  ;;  %v509_v39 = vld [vmem:[%s8449_s20 + $0x240] sm:$0xff]  ;;  %v512_v42 = vld [vmem:[%s8449_s20 + $0x258] sm:$0xff] }
  0xad   : > { %621 = vst.msk [vmem:[#allocation2 + $0x249] sm:$0xff] %vm265_vm0, %v492_v12  ;;  %620 = vst.msk [vmem:[#allocation2 + $0x241] sm:$0xff] %vm265_vm0, %v491_v13  ;;  %v859_v40 = vld [vmem:[#allocation2 + $0x121] sm:$0xff]  ;;  %v858_v41 = vld [vmem:[#allocation2 + $0x119] sm:$0xff] }
  0xae   : > { %1268 = vrot.lane.b32.xlu1 %v845_v62, %s7996_s22  ;;  %1266 = vrot.lane.b32.xlu0 %v844_v63, %s7996_s22  ;;  %623 = vst.msk [vmem:[#allocation2 + $0x261] sm:$0xff] %vm265_vm0, %v494_v14  ;;  %622 = vst.msk [vmem:[#allocation2 + $0x259] sm:$0xff] %vm265_vm0, %v493_v15  ;;  %v511_v43 = vld [vmem:[%s8449_s20 + $0x250] sm:$0xff]  ;;  %v514_v44 = vld [vmem:[%s8449_s20 + $0x268] sm:$0xff] }
  0xaf   : > { %625 = vst.msk [vmem:[#allocation2 + $0x271] sm:$0xff] %vm265_vm0, %v496_v16  ;;  %624 = vst.msk [vmem:[#allocation2 + $0x269] sm:$0xff] %vm265_vm0, %v495_v19  ;;  %v513_v45 = vld [vmem:[%s8449_s20 + $0x260] sm:$0xff]  ;;  %v861_v46 = vld [vmem:[#allocation2 + $0x131] sm:$0xff] }
  0xb0   : > { %627 = vst.msk [vmem:[#allocation2 + $0x289] sm:$0xff] %vm265_vm0, %v498_v20  ;;  %626 = vst.msk [vmem:[#allocation2 + $0x281] sm:$0xff] %vm265_vm0, %v497_v21  ;;  %v860_v47 = vld [vmem:[#allocation2 + $0x129] sm:$0xff]  ;;  %v516_v48 = vld [vmem:[%s8449_s20 + $0x278] sm:$0xff] }
  0xb1   : > { %629 = vst.msk [vmem:[#allocation2 + $0x299] sm:$0xff] %vm265_vm0, %v500_v24  ;;  %628 = vst.msk [vmem:[#allocation2 + $0x291] sm:$0xff] %vm265_vm0, %v499_v25  ;;  %v515_v49 = vld [vmem:[%s8449_s20 + $0x270] sm:$0xff]  ;;  %v518_v50 = vld [vmem:[%s8449_s20 + $0x288] sm:$0xff] }
  0xb2   : > { %1272 = vrot.lane.b32.xlu1 %v847_v2, %s7996_s22  ;;  %1270 = vrot.lane.b32.xlu0 %v846_v3, %s7996_s22  ;;  %631 = vst.msk [vmem:[#allocation2 + $0x2b1] sm:$0xff] %vm265_vm0, %v502_v26  ;;  %630 = vst.msk [vmem:[#allocation2 + $0x2a9] sm:$0xff] %vm265_vm0, %v501_v27  ;;  %v517_v51 = vld [vmem:[%s8449_s20 + $0x280] sm:$0xff]  ;;  %v863_v52 = vld [vmem:[#allocation2 + $0x149] sm:$0xff] }
  0xb3   : > { %633 = vst.msk [vmem:[#allocation2 + $0x2c1] sm:$0xff] %vm265_vm0, %v504_v30  ;;  %632 = vst.msk [vmem:[#allocation2 + $0x2b9] sm:$0xff] %vm265_vm0, %v503_v31  ;;  %v862_v53 = vld [vmem:[#allocation2 + $0x141] sm:$0xff]  ;;  %v520_v54 = vld [vmem:[%s8449_s20 + $0x298] sm:$0xff] }
  0xb4   : > { %635 = vst.msk [vmem:[#allocation2 + $0x2d9] sm:$0xff] %vm265_vm0, %v506_v32  ;;  %634 = vst.msk [vmem:[#allocation2 + $0x2d1] sm:$0xff] %vm265_vm0, %v505_v33  ;;  %v519_v55 = vld [vmem:[%s8449_s20 + $0x290] sm:$0xff]  ;;  %v522_v56 = vld [vmem:[%s8449_s20 + $0x2a8] sm:$0xff] }
  0xb5   : > { %637 = vst.msk [vmem:[#allocation2 + $0x2e9] sm:$0xff] %vm265_vm0, %v508_v36  ;;  %636 = vst.msk [vmem:[#allocation2 + $0x2e1] sm:$0xff] %vm265_vm0, %v507_v37  ;;  %v521_v57 = vld [vmem:[%s8449_s20 + $0x2a0] sm:$0xff]  ;;  %v864_v59 = vld [vmem:[#allocation2 + $0x151] sm:$0xff] }
  0xb6   : > { %1276 = vrot.lane.b32.xlu1 %v849_v7, %s7996_s22  ;;  %1274 = vrot.lane.b32.xlu0 %v848_v10, %s7996_s22  ;;  %639 = vst.msk [vmem:[#allocation2 + $0x301] sm:$0xff] %vm265_vm0, %v510_v38  ;;  %638 = vst.msk [vmem:[#allocation2 + $0x2f9] sm:$0xff] %vm265_vm0, %v509_v39  ;;  %v865_v58 = vld [vmem:[#allocation2 + $0x159] sm:$0xff]  ;;  %v523_v61 = vld [vmem:[%s8449_s20 + $0x2b0] sm:$0xff] }
  0xb7   : > { %641 = vst.msk [vmem:[#allocation2 + $0x311] sm:$0xff] %vm265_vm0, %v512_v42  ;;  %640 = vst.msk [vmem:[#allocation2 + $0x309] sm:$0xff] %vm265_vm0, %v511_v43  ;;  %v524_v60 = vld [vmem:[%s8449_s20 + $0x2b8] sm:$0xff]  ;;  %v526_v62 = vld [vmem:[%s8449_s20 + $0x2c8] sm:$0xff] }
  0xb8   : > { %643 = vst.msk [vmem:[#allocation2 + $0x329] sm:$0xff] %vm265_vm0, %v514_v44  ;;  %642 = vst.msk [vmem:[#allocation2 + $0x321] sm:$0xff] %vm265_vm0, %v513_v45  ;;  %v525_v63 = vld [vmem:[%s8449_s20 + $0x2c0] sm:$0xff]  ;;  %v867_v1 = vld [vmem:[#allocation2 + $0x171] sm:$0xff] }
  0xb9   : > { %645 = vst.msk [vmem:[#allocation2 + $0x339] sm:$0xff] %vm265_vm0, %v516_v48  ;;  %644 = vst.msk [vmem:[#allocation2 + $0x331] sm:$0xff] %vm265_vm0, %v515_v49  ;;  %v866_v2 = vld [vmem:[#allocation2 + $0x169] sm:$0xff]  ;;  %v528_v3 = vld [vmem:[%s8449_s20 + $0x2d8] sm:$0xff] }
  0xba   : > { %1280 = vrot.lane.b32.xlu1 %v851_v17, %s7996_s22  ;;  %1278 = vrot.lane.b32.xlu0 %v850_v18, %s7996_s22  ;;  %647 = vst.msk [vmem:[#allocation2 + $0x351] sm:$0xff] %vm265_vm0, %v518_v50  ;;  %646 = vst.msk [vmem:[#allocation2 + $0x349] sm:$0xff] %vm265_vm0, %v517_v51  ;;  %v527_v4 = vld [vmem:[%s8449_s20 + $0x2d0] sm:$0xff]  ;;  %v530_v5 = vld [vmem:[%s8449_s20 + $0x2e8] sm:$0xff] }
  0xbb   : > { %649 = vst.msk [vmem:[#allocation2 + $0x361] sm:$0xff] %vm265_vm0, %v520_v54  ;;  %648 = vst.msk [vmem:[#allocation2 + $0x359] sm:$0xff] %vm265_vm0, %v519_v55  ;;  %v529_v6 = vld [vmem:[%s8449_s20 + $0x2e0] sm:$0xff]  ;;  %v532_v9 = vld [vmem:[%s8449_s20 + $0x2f8] sm:$0xff] }
  0xbc   : > { %651 = vst.msk [vmem:[#allocation2 + $0x379] sm:$0xff] %vm265_vm0, %v522_v56  ;;  %650 = vst.msk [vmem:[#allocation2 + $0x371] sm:$0xff] %vm265_vm0, %v521_v57  ;;  %v869_v7 = vld [vmem:[#allocation2 + $0x181] sm:$0xff]  ;;  %v868_v8 = vld [vmem:[#allocation2 + $0x179] sm:$0xff]  ;;  %v8753_v57 = vpop.permute.xlu1 %1242 }
  0xbd   : > { %653 = vst.msk [vmem:[#allocation2 + $0x389] sm:$0xff] %vm265_vm0, %v524_v60  ;;  %652 = vst.msk [vmem:[#allocation2 + $0x381] sm:$0xff] %vm265_vm0, %v523_v61  ;;  %v531_v10 = vld [vmem:[%s8449_s20 + $0x2f0] sm:$0xff]  ;;  %v534_v11 = vld [vmem:[%s8449_s20 + $0x308] sm:$0xff] }
  0xbe   : > { %1284 = vrot.lane.b32.xlu1 %v853_v22, %s7996_s22  ;;  %1282 = vrot.lane.b32.xlu0 %v852_v23, %s7996_s22  ;;  %655 = vst.msk [vmem:[#allocation2 + $0x3a1] sm:$0xff] %vm265_vm0, %v526_v62  ;;  %654 = vst.msk [vmem:[#allocation2 + $0x399] sm:$0xff] %vm265_vm0, %v525_v63  ;;  %v533_v12 = vld [vmem:[%s8449_s20 + $0x300] sm:$0xff]  ;;  %v870_v14 = vld [vmem:[#allocation2 + $0x191] sm:$0xff] }
  0xbf   : > { %657 = vst.msk [vmem:[#allocation2 + $0x3b1] sm:$0xff] %vm265_vm0, %v528_v3  ;;  %656 = vst.msk [vmem:[#allocation2 + $0x3a9] sm:$0xff] %vm265_vm0, %v527_v4  ;;  %v871_v13 = vld [vmem:[#allocation2 + $0x199] sm:$0xff]  ;;  %v535_v16 = vld [vmem:[%s8449_s20 + $0x310] sm:$0xff] }
  0xc0   : > { %659 = vst.msk [vmem:[#allocation2 + $0x3c9] sm:$0xff] %vm265_vm0, %v530_v5  ;;  %658 = vst.msk [vmem:[#allocation2 + $0x3c1] sm:$0xff] %vm265_vm0, %v529_v6  ;;  %v536_v15 = vld [vmem:[%s8449_s20 + $0x318] sm:$0xff]  ;;  %v873_v17 = vld [vmem:[#allocation2 + $0x1a9] sm:$0xff] }
  0xc1   : > { %661 = vst.msk [vmem:[#allocation2 + $0x3d9] sm:$0xff] %vm265_vm0, %v532_v9  ;;  %660 = vst.msk [vmem:[#allocation2 + $0x3d1] sm:$0xff] %vm265_vm0, %v531_v10  ;;  %v538_v18 = vld [vmem:[%s8449_s20 + $0x328] sm:$0xff]  ;;  %v537_v19 = vld [vmem:[%s8449_s20 + $0x320] sm:$0xff] }
  0xc2   : > { %1288 = vrot.lane.b32.xlu1 %v855_v28, %s7996_s22  ;;  %1286 = vrot.lane.b32.xlu0 %v854_v29, %s7996_s22  ;;  %663 = vst.msk [vmem:[#allocation2 + $0x3f1] sm:$0xff] %vm265_vm0, %v534_v11  ;;  %662 = vst.msk [vmem:[#allocation2 + $0x3e9] sm:$0xff] %vm265_vm0, %v533_v12  ;;  %v872_v20 = vld [vmem:[#allocation2 + $0x1a1] sm:$0xff]  ;;  %v540_v21 = vld [vmem:[%s8449_s20 + $0x338] sm:$0xff] }
  0xc3   : > { %665 = vst.msk [vmem:[#allocation2 + $0x401] sm:$0xff] %vm265_vm0, %v536_v15  ;;  %664 = vst.msk [vmem:[#allocation2 + $0x3f9] sm:$0xff] %vm265_vm0, %v535_v16  ;;  %v539_v22 = vld [vmem:[%s8449_s20 + $0x330] sm:$0xff]  ;;  %v542_v23 = vld [vmem:[%s8449_s20 + $0x348] sm:$0xff] }
  0xc4   : > { %667 = vst.msk [vmem:[#allocation2 + $0x419] sm:$0xff] %vm265_vm0, %v538_v18  ;;  %666 = vst.msk [vmem:[#allocation2 + $0x411] sm:$0xff] %vm265_vm0, %v537_v19  ;;  %v541_v24 = vld [vmem:[%s8449_s20 + $0x340] sm:$0xff]  ;;  %v544_v25 = vld [vmem:[%s8449_s20 + $0x358] sm:$0xff] }
  0xc5   : > { %669 = vst.msk [vmem:[#allocation2 + $0x429] sm:$0xff] %vm265_vm0, %v540_v21  ;;  %668 = vst.msk [vmem:[#allocation2 + $0x421] sm:$0xff] %vm265_vm0, %v539_v22  ;;  %v543_v26 = vld [vmem:[%s8449_s20 + $0x350] sm:$0xff]  ;;  %v875_v27 = vld [vmem:[#allocation2 + $0x1c1] sm:$0xff] }
  0xc6   : > { %1292 = vrot.lane.b32.xlu1 %v857_v34, %s7996_s22  ;;  %1290 = vrot.lane.b32.xlu0 %v856_v35, %s7996_s22  ;;  %671 = vst.msk [vmem:[#allocation2 + $0x441] sm:$0xff] %vm265_vm0, %v542_v23  ;;  %670 = vst.msk [vmem:[#allocation2 + $0x439] sm:$0xff] %vm265_vm0, %v541_v24  ;;  %v874_v28 = vld [vmem:[#allocation2 + $0x1b9] sm:$0xff]  ;;  %v546_v29 = vld [vmem:[%s8449_s20 + $0x368] sm:$0xff] }
  0xc7   : > { %673 = vst.msk [vmem:[#allocation2 + $0x451] sm:$0xff] %vm265_vm0, %v544_v25  ;;  %672 = vst.msk [vmem:[#allocation2 + $0x449] sm:$0xff] %vm265_vm0, %v543_v26  ;;  %v545_v30 = vld [vmem:[%s8449_s20 + $0x360] sm:$0xff]  ;;  %v877_v31 = vld [vmem:[#allocation2 + $0x1d1] sm:$0xff] }
  0xc8   : > { %675 = vst.msk [vmem:[#allocation2 + $0x469] sm:$0xff] %vm265_vm0, %v546_v29  ;;  %674 = vst.msk [vmem:[#allocation2 + $0x461] sm:$0xff] %vm265_vm0, %v545_v30  ;;  %v876_v32 = vld [vmem:[#allocation2 + $0x1c9] sm:$0xff]  ;;  %v548_v33 = vld [vmem:[%s8449_s20 + $0x378] sm:$0xff] }
  0xc9   : > { %v547_v34 = vld [vmem:[%s8449_s20 + $0x370] sm:$0xff]  ;;  %v878_v36 = vld [vmem:[#allocation2 + $0x1e1] sm:$0xff]  ;;  %677 = vst.msk [vmem:[#allocation2 + $0x479] sm:$0xff] %vm265_vm0, %v548_v33  ;;  %v881_v39 = vld [vmem:[#allocation2 + $0x1f9] sm:$0xff] }
  0xca   : > { %1296 = vrot.lane.b32.xlu1 %v859_v40, %s7996_s22  ;;  %1294 = vrot.lane.b32.xlu0 %v858_v41, %s7996_s22  ;;  %v879_v35 = vld [vmem:[#allocation2 + $0x1e9] sm:$0xff]  ;;  %676 = vst.msk [vmem:[#allocation2 + $0x471] sm:$0xff] %vm265_vm0, %v547_v34  ;;  %v549_v38 = vld [vmem:[%s8449_s20 + $0x380] sm:$0xff]  ;;  %v880_v40 = vld [vmem:[#allocation2 + $0x1f1] sm:$0xff] }
  0xcb   : > { %v550_v37 = vld [vmem:[%s8449_s20 + $0x388] sm:$0xff]  ;;  %678 = vst.msk [vmem:[#allocation2 + $0x489] sm:$0xff] %vm265_vm0, %v549_v38  ;;  %v552_v41 = vld [vmem:[%s8449_s20 + $0x398] sm:$0xff]  ;;  %v551_v42 = vld [vmem:[%s8449_s20 + $0x390] sm:$0xff] }
  0xcc   : > { %679 = vst.msk [vmem:[#allocation2 + $0x491] sm:$0xff] %vm265_vm0, %v550_v37  ;;  %681 = vst.msk [vmem:[#allocation2 + $0x4a1] sm:$0xff] %vm265_vm0, %v552_v41  ;;  %v883_v43 = vld [vmem:[#allocation2 + $0x211] sm:$0xff]  ;;  %v882_v44 = vld [vmem:[#allocation2 + $0x209] sm:$0xff] }
  0xcd   : > { %680 = vst.msk [vmem:[#allocation2 + $0x499] sm:$0xff] %vm265_vm0, %v551_v42  ;;  %v554_v45 = vld [vmem:[%s8449_s20 + $0x3a8] sm:$0xff]  ;;  %v884_v48 = vld [vmem:[#allocation2 + $0x219] sm:$0xff]  ;;  %v555_v50 = vld [vmem:[%s8449_s20 + $0x3b0] sm:$0xff] }
  0xce   : > { %1300 = vrot.lane.b32.xlu1 %v861_v46, %s7996_s22  ;;  %1298 = vrot.lane.b32.xlu0 %v860_v47, %s7996_s22  ;;  %v553_v46 = vld [vmem:[%s8449_s20 + $0x3a0] sm:$0xff]  ;;  %683 = vst.msk [vmem:[#allocation2 + $0x4b9] sm:$0xff] %vm265_vm0, %v554_v45  ;;  %v556_v49 = vld [vmem:[%s8449_s20 + $0x3b8] sm:$0xff]  ;;  %684 = vst.msk [vmem:[#allocation2 + $0x4c1] sm:$0xff] %vm265_vm0, %v555_v50 }
  0xcf   : > { %682 = vst.msk [vmem:[#allocation2 + $0x4b1] sm:$0xff] %vm265_vm0, %v553_v46  ;;  %v885_v47 = vld [vmem:[#allocation2 + $0x221] sm:$0xff]  ;;  %685 = vst.msk [vmem:[#allocation2 + $0x4c9] sm:$0xff] %vm265_vm0, %v556_v49  ;;  %v887_v51 = vld [vmem:[#allocation2 + $0x239] sm:$0xff] }
  0xd0   : > { %v557_v54 = vld [vmem:[%s8449_s20 + $0x3c0] sm:$0xff]  ;;  %v889_v55 = vld [vmem:[#allocation2 + $0x249] sm:$0xff]  ;;  %v893_v4 = vld [vmem:[#allocation2 + $0x271] sm:$0xff] }
  0xd1   : > { %v888_v56 = vld [vmem:[#allocation2 + $0x241] sm:$0xff]  ;;  %686 = vst.msk [vmem:[#allocation2 + $0x4d9] sm:$0xff] %vm265_vm0, %v557_v54  ;;  %v559_v60 = vld [vmem:[%s8449_s20 + $0x3d0] sm:$0xff]  ;;  %v890_v62 = vld [vmem:[#allocation2 + $0x259] sm:$0xff] }
  0xd2   : > { %1304 = vrot.lane.b32.xlu1 %v863_v52, %s7996_s22  ;;  %1302 = vrot.lane.b32.xlu0 %v862_v53, %s7996_s22  ;;  %v886_v52 = vld [vmem:[#allocation2 + $0x231] sm:$0xff]  ;;  %v558_v53 = vld [vmem:[%s8449_s20 + $0x3c8] sm:$0xff]  ;;  %688 = vst.msk [vmem:[#allocation2 + $0x4e9] sm:$0xff] %vm265_vm0, %v559_v60  ;;  %v561_v3 = vld [vmem:[%s8449_s20 + $0x3e0] sm:$0xff] }
  0xd3   : > { %687 = vst.msk [vmem:[#allocation2 + $0x4e1] sm:$0xff] %vm265_vm0, %v558_v53  ;;  %v891_v61 = vld [vmem:[#allocation2 + $0x261] sm:$0xff]  ;;  %690 = vst.msk [vmem:[#allocation2 + $0x501] sm:$0xff] %vm265_vm0, %v561_v3  ;;  %v892_v5 = vld [vmem:[#allocation2 + $0x269] sm:$0xff] }
  0xd4   : > { %v563_v9 = vld [vmem:[%s8449_s20 + $0x3f0] sm:$0xff]  ;;  %v894_v11 = vld [vmem:[#allocation2 + $0x281] sm:$0xff]  ;;  %v900_v23 = vld [vmem:[#allocation2 + $0x2b9] sm:$0xff] }
  0xd5   : > { %v895_v10 = vld [vmem:[#allocation2 + $0x289] sm:$0xff]  ;;  %692 = vst.msk [vmem:[#allocation2 + $0x511] sm:$0xff] %vm265_vm0, %v563_v9  ;;  %v896_v15 = vld [vmem:[#allocation2 + $0x291] sm:$0xff]  ;;  %v901_v22 = vld [vmem:[#allocation2 + $0x2c1] sm:$0xff] }
  0xd6   : > { %1308 = vrot.lane.b32.xlu1 %v865_v58, %s7996_s22  ;;  %1306 = vrot.lane.b32.xlu0 %v864_v59, %s7996_s22  ;;  %v8755_v58 = vpop.permute.xlu0 %1238  ;;  %v560_v59 = vld [vmem:[%s8449_s20 + $0x3d8] sm:$0xff]  ;;  %v898_v19 = vld [vmem:[#allocation2 + $0x2a9] sm:$0xff]  ;;  %v907_v34 = vld [vmem:[#allocation2 + $0x301] sm:$0xff] }
  0xd7   : > { %689 = vst.msk [vmem:[#allocation2 + $0x4f1] sm:$0xff] %vm265_vm0, %v560_v59  ;;  %v899_v18 = vld [vmem:[#allocation2 + $0x2b1] sm:$0xff]  ;;  %v903_v26 = vld [vmem:[#allocation2 + $0x2d9] sm:$0xff]  ;;  %v905_v30 = vld [vmem:[#allocation2 + $0x2e9] sm:$0xff] }
  0xd8   : > { %v909_v38 = vld [vmem:[#allocation2 + $0x311] sm:$0xff]  ;;  %v911_v42 = vld [vmem:[#allocation2 + $0x329] sm:$0xff]  ;;  %v913_v46 = vld [vmem:[#allocation2 + $0x339] sm:$0xff] }
  0xd9   : > { %v915_v50 = vld [vmem:[#allocation2 + $0x351] sm:$0xff]  ;;  %v917_v54 = vld [vmem:[#allocation2 + $0x361] sm:$0xff]  ;;  %v919_v60 = vld [vmem:[#allocation2 + $0x379] sm:$0xff] }
  0xda   : > { %1312 = vrot.lane.b32.xlu1 %v867_v1, %s7996_s22  ;;  %1310 = vrot.lane.b32.xlu0 %v866_v2, %s7996_s22  ;;  %v8765_v1 = vpop.permute.xlu0 %1240  ;;  %v562_v2 = vld [vmem:[%s8449_s20 + $0x3e8] sm:$0xff] }
  0xdb   : > { %691 = vst.msk [vmem:[#allocation2 + $0x509] sm:$0xff] %vm265_vm0, %v562_v2  ;;  %v921_v3 = vld [vmem:[#allocation2 + $0x389] sm:$0xff]  ;;  %v923_v9 = vld [vmem:[#allocation2 + $0x3a1] sm:$0xff] }
  0xde   : > { %1316 = vrot.lane.b32.xlu1 %v869_v7, %s7996_s22  ;;  %1314 = vrot.lane.b32.xlu0 %v868_v8, %s7996_s22  ;;  %v564_v8 = vld [vmem:[%s8449_s20 + $0x3f8] sm:$0xff] }
  0xdf   : > { %693 = vst.msk [vmem:[#allocation2 + $0x519] sm:$0xff] %vm265_vm0, %v564_v8 }
  0xe2   : > { %1320 = vrot.lane.b32.xlu1 %v871_v13, %s7996_s22  ;;  %1318 = vrot.lane.b32.xlu0 %v870_v14, %s7996_s22  ;;  %v897_v14 = vld [vmem:[#allocation2 + $0x299] sm:$0xff] }
  0xe6   : > { %1324 = vrot.lane.b32.xlu1 %v873_v17, %s7996_s22  ;;  %1322 = vrot.lane.b32.xlu0 %v872_v20, %s7996_s22 }
  0xea   : > { %1328 = vrot.lane.b32.xlu1 %v875_v27, %s7996_s22  ;;  %1326 = vrot.lane.b32.xlu0 %v874_v28, %s7996_s22  ;;  %v902_v27 = vld [vmem:[#allocation2 + $0x2d1] sm:$0xff] }
  0xee   : > { %1332 = vrot.lane.b32.xlu1 %v877_v31, %s7996_s22  ;;  %1330 = vrot.lane.b32.xlu0 %v876_v32, %s7996_s22  ;;  %v904_v31 = vld [vmem:[#allocation2 + $0x2e1] sm:$0xff] }
  0xf2   : > { %1336 = vrot.lane.b32.xlu1 %v879_v35, %s7996_s22  ;;  %1334 = vrot.lane.b32.xlu0 %v878_v36, %s7996_s22  ;;  %v906_v35 = vld [vmem:[#allocation2 + $0x2f9] sm:$0xff] }
  0xf6   : > { %1340 = vrot.lane.b32.xlu1 %v881_v39, %s7996_s22  ;;  %1338 = vrot.lane.b32.xlu0 %v880_v40, %s7996_s22  ;;  %v908_v39 = vld [vmem:[#allocation2 + $0x309] sm:$0xff] }
  0xfa   : > { %1344 = vrot.lane.b32.xlu1 %v883_v43, %s7996_s22  ;;  %1342 = vrot.lane.b32.xlu0 %v882_v44, %s7996_s22  ;;  %v910_v43 = vld [vmem:[#allocation2 + $0x321] sm:$0xff] }
  0xfb   : > { %v8763_v63 = vpop.permute.xlu1 %1244 }
  0xfe   : > { %1348 = vrot.lane.b32.xlu1 %v885_v47, %s7996_s22  ;;  %1346 = vrot.lane.b32.xlu0 %v884_v48, %s7996_s22  ;;  %v912_v47 = vld [vmem:[#allocation2 + $0x331] sm:$0xff] }
 0x102   : > { %1352 = vrot.lane.b32.xlu1 %v887_v51, %s7996_s22  ;;  %1350 = vrot.lane.b32.xlu0 %v886_v52, %s7996_s22  ;;  %v914_v51 = vld [vmem:[#allocation2 + $0x349] sm:$0xff] }
 0x106   : > { %1356 = vrot.lane.b32.xlu1 %v889_v55, %s7996_s22  ;;  %1354 = vrot.lane.b32.xlu0 %v888_v56, %s7996_s22  ;;  %v916_v55 = vld [vmem:[#allocation2 + $0x359] sm:$0xff] }
 0x10a   : > { %1360 = vrot.lane.b32.xlu1 %v891_v61, %s7996_s22  ;;  %1358 = vrot.lane.b32.xlu0 %v890_v62, %s7996_s22  ;;  %v918_v61 = vld [vmem:[#allocation2 + $0x371] sm:$0xff] }
 0x10c   : > { %v8773_v6 = vpop.permute.xlu1 %1248  ;;  %v8775_v7 = vpop.permute.xlu0 %1246 }
 0x10e   : > { %1364 = vrot.lane.b32.xlu1 %v893_v4, %s7996_s22  ;;  %1362 = vrot.lane.b32.xlu0 %v892_v5, %s7996_s22  ;;  %v920_v4 = vld [vmem:[#allocation2 + $0x381] sm:$0xff] }
 0x110   : > { %v8783_v12 = vpop.permute.xlu1 %1252  ;;  %v8785_v13 = vpop.permute.xlu0 %1250 }
 0x112   : > { %1368 = vrot.lane.b32.xlu1 %v895_v10, %s7996_s22  ;;  %1366 = vrot.lane.b32.xlu0 %v894_v11, %s7996_s22  ;;  %v922_v10 = vld [vmem:[#allocation2 + $0x399] sm:$0xff] }
 0x114   : > { %v8789_v16 = vpop.permute.xlu1 %1256  ;;  %v8791_v17 = vpop.permute.xlu0 %1254 }
 0x116   : > { %1372 = vrot.lane.b32.xlu1 %v897_v14, %s7996_s22  ;;  %1370 = vrot.lane.b32.xlu0 %v896_v15, %s7996_s22  ;;  %v925_v15 = vld [vmem:[#allocation2 + $0x3b1] sm:$0xff] }
 0x118   : > { %v8795_v20 = vpop.permute.xlu1 %1260  ;;  %v8797_v21 = vpop.permute.xlu0 %1258 }
 0x11a   : > { %1376 = vrot.lane.b32.xlu1 %v899_v18, %s7996_s22  ;;  %1374 = vrot.lane.b32.xlu0 %v898_v19, %s7996_s22  ;;  %v924_v18 = vld [vmem:[#allocation2 + $0x3a9] sm:$0xff] }
 0x11c   : > { %v8801_v24 = vpop.permute.xlu1 %1264  ;;  %v8803_v25 = vpop.permute.xlu0 %1262 }
 0x11e   : > { %1380 = vrot.lane.b32.xlu1 %v901_v22, %s7996_s22  ;;  %1378 = vrot.lane.b32.xlu0 %v900_v23, %s7996_s22  ;;  %v927_v23 = vld [vmem:[#allocation2 + $0x3c9] sm:$0xff] }
 0x120   : > { %v8807_v28 = vpop.permute.xlu1 %1268  ;;  %v8809_v29 = vpop.permute.xlu0 %1266 }
 0x122   : > { %1384 = vrot.lane.b32.xlu1 %v903_v26, %s7996_s22  ;;  %1382 = vrot.lane.b32.xlu0 %v902_v27, %s7996_s22  ;;  %v926_v26 = vld [vmem:[#allocation2 + $0x3c1] sm:$0xff] }
 0x124   : > { %v8813_v32 = vpop.permute.xlu1 %1272  ;;  %v8815_v33 = vpop.permute.xlu0 %1270 }
 0x126   : > { %1388 = vrot.lane.b32.xlu1 %v905_v30, %s7996_s22  ;;  %1386 = vrot.lane.b32.xlu0 %v904_v31, %s7996_s22  ;;  %v929_v31 = vld [vmem:[#allocation2 + $0x3d9] sm:$0xff] }
 0x128   : > { %v8819_v36 = vpop.permute.xlu1 %1276  ;;  %v8821_v37 = vpop.permute.xlu0 %1274 }
 0x12a   : > { %1392 = vrot.lane.b32.xlu1 %v907_v34, %s7996_s22  ;;  %1390 = vrot.lane.b32.xlu0 %v906_v35, %s7996_s22  ;;  %v928_v34 = vld [vmem:[#allocation2 + $0x3d1] sm:$0xff] }
 0x12c   : > { %v8825_v40 = vpop.permute.xlu1 %1280  ;;  %v8827_v41 = vpop.permute.xlu0 %1278 }
 0x12e   : > { %1396 = vrot.lane.b32.xlu1 %v909_v38, %s7996_s22  ;;  %1394 = vrot.lane.b32.xlu0 %v908_v39, %s7996_s22  ;;  %v931_v39 = vld [vmem:[#allocation2 + $0x3f1] sm:$0xff] }
 0x130   : > { %v8831_v44 = vpop.permute.xlu1 %1284  ;;  %v8833_v45 = vpop.permute.xlu0 %1282 }
 0x132   : > { %1400 = vrot.lane.b32.xlu1 %v911_v42, %s7996_s22  ;;  %1398 = vrot.lane.b32.xlu0 %v910_v43, %s7996_s22  ;;  %v930_v42 = vld [vmem:[#allocation2 + $0x3e9] sm:$0xff] }
 0x134   : > { %v8837_v48 = vpop.permute.xlu1 %1288  ;;  %v8839_v49 = vpop.permute.xlu0 %1286 }
 0x136   : > { %1404 = vrot.lane.b32.xlu1 %v913_v46, %s7996_s22  ;;  %1402 = vrot.lane.b32.xlu0 %v912_v47, %s7996_s22  ;;  %v933_v47 = vld [vmem:[#allocation2 + $0x401] sm:$0xff] }
 0x138   : > { %v8843_v52 = vpop.permute.xlu1 %1292  ;;  %v8845_v53 = vpop.permute.xlu0 %1290 }
 0x13a   : > { %1408 = vrot.lane.b32.xlu1 %v915_v50, %s7996_s22  ;;  %1406 = vrot.lane.b32.xlu0 %v914_v51, %s7996_s22  ;;  %v932_v50 = vld [vmem:[#allocation2 + $0x3f9] sm:$0xff] }
 0x13c   : > { %v8849_v56 = vpop.permute.xlu1 %1296  ;;  %v8851_v59 = vpop.permute.xlu0 %1294 }
 0x13e   : > { %1412 = vrot.lane.b32.xlu1 %v917_v54, %s7996_s22  ;;  %1410 = vrot.lane.b32.xlu0 %v916_v55, %s7996_s22  ;;  %v935_v55 = vld [vmem:[#allocation2 + $0x419] sm:$0xff] }
 0x140   : > { %v8855_v62 = vpop.permute.xlu1 %1300  ;;  %v8857_v2 = vpop.permute.xlu0 %1298 }
 0x142   : > { %1416 = vrot.lane.b32.xlu1 %v919_v60, %s7996_s22  ;;  %1414 = vrot.lane.b32.xlu0 %v918_v61, %s7996_s22  ;;  %v934_v60 = vld [vmem:[#allocation2 + $0x411] sm:$0xff] }
 0x144   : > { %v8861_v5 = vpop.permute.xlu1 %1304  ;;  %v8863_v8 = vpop.permute.xlu0 %1302 }
 0x146   : > { %1420 = vrot.lane.b32.xlu1 %v921_v3, %s7996_s22  ;;  %1418 = vrot.lane.b32.xlu0 %v920_v4, %s7996_s22  ;;  %v937_v4 = vld [vmem:[#allocation2 + $0x429] sm:$0xff] }
 0x148   : > { %v8867_v11 = vpop.permute.xlu1 %1308  ;;  %v8869_v14 = vpop.permute.xlu0 %1306 }
 0x14a   : > { %1424 = vrot.lane.b32.xlu1 %v923_v9, %s7996_s22  ;;  %1422 = vrot.lane.b32.xlu0 %v922_v10, %s7996_s22  ;;  %v936_v9 = vld [vmem:[#allocation2 + $0x421] sm:$0xff] }
 0x14c   : > { %v8873_v19 = vpop.permute.xlu1 %1312  ;;  %v8875_v22 = vpop.permute.xlu0 %1310 }
 0x14e   : > { %1428 = vrot.lane.b32.xlu1 %v925_v15, %s7996_s22  ;;  %1426 = vrot.lane.b32.xlu0 %v924_v18, %s7996_s22  ;;  %v939_v18 = vld [vmem:[#allocation2 + $0x441] sm:$0xff] }
 0x150   : > { %v8879_v27 = vpop.permute.xlu1 %1316  ;;  %v8881_v30 = vpop.permute.xlu0 %1314 }
 0x152   : > { %1432 = vrot.lane.b32.xlu1 %v927_v23, %s7996_s22  ;;  %1430 = vrot.lane.b32.xlu0 %v926_v26, %s7996_s22  ;;  %v938_v23 = vld [vmem:[#allocation2 + $0x439] sm:$0xff] }
 0x154   : > { %v8885_v35 = vpop.permute.xlu1 %1320  ;;  %v8887_v38 = vpop.permute.xlu0 %1318 }
 0x156   : > { %1436 = vrot.lane.b32.xlu1 %v929_v31, %s7996_s22  ;;  %1434 = vrot.lane.b32.xlu0 %v928_v34, %s7996_s22  ;;  %v941_v34 = vld [vmem:[#allocation2 + $0x451] sm:$0xff] }
 0x158   : > { %v8891_v43 = vpop.permute.xlu1 %1324  ;;  %v8893_v46 = vpop.permute.xlu0 %1322 }
 0x15a   : > { %1440 = vrot.lane.b32.xlu1 %v931_v39, %s7996_s22  ;;  %1438 = vrot.lane.b32.xlu0 %v930_v42, %s7996_s22  ;;  %v940_v39 = vld [vmem:[#allocation2 + $0x449] sm:$0xff] }
 0x15c   : > { %v8897_v51 = vpop.permute.xlu1 %1328  ;;  %v8899_v54 = vpop.permute.xlu0 %1326 }
 0x15d   : > { %12716 = vst [vmem:[#allocation13_spill] sm:$0xff] %v8897_v51 }
 0x15e   : > { %1444 = vrot.lane.b32.xlu1 %v933_v47, %s7996_s22  ;;  %1442 = vrot.lane.b32.xlu0 %v932_v50, %s7996_s22  ;;  %v943_v50 = vld [vmem:[#allocation2 + $0x469] sm:$0xff] }
 0x160   : > { %v8903_v61 = vpop.permute.xlu1 %1332  ;;  %v8905_v3 = vpop.permute.xlu0 %1330 }
 0x161   : > { %12717 = vst [vmem:[#allocation14_spill] sm:$0xff] %v8903_v61  ;;  %12718 = vst [vmem:[#allocation15_spill] sm:$0xff] %v8905_v3 }
 0x162   : > { %1448 = vrot.lane.b32.xlu1 %v935_v55, %s7996_s22  ;;  %1446 = vrot.lane.b32.xlu0 %v934_v60, %s7996_s22  ;;  %v942_v55 = vld [vmem:[#allocation2 + $0x461] sm:$0xff] }
 0x164   : > { %v8909_v10 = vpop.permute.xlu1 %1336  ;;  %v8911_v15 = vpop.permute.xlu0 %1334 }
 0x165   : > { %12719 = vst [vmem:[#allocation16_spill] sm:$0xff] %v8909_v10  ;;  %12720 = vst [vmem:[#allocation17_spill] sm:$0xff] %v8911_v15  ;;  %v701_v10 = vld [vmem:[#allocation2 + $0x40] sm:$0xff]  ;;  %v700_v15 = vld [vmem:[#allocation2 + $0x38] sm:$0xff] }
 0x166   : > { %1452 = vrot.lane.b32.xlu1 %v937_v4, %s7996_s22  ;;  %1450 = vrot.lane.b32.xlu0 %v936_v9, %s7996_s22  ;;  %v945_v9 = vld [vmem:[#allocation2 + $0x479] sm:$0xff] }
 0x168   : > { %v8915_v26 = vpop.permute.xlu1 %1340  ;;  %v8917_v31 = vpop.permute.xlu0 %1338 }
 0x169   : > { %12721 = vst [vmem:[#allocation18_spill] sm:$0xff] %v8915_v26  ;;  %12722 = vst [vmem:[#allocation19_spill] sm:$0xff] %v8917_v31  ;;  %v702_v26 = vld [vmem:[#allocation2 + $0x50] sm:$0xff] }
 0x16a   : > { %1456 = vrot.lane.b32.xlu1 %v939_v18, %s7996_s22  ;;  %1454 = vrot.lane.b32.xlu0 %v938_v23, %s7996_s22  ;;  %v944_v18 = vld [vmem:[#allocation2 + $0x471] sm:$0xff] }
 0x16c   : > { %v8921_v42 = vpop.permute.xlu1 %1344  ;;  %v8923_v47 = vpop.permute.xlu0 %1342 }
 0x16d   : > { %12723 = vst [vmem:[#allocation20_spill] sm:$0xff] %v8921_v42  ;;  %12724 = vst [vmem:[#allocation21_spill] sm:$0xff] %v8923_v47 }
 0x16e   : > { %1460 = vrot.lane.b32.xlu1 %v941_v34, %s7996_s22  ;;  %1458 = vrot.lane.b32.xlu0 %v940_v39, %s7996_s22  ;;  %v947_v34 = vld [vmem:[#allocation2 + $0x491] sm:$0xff]  ;;  %v946_v39 = vld [vmem:[#allocation2 + $0x489] sm:$0xff] }
 0x170   : > { %v8927_v60 = vpop.permute.xlu1 %1348  ;;  %v8929_v4 = vpop.permute.xlu0 %1346 }
 0x171   : > { %12725 = vst [vmem:[#allocation22_spill] sm:$0xff] %v8927_v60  ;;  %12726 = vst [vmem:[#allocation23_spill] sm:$0xff] %v8929_v4 }
 0x172   : > { %1464 = vrot.lane.b32.xlu1 %v943_v50, %s7996_s22  ;;  %1462 = vrot.lane.b32.xlu0 %v942_v55, %s7996_s22  ;;  %v949_v50 = vld [vmem:[#allocation2 + $0x4a1] sm:$0xff]  ;;  %v948_v55 = vld [vmem:[#allocation2 + $0x499] sm:$0xff] }
 0x174   : > { %v8933_v23 = vpop.permute.xlu1 %1352  ;;  %v8935_v0 = vpop.permute.xlu0 %1350 }
 0x175   : > { %12727 = vst [vmem:[#allocation24_spill] sm:$0xff] %v8933_v23  ;;  %12728 = vst [vmem:[#allocation25_spill] sm:$0xff] %v8935_v0 }
 0x176   : > { %1468 = vrot.lane.b32.xlu1 %v945_v9, %s7996_s22  ;;  %1466 = vrot.lane.b32.xlu0 %v944_v18, %s7996_s22  ;;  %v951_v9 = vld [vmem:[#allocation2 + $0x4b9] sm:$0xff]  ;;  %v950_v18 = vld [vmem:[#allocation2 + $0x4b1] sm:$0xff] }
 0x178   : > { %v8939_v42 = vpop.permute.xlu1 %1356  ;;  %v8941_v60 = vpop.permute.xlu0 %1354 }
 0x179   : > { %12729 = vst [vmem:[#allocation26_spill] sm:$0xff] %v8939_v42  ;;  %12730 = vst [vmem:[#allocation27_spill] sm:$0xff] %v8941_v60 }
 0x17a   : > { %1472 = vrot.lane.b32.xlu1 %v947_v34, %s7996_s22  ;;  %1470 = vrot.lane.b32.xlu0 %v946_v39, %s7996_s22  ;;  %v953_v34 = vld [vmem:[#allocation2 + $0x4c9] sm:$0xff]  ;;  %v952_v39 = vld [vmem:[#allocation2 + $0x4c1] sm:$0xff] }
 0x17c   : > { %v8945_v4 = vpop.permute.xlu1 %1360  ;;  %v8947_v23 = vpop.permute.xlu0 %1358 }
 0x17d   : > { %12731 = vst [vmem:[#allocation28_spill] sm:$0xff] %v8945_v4  ;;  %12732 = vst [vmem:[#allocation29_spill] sm:$0xff] %v8947_v23 }
 0x17e   : > { %1476 = vrot.lane.b32.xlu1 %v949_v50, %s7996_s22  ;;  %1474 = vrot.lane.b32.xlu0 %v948_v55, %s7996_s22  ;;  %v955_v50 = vld [vmem:[#allocation2 + $0x4e1] sm:$0xff]  ;;  %v954_v55 = vld [vmem:[#allocation2 + $0x4d9] sm:$0xff] }
 0x180   : > { %v8951_v0 = vpop.permute.xlu1 %1364  ;;  %v8953_v42 = vpop.permute.xlu0 %1362 }
 0x181   : > { %12733 = vst [vmem:[#allocation30_spill] sm:$0xff] %v8951_v0  ;;  %12734 = vst [vmem:[#allocation31_spill] sm:$0xff] %v8953_v42 }
 0x182   : > { %1480 = vrot.lane.b32.xlu1 %v951_v9, %s7996_s22  ;;  %1478 = vrot.lane.b32.xlu0 %v950_v18, %s7996_s22  ;;  %v957_v9 = vld [vmem:[#allocation2 + $0x4f1] sm:$0xff]  ;;  %v956_v18 = vld [vmem:[#allocation2 + $0x4e9] sm:$0xff] }
 0x184   : > { %v8957_v60 = vpop.permute.xlu1 %1368  ;;  %v8959_v4 = vpop.permute.xlu0 %1366 }
 0x185   : > { %12735 = vst [vmem:[#allocation32_spill] sm:$0xff] %v8957_v60  ;;  %12736 = vst [vmem:[#allocation33_spill] sm:$0xff] %v8959_v4 }
 0x186   : > { %1484 = vrot.lane.b32.xlu1 %v953_v34, %s7996_s22  ;;  %1482 = vrot.lane.b32.xlu0 %v952_v39, %s7996_s22  ;;  %v959_v34 = vld [vmem:[#allocation2 + $0x509] sm:$0xff]  ;;  %v958_v39 = vld [vmem:[#allocation2 + $0x501] sm:$0xff] }
 0x188   : > { %v8963_v23 = vpop.permute.xlu1 %1372  ;;  %v8965_v0 = vpop.permute.xlu0 %1370 }
 0x189   : > { %12737 = vst [vmem:[#allocation34_spill] sm:$0xff] %v8963_v23  ;;  %12738 = vst [vmem:[#allocation35_spill] sm:$0xff] %v8965_v0 }
 0x18a   : > { %1488 = vrot.lane.b32.xlu1 %v955_v50, %s7996_s22  ;;  %1486 = vrot.lane.b32.xlu0 %v954_v55, %s7996_s22  ;;  %v961_v50 = vld [vmem:[#allocation2 + $0x519] sm:$0xff]  ;;  %v960_v55 = vld [vmem:[#allocation2 + $0x511] sm:$0xff] }
 0x18c   : > { %v8969_v42 = vpop.permute.xlu1 %1376  ;;  %v8971_v60 = vpop.permute.xlu0 %1374 }
 0x18d   : > { %12739 = vst [vmem:[#allocation36_spill] sm:$0xff] %v8969_v42  ;;  %12740 = vst [vmem:[#allocation37_spill] sm:$0xff] %v8971_v60 }
 0x18e   : > { %1492 = vrot.lane.b32.xlu1 %v957_v9, %s7996_s22  ;;  %1490 = vrot.lane.b32.xlu0 %v956_v18, %s7996_s22  ;;  %v963_v9 = vld [vmem:[#allocation2 + $0x531] sm:$0xff]  ;;  %v962_v18 = vld [vmem:[#allocation2 + $0x529] sm:$0xff] }
 0x190   : > { %v8975_v4 = vpop.permute.xlu1 %1380  ;;  %v8977_v23 = vpop.permute.xlu0 %1378 }
 0x191   : > { %12741 = vst [vmem:[#allocation38_spill] sm:$0xff] %v8975_v4  ;;  %12742 = vst [vmem:[#allocation39_spill] sm:$0xff] %v8977_v23 }
 0x192   : > { %1496 = vrot.lane.b32.xlu1 %v959_v34, %s7996_s22  ;;  %1494 = vrot.lane.b32.xlu0 %v958_v39, %s7996_s22  ;;  %v965_v34 = vld [vmem:[#allocation2 + $0x541] sm:$0xff]  ;;  %v964_v39 = vld [vmem:[#allocation2 + $0x539] sm:$0xff] }
 0x194   : > { %v8981_v0 = vpop.permute.xlu1 %1384  ;;  %v8983_v42 = vpop.permute.xlu0 %1382 }
 0x195   : > { %12743 = vst [vmem:[#allocation40_spill] sm:$0xff] %v8981_v0  ;;  %12744 = vst [vmem:[#allocation41_spill] sm:$0xff] %v8983_v42 }
 0x196   : > { %1500 = vrot.lane.b32.xlu1 %v961_v50, %s7996_s22  ;;  %1498 = vrot.lane.b32.xlu0 %v960_v55, %s7996_s22  ;;  %v967_v50 = vld [vmem:[#allocation2 + $0xa] sm:$0xff]  ;;  %v966_v55 = vld [vmem:[#allocation2 + $0x2] sm:$0xff] }
 0x198   : > { %v8987_v60 = vpop.permute.xlu1 %1388  ;;  %v8989_v4 = vpop.permute.xlu0 %1386 }
 0x199   : > { %12745 = vst [vmem:[#allocation42_spill] sm:$0xff] %v8987_v60  ;;  %12746 = vst [vmem:[#allocation43_spill] sm:$0xff] %v8989_v4 }
 0x19a   : > { %1504 = vrot.lane.b32.xlu1 %v963_v9, %s7996_s22  ;;  %1502 = vrot.lane.b32.xlu0 %v962_v18, %s7996_s22  ;;  %v969_v9 = vld [vmem:[#allocation2 + $0x1a] sm:$0xff]  ;;  %v968_v18 = vld [vmem:[#allocation2 + $0x12] sm:$0xff] }
 0x19c   : > { %v8993_v23 = vpop.permute.xlu1 %1392  ;;  %v8995_v0 = vpop.permute.xlu0 %1390 }
 0x19d   : > { %12747 = vst [vmem:[#allocation44_spill] sm:$0xff] %v8993_v23  ;;  %12748 = vst [vmem:[#allocation45_spill] sm:$0xff] %v8995_v0 }
 0x19e   : > { %1508 = vrot.lane.b32.xlu1 %v965_v34, %s7996_s22  ;;  %1506 = vrot.lane.b32.xlu0 %v964_v39, %s7996_s22  ;;  %v971_v34 = vld [vmem:[#allocation2 + $0x32] sm:$0xff]  ;;  %v970_v39 = vld [vmem:[#allocation2 + $0x2a] sm:$0xff] }
 0x1a0   : > { %v8999_v42 = vpop.permute.xlu1 %1396  ;;  %v9001_v60 = vpop.permute.xlu0 %1394 }
 0x1a1   : > { %12749 = vst [vmem:[#allocation46_spill] sm:$0xff] %v8999_v42  ;;  %12750 = vst [vmem:[#allocation47_spill] sm:$0xff] %v9001_v60 }
 0x1a2   : > { %1784 = vrot.lane.b32.xlu1 %v967_v50, %s7997_s23  ;;  %1782 = vrot.lane.b32.xlu0 %v966_v55, %s7997_s23  ;;  %v974_v50 = vld [vmem:[#allocation2 + $0x52] sm:$0xff]  ;;  %v972_v55 = vld [vmem:[#allocation2 + $0x3a] sm:$0xff] }
 0x1a4   : > { %v9005_v23 = vpop.permute.xlu1 %1400  ;;  %v9007_v0 = vpop.permute.xlu0 %1398 }
 0x1a5   : > { %12751 = vst [vmem:[#allocation48_spill] sm:$0xff] %v9005_v23  ;;  %12752 = vst [vmem:[#allocation49_spill] sm:$0xff] %v9007_v0 }
 0x1a6   : > { %1788 = vrot.lane.b32.xlu1 %v969_v9, %s7997_s23  ;;  %1786 = vrot.lane.b32.xlu0 %v968_v18, %s7997_s23  ;;  %v973_v9 = vld [vmem:[#allocation2 + $0x42] sm:$0xff]  ;;  %v975_v18 = vld [vmem:[#allocation2 + $0x5a] sm:$0xff] }
 0x1a8   : > { %v9011_v42 = vpop.permute.xlu1 %1404  ;;  %v9013_v60 = vpop.permute.xlu0 %1402 }
 0x1a9   : > { %12753 = vst [vmem:[#allocation50_spill] sm:$0xff] %v9011_v42  ;;  %12754 = vst [vmem:[#allocation51_spill] sm:$0xff] %v9013_v60 }
 0x1aa   : > { %1792 = vrot.lane.b32.xlu1 %v971_v34, %s7997_s23  ;;  %1790 = vrot.lane.b32.xlu0 %v970_v39, %s7997_s23  ;;  %v977_v34 = vld [vmem:[#allocation2 + $0x6a] sm:$0xff]  ;;  %v976_v39 = vld [vmem:[#allocation2 + $0x62] sm:$0xff] }
 0x1ac   : > { %v9017_v4 = vpop.permute.xlu1 %1408  ;;  %v9019_v23 = vpop.permute.xlu0 %1406 }
 0x1ad   : > { %12755 = vst [vmem:[#allocation52_spill] sm:$0xff] %v9017_v4  ;;  %12756 = vst [vmem:[#allocation53_spill] sm:$0xff] %v9019_v23 }
 0x1ae   : > { %1798 = vrot.lane.b32.xlu1 %v974_v50, %s7997_s23  ;;  %1794 = vrot.lane.b32.xlu0 %v972_v55, %s7997_s23  ;;  %v979_v50 = vld [vmem:[#allocation2 + $0x82] sm:$0xff]  ;;  %v978_v55 = vld [vmem:[#allocation2 + $0x7a] sm:$0xff] }
 0x1b0   : > { %v9023_v0 = vpop.permute.xlu1 %1412  ;;  %v9025_v42 = vpop.permute.xlu0 %1410 }
 0x1b1   : > { %12757 = vst [vmem:[#allocation54_spill] sm:$0xff] %v9023_v0  ;;  %12758 = vst [vmem:[#allocation55_spill] sm:$0xff] %v9025_v42 }
 0x1b2   : > { %1796 = vrot.lane.b32.xlu1 %v973_v9, %s7997_s23  ;;  %1800 = vrot.lane.b32.xlu0 %v975_v18, %s7997_s23  ;;  %v981_v9 = vld [vmem:[#allocation2 + $0x92] sm:$0xff]  ;;  %v980_v18 = vld [vmem:[#allocation2 + $0x8a] sm:$0xff] }
 0x1b4   : > { %v9029_v60 = vpop.permute.xlu1 %1416  ;;  %v9031_v4 = vpop.permute.xlu0 %1414 }
 0x1b5   : > { %12759 = vst [vmem:[#allocation56_spill] sm:$0xff] %v9029_v60  ;;  %12760 = vst [vmem:[#allocation57_spill] sm:$0xff] %v9031_v4 }
 0x1b6   : > { %1804 = vrot.lane.b32.xlu1 %v977_v34, %s7997_s23  ;;  %1802 = vrot.lane.b32.xlu0 %v976_v39, %s7997_s23  ;;  %v983_v34 = vld [vmem:[#allocation2 + $0xaa] sm:$0xff]  ;;  %v982_v39 = vld [vmem:[#allocation2 + $0xa2] sm:$0xff] }
 0x1b8   : > { %v9035_v23 = vpop.permute.xlu1 %1420  ;;  %v9037_v0 = vpop.permute.xlu0 %1418 }
 0x1b9   : > { %12761 = vst [vmem:[#allocation58_spill] sm:$0xff] %v9035_v23  ;;  %12762 = vst [vmem:[#allocation59_spill] sm:$0xff] %v9037_v0 }
 0x1ba   : > { %1808 = vrot.lane.b32.xlu1 %v979_v50, %s7997_s23  ;;  %1806 = vrot.lane.b32.xlu0 %v978_v55, %s7997_s23  ;;  %v985_v50 = vld [vmem:[#allocation2 + $0xba] sm:$0xff]  ;;  %v984_v55 = vld [vmem:[#allocation2 + $0xb2] sm:$0xff] }
 0x1bc   : > { %v9041_v42 = vpop.permute.xlu1 %1424  ;;  %v9043_v60 = vpop.permute.xlu0 %1422 }
 0x1bd   : > { %12763 = vst [vmem:[#allocation60_spill] sm:$0xff] %v9041_v42  ;;  %12764 = vst [vmem:[#allocation61_spill] sm:$0xff] %v9043_v60 }
 0x1be   : > { %1812 = vrot.lane.b32.xlu1 %v981_v9, %s7997_s23  ;;  %1810 = vrot.lane.b32.xlu0 %v980_v18, %s7997_s23  ;;  %v987_v9 = vld [vmem:[#allocation2 + $0xd2] sm:$0xff]  ;;  %v986_v18 = vld [vmem:[#allocation2 + $0xca] sm:$0xff] }
 0x1c0   : > { %v9047_v4 = vpop.permute.xlu1 %1428  ;;  %v9049_v23 = vpop.permute.xlu0 %1426 }
 0x1c1   : > { %12765 = vst [vmem:[#allocation62_spill] sm:$0xff] %v9047_v4  ;;  %12766 = vst [vmem:[#allocation63_spill] sm:$0xff] %v9049_v23 }
 0x1c2   : > { %1816 = vrot.lane.b32.xlu1 %v983_v34, %s7997_s23  ;;  %1814 = vrot.lane.b32.xlu0 %v982_v39, %s7997_s23  ;;  %v989_v34 = vld [vmem:[#allocation2 + $0xe2] sm:$0xff]  ;;  %v988_v39 = vld [vmem:[#allocation2 + $0xda] sm:$0xff] }
 0x1c4   : > { %v9053_v0 = vpop.permute.xlu1 %1432  ;;  %v9055_v42 = vpop.permute.xlu0 %1430 }
 0x1c5   : > { %12767 = vst [vmem:[#allocation64_spill] sm:$0xff] %v9053_v0  ;;  %12768 = vst [vmem:[#allocation65_spill] sm:$0xff] %v9055_v42 }
 0x1c6   : > { %1820 = vrot.lane.b32.xlu1 %v985_v50, %s7997_s23  ;;  %1818 = vrot.lane.b32.xlu0 %v984_v55, %s7997_s23  ;;  %v991_v50 = vld [vmem:[#allocation2 + $0xfa] sm:$0xff]  ;;  %v990_v55 = vld [vmem:[#allocation2 + $0xf2] sm:$0xff] }
 0x1c8   : > { %v9059_v60 = vpop.permute.xlu1 %1436  ;;  %v9061_v4 = vpop.permute.xlu0 %1434 }
 0x1c9   : > { %12769 = vst [vmem:[#allocation66_spill] sm:$0xff] %v9059_v60  ;;  %12770 = vst [vmem:[#allocation67_spill] sm:$0xff] %v9061_v4 }
 0x1ca   : > { %1824 = vrot.lane.b32.xlu1 %v987_v9, %s7997_s23  ;;  %1822 = vrot.lane.b32.xlu0 %v986_v18, %s7997_s23  ;;  %v993_v9 = vld [vmem:[#allocation2 + $0x10a] sm:$0xff]  ;;  %v992_v18 = vld [vmem:[#allocation2 + $0x102] sm:$0xff] }
 0x1cc   : > { %v9065_v23 = vpop.permute.xlu1 %1440  ;;  %v9067_v0 = vpop.permute.xlu0 %1438 }
 0x1cd   : > { %12771 = vst [vmem:[#allocation68_spill] sm:$0xff] %v9065_v23  ;;  %12772 = vst [vmem:[#allocation69_spill] sm:$0xff] %v9067_v0 }
 0x1ce   : > { %1828 = vrot.lane.b32.xlu1 %v989_v34, %s7997_s23  ;;  %1826 = vrot.lane.b32.xlu0 %v988_v39, %s7997_s23  ;;  %v995_v34 = vld [vmem:[#allocation2 + $0x122] sm:$0xff]  ;;  %v994_v39 = vld [vmem:[#allocation2 + $0x11a] sm:$0xff] }
 0x1d0   : > { %v9071_v42 = vpop.permute.xlu1 %1444  ;;  %v9073_v60 = vpop.permute.xlu0 %1442 }
 0x1d1   : > { %12773 = vst [vmem:[#allocation70_spill] sm:$0xff] %v9071_v42  ;;  %12774 = vst [vmem:[#allocation71_spill] sm:$0xff] %v9073_v60 }
 0x1d2   : > { %1832 = vrot.lane.b32.xlu1 %v991_v50, %s7997_s23  ;;  %1830 = vrot.lane.b32.xlu0 %v990_v55, %s7997_s23  ;;  %v997_v50 = vld [vmem:[#allocation2 + $0x132] sm:$0xff]  ;;  %v996_v55 = vld [vmem:[#allocation2 + $0x12a] sm:$0xff] }
 0x1d4   : > { %v9077_v4 = vpop.permute.xlu1 %1448  ;;  %v9079_v23 = vpop.permute.xlu0 %1446 }
 0x1d5   : > { %12775 = vst [vmem:[#allocation72_spill] sm:$0xff] %v9077_v4  ;;  %12776 = vst [vmem:[#allocation73_spill] sm:$0xff] %v9079_v23 }
 0x1d6   : > { %1836 = vrot.lane.b32.xlu1 %v993_v9, %s7997_s23  ;;  %1834 = vrot.lane.b32.xlu0 %v992_v18, %s7997_s23  ;;  %v999_v9 = vld [vmem:[#allocation2 + $0x14a] sm:$0xff]  ;;  %v998_v18 = vld [vmem:[#allocation2 + $0x142] sm:$0xff] }
 0x1d8   : > { %v9083_v0 = vpop.permute.xlu1 %1452  ;;  %v9085_v42 = vpop.permute.xlu0 %1450 }
 0x1d9   : > { %12777 = vst [vmem:[#allocation74_spill] sm:$0xff] %v9083_v0  ;;  %12778 = vst [vmem:[#allocation75_spill] sm:$0xff] %v9085_v42 }
 0x1da   : > { %1840 = vrot.lane.b32.xlu1 %v995_v34, %s7997_s23  ;;  %1838 = vrot.lane.b32.xlu0 %v994_v39, %s7997_s23  ;;  %v1001_v34 = vld [vmem:[#allocation2 + $0x15a] sm:$0xff]  ;;  %v1000_v39 = vld [vmem:[#allocation2 + $0x152] sm:$0xff] }
 0x1dc   : > { %v9089_v60 = vpop.permute.xlu1 %1456  ;;  %v9091_v4 = vpop.permute.xlu0 %1454 }
 0x1dd   : > { %12779 = vst [vmem:[#allocation76_spill] sm:$0xff] %v9089_v60  ;;  %12780 = vst [vmem:[#allocation77_spill] sm:$0xff] %v9091_v4 }
 0x1de   : > { %1844 = vrot.lane.b32.xlu1 %v997_v50, %s7997_s23  ;;  %1842 = vrot.lane.b32.xlu0 %v996_v55, %s7997_s23  ;;  %v1003_v50 = vld [vmem:[#allocation2 + $0x172] sm:$0xff]  ;;  %v1002_v55 = vld [vmem:[#allocation2 + $0x16a] sm:$0xff] }
 0x1e0   : > { %v9095_v23 = vpop.permute.xlu1 %1460  ;;  %v9097_v0 = vpop.permute.xlu0 %1458 }
 0x1e1   : > { %12781 = vst [vmem:[#allocation78_spill] sm:$0xff] %v9095_v23  ;;  %12782 = vst [vmem:[#allocation79_spill] sm:$0xff] %v9097_v0 }
 0x1e2   : > { %1848 = vrot.lane.b32.xlu1 %v999_v9, %s7997_s23  ;;  %1846 = vrot.lane.b32.xlu0 %v998_v18, %s7997_s23 }
 0x1e4   : > { %v9101_v42 = vpop.permute.xlu1 %1464  ;;  %v9103_v60 = vpop.permute.xlu0 %1462 }
 0x1e5   : > { %12783 = vst [vmem:[#allocation80_spill] sm:$0xff] %v9101_v42  ;;  %12784 = vst [vmem:[#allocation81_spill] sm:$0xff] %v9103_v60 }
 0x1e6   : > { %1852 = vrot.lane.b32.xlu1 %v1001_v34, %s7997_s23  ;;  %1850 = vrot.lane.b32.xlu0 %v1000_v39, %s7997_s23 }
 0x1e8   : > { %v9107_v4 = vpop.permute.xlu1 %1468  ;;  %v9109_v23 = vpop.permute.xlu0 %1466 }
 0x1e9   : > { %12785 = vst [vmem:[#allocation82_spill] sm:$0xff] %v9107_v4  ;;  %12786 = vst [vmem:[#allocation83_spill] sm:$0xff] %v9109_v23 }
 0x1ea   : > { %1856 = vrot.lane.b32.xlu1 %v1003_v50, %s7997_s23  ;;  %1854 = vrot.lane.b32.xlu0 %v1002_v55, %s7997_s23 }
 0x1ec   : > { %v9113_v9 = vpop.permute.xlu1 %1472  ;;  %v9115_v18 = vpop.permute.xlu0 %1470 }
 0x1ed   : > { %12787 = vst [vmem:[#allocation84_spill] sm:$0xff] %v9113_v9  ;;  %12788 = vst [vmem:[#allocation85_spill] sm:$0xff] %v9115_v18 }
 0x1f0   : > { %v9117_v42 = vpop.permute.xlu1 %1476  ;;  %v9119_v60 = vpop.permute.xlu0 %1474 }
 0x1f1   : > { %12789 = vst [vmem:[#allocation86_spill] sm:$0xff] %v9117_v42  ;;  %12790 = vst [vmem:[#allocation87_spill] sm:$0xff] %v9119_v60 }
 0x1f4   : > { %v9121_v34 = vpop.permute.xlu1 %1480  ;;  %v9123_v39 = vpop.permute.xlu0 %1478 }
 0x1f5   : > { %12791 = vst [vmem:[#allocation88_spill] sm:$0xff] %v9121_v34  ;;  %12792 = vst [vmem:[#allocation89_spill] sm:$0xff] %v9123_v39 }
 0x1f8   : > { %v9125_v0 = vpop.permute.xlu1 %1484  ;;  %v9127_v4 = vpop.permute.xlu0 %1482 }
 0x1f9   : > { %12793 = vst [vmem:[#allocation90_spill] sm:$0xff] %v9125_v0  ;;  %12794 = vst [vmem:[#allocation91_spill] sm:$0xff] %v9127_v4 }
 0x1fc   : > { %v9129_v23 = vpop.permute.xlu1 %1488  ;;  %v9131_v50 = vpop.permute.xlu0 %1486 }
 0x1fd   : > { %12795 = vst [vmem:[#allocation92_spill] sm:$0xff] %v9129_v23  ;;  %12796 = vst [vmem:[#allocation93_spill] sm:$0xff] %v9131_v50  ;;  %v3624_v50 = vld [vmem:[#allocation6 + $0x18] sm:$0x7] }
 0x1fe   : > { %7527 = vmatprep.subr.msk.mxu0 %vm4017_vm2, %v3624_v50 }
 0x1ff   : > { %7528 = vmatpush3.msk.msra.mxu0 %vm4017_vm2, %v3624_v50 }
 0x200   : > { %v9133_v55 = vpop.permute.xlu1 %1492  ;;  %v9135_v9 = vpop.permute.xlu0 %1490 }
 0x201   : > { %12797 = vst [vmem:[#allocation94_spill] sm:$0xff] %v9133_v55  ;;  %12798 = vst [vmem:[#allocation95_spill] sm:$0xff] %v9135_v9  ;;  %v3623_v9 = vld [vmem:[#allocation6 + $0x10] sm:$0xff] }
 0x202   : > { %7529 = vmatprep.subr.mxu0 %v3623_v9 }
 0x203   : > { %7530 = vmatpush3.msra.mxu0 %v3623_v9 }
 0x204   : > { %v9137_v18 = vpop.permute.xlu1 %1496  ;;  %v9139_v42 = vpop.permute.xlu0 %1494 }
 0x205   : > { %12799 = vst [vmem:[#allocation96_spill] sm:$0xff] %v9137_v18  ;;  %12800 = vst [vmem:[#allocation97_spill] sm:$0xff] %v9139_v42 }
 0x208   : > { %v9141_v60 = vpop.permute.xlu1 %1500  ;;  %v9143_v34 = vpop.permute.xlu0 %1498 }
 0x209   : > { %12801 = vst [vmem:[#allocation98_spill] sm:$0xff] %v9141_v60  ;;  %12802 = vst [vmem:[#allocation99_spill] sm:$0xff] %v9143_v34  ;;  %v3622_v34 = vld [vmem:[#allocation6 + $0x8] sm:$0xff] }
 0x20a   : > { %7531 = vmatprep.subr.mxu0 %v3622_v34  ;;  %v698_v60 = vld [vmem:[#allocation2 + $0x28] sm:$0xff] }
 0x20b   : > { %7532 = vmatpush3.msra.mxu0 %v3622_v34  ;;  %v2194_v55 = vsel %vm265_vm0, %v698_v60, %v8775_v7  ;;  %v2198_v7 = vsel %vm265_vm0, %v702_v26, %v8791_v17 }
 0x20c   : > { %v9145_v39 = vpop.permute.xlu1 %1504  ;;  %v9147_v0 = vpop.permute.xlu0 %1502 }
 0x20d   : > { %12803 = vst [vmem:[#allocation100_spill] sm:$0xff] %v9145_v39  ;;  %12804 = vst [vmem:[#allocation101_spill] sm:$0xff] %v9147_v0  ;;  %v3621_v39 = vld [vmem:[#allocation6] sm:$0xff] }
 0x20e   : > { %7533 = vmatprep.subr.mxu0 %v3621_v39 }
 0x20f   : > { %7534 = vmatpush3.msra.mxu0 %v3621_v39  ;;  %v703_v39 = vld [vmem:[#allocation2 + $0x58] sm:$0xff] }
 0x210   : > { %v9149_v4 = vpop.permute.xlu1 %1508  ;;  %v9151_v23 = vpop.permute.xlu0 %1506 }
 0x211   : > { %12805 = vst [vmem:[#allocation102_spill] sm:$0xff] %v9149_v4  ;;  %12806 = vst [vmem:[#allocation103_spill] sm:$0xff] %v9151_v23  ;;  %v699_v23 = vld [vmem:[#allocation2 + $0x30] sm:$0xff] }
 0x212   : > { %v2195_v50 = vsel %vm265_vm0, %v699_v23, %v8773_v6  ;;  %v1004_v6 = vld [vmem:[#allocation2 + $0x17a] sm:$0xff] }
 0x214   : > { %v9153_v18 = vpop.permute.xlu1 %1784  ;;  %v9155_v42 = vpop.permute.xlu0 %1782 }
 0x218   : > { %v9157_v0 = vpop.permute.xlu1 %1788  ;;  %v9159_v4 = vpop.permute.xlu0 %1786 }
 0x21c   : > { %v1793_v9 = vpop.permute.xlu1 %1792  ;;  %v1791_v47 = vpop.permute.xlu0 %1790 }
 0x21d   : > { %v9166_v34 = vsel %vm2326_vm3, %v2195_v50, %v1793_v9  ;;  %v9169_v31 = vsel %vm2326_vm3, %v2194_v55, %v1791_v47  ;;  %v1005_v47 = vld [vmem:[#allocation2 + $0x182] sm:$0xff]  ;;  %v2199_v55 = vsel %vm265_vm0, %v703_v39, %v8789_v16 }
 0x21e   : > { %2593 = vrot.lane.b32.xlu1 %v9166_v34, %s7998_s24  ;;  %2591 = vrot.lane.b32.xlu0 %v9169_v31, %s7998_s24 }
 0x220   : > { %v1799_v60 = vpop.permute.xlu1 %1798  ;;  %v1795_v23 = vpop.permute.xlu0 %1794 }
 0x221   : > { %v9178_v50 = vsel %vm2326_vm3, %v2198_v7, %v1799_v60  ;;  %v2196_v7 = vsel %vm265_vm0, %v700_v15, %v8785_v13  ;;  %v704_v60 = vld [vmem:[#allocation2 + $0x60] sm:$0xff] }
 0x222   : > { %1858 = vrot.lane.b32.xlu1 %v1004_v6, %s7997_s23  ;;  %2979 = vrot.lane.b32.xlu0 %v9178_v50, %s7999_s25  ;;  %v2197_v6 = vsel %vm265_vm0, %v701_v10, %v8783_v12  ;;  %v9196_v16 = vsel %vm2326_vm3, %v2196_v7, %v1795_v23  ;;  %v2200_v12 = vsel %vm265_vm0, %v704_v60, %v8797_v21  ;;  %v705_v10 = vld [vmem:[#allocation2 + $0x68] sm:$0xff]  ;;  %v1007_v23 = vld [vmem:[#allocation2 + $0x19a] sm:$0xff] }
 0x223   : > { %v706_v21 = vld [vmem:[#allocation2 + $0x78] sm:$0xff]  ;;  %v1008_v7 = vld [vmem:[#allocation2 + $0x1a2] sm:$0xff] }
 0x224   : > { %v1801_v9 = vpop.permute.xlu0 %1800  ;;  %v1797_v26 = vpop.permute.xlu1 %1796  ;;  %v707_v60 = vld [vmem:[#allocation2 + $0x80] sm:$0xff] }
 0x225   : > { %v9186_v17 = vsel %vm2326_vm3, %v2199_v55, %v1801_v9  ;;  %v9199_v39 = vsel %vm2326_vm3, %v2197_v6, %v1797_v26  ;;  %v2201_v9 = vsel %vm265_vm0, %v705_v10, %v8795_v20  ;;  %v2202_v20 = vsel %vm265_vm0, %v706_v21, %v8803_v25  ;;  %v708_v25 = vld [vmem:[#allocation2 + $0x88] sm:$0xff]  ;;  %v709_v21 = vld [vmem:[#allocation2 + $0x90] sm:$0xff] }
 0x226   : > { %1860 = vrot.lane.b32.xlu1 %v1005_v47, %s7997_s23  ;;  %2981 = vrot.lane.b32.xlu0 %v9186_v17, %s7999_s25  ;;  %v1006_v47 = vld [vmem:[#allocation2 + $0x192] sm:$0xff]  ;;  %v2203_v10 = vsel %vm265_vm0, %v707_v60, %v8801_v24  ;;  %v2204_v24 = vsel %vm265_vm0, %v708_v25, %v8809_v29  ;;  %v2205_v60 = vsel %vm265_vm0, %v709_v21, %v8807_v28  ;;  %v710_v29 = vld [vmem:[#allocation2 + $0xa0] sm:$0xff] }
 0x227   : > { %v2206_v28 = vsel %vm265_vm0, %v710_v29, %v8815_v33  ;;  %v712_v33 = vld [vmem:[#allocation2 + $0xb0] sm:$0xff]  ;;  %v1014_v29 = vld [vmem:[#allocation2 + $0x1e2] sm:$0xff] }
 0x228   : > { %v1803_v55 = vpop.permute.xlu0 %1802  ;;  %v1805_v15 = vpop.permute.xlu1 %1804 }
 0x229   : > { %v9208_v13 = vsel %vm2326_vm3, %v2200_v12, %v1803_v55  ;;  %v9216_v26 = vsel %vm2326_vm3, %v2201_v9, %v1805_v15  ;;  %v1009_v12 = vld [vmem:[#allocation2 + $0x1aa] sm:$0xff]  ;;  %v1010_v9 = vld [vmem:[#allocation2 + $0x1ba] sm:$0xff] }
 0x22a   : > { %2597 = vrot.lane.b32.xlu1 %v9199_v39, %s7998_s24  ;;  %2595 = vrot.lane.b32.xlu0 %v9196_v16, %s7998_s24 }
 0x22c   : > { %v1807_v6 = vpop.permute.xlu0 %1806 }
 0x22d   : > { %v9228_v55 = vsel %vm2326_vm3, %v2202_v20, %v1807_v6  ;;  %v1011_v20 = vld [vmem:[#allocation2 + $0x1c2] sm:$0xff] }
 0x22e   : > { %1862 = vrot.lane.b32.xlu1 %v1006_v47, %s7997_s23  ;;  %2983 = vrot.lane.b32.xlu0 %v9208_v13, %s7999_s25  ;;  %v1809_v47 = vpop.permute.xlu1 %1808 }
 0x22f   : > { %v9236_v15 = vsel %vm2326_vm3, %v2203_v10, %v1809_v47  ;;  %v1012_v10 = vld [vmem:[#allocation2 + $0x1ca] sm:$0xff] }
 0x232   : > { %1864 = vrot.lane.b32.xlu1 %v1007_v23, %s7997_s23  ;;  %2985 = vrot.lane.b32.xlu0 %v9216_v26, %s7999_s25  ;;  %v1811_v23 = vpop.permute.xlu0 %1810 }
 0x233   : > { %v9248_v6 = vsel %vm2326_vm3, %v2204_v24, %v1811_v23  ;;  %v711_v23 = vld [vmem:[#allocation2 + $0xa8] sm:$0xff]  ;;  %v1013_v24 = vld [vmem:[#allocation2 + $0x1d2] sm:$0xff] }
 0x234   : > { %v2207_v21 = vsel %vm265_vm0, %v711_v23, %v8813_v32  ;;  %v2208_v32 = vsel %vm265_vm0, %v712_v33, %v8821_v37  ;;  %v1015_v23 = vld [vmem:[#allocation2 + $0x1ea] sm:$0xff]  ;;  %v1016_v33 = vld [vmem:[#allocation2 + $0x1f2] sm:$0xff] }
 0x236   : > { %2601 = vrot.lane.b32.xlu1 %v9186_v17, %s7998_s24  ;;  %2599 = vrot.lane.b32.xlu0 %v9178_v50, %s7998_s24 }
 0x23a   : > { %1866 = vrot.lane.b32.xlu1 %v1008_v7, %s7997_s23  ;;  %2987 = vrot.lane.b32.xlu0 %v9228_v55, %s7999_s25  ;;  %v1813_v7 = vpop.permute.xlu1 %1812 }
 0x23b   : > { %v9256_v47 = vsel %vm2326_vm3, %v2205_v60, %v1813_v7 }
 0x23e   : > { %1868 = vrot.lane.b32.xlu1 %v1009_v12, %s7997_s23  ;;  %2989 = vrot.lane.b32.xlu0 %v9236_v15, %s7999_s25  ;;  %v1815_v12 = vpop.permute.xlu0 %1814  ;;  %v1817_v25 = vpop.permute.xlu1 %1816 }
 0x23f   : > { %v9276_v7 = vsel %vm2326_vm3, %v2207_v21, %v1817_v25 }
 0x240   : > { %12807 = vst [vmem:[#allocation104_spill] sm:$0xff] %v9276_v7 }
 0x242   : > { %2605 = vrot.lane.b32.xlu1 %v9216_v26, %s7998_s24  ;;  %2603 = vrot.lane.b32.xlu0 %v9208_v13, %s7998_s24  ;;  %v1819_v60 = vpop.permute.xlu0 %1818 }
 0x243   : > { %v9288_v25 = vsel %vm2326_vm3, %v2208_v32, %v1819_v60  ;;  %v714_v60 = vld [vmem:[#allocation2 + $0xc8] sm:$0xff]  ;;  %v715_v32 = vld [vmem:[#allocation2 + $0xd0] sm:$0xff] }
 0x244   : > { %12808 = vst [vmem:[#allocation105_spill] sm:$0xff] %v9288_v25 }
 0x246   : > { %1870 = vrot.lane.b32.xlu1 %v1010_v9, %s7997_s23  ;;  %2991 = vrot.lane.b32.xlu0 %v9248_v6, %s7999_s25  ;;  %v9268_v9 = vsel %vm2326_vm3, %v2206_v28, %v1815_v12  ;;  %v713_v28 = vld [vmem:[#allocation2 + $0xb8] sm:$0xff] }
 0x24a   : > { %1872 = vrot.lane.b32.xlu1 %v1011_v20, %s7997_s23  ;;  %2993 = vrot.lane.b32.xlu0 %v9256_v47, %s7999_s25  ;;  %v1821_v20 = vpop.permute.xlu1 %1820 }
 0x24e   : > { %2609 = vrot.lane.b32.xlu1 %v9236_v15, %s7998_s24  ;;  %2607 = vrot.lane.b32.xlu0 %v9228_v55, %s7998_s24  ;;  %v1825_v12 = vpop.permute.xlu1 %1824 }
 0x252   : > { %1874 = vrot.lane.b32.xlu1 %v1012_v10, %s7997_s23  ;;  %2995 = vrot.lane.b32.xlu0 %v9268_v9, %s7999_s25  ;;  %v1823_v10 = vpop.permute.xlu0 %1822  ;;  %v1829_v61 = vpop.permute.xlu1 %1828 }
 0x256   : > { %1876 = vrot.lane.b32.xlu1 %v1013_v24, %s7997_s23  ;;  %2997 = vrot.lane.b32.xlu0 %v9276_v7, %s7999_s25  ;;  %v2209_v24 = vsel %vm265_vm0, %v713_v28, %v8819_v36  ;;  %v1827_v37 = vpop.permute.xlu0 %1826  ;;  %v2210_v36 = vsel %vm265_vm0, %v714_v60, %v8827_v41  ;;  %v1018_v60 = vld [vmem:[#allocation2 + $0x20a] sm:$0xff] }
 0x257   : > { %v9296_v21 = vsel %vm2326_vm3, %v2209_v24, %v1821_v20  ;;  %v1833_v20 = vpop.permute.xlu1 %1832  ;;  %v9308_v28 = vsel %vm2326_vm3, %v2210_v36, %v1823_v10  ;;  %v2211_v24 = vsel %vm265_vm0, %v715_v32, %v8825_v40  ;;  %v716_v10 = vld [vmem:[#allocation2 + $0xd8] sm:$0xff]  ;;  %v717_v36 = vld [vmem:[#allocation2 + $0xe0] sm:$0xff] }
 0x258   : > { %12809 = vst [vmem:[#allocation106_spill] sm:$0xff] %v9296_v21  ;;  %12810 = vst [vmem:[#allocation107_spill] sm:$0xff] %v9308_v28  ;;  %v9316_v3 = vsel %vm2326_vm3, %v2211_v24, %v1825_v12  ;;  %v2212_v40 = vsel %vm265_vm0, %v716_v10, %v8833_v45  ;;  %v2213_v24 = vsel %vm265_vm0, %v717_v36, %v8831_v44  ;;  %v1020_v44 = vld [vmem:[#allocation2 + $0x21a] sm:$0xff] }
 0x259   : > { %12811 = vst [vmem:[#allocation108_spill] sm:$0xff] %v9316_v3  ;;  %v9332_v32 = vsel %vm2326_vm3, %v2212_v40, %v1827_v37  ;;  %v718_v37 = vld [vmem:[#allocation2 + $0xf0] sm:$0xff]  ;;  %v719_v36 = vld [vmem:[#allocation2 + $0xf8] sm:$0xff] }
 0x25a   : > { %2613 = vrot.lane.b32.xlu1 %v9256_v47, %s7998_s24  ;;  %2611 = vrot.lane.b32.xlu0 %v9248_v6, %s7998_s24  ;;  %12812 = vst [vmem:[#allocation109_spill] sm:$0xff] %v9332_v32 }
 0x25b   : > { %v1837_v51 = vpop.permute.xlu1 %1836 }
 0x25e   : > { %1878 = vrot.lane.b32.xlu1 %v1014_v29, %s7997_s23  ;;  %2999 = vrot.lane.b32.xlu0 %v9288_v25, %s7999_s25  ;;  %v1831_v29 = vpop.permute.xlu0 %1830 }
 0x25f   : > { %v9327_v12 = vpop.permute.xlu1 %1840 }
 0x262   : > { %1880 = vrot.lane.b32.xlu1 %v1015_v23, %s7997_s23  ;;  %3001 = vrot.lane.b32.xlu0 %v9296_v21, %s7999_s25  ;;  %v1017_v23 = vld [vmem:[#allocation2 + $0x1fa] sm:$0xff]  ;;  %v1835_v41 = vpop.permute.xlu0 %1834 }
 0x263   : > { %v9342_v45 = vpop.permute.xlu1 %1844 }
 0x266   : > { %2617 = vrot.lane.b32.xlu1 %v9276_v7, %s7998_s24  ;;  %2615 = vrot.lane.b32.xlu0 %v9268_v9, %s7998_s24 }
 0x26a   : > { %1882 = vrot.lane.b32.xlu1 %v1016_v33, %s7997_s23  ;;  %3003 = vrot.lane.b32.xlu0 %v9308_v28, %s7999_s25  ;;  %v9329_v33 = vpop.permute.xlu0 %1838 }
 0x26e   : > { %1884 = vrot.lane.b32.xlu1 %v1017_v23, %s7997_s23  ;;  %3005 = vrot.lane.b32.xlu0 %v9316_v3, %s7999_s25  ;;  %v1019_v23 = vld [vmem:[#allocation2 + $0x212] sm:$0xff]  ;;  %v9344_v10 = vpop.permute.xlu0 %1842 }
 0x272   : > { %2621 = vrot.lane.b32.xlu1 %v9296_v21, %s7998_s24  ;;  %2619 = vrot.lane.b32.xlu0 %v9288_v25, %s7998_s24  ;;  %v9340_v21 = vsel %vm2326_vm3, %v2213_v24, %v1829_v61  ;;  %v2214_v61 = vsel %vm265_vm0, %v718_v37, %v8839_v49  ;;  %v9357_v40 = vpop.permute.xlu0 %1846  ;;  %v1021_v24 = vld [vmem:[#allocation2 + $0x222] sm:$0xff] }
 0x273   : > { %12813 = vst [vmem:[#allocation110_spill] sm:$0xff] %v9340_v21 }
 0x276   : > { %1886 = vrot.lane.b32.xlu1 %v1018_v60, %s7997_s23  ;;  %3007 = vrot.lane.b32.xlu0 %v9332_v32, %s7999_s25  ;;  %v9355_v60 = vpop.permute.xlu1 %1848  ;;  %v9372_v37 = vpop.permute.xlu0 %1850 }
 0x27a   : > { %1888 = vrot.lane.b32.xlu1 %v1019_v23, %s7997_s23  ;;  %3009 = vrot.lane.b32.xlu0 %v9340_v21, %s7999_s25  ;;  %v9360_v23 = vsel %vm2326_vm3, %v2214_v61, %v1831_v29  ;;  %v9370_v49 = vpop.permute.xlu1 %1852  ;;  %v720_v29 = vld [vmem:[#allocation2 + $0x100] sm:$0xff]  ;;  %v721_v61 = vld [vmem:[#allocation2 + $0x108] sm:$0xff] }
 0x27e   : > { %2625 = vrot.lane.b32.xlu1 %v9316_v3, %s7998_s24  ;;  %2623 = vrot.lane.b32.xlu0 %v9308_v28, %s7998_s24  ;;  %v2215_v3 = vsel %vm265_vm0, %v719_v36, %v8837_v48  ;;  %v1022_v48 = vld [vmem:[#allocation2 + $0x232] sm:$0xff] }
 0x27f   : > { %v9368_v28 = vsel %vm2326_vm3, %v2215_v3, %v1833_v20  ;;  %v2216_v3 = vsel %vm265_vm0, %v720_v29, %v8845_v53  ;;  %v9383_v20 = vpop.permute.xlu1 %1856 }
 0x280   : > { %v9388_v36 = vsel %vm2326_vm3, %v2216_v3, %v1835_v41 }
 0x282   : > { %1890 = vrot.lane.b32.xlu1 %v1020_v44, %s7997_s23  ;;  %3011 = vrot.lane.b32.xlu0 %v9360_v23, %s7999_s25  ;;  %v9385_v44 = vpop.permute.xlu0 %1854 }
 0x286   : > { %1892 = vrot.lane.b32.xlu1 %v1021_v24, %s7997_s23  ;;  %3013 = vrot.lane.b32.xlu0 %v9368_v28, %s7999_s25  ;;  %v694_v24 = vld [vmem:[#allocation2] sm:$0xff] }
 0x287   : > { %v2190_v41 = vsel %vm265_vm0, %v694_v24, %v8755_v58 }
 0x288   : > { %v2327_v3 = vsel %vm2326_vm3, %v2190_v41, %v9155_v42 }
 0x28a   : > { %2629 = vrot.lane.b32.xlu1 %v9340_v21, %s7998_s24  ;;  %2627 = vrot.lane.b32.xlu0 %v9332_v32, %s7998_s24  ;;  %v1023_v21 = vld [vmem:[#allocation2 + $0x23a] sm:$0xff]  ;;  %v2217_v32 = vsel %vm265_vm0, %v721_v61, %v8843_v52 }
 0x28b   : > { %v9396_v29 = vsel %vm2326_vm3, %v2217_v32, %v1837_v51  ;;  %v722_v32 = vld [vmem:[#allocation2 + $0x118] sm:$0xff] }
 0x28c   : > { %v2218_v24 = vsel %vm265_vm0, %v722_v32, %v8851_v59  ;;  %v1025_v59 = vld [vmem:[#allocation2 + $0x24a] sm:$0xff] }
 0x28e   : > { %1894 = vrot.lane.b32.xlu1 %v1022_v48, %s7997_s23  ;;  %3015 = vrot.lane.b32.xlu0 %v9388_v36, %s7999_s25  ;;  %v695_v48 = vld [vmem:[#allocation2 + $0x8] sm:$0xff] }
 0x28f   : > { %v2191_v58 = vsel %vm265_vm0, %v695_v48, %v8765_v1  ;;  %v723_v48 = vld [vmem:[#allocation2 + $0x120] sm:$0xff] }
 0x290   : > { %v2594_v25 = vpop.permute.xlu1 %2593  ;;  %v2592_v53 = vpop.permute.xlu0 %2591  ;;  %v2328_v42 = vsel %vm2326_vm3, %v2191_v58, %v9153_v18  ;;  %v696_v18 = vld [vmem:[#allocation2 + $0x10] sm:$0xff]  ;;  %v697_v58 = vld [vmem:[#allocation2 + $0x18] sm:$0xff] }
 0x291   : > { %v3364_v52 = vsel %vm3363_vm4, %v2327_v3, %v2592_v53  ;;  %v3365_v53 = vsel %vm3363_vm4, %v2328_v42, %v2594_v25  ;;  %v9425_v3 = vsel %vm2326_vm3, %v2218_v24, %v9329_v33  ;;  %v2192_v32 = vsel %vm265_vm0, %v696_v18, %v8753_v57 }
 0x292   : > { %1896 = vrot.lane.b32.xlu1 %v1023_v21, %s7997_s23  ;;  %3017 = vrot.lane.b32.xlu0 %v9396_v29, %s7999_s25  ;;  %v1024_v21 = vld [vmem:[#allocation2 + $0x242] sm:$0xff]  ;;  %v2329_v42 = vsel %vm2326_vm3, %v2192_v32, %v9159_v4  ;;  %v2193_v57 = vsel %vm265_vm0, %v697_v58, %v8763_v63 }
 0x293   : > { %v2330_v4 = vsel %vm2326_vm3, %v2193_v57, %v9157_v0  ;;  %v1027_v0 = vld [vmem:[#allocation2 + $0x262] sm:$0xff] }
 0x294   : > { %v9406_v61 = vpop.permute.xlu1 %1858  ;;  %v2980_v51 = vpop.permute.xlu0 %2979 }
 0x295   : > { %v3493_v7 = vsel %vm3492_vm5, %v3364_v52, %v2980_v51 }
 0x296   : > { %2633 = vrot.lane.b32.xlu1 %v9368_v28, %s7998_s24  ;;  %2631 = vrot.lane.b32.xlu0 %v9360_v23, %s7998_s24 }
 0x297   : > { %7535 = vmatprep.mubr.msk.f32.mxu0 %vm3632_vm6, %v3493_v7  ;;  %v2219_v7 = vsel %vm265_vm0, %v723_v48, %v8849_v56 }
 0x298   : > { %v9421_v41 = vpop.permute.xlu1 %1860  ;;  %v2982_v1 = vpop.permute.xlu0 %2981  ;;  %v9436_v33 = vsel %vm2326_vm3, %v2219_v7, %v9327_v12 }
 0x299   : > { %v3494_v52 = vsel %vm3492_vm5, %v3365_v53, %v2982_v1  ;;  %v724_v53 = vld [vmem:[#allocation2 + $0x128] sm:$0xff]  ;;  %v1026_v1 = vld [vmem:[#allocation2 + $0x25a] sm:$0xff] }
 0x29a   : > { %1898 = vrot.lane.b32.xlu1 %v1024_v21, %s7997_s23  ;;  %3019 = vrot.lane.b32.xlu0 %v9425_v3, %s7999_s25  ;;  %v2220_v48 = vsel %vm265_vm0, %v724_v53, %v8857_v2 }
 0x29b   : > { %7536 = vmatmul.mubr.msk.f32.vlgmr.msra.gmra.mxu0 %vm3632_vm6, %v3494_v52  ;;  %v9465_v7 = vsel %vm2326_vm3, %v2220_v48, %v9344_v10 }
 0x29c   : > { %v2598_v25 = vpop.permute.xlu1 %2597  ;;  %v2596_v51 = vpop.permute.xlu0 %2595 }
 0x29d   : > { %v3366_v56 = vsel %vm3363_vm4, %v2329_v42, %v2596_v51  ;;  %v3367_v52 = vsel %vm3363_vm4, %v2330_v4, %v2598_v25  ;;  %v727_v4 = vld [vmem:[#allocation2 + $0x148] sm:$0xff] }
 0x29e   : > { %1900 = vrot.lane.b32.xlu1 %v1025_v59, %s7997_s23  ;;  %3021 = vrot.lane.b32.xlu0 %v9436_v33, %s7999_s25  ;;  %v725_v59 = vld [vmem:[#allocation2 + $0x130] sm:$0xff] }
 0x29f   : > { %v2221_v2 = vsel %vm265_vm0, %v725_v59, %v8855_v62 }
 0x2a0   : > { %v9446_v21 = vpop.permute.xlu1 %1862  ;;  %v2984_v24 = vpop.permute.xlu0 %2983  ;;  %v9476_v58 = vsel %vm2326_vm3, %v2221_v2, %v9342_v45  ;;  %v1028_v45 = vld [vmem:[#allocation2 + $0x26a] sm:$0xff] }
 0x2a1   : > { %v3495_v12 = vsel %vm3492_vm5, %v3366_v56, %v2984_v24  ;;  %v726_v24 = vld [vmem:[#allocation2 + $0x140] sm:$0xff]  ;;  %v728_v2 = vld [vmem:[#allocation2 + $0x150] sm:$0xff] }
 0x2a2   : > { %2637 = vrot.lane.b32.xlu1 %v9396_v29, %s7998_s24  ;;  %2635 = vrot.lane.b32.xlu0 %v9388_v36, %s7998_s24  ;;  %v2222_v53 = vsel %vm265_vm0, %v726_v24, %v8863_v8  ;;  %v1029_v8 = vld [vmem:[#allocation2 + $0x272] sm:$0xff] }
 0x2a3   : > { %7538 = vmatprep.mubr.msk.f32.mxu0 %vm3632_vm6, %v3495_v12 }
 0x2a4   : > { %v9461_v18 = vpop.permute.xlu1 %1864  ;;  %v2986_v63 = vpop.permute.xlu0 %2985 }
 0x2a5   : > { %v3496_v51 = vsel %vm3492_vm5, %v3367_v52, %v2986_v63 }
 0x2a6   : > { %1902 = vrot.lane.b32.xlu1 %v1026_v1, %s7997_s23  ;;  %3023 = vrot.lane.b32.xlu0 %v9465_v7, %s7999_s25  ;;  %v9499_v1 = vsel %vm2326_vm3, %v2222_v53, %v9357_v40 }
 0x2a7   : > { %7539 = vmatmul.mubr.msk.f32.gmra.mxu0 %vm3632_vm6, %v3496_v51 }
 0x2a8   : > { %v2602_v25 = vpop.permute.xlu1 %2601  ;;  %v2600_v32 = vpop.permute.xlu0 %2599 }
 0x2a9   : > { %v3368_v10 = vsel %vm3363_vm4, %v9169_v31, %v2600_v32  ;;  %v3369_v31 = vsel %vm3363_vm4, %v9166_v34, %v2602_v25  ;;  %v2223_v34 = vsel %vm265_vm0, %v727_v4, %v8861_v5  ;;  %v2224_v25 = vsel %vm265_vm0, %v728_v2, %v8869_v14  ;;  %v1031_v14 = vld [vmem:[#allocation2 + $0x28a] sm:$0xff] }
 0x2aa   : > { %1904 = vrot.lane.b32.xlu1 %v1027_v0, %s7997_s23  ;;  %3025 = vrot.lane.b32.xlu0 %v9476_v58, %s7999_s25  ;;  %v9510_v59 = vsel %vm2326_vm3, %v2223_v34, %v9355_v60  ;;  %v1030_v60 = vld [vmem:[#allocation2 + $0x282] sm:$0xff]  ;;  %v9533_v24 = vsel %vm2326_vm3, %v2224_v25, %v9372_v37 }
 0x2ac   : > { %v9483_v42 = vpop.permute.xlu1 %1866  ;;  %v2988_v56 = vpop.permute.xlu0 %2987 }
 0x2ad   : > { %v3497_v62 = vsel %vm3492_vm5, %v3368_v10, %v2988_v56  ;;  %v729_v56 = vld [vmem:[#allocation2 + $0x158] sm:$0xff] }
 0x2ae   : > { %2641 = vrot.lane.b32.xlu1 %v9436_v33, %s7998_s24  ;;  %2639 = vrot.lane.b32.xlu0 %v9425_v3, %s7998_s24 }
 0x2af   : > { %7541 = vmatprep.mubr.msk.f32.mxu0 %vm3632_vm6, %v3497_v62 }
 0x2b0   : > { %v9495_v12 = vpop.permute.xlu1 %1868  ;;  %v2990_v57 = vpop.permute.xlu0 %2989 }
 0x2b1   : > { %v3498_v48 = vsel %vm3492_vm5, %v3369_v31, %v2990_v57 }
 0x2b2   : > { %1906 = vrot.lane.b32.xlu1 %v1028_v45, %s7997_s23  ;;  %3027 = vrot.lane.b32.xlu0 %v9499_v1, %s7999_s25 }
 0x2b3   : > { %7542 = vmatmul.mubr.msk.f32.gmra.mxu0 %vm3632_vm6, %v3498_v48  ;;  %v730_v48 = vld [vmem:[#allocation2 + $0x168] sm:$0xff] }
 0x2b4   : > { %v2606_v52 = vpop.permute.xlu1 %2605  ;;  %v2604_v63 = vpop.permute.xlu0 %2603 }
 0x2b5   : > { %v3370_v40 = vsel %vm3363_vm4, %v9196_v16, %v2604_v63  ;;  %v3371_v16 = vsel %vm3363_vm4, %v9199_v39, %v2606_v52  ;;  %v2225_v39 = vsel %vm265_vm0, %v729_v56, %v8867_v11  ;;  %v731_v63 = vld [vmem:[#allocation2 + $0x170] sm:$0xff] }
 0x2b6   : > { %1908 = vrot.lane.b32.xlu1 %v1029_v8, %s7997_s23  ;;  %3029 = vrot.lane.b32.xlu0 %v9510_v59, %s7999_s25  ;;  %v9544_v31 = vsel %vm2326_vm3, %v2225_v39, %v9370_v49  ;;  %v1032_v49 = vld [vmem:[#allocation2 + $0x292] sm:$0xff]  ;;  %v2226_v8 = vsel %vm265_vm0, %v730_v48, %v8875_v22  ;;  %v1033_v22 = vld [vmem:[#allocation2 + $0x29a] sm:$0xff] }
 0x2b7   : > { %v733_v39 = vld [vmem:[#allocation2 + $0x180] sm:$0xff] }
 0x2b8   : > { %v9517_v51 = vpop.permute.xlu1 %1870  ;;  %v2992_v0 = vpop.permute.xlu0 %2991 }
 0x2b9   : > { %v3499_v5 = vsel %vm3492_vm5, %v3370_v40, %v2992_v0  ;;  %v9567_v40 = vsel %vm2326_vm3, %v2226_v8, %v9385_v44  ;;  %v734_v8 = vld [vmem:[#allocation2 + $0x190] sm:$0xff] }
 0x2ba   : > { %2645 = vrot.lane.b32.xlu1 %v9476_v58, %s7998_s24  ;;  %2643 = vrot.lane.b32.xlu0 %v9465_v7, %s7998_s24 }
 0x2bb   : > { %7544 = vmatprep.mubr.msk.f32.mxu0 %vm3632_vm6, %v3499_v5 }
 0x2bc   : > { %v9529_v32 = vpop.permute.xlu1 %1872  ;;  %v2994_v10 = vpop.permute.xlu0 %2993 }
 0x2bd   : > { %v3500_v62 = vsel %vm3492_vm5, %v3371_v16, %v2994_v10  ;;  %v732_v10 = vld [vmem:[#allocation2 + $0x178] sm:$0xff] }
 0x2be   : > { %1910 = vrot.lane.b32.xlu1 %v1030_v60, %s7997_s23  ;;  %3031 = vrot.lane.b32.xlu0 %v9533_v24, %s7999_s25  ;;  %v2228_v56 = vsel %vm265_vm0, %v732_v10, %v8881_v30  ;;  %v1035_v30 = vld [vmem:[#allocation2 + $0x2b2] sm:$0xff] }
 0x2bf   : > { %7545 = vmatmul.mubr.msk.f32.gmra.mxu0 %vm3632_vm6, %v3500_v62 }
 0x2c0   : > { %v2610_v45 = vpop.permute.xlu1 %2609  ;;  %v2608_v53 = vpop.permute.xlu0 %2607 }
 0x2c1   : > { %v3372_v37 = vsel %vm3363_vm4, %v9178_v50, %v2608_v53  ;;  %v3373_v50 = vsel %vm3363_vm4, %v9186_v17, %v2610_v45  ;;  %v2227_v17 = vsel %vm265_vm0, %v731_v63, %v8873_v19  ;;  %v9601_v45 = vsel %vm2326_vm3, %v2228_v56, %v9406_v61 }
 0x2c2   : > { %1912 = vrot.lane.b32.xlu1 %v1031_v14, %s7997_s23  ;;  %3033 = vrot.lane.b32.xlu0 %v9544_v31, %s7999_s25  ;;  %v9578_v60 = vsel %vm2326_vm3, %v2227_v17, %v9383_v20  ;;  %v1034_v20 = vld [vmem:[#allocation2 + $0x2aa] sm:$0xff] }
 0x2c4   : > { %v9551_v57 = vpop.permute.xlu1 %1874  ;;  %v2996_v4 = vpop.permute.xlu0 %2995 }
 0x2c5   : > { %v3501_v11 = vsel %vm3492_vm5, %v3372_v37, %v2996_v4 }
 0x2c6   : > { %2649 = vrot.lane.b32.xlu1 %v9510_v59, %s7998_s24  ;;  %2647 = vrot.lane.b32.xlu0 %v9499_v1, %s7998_s24 }
 0x2c7   : > { %7547 = vmatprep.mubr.msk.f32.mxu0 %vm3632_vm6, %v3501_v11 }
 0x2c8   : > { %v9563_v34 = vpop.permute.xlu1 %1876  ;;  %v2998_v52 = vpop.permute.xlu0 %2997 }
 0x2c9   : > { %v3502_v0 = vsel %vm3492_vm5, %v3373_v50, %v2998_v52  ;;  %v12814_v50 = vmov 0.0  }
 0x2ca   : > { %1914 = vrot.lane.b32.xlu1 %v1032_v49, %s7997_s23  ;;  %3035 = vrot.lane.b32.xlu0 %v9567_v40, %s7999_s25  ;;  %5398 = vst.msk [vmem:[#allocation4] sm:$0xff] %vm4854_vm7, %v12814_v50  ;;  %5399 = vst.msk [vmem:[#allocation4 + $0x8] sm:$0xff] %vm4854_vm7, %v12814_v50 }
 0x2cb   : > { %7548 = vmatmul.mubr.msk.f32.gmra.mxu0 %vm3632_vm6, %v3502_v0  ;;  %5402 = vst.msk [vmem:[#allocation4 + $0x18] sm:$0xff] %vm4854_vm7, %v12814_v50  ;;  %5403 = vst.msk [vmem:[#allocation4 + $0x20] sm:$0xff] %vm4854_vm7, %v12814_v50 }
 0x2cc   : > { %v2614_v2 = vpop.permute.xlu1 %2613  ;;  %v2612_v5 = vpop.permute.xlu0 %2611  ;;  %5405 = vst.msk [vmem:[#allocation4 + $0x30] sm:$0xff] %vm4854_vm7, %v12814_v50  ;;  %5406 = vst.msk [vmem:[#allocation4 + $0x38] sm:$0xff] %vm4854_vm7, %v12814_v50 }
 0x2cd   : > { %v3374_v44 = vsel %vm3363_vm4, %v9208_v13, %v2612_v5  ;;  %v3375_v13 = vsel %vm3363_vm4, %v9216_v26, %v2614_v2  ;;  %v2229_v26 = vsel %vm265_vm0, %v733_v39, %v8879_v27  ;;  %5408 = vst.msk [vmem:[#allocation4 + $0x48] sm:$0xff] %vm4854_vm7, %v12814_v50  ;;  %5409 = vst.msk [vmem:[#allocation4 + $0x50] sm:$0xff] %vm4854_vm7, %v12814_v50  ;;  %v737_v39 = vld [vmem:[#allocation2 + $0x1a8] sm:$0xff] }
 0x2ce   : > { %1916 = vrot.lane.b32.xlu1 %v1033_v22, %s7997_s23  ;;  %3037 = vrot.lane.b32.xlu0 %v9578_v60, %s7999_s25  ;;  %v9612_v48 = vsel %vm2326_vm3, %v2229_v26, %v9421_v41  ;;  %v1036_v41 = vld [vmem:[#allocation2 + $0x2ba] sm:$0xff]  ;;  %5411 = vst.msk [vmem:[#allocation4 + $0x60] sm:$0xff] %vm4854_vm7, %v12814_v50  ;;  %5412 = vst.msk [vmem:[#allocation4 + $0x68] sm:$0xff] %vm4854_vm7, %v12814_v50 }
 0x2cf   : > { %5414 = vst.msk [vmem:[#allocation4 + $0x78] sm:$0xff] %vm4854_vm7, %v12814_v50  ;;  %5415 = vst.msk [vmem:[#allocation4 + $0x80] sm:$0xff] %vm4854_vm7, %v12814_v50  ;;  %v735_v22 = vld [vmem:[#allocation2 + $0x198] sm:$0xff] }
 0x2d0   : > { %v9585_v25 = vpop.permute.xlu1 %1878  ;;  %v3000_v16 = vpop.permute.xlu0 %2999  ;;  %5417 = vst.msk [vmem:[#allocation4 + $0x90] sm:$0xff] %vm4854_vm7, %v12814_v50  ;;  %5418 = vst.msk [vmem:[#allocation4 + $0x98] sm:$0xff] %vm4854_vm7, %v12814_v50 }
 0x2d1   : > { %v3503_v19 = vsel %vm3492_vm5, %v3374_v44, %v3000_v16  ;;  %5420 = vst.msk [vmem:[#allocation4 + $0xa8] sm:$0xff] %vm4854_vm7, %v12814_v50  ;;  %5421 = vst.msk [vmem:[#allocation4 + $0xb0] sm:$0xff] %vm4854_vm7, %v12814_v50 }
 0x2d2   : > { %2653 = vrot.lane.b32.xlu1 %v9544_v31, %s7998_s24  ;;  %2651 = vrot.lane.b32.xlu0 %v9533_v24, %s7998_s24  ;;  %5423 = vst.msk [vmem:[#allocation4 + $0xc0] sm:$0xff] %vm4854_vm7, %v12814_v50  ;;  %5424 = vst.msk [vmem:[#allocation4 + $0xc8] sm:$0xff] %vm4854_vm7, %v12814_v50 }
 0x2d3   : > { %7550 = vmatprep.mubr.msk.f32.mxu0 %vm3632_vm6, %v3503_v19  ;;  %5426 = vst.msk [vmem:[#allocation4 + $0xd8] sm:$0xff] %vm4854_vm7, %v12814_v50  ;;  %5427 = vst.msk [vmem:[#allocation4 + $0xe0] sm:$0xff] %vm4854_vm7, %v12814_v50 }
 0x2d4   : > { %v9597_v62 = vpop.permute.xlu1 %1880  ;;  %v3002_v14 = vpop.permute.xlu0 %3001  ;;  %5429 = vst.msk [vmem:[#allocation4 + $0xf0] sm:$0xff] %vm4854_vm7, %v12814_v50  ;;  %5430 = vst.msk [vmem:[#allocation4 + $0xf8] sm:$0xff] %vm4854_vm7, %v12814_v50 }
 0x2d5   : > { %v3504_v53 = vsel %vm3492_vm5, %v3375_v13, %v3002_v14  ;;  %5432 = vst.msk [vmem:[#allocation4 + $0x108] sm:$0xff] %vm4854_vm7, %v12814_v50  ;;  %5433 = vst.msk [vmem:[#allocation4 + $0x110] sm:$0xff] %vm4854_vm7, %v12814_v50 }
 0x2d6   : > { %1918 = vrot.lane.b32.xlu1 %v1034_v20, %s7997_s23  ;;  %3039 = vrot.lane.b32.xlu0 %v9601_v45, %s7999_s25  ;;  %5435 = vst.msk [vmem:[#allocation4 + $0x120] sm:$0xff] %vm4854_vm7, %v12814_v50  ;;  %5436 = vst.msk [vmem:[#allocation4 + $0x128] sm:$0xff] %vm4854_vm7, %v12814_v50  ;;  %v736_v20 = vld [vmem:[#allocation2 + $0x1a0] sm:$0xff] }
 0x2d7   : > { %7551 = vmatmul.mubr.msk.f32.gmra.mxu0 %vm3632_vm6, %v3504_v53  ;;  %5438 = vst.msk [vmem:[#allocation4 + $0x138] sm:$0xff] %vm4854_vm7, %v12814_v50  ;;  %5439 = vst.msk [vmem:[#allocation4 + $0x140] sm:$0xff] %vm4854_vm7, %v12814_v50  ;;  %v2232_v56 = vsel %vm265_vm0, %v736_v20, %v8893_v46  ;;  %v1039_v46 = vld [vmem:[#allocation2 + $0x2da] sm:$0xff] }
 0x2d8   : > { %v2618_v37 = vpop.permute.xlu1 %2617  ;;  %v2616_v4 = vpop.permute.xlu0 %2615  ;;  %5441 = vst.msk [vmem:[#allocation4 + $0x150] sm:$0xff] %vm4854_vm7, %v12814_v50  ;;  %5442 = vst.msk [vmem:[#allocation4 + $0x158] sm:$0xff] %vm4854_vm7, %v12814_v50  ;;  %v9741_v53 = vsel %vm2326_vm3, %v2232_v56, %v9483_v42 }
 0x2d9   : > { %v3376_v61 = vsel %vm3363_vm4, %v9228_v55, %v2616_v4  ;;  %5444 = vst.msk [vmem:[#allocation4 + $0x168] sm:$0xff] %vm4854_vm7, %v12814_v50  ;;  %5445 = vst.msk [vmem:[#allocation4 + $0x170] sm:$0xff] %vm4854_vm7, %v12814_v50  ;;  %v2230_v55 = vsel %vm265_vm0, %v734_v8, %v8887_v38  ;;  %v3377_v52 = vsel %vm3363_vm4, %v9236_v15, %v2618_v37  ;;  %v1037_v38 = vld [vmem:[#allocation2 + $0x2c2] sm:$0xff]  ;;  %v738_v8 = vld [vmem:[#allocation2 + $0x1b8] sm:$0xff] }
 0x2da   : > { %1920 = vrot.lane.b32.xlu1 %v1035_v30, %s7997_s23  ;;  %3041 = vrot.lane.b32.xlu0 %v9612_v48, %s7999_s25  ;;  %5447 = vst.msk [vmem:[#allocation4 + $0x180] sm:$0xff] %vm4854_vm7, %v12814_v50  ;;  %5448 = vst.msk [vmem:[#allocation4 + $0x188] sm:$0xff] %vm4854_vm7, %v12814_v50  ;;  %v9707_v17 = vsel %vm2326_vm3, %v2230_v55, %v9446_v21  ;;  %v2231_v15 = vsel %vm265_vm0, %v735_v22, %v8885_v35 }
 0x2db   : > { %5450 = vst.msk [vmem:[#allocation4 + $0x198] sm:$0xff] %vm4854_vm7, %v12814_v50  ;;  %5451 = vst.msk [vmem:[#allocation4 + $0x1a0] sm:$0xff] %vm4854_vm7, %v12814_v50  ;;  %v9718_v16 = vsel %vm2326_vm3, %v2231_v15, %v9461_v18  ;;  %v1038_v18 = vld [vmem:[#allocation2 + $0x2d2] sm:$0xff] }
 0x2dc   : > { %v9619_v11 = vpop.permute.xlu1 %1882  ;;  %v3004_v49 = vpop.permute.xlu0 %3003  ;;  %5404 = vst.msk [vmem:[#allocation4 + $0x28] sm:$0x3] %vm5400_vm8, %v12814_v50  ;;  %5401 = vst.msk [vmem:[#allocation4 + $0x10] sm:$0x3] %vm5400_vm8, %v12814_v50 }
 0x2dd   : > { %v3505_v27 = vsel %vm3492_vm5, %v3376_v61, %v3004_v49  ;;  %5407 = vst.msk [vmem:[#allocation4 + $0x40] sm:$0x3] %vm5400_vm8, %v12814_v50  ;;  %5410 = vst.msk [vmem:[#allocation4 + $0x58] sm:$0x3] %vm5400_vm8, %v12814_v50 }
 0x2de   : > { %2657 = vrot.lane.b32.xlu1 %v9578_v60, %s7998_s24  ;;  %2655 = vrot.lane.b32.xlu0 %v9567_v40, %s7998_s24  ;;  %5413 = vst.msk [vmem:[#allocation4 + $0x70] sm:$0x3] %vm5400_vm8, %v12814_v50  ;;  %5416 = vst.msk [vmem:[#allocation4 + $0x88] sm:$0x3] %vm5400_vm8, %v12814_v50 }
 0x2df   : > { %7553 = vmatprep.mubr.msk.f32.mxu0 %vm3632_vm6, %v3505_v27  ;;  %v2234_v27 = vsel %vm265_vm0, %v738_v8, %v8899_v54  ;;  %v1041_v54 = vld [vmem:[#allocation2 + $0x2ea] sm:$0xff]  ;;  %5419 = vst.msk [vmem:[#allocation4 + $0xa0] sm:$0x3] %vm5400_vm8, %v12814_v50  ;;  %5422 = vst.msk [vmem:[#allocation4 + $0xb8] sm:$0x3] %vm5400_vm8, %v12814_v50 }
 0x2e0   : > { %v9703_v63 = vpop.permute.xlu1 %1884  ;;  %v3006_v0 = vpop.permute.xlu0 %3005  ;;  %v9775_v22 = vsel %vm2326_vm3, %v2234_v27, %v9517_v51  ;;  %v12817_v51 = vld [vmem:[#allocation105_spill] sm:$0xff]  ;;  %v12820_v8 = vld [vmem:[#allocation14_spill] sm:$0xff]  ;;  %5425 = vst.msk [vmem:[#allocation4 + $0xd0] sm:$0x3] %vm5400_vm8, %v12814_v50  ;;  %5428 = vst.msk [vmem:[#allocation4 + $0xe8] sm:$0x3] %vm5400_vm8, %v12814_v50 }
 0x2e1   : > { %v3506_v2 = vsel %vm3492_vm5, %v3377_v52, %v3006_v0  ;;  %v739_v0 = vld [vmem:[#allocation2 + $0x1c0] sm:$0xff]  ;;  %5431 = vst.msk [vmem:[#allocation4 + $0x100] sm:$0x3] %vm5400_vm8, %v12814_v50  ;;  %5434 = vst.msk [vmem:[#allocation4 + $0x118] sm:$0x3] %vm5400_vm8, %v12814_v50 }
 0x2e2   : > { %1922 = vrot.lane.b32.xlu1 %v1036_v41, %s7997_s23  ;;  %3043 = vrot.lane.b32.xlu0 %v9707_v17, %s7999_s25  ;;  %v12815_v41 = vld [vmem:[#allocation104_spill] sm:$0xff]  ;;  %5437 = vst.msk [vmem:[#allocation4 + $0x130] sm:$0x3] %vm5400_vm8, %v12814_v50  ;;  %5440 = vst.msk [vmem:[#allocation4 + $0x148] sm:$0x3] %vm5400_vm8, %v12814_v50 }
 0x2e3   : > { %7554 = vmatmul.mubr.msk.f32.gmra.mxu0 %vm3632_vm6, %v3506_v2  ;;  %5443 = vst.msk [vmem:[#allocation4 + $0x160] sm:$0x3] %vm5400_vm8, %v12814_v50  ;;  %5446 = vst.msk [vmem:[#allocation4 + $0x178] sm:$0x3] %vm5400_vm8, %v12814_v50 }
 0x2e4   : > { %v2622_v5 = vpop.permute.xlu1 %2621  ;;  %v2620_v44 = vpop.permute.xlu0 %2619  ;;  %5449 = vst.msk [vmem:[#allocation4 + $0x190] sm:$0x3] %vm5400_vm8, %v12814_v50  ;;  %5452 = vst.msk [vmem:[#allocation4 + $0x1a8] sm:$0x3] %vm5400_vm8, %v12814_v50 }
 0x2e5   : > { %v3378_v21 = vsel %vm3363_vm4, %v9248_v6, %v2620_v44  ;;  %v3379_v6 = vsel %vm3363_vm4, %v9256_v47, %v2622_v5  ;;  %v2233_v47 = vsel %vm265_vm0, %v737_v39, %v8891_v43  ;;  %v12819_v39 = vld [vmem:[#allocation106_spill] sm:$0xff] }
 0x2e6   : > { %1924 = vrot.lane.b32.xlu1 %v1037_v38, %s7997_s23  ;;  %3045 = vrot.lane.b32.xlu0 %v9718_v16, %s7999_s25  ;;  %v9752_v4 = vsel %vm2326_vm3, %v2233_v47, %v9495_v12  ;;  %v1040_v12 = vld [vmem:[#allocation2 + $0x2e2] sm:$0xff] }
 0x2e7   : > { %v12816_v38 = vld [vmem:[#allocation13_spill] sm:$0xff] }
 0x2e8   : > { %v9725_v10 = vpop.permute.xlu1 %1886  ;;  %v3008_v19 = vpop.permute.xlu0 %3007  ;;  %v2235_v15 = vsel %vm265_vm0, %v739_v0, %v12816_v38  ;;  %v12822_v38 = vld [vmem:[#allocation17_spill] sm:$0xff] }
 0x2e9   : > { %v3507_v35 = vsel %vm3492_vm5, %v3378_v21, %v3008_v19  ;;  %v9786_v21 = vsel %vm2326_vm3, %v2235_v15, %v9529_v32  ;;  %v1042_v32 = vld [vmem:[#allocation2 + $0x2fa] sm:$0xff] }
 0x2ea   : > { %2661 = vrot.lane.b32.xlu1 %v9612_v48, %s7998_s24  ;;  %2659 = vrot.lane.b32.xlu0 %v9601_v45, %s7998_s24 }
 0x2eb   : > { %7556 = vmatprep.mubr.msk.f32.mxu0 %vm3632_vm6, %v3507_v35 }
 0x2ec   : > { %v9737_v13 = vpop.permute.xlu1 %1888  ;;  %v3010_v14 = vpop.permute.xlu0 %3009 }
 0x2ed   : > { %v3508_v30 = vsel %vm3492_vm5, %v3379_v6, %v3010_v14  ;;  %v12818_v6 = vld [vmem:[#allocation15_spill] sm:$0xff] }
 0x2ee   : > { %1926 = vrot.lane.b32.xlu1 %v1038_v18, %s7997_s23  ;;  %3047 = vrot.lane.b32.xlu0 %v9741_v53, %s7999_s25  ;;  %v740_v18 = vld [vmem:[#allocation2 + $0x1c8] sm:$0xff] }
 0x2ef   : > { %7557 = vmatmul.mubr.msk.f32.gmra.mxu0 %vm3632_vm6, %v3508_v30  ;;  %v2236_v14 = vsel %vm265_vm0, %v740_v18, %v12818_v6 }
 0x2f0   : > { %v2626_v26 = vpop.permute.xlu1 %2625  ;;  %v2624_v37 = vpop.permute.xlu0 %2623 }
 0x2f1   : > { %v3380_v42 = vsel %vm3363_vm4, %v9268_v9, %v2624_v37  ;;  %v3381_v9 = vsel %vm3363_vm4, %v12815_v41, %v2626_v26  ;;  %v741_v26 = vld [vmem:[#allocation2 + $0x1d0] sm:$0xff]  ;;  %v9809_v37 = vsel %vm2326_vm3, %v2236_v14, %v9551_v57 }
 0x2f2   : > { %1928 = vrot.lane.b32.xlu1 %v1039_v46, %s7997_s23  ;;  %3049 = vrot.lane.b32.xlu0 %v9752_v4, %s7999_s25  ;;  %v12821_v57 = vld [vmem:[#allocation107_spill] sm:$0xff] }
 0x2f4   : > { %v9759_v61 = vpop.permute.xlu1 %1890  ;;  %v3012_v49 = vpop.permute.xlu0 %3011 }
 0x2f5   : > { %v3509_v43 = vsel %vm3492_vm5, %v3380_v42, %v3012_v49  ;;  %v1043_v49 = vld [vmem:[#allocation2 + $0x302] sm:$0xff] }
 0x2f6   : > { %2665 = vrot.lane.b32.xlu1 %v9718_v16, %s7998_s24  ;;  %2663 = vrot.lane.b32.xlu0 %v9707_v17, %s7998_s24 }
 0x2f7   : > { %7559 = vmatprep.mubr.msk.f32.mxu0 %vm3632_vm6, %v3509_v43  ;;  %v2237_v43 = vsel %vm265_vm0, %v741_v26, %v12820_v8  ;;  %v744_v8 = vld [vmem:[#allocation2 + $0x1f0] sm:$0xff] }
 0x2f8   : > { %v9771_v55 = vpop.permute.xlu1 %1892  ;;  %v3014_v52 = vpop.permute.xlu0 %3013  ;;  %v9820_v41 = vsel %vm2326_vm3, %v2237_v43, %v9563_v34  ;;  %v1044_v34 = vld [vmem:[#allocation2 + $0x30a] sm:$0xff] }
 0x2f9   : > { %v3510_v2 = vsel %vm3492_vm5, %v3381_v9, %v3014_v52 }
 0x2fa   : > { %1930 = vrot.lane.b32.xlu1 %v1040_v12, %s7997_s23  ;;  %3051 = vrot.lane.b32.xlu0 %v9775_v22, %s7999_s25 }
 0x2fb   : > { %7560 = vmatmul.mubr.msk.f32.gmra.mxu0 %vm3632_vm6, %v3510_v2  ;;  %v742_v2 = vld [vmem:[#allocation2 + $0x1e0] sm:$0xff] }
 0x2fc   : > { %v2630_v5 = vpop.permute.xlu1 %2629  ;;  %v2628_v44 = vpop.permute.xlu0 %2627  ;;  %v2238_v15 = vsel %vm265_vm0, %v742_v2, %v12822_v38 }
 0x2fd   : > { %v3382_v19 = vsel %vm3363_vm4, %v12817_v51, %v2628_v44  ;;  %v3383_v30 = vsel %vm3363_vm4, %v12819_v39, %v2630_v5  ;;  %v12823_v5 = vld [vmem:[#allocation108_spill] sm:$0xff]  ;;  %v9843_v18 = vsel %vm2326_vm3, %v2238_v15, %v9585_v25  ;;  %v1045_v25 = vld [vmem:[#allocation2 + $0x312] sm:$0xff]  ;;  %v1047_v15 = vld [vmem:[#allocation2 + $0x32a] sm:$0xff] }
 0x2fe   : > { %1932 = vrot.lane.b32.xlu1 %v1041_v54, %s7997_s23  ;;  %3053 = vrot.lane.b32.xlu0 %v9786_v21, %s7999_s25 }
 0x300   : > { %v9793_v20 = vpop.permute.xlu1 %1894  ;;  %v3016_v35 = vpop.permute.xlu0 %3015 }
 0x301   : > { %v3511_v56 = vsel %vm3492_vm5, %v3382_v19, %v3016_v35  ;;  %v743_v35 = vld [vmem:[#allocation2 + $0x1e8] sm:$0xff] }
 0x302   : > { %2669 = vrot.lane.b32.xlu1 %v9752_v4, %s7998_s24  ;;  %2667 = vrot.lane.b32.xlu0 %v9741_v53, %s7998_s24 }
 0x303   : > { %7562 = vmatprep.mubr.msk.f32.mxu0 %vm3632_vm6, %v3511_v56 }
 0x304   : > { %v9805_v46 = vpop.permute.xlu1 %1896  ;;  %v3018_v47 = vpop.permute.xlu0 %3017 }
 0x305   : > { %v3512_v42 = vsel %vm3492_vm5, %v3383_v30, %v3018_v47  ;;  %v12825_v47 = vld [vmem:[#allocation109_spill] sm:$0xff] }
 0x306   : > { %1934 = vrot.lane.b32.xlu1 %v1042_v32, %s7997_s23  ;;  %3055 = vrot.lane.b32.xlu0 %v9809_v37, %s7999_s25  ;;  %v12824_v32 = vld [vmem:[#allocation16_spill] sm:$0xff] }
 0x307   : > { %7563 = vmatmul.mubr.msk.f32.gmra.mxu0 %vm3632_vm6, %v3512_v42  ;;  %v2239_v6 = vsel %vm265_vm0, %v743_v35, %v12824_v32 }
 0x308   : > { %v2634_v12 = vpop.permute.xlu1 %2633  ;;  %v2632_v27 = vpop.permute.xlu0 %2631  ;;  %v9890_v30 = vsel %vm2326_vm3, %v2239_v6, %v9597_v62  ;;  %v1046_v62 = vld [vmem:[#allocation2 + $0x322] sm:$0xff] }
 0x309   : > { %v3384_v9 = vsel %vm3363_vm4, %v12821_v57, %v2632_v27  ;;  %v3385_v44 = vsel %vm3363_vm4, %v12823_v5, %v2634_v12  ;;  %v12826_v12 = vld [vmem:[#allocation19_spill] sm:$0xff]  ;;  %v12827_v57 = vld [vmem:[#allocation110_spill] sm:$0xff] }
 0x30a   : > { %1936 = vrot.lane.b32.xlu1 %v1043_v49, %s7997_s23  ;;  %3057 = vrot.lane.b32.xlu0 %v9820_v41, %s7999_s25  ;;  %v2240_v27 = vsel %vm265_vm0, %v744_v8, %v12826_v12  ;;  %v12828_v5 = vld [vmem:[#allocation18_spill] sm:$0xff]  ;;  %v1049_v12 = vld [vmem:[#allocation2 + $0x33a] sm:$0xff] }
 0x30b   : > { %v746_v6 = vld [vmem:[#allocation2 + $0x208] sm:$0xff]  ;;  %v747_v8 = vld [vmem:[#allocation2 + $0x210] sm:$0xff] }
 0x30c   : > { %v9827_v52 = vpop.permute.xlu1 %1898  ;;  %v3020_v0 = vpop.permute.xlu0 %3019 }
 0x30d   : > { %v3513_v54 = vsel %vm3492_vm5, %v3384_v9, %v3020_v0 }
 0x30e   : > { %2673 = vrot.lane.b32.xlu1 %v9786_v21, %s7998_s24  ;;  %2671 = vrot.lane.b32.xlu0 %v9775_v22, %s7998_s24 }
 0x30f   : > { %7565 = vmatprep.mubr.msk.f32.mxu0 %vm3632_vm6, %v3513_v54  ;;  %v745_v54 = vld [vmem:[#allocation2 + $0x1f8] sm:$0xff] }
 0x310   : > { %v9839_v51 = vpop.permute.xlu1 %1900  ;;  %v3022_v19 = vpop.permute.xlu0 %3021 }
 0x311   : > { %v3514_v56 = vsel %vm3492_vm5, %v3385_v44, %v3022_v19  ;;  %v2241_v44 = vsel %vm265_vm0, %v745_v54, %v12828_v5 }
 0x312   : > { %1938 = vrot.lane.b32.xlu1 %v1044_v34, %s7997_s23  ;;  %3059 = vrot.lane.b32.xlu0 %v9843_v18, %s7999_s25  ;;  %v9913_v34 = vsel %vm2326_vm3, %v2240_v27, %v9619_v11  ;;  %v12830_v27 = vld [vmem:[#allocation20_spill] sm:$0xff] }
 0x313   : > { %7566 = vmatmul.mubr.msk.f32.gmra.mxu0 %vm3632_vm6, %v3514_v56  ;;  %v9924_v56 = vsel %vm2326_vm3, %v2241_v44, %v9703_v63  ;;  %v1048_v63 = vld [vmem:[#allocation2 + $0x332] sm:$0xff] }
 0x314   : > { %v2638_v14 = vpop.permute.xlu1 %2637  ;;  %v2636_v39 = vpop.permute.xlu0 %2635  ;;  %v12831_v44 = vld [vmem:[#allocation23_spill] sm:$0xff] }
 0x315   : > { %v3386_v26 = vsel %vm3363_vm4, %v12825_v47, %v2636_v39  ;;  %v3387_v9 = vsel %vm3363_vm4, %v12827_v57, %v2638_v14  ;;  %v12829_v39 = vld [vmem:[#allocation21_spill] sm:$0xff] }
 0x316   : > { %1940 = vrot.lane.b32.xlu1 %v1045_v25, %s7997_s23  ;;  %3061 = vrot.lane.b32.xlu0 %v9890_v30, %s7999_s25  ;;  %v2242_v47 = vsel %vm265_vm0, %v746_v6, %v12829_v39  ;;  %v12832_v39 = vld [vmem:[#allocation22_spill] sm:$0xff] }
 0x318   : > { %v9897_v42 = vpop.permute.xlu1 %1902  ;;  %v3024_v49 = vpop.permute.xlu0 %3023 }
 0x319   : > { %v3515_v43 = vsel %vm3492_vm5, %v3386_v26, %v3024_v49 }
 0x31a   : > { %2677 = vrot.lane.b32.xlu1 %v9820_v41, %s7998_s24  ;;  %2675 = vrot.lane.b32.xlu0 %v9809_v37, %s7998_s24 }
 0x31b   : > { %7568 = vmatprep.mubr.msk.f32.mxu0 %vm3632_vm6, %v3515_v43  ;;  %v9947_v43 = vsel %vm2326_vm3, %v2242_v47, %v9725_v10 }
 0x31c   : > { %v9909_v0 = vpop.permute.xlu1 %1904  ;;  %v3026_v2 = vpop.permute.xlu0 %3025 }
 0x31d   : > { %v3516_v38 = vsel %vm3492_vm5, %v3387_v9, %v3026_v2 }
 0x31e   : > { %1942 = vrot.lane.b32.xlu1 %v1046_v62, %s7997_s23  ;;  %3063 = vrot.lane.b32.xlu0 %v9913_v34, %s7999_s25 }
 0x31f   : > { %7569 = vmatmul.mubr.msk.f32.gmra.mxu0 %vm3632_vm6, %v3516_v38 }
 0x320   : > { %v2642_v19 = vpop.permute.xlu1 %2641  ;;  %v2640_v35 = vpop.permute.xlu0 %2639 }
 0x321   : > { %v3388_v11 = vsel %vm3363_vm4, %v9360_v23, %v2640_v35  ;;  %v3389_v23 = vsel %vm3363_vm4, %v9368_v28, %v2642_v19  ;;  %v2243_v28 = vsel %vm265_vm0, %v747_v8, %v12830_v27 }
 0x322   : > { %1944 = vrot.lane.b32.xlu1 %v1047_v15, %s7997_s23  ;;  %3065 = vrot.lane.b32.xlu0 %v9924_v56, %s7999_s25  ;;  %v9958_v2 = vsel %vm2326_vm3, %v2243_v28, %v9737_v13  ;;  %v748_v15 = vld [vmem:[#allocation2 + $0x218] sm:$0xff]  ;;  %v1050_v13 = vld [vmem:[#allocation2 + $0x34a] sm:$0xff] }
 0x323   : > { %v2244_v19 = vsel %vm265_vm0, %v748_v15, %v12831_v44  ;;  %v12833_v28 = vld [vmem:[#allocation25_spill] sm:$0xff]  ;;  %v12834_v44 = vld [vmem:[#allocation24_spill] sm:$0xff] }
 0x324   : > { %v9931_v25 = vpop.permute.xlu1 %1906  ;;  %v3028_v32 = vpop.permute.xlu0 %3027  ;;  %v9981_v6 = vsel %vm2326_vm3, %v2244_v19, %v9759_v61 }
 0x325   : > { %v3517_v14 = vsel %vm3492_vm5, %v3388_v11, %v3028_v32  ;;  %v749_v32 = vld [vmem:[#allocation2 + $0x220] sm:$0xff] }
 0x326   : > { %2681 = vrot.lane.b32.xlu1 %v9890_v30, %s7998_s24  ;;  %2679 = vrot.lane.b32.xlu0 %v9843_v18, %s7998_s24 }
 0x327   : > { %7571 = vmatprep.mubr.msk.f32.mxu0 %vm3632_vm6, %v3517_v14 }
 0x328   : > { %v9943_v26 = vpop.permute.xlu1 %1908  ;;  %v3030_v49 = vpop.permute.xlu0 %3029 }
 0x329   : > { %v3518_v62 = vsel %vm3492_vm5, %v3389_v23, %v3030_v49 }
 0x32a   : > { %1946 = vrot.lane.b32.xlu1 %v1048_v63, %s7997_s23  ;;  %3067 = vrot.lane.b32.xlu0 %v9947_v43, %s7999_s25  ;;  %v1051_v63 = vld [vmem:[#allocation2 + $0x352] sm:$0xff] }
 0x32b   : > { %7572 = vmatmul.mubr.msk.f32.gmra.mxu0 %vm3632_vm6, %v3518_v62 }
 0x32c   : > { %v2646_v57 = vpop.permute.xlu1 %2645  ;;  %v2644_v9 = vpop.permute.xlu0 %2643 }
 0x32d   : > { %v3390_v10 = vsel %vm3363_vm4, %v9388_v36, %v2644_v9  ;;  %v3391_v36 = vsel %vm3363_vm4, %v9396_v29, %v2646_v57  ;;  %v2245_v29 = vsel %vm265_vm0, %v749_v32, %v12832_v39 }
 0x32e   : > { %1948 = vrot.lane.b32.xlu1 %v1049_v12, %s7997_s23  ;;  %3069 = vrot.lane.b32.xlu0 %v9958_v2, %s7999_s25  ;;  %v9992_v49 = vsel %vm2326_vm3, %v2245_v29, %v9771_v55  ;;  %v750_v12 = vld [vmem:[#allocation2 + $0x230] sm:$0xff]  ;;  %v1052_v55 = vld [vmem:[#allocation2 + $0x35a] sm:$0xff] }
 0x32f   : > { %v2246_v57 = vsel %vm265_vm0, %v750_v12, %v12833_v28  ;;  %v12835_v29 = vld [vmem:[#allocation27_spill] sm:$0xff]  ;;  %v12836_v28 = vld [vmem:[#allocation26_spill] sm:$0xff] }
 0x330   : > { %v9965_v54 = vpop.permute.xlu1 %1910  ;;  %v3032_v38 = vpop.permute.xlu0 %3031  ;;  %v10015_v15 = vsel %vm2326_vm3, %v2246_v57, %v9793_v20 }
 0x331   : > { %v3519_v5 = vsel %vm3492_vm5, %v3390_v10, %v3032_v38  ;;  %v751_v38 = vld [vmem:[#allocation2 + $0x238] sm:$0xff] }
 0x332   : > { %2685 = vrot.lane.b32.xlu1 %v9924_v56, %s7998_s24  ;;  %2683 = vrot.lane.b32.xlu0 %v9913_v34, %s7998_s24 }
 0x333   : > { %7574 = vmatprep.mubr.msk.f32.mxu0 %vm3632_vm6, %v3519_v5 }
 0x334   : > { %v9977_v35 = vpop.permute.xlu1 %1912  ;;  %v3034_v11 = vpop.permute.xlu0 %3033 }
 0x335   : > { %v3520_v14 = vsel %vm3492_vm5, %v3391_v36, %v3034_v11 }
 0x336   : > { %1950 = vrot.lane.b32.xlu1 %v1050_v13, %s7997_s23  ;;  %3071 = vrot.lane.b32.xlu0 %v9981_v6, %s7999_s25  ;;  %v1053_v13 = vld [vmem:[#allocation2 + $0x362] sm:$0xff] }
 0x337   : > { %7575 = vmatmul.mubr.msk.f32.gmra.mxu0 %vm3632_vm6, %v3520_v14 }
 0x338   : > { %v2650_v47 = vpop.permute.xlu1 %2649  ;;  %v2648_v23 = vpop.permute.xlu0 %2647 }
 0x339   : > { %v3392_v61 = vsel %vm3363_vm4, %v9425_v3, %v2648_v23  ;;  %v3393_v3 = vsel %vm3363_vm4, %v9436_v33, %v2650_v47  ;;  %v2247_v33 = vsel %vm265_vm0, %v751_v38, %v12834_v44 }
 0x33a   : > { %1952 = vrot.lane.b32.xlu1 %v1051_v63, %s7997_s23  ;;  %3073 = vrot.lane.b32.xlu0 %v9992_v49, %s7999_s25  ;;  %v10026_v11 = vsel %vm2326_vm3, %v2247_v33, %v9805_v46  ;;  %v752_v63 = vld [vmem:[#allocation2 + $0x240] sm:$0xff]  ;;  %v1054_v46 = vld [vmem:[#allocation2 + $0x372] sm:$0xff] }
 0x33b   : > { %v2248_v47 = vsel %vm265_vm0, %v752_v63, %v12835_v29  ;;  %v12837_v33 = vld [vmem:[#allocation29_spill] sm:$0xff] }
 0x33c   : > { %v9999_v8 = vpop.permute.xlu1 %1914  ;;  %v3036_v62 = vpop.permute.xlu0 %3035  ;;  %v10049_v12 = vsel %vm2326_vm3, %v2248_v47, %v9827_v52  ;;  %v12838_v47 = vld [vmem:[#allocation28_spill] sm:$0xff] }
 0x33d   : > { %v3521_v27 = vsel %vm3492_vm5, %v3392_v61, %v3036_v62  ;;  %v753_v62 = vld [vmem:[#allocation2 + $0x248] sm:$0xff] }
 0x33e   : > { %2689 = vrot.lane.b32.xlu1 %v9958_v2, %s7998_s24  ;;  %2687 = vrot.lane.b32.xlu0 %v9947_v43, %s7998_s24 }
 0x33f   : > { %7577 = vmatprep.mubr.msk.f32.mxu0 %vm3632_vm6, %v3521_v27 }
 0x340   : > { %v10011_v9 = vpop.permute.xlu1 %1916  ;;  %v3038_v10 = vpop.permute.xlu0 %3037 }
 0x341   : > { %v3522_v5 = vsel %vm3492_vm5, %v3393_v3, %v3038_v10 }
 0x342   : > { %1954 = vrot.lane.b32.xlu1 %v1052_v55, %s7997_s23  ;;  %3075 = vrot.lane.b32.xlu0 %v10015_v15, %s7999_s25  ;;  %v1055_v55 = vld [vmem:[#allocation2 + $0x37a] sm:$0xff] }
 0x343   : > { %7578 = vmatmul.mubr.msk.f32.gmra.mxu0 %vm3632_vm6, %v3522_v5 }
 0x344   : > { %v2654_v19 = vpop.permute.xlu1 %2653  ;;  %v2652_v36 = vpop.permute.xlu0 %2651 }
 0x345   : > { %v3394_v20 = vsel %vm3363_vm4, %v9465_v7, %v2652_v36  ;;  %v3395_v7 = vsel %vm3363_vm4, %v9476_v58, %v2654_v19  ;;  %v2249_v58 = vsel %vm265_vm0, %v753_v62, %v12836_v28 }
 0x346   : > { %1956 = vrot.lane.b32.xlu1 %v1053_v13, %s7997_s23  ;;  %3077 = vrot.lane.b32.xlu0 %v10026_v11, %s7999_s25  ;;  %v10060_v10 = vsel %vm2326_vm3, %v2249_v58, %v9839_v51  ;;  %v754_v13 = vld [vmem:[#allocation2 + $0x258] sm:$0xff]  ;;  %v1056_v51 = vld [vmem:[#allocation2 + $0x382] sm:$0xff] }
 0x347   : > { %v2250_v19 = vsel %vm265_vm0, %v754_v13, %v12837_v33 }
 0x348   : > { %v10033_v32 = vpop.permute.xlu1 %1918  ;;  %v3040_v14 = vpop.permute.xlu0 %3039  ;;  %v10083_v63 = vsel %vm2326_vm3, %v2250_v19, %v9897_v42 }
 0x349   : > { %v3523_v39 = vsel %vm3492_vm5, %v3394_v20, %v3040_v14  ;;  %v755_v14 = vld [vmem:[#allocation2 + $0x260] sm:$0xff] }
 0x34a   : > { %2693 = vrot.lane.b32.xlu1 %v9992_v49, %s7998_s24  ;;  %2691 = vrot.lane.b32.xlu0 %v9981_v6, %s7998_s24 }
 0x34b   : > { %7580 = vmatprep.mubr.msk.f32.mxu0 %vm3632_vm6, %v3523_v39 }
 0x34c   : > { %v10045_v23 = vpop.permute.xlu1 %1920  ;;  %v3042_v61 = vpop.permute.xlu0 %3041 }
 0x34d   : > { %v3524_v27 = vsel %vm3492_vm5, %v3395_v7, %v3042_v61  ;;  %v2251_v7 = vsel %vm265_vm0, %v755_v14, %v12838_v47 }
 0x34e   : > { %1958 = vrot.lane.b32.xlu1 %v1054_v46, %s7997_s23  ;;  %3079 = vrot.lane.b32.xlu0 %v10049_v12, %s7999_s25  ;;  %v10086_v46 = vld [vmem:[#allocation8] ss:$0 sm:$0xff] }
 0x34f   : > { %7581 = vmatmul.mubr.msk.f32.gmra.mxu0 %vm3632_vm6, %v3524_v27  ;;  %v10097_v27 = vsel %vm2326_vm3, %v2251_v7, %v9909_v0  ;;  %v756_v0 = vld [vmem:[#allocation2 + $0x268] sm:$0xff] }
 0x350   : > { %v2658_v57 = vpop.permute.xlu1 %2657  ;;  %v2656_v3 = vpop.permute.xlu0 %2655 }
 0x351   : > { %v3396_v52 = vsel %vm3363_vm4, %v9499_v1, %v2656_v3  ;;  %v3397_v1 = vsel %vm3363_vm4, %v9510_v59, %v2658_v57  ;;  %v1057_v59 = vld [vmem:[#allocation2 + $0x38a] sm:$0xff] }
 0x352   : > { %1960 = vrot.lane.b32.xlu1 %v1055_v55, %s7997_s23  ;;  %3081 = vrot.lane.b32.xlu0 %v10060_v10, %s7999_s25 }
 0x354   : > { %v10067_v38 = vpop.permute.xlu1 %1922  ;;  %v3044_v5 = vpop.permute.xlu0 %3043 }
 0x355   : > { %v3525_v44 = vsel %vm3492_vm5, %v3396_v52, %v3044_v5 }
 0x356   : > { %2697 = vrot.lane.b32.xlu1 %v10026_v11, %s7998_s24  ;;  %2695 = vrot.lane.b32.xlu0 %v10015_v15, %s7998_s24 }
 0x357   : > { %7583 = vmatprep.mubr.msk.f32.mxu0 %vm3632_vm6, %v3525_v44  ;;  %v1058_v44 = vld [vmem:[#allocation2 + $0x39a] sm:$0xff] }
 0x358   : > { %v10079_v36 = vpop.permute.xlu1 %1924  ;;  %v3046_v20 = vpop.permute.xlu0 %3045 }
 0x359   : > { %v3526_v39 = vsel %vm3492_vm5, %v3397_v1, %v3046_v20  ;;  %v757_v20 = vld [vmem:[#allocation2 + $0x270] sm:$0xff] }
 0x35a   : > { %1962 = vrot.lane.b32.xlu1 %v1056_v51, %s7997_s23  ;;  %3083 = vrot.lane.b32.xlu0 %v10083_v63, %s7999_s25  ;;  %v12839_v51 = vld [vmem:[#allocation31_spill] sm:$0xff] }
 0x35b   : > { %v7537_v29 = vpop.f32.mrf.mxu0  ;;  %7584 = vmatmul.mubr.msk.f32.gmra.mxu0 %vm3632_vm6, %v3526_v39 }
 0x35c   : > { %v4093_v61 = vadd.f32 %v7537_v29, %v10086_v46  ;;  %v2662_v42 = vpop.permute.xlu1 %2661  ;;  %v2660_v62 = vpop.permute.xlu0 %2659 }
 0x35d   : > { %v4087_v55 = vpop.f32.mrf.mxu0  ;;  %v3398_v57 = vsel %vm3363_vm4, %v9533_v24, %v2660_v62  ;;  %v2252_v24 = vsel %vm265_vm0, %v756_v0, %v12839_v51  ;;  %v3399_v33 = vsel %vm3363_vm4, %v9544_v31, %v2662_v42  ;;  %v12840_v31 = vld [vmem:[#allocation30_spill] sm:$0xff] }
 0x35e   : > { %v4727_v28 = vmax.f32 %v4093_v61, 0.0  ;;  %v4088_v58 = vadd.f32 %v10086_v46, %v4087_v55  ;;  %1964 = vrot.lane.b32.xlu1 %v1057_v59, %s7997_s23  ;;  %3085 = vrot.lane.b32.xlu0 %v10097_v27, %s7999_s25  ;;  %v10123_v14 = vsel %vm2326_vm3, %v2252_v24, %v9931_v25  ;;  %v1059_v59 = vld [vmem:[#allocation2 + $0x3a2] sm:$0xff]  ;;  %v2253_v47 = vsel %vm265_vm0, %v757_v20, %v12840_v31 }
 0x35f   : > { %v10135_v25 = vsel %vm2326_vm3, %v2253_v47, %v9943_v26  ;;  %v758_v26 = vld [vmem:[#allocation2 + $0x280] sm:$0xff] }
 0x360   : > { %4856 = vst.msk [vmem:[#allocation3 + $0x8] sm:$0xff] %vm4854_vm7, %v4727_v28  ;;  %v4726_v3 = vmax.f32 %v4088_v58, 0.0  ;;  %v10106_v52 = vpop.permute.xlu1 %1926  ;;  %v3048_v5 = vpop.permute.xlu0 %3047 }
 0x361   : > { %v3527_v13 = vsel %vm3492_vm5, %v3398_v57, %v3048_v5 }
 0x362   : > { %4855 = vst.msk [vmem:[#allocation3] sm:$0xff] %vm4854_vm7, %v4726_v3  ;;  %2701 = vrot.lane.b32.xlu1 %v10060_v10, %s7998_s24  ;;  %2699 = vrot.lane.b32.xlu0 %v10049_v12, %s7998_s24 }
 0x363   : > { %7586 = vmatprep.mubr.msk.f32.mxu0 %vm3632_vm6, %v3527_v13  ;;  %v1060_v13 = vld [vmem:[#allocation2 + $0x3aa] sm:$0xff] }
 0x364   : > { %v10119_v19 = vpop.permute.xlu1 %1928  ;;  %v3050_v1 = vpop.permute.xlu0 %3049 }
 0x365   : > { %v3528_v39 = vsel %vm3492_vm5, %v3399_v33, %v3050_v1  ;;  %v759_v1 = vld [vmem:[#allocation2 + $0x288] sm:$0xff] }
 0x366   : > { %1966 = vrot.lane.b32.xlu1 %v1058_v44, %s7997_s23  ;;  %3087 = vrot.lane.b32.xlu0 %v10123_v14, %s7999_s25  ;;  %v12841_v44 = vld [vmem:[#allocation33_spill] sm:$0xff] }
 0x367   : > { %v7540_v29 = vpop.f32.mrf.mxu0  ;;  %7587 = vmatmul.mubr.msk.f32.gmra.mxu0 %vm3632_vm6, %v3528_v39 }
 0x368   : > { %v4103_v7 = vadd.f32 %v7540_v29, %v10086_v46  ;;  %v2666_v61 = vpop.permute.xlu1 %2665  ;;  %v2664_v42 = vpop.permute.xlu0 %2663 }
 0x369   : > { %v4097_v62 = vpop.f32.mrf.mxu0  ;;  %v3400_v58 = vsel %vm3363_vm4, %v9567_v40, %v2664_v42  ;;  %v2254_v40 = vsel %vm265_vm0, %v758_v26, %v12841_v44  ;;  %v3401_v51 = vsel %vm3363_vm4, %v9578_v60, %v2666_v61  ;;  %v12842_v60 = vld [vmem:[#allocation32_spill] sm:$0xff] }
 0x36a   : > { %v4729_v55 = vmax.f32 %v4103_v7, 0.0  ;;  %v4098_v28 = vadd.f32 %v10086_v46, %v4097_v62  ;;  %1968 = vrot.lane.b32.xlu1 %v1059_v59, %s7997_s23  ;;  %3089 = vrot.lane.b32.xlu0 %v10135_v25, %s7999_s25  ;;  %v10161_v20 = vsel %vm2326_vm3, %v2254_v40, %v9965_v54  ;;  %v1061_v59 = vld [vmem:[#allocation2 + $0x3b2] sm:$0xff]  ;;  %v2255_v31 = vsel %vm265_vm0, %v759_v1, %v12842_v60 }
 0x36b   : > { %v10173_v54 = vsel %vm2326_vm3, %v2255_v31, %v9977_v35  ;;  %v760_v35 = vld [vmem:[#allocation2 + $0x290] sm:$0xff] }
 0x36c   : > { %4858 = vst.msk [vmem:[#allocation3 + $0x18] sm:$0xff] %vm4854_vm7, %v4729_v55  ;;  %v4728_v57 = vmax.f32 %v4098_v28, 0.0  ;;  %v10144_v3 = vpop.permute.xlu1 %1930  ;;  %v3052_v5 = vpop.permute.xlu0 %3051  ;;  %v12844_v31 = vld [vmem:[#allocation34_spill] sm:$0xff] }
 0x36d   : > { %v3529_v0 = vsel %vm3492_vm5, %v3400_v58, %v3052_v5 }
 0x36e   : > { %4857 = vst.msk [vmem:[#allocation3 + $0x10] sm:$0xff] %vm4854_vm7, %v4728_v57  ;;  %2705 = vrot.lane.b32.xlu1 %v10097_v27, %s7998_s24  ;;  %2703 = vrot.lane.b32.xlu0 %v10083_v63, %s7998_s24 }
 0x36f   : > { %7589 = vmatprep.mubr.msk.f32.mxu0 %vm3632_vm6, %v3529_v0  ;;  %v1062_v0 = vld [vmem:[#allocation2 + $0x3c2] sm:$0xff] }
 0x370   : > { %v10157_v24 = vpop.permute.xlu1 %1932  ;;  %v3054_v33 = vpop.permute.xlu0 %3053 }
 0x371   : > { %v3530_v39 = vsel %vm3492_vm5, %v3401_v51, %v3054_v33  ;;  %v761_v33 = vld [vmem:[#allocation2 + $0x298] sm:$0xff] }
 0x372   : > { %1970 = vrot.lane.b32.xlu1 %v1060_v13, %s7997_s23  ;;  %3091 = vrot.lane.b32.xlu0 %v10161_v20, %s7999_s25  ;;  %v12843_v13 = vld [vmem:[#allocation35_spill] sm:$0xff] }
 0x373   : > { %v7543_v29 = vpop.f32.mrf.mxu0  ;;  %7590 = vmatmul.mubr.msk.f32.gmra.mxu0 %vm3632_vm6, %v3530_v39  ;;  %v4983_v39 = vld [vmem:[#allocation3] ss:$2 sm:$0xff] }
 0x374   : > { %v4113_v47 = vadd.f32 %v7543_v29, %v10086_v46  ;;  %v2670_v7 = vpop.permute.xlu1 %2669  ;;  %v2668_v61 = vpop.permute.xlu0 %2667  ;;  %v5111_v29 = vld [vmem:[#allocation3 + $0x1] ss:$2 sm:$0xff] }
 0x375   : > { %v4107_v42 = vpop.f32.mrf.mxu0  ;;  %v3402_v28 = vsel %vm3363_vm4, %v9601_v45, %v2668_v61  ;;  %v2256_v45 = vsel %vm265_vm0, %v760_v35, %v12843_v13  ;;  %v3403_v44 = vsel %vm3363_vm4, %v9612_v48, %v2670_v7  ;;  %v1063_v48 = vld [vmem:[#allocation2 + $0x3ca] sm:$0xff]  ;;  %v5238_v7 = vmax.f32 %v4983_v39, %v5111_v29 }
 0x376   : > { %v4731_v62 = vmax.f32 %v4113_v47, 0.0  ;;  %v4108_v55 = vadd.f32 %v10086_v46, %v4107_v42  ;;  %1972 = vrot.lane.b32.xlu1 %v1061_v59, %s7997_s23  ;;  %3093 = vrot.lane.b32.xlu0 %v10173_v54, %s7999_s25  ;;  %v10199_v1 = vsel %vm2326_vm3, %v2256_v45, %v9999_v8  ;;  %v2257_v47 = vsel %vm265_vm0, %v761_v33, %v12844_v31  ;;  %v762_v33 = vld [vmem:[#allocation2 + $0x2a8] sm:$0xff] }
 0x378   : > { %4860 = vst.msk [vmem:[#allocation3 + $0x28] sm:$0xff] %vm4854_vm7, %v4731_v62  ;;  %v4730_v58 = vmax.f32 %v4108_v55, 0.0  ;;  %v10182_v57 = vpop.permute.xlu1 %1934  ;;  %v3056_v5 = vpop.permute.xlu0 %3055  ;;  %v10211_v62 = vsel %vm2326_vm3, %v2257_v47, %v10011_v9 }
 0x379   : > { %v3531_v26 = vsel %vm3492_vm5, %v3402_v28, %v3056_v5 }
 0x37a   : > { %4859 = vst.msk [vmem:[#allocation3 + $0x20] sm:$0xff] %vm4854_vm7, %v4730_v58  ;;  %2709 = vrot.lane.b32.xlu1 %v10135_v25, %s7998_s24  ;;  %2707 = vrot.lane.b32.xlu0 %v10123_v14, %s7998_s24 }
 0x37b   : > { %7592 = vmatprep.mubr.msk.f32.mxu0 %vm3632_vm6, %v3531_v26 }
 0x37c   : > { %v10195_v40 = vpop.permute.xlu1 %1936  ;;  %v3058_v51 = vpop.permute.xlu0 %3057 }
 0x37d   : > { %v3532_v59 = vsel %vm3492_vm5, %v3403_v44, %v3058_v51 }
 0x37e   : > { %1974 = vrot.lane.b32.xlu1 %v1062_v0, %s7997_s23  ;;  %3095 = vrot.lane.b32.xlu0 %v10199_v1, %s7999_s25  ;;  %v5302_v0 = vsel %vm4854_vm7, %v5238_v7, -inf  ;;  %v763_v7 = vld [vmem:[#allocation2 + $0x2b0] sm:$0xff] }
 0x37f   : > { %v7546_v60 = vpop.f32.mrf.mxu0  ;;  %7593 = vmatmul.mubr.msk.f32.gmra.mxu0 %vm3632_vm6, %v3532_v59  ;;  %v12845_v59 = vld [vmem:[#allocation37_spill] sm:$0xff] }
 0x380   : > { %v4123_v8 = vadd.f32 %v7546_v60, %v10086_v46  ;;  %v2674_v61 = vpop.permute.xlu1 %2673  ;;  %v2672_v42 = vpop.permute.xlu0 %2671  ;;  %v2258_v60 = vsel %vm265_vm0, %v762_v33, %v12845_v59 }
 0x381   : > { %v4987_v55 = vld [vmem:[#allocation3 + $0x20] ss:$2 sm:$0xff]  ;;  %v5115_v28 = vld [vmem:[#allocation3 + $0x21] ss:$2 sm:$0xff]  ;;  %v4117_v58 = vpop.f32.mrf.mxu0  ;;  %v3404_v9 = vsel %vm3363_vm4, %v9707_v17, %v2672_v42  ;;  %v4985_v42 = vld [vmem:[#allocation3 + $0x10] ss:$2 sm:$0xff] }
 0x382   : > { %v5240_v5 = vmax.f32 %v4987_v55, %v5115_v28  ;;  %v4733_v35 = vmax.f32 %v4123_v8, 0.0  ;;  %v4118_v26 = vadd.f32 %v10086_v46, %v4117_v58  ;;  %1976 = vrot.lane.b32.xlu1 %v1063_v48, %s7997_s23  ;;  %3097 = vrot.lane.b32.xlu0 %v10211_v62, %s7999_s25  ;;  %v1064_v17 = vld [vmem:[#allocation2 + $0x3d2] sm:$0xff]  ;;  %v3405_v48 = vsel %vm3363_vm4, %v9718_v16, %v2674_v61  ;;  %v5113_v55 = vld [vmem:[#allocation3 + $0x11] ss:$2 sm:$0xff] }
 0x383   : > { %v10240_v8 = vsel %vm2326_vm3, %v2258_v60, %v10033_v32  ;;  %v1065_v16 = vld [vmem:[#allocation2 + $0x3da] sm:$0xff] }
 0x384   : > { %v5303_v13 = vsel %vm4854_vm7, %v5240_v5, -inf  ;;  %4862 = vst.msk [vmem:[#allocation3 + $0x38] sm:$0xff] %vm4854_vm7, %v4733_v35  ;;  %v4732_v45 = vmax.f32 %v4118_v26, 0.0  ;;  %v10222_v44 = vpop.permute.xlu1 %1938  ;;  %v3060_v51 = vpop.permute.xlu0 %3059  ;;  %v12846_v61 = vld [vmem:[#allocation36_spill] sm:$0xff]  ;;  %v5239_v35 = vmax.f32 %v4985_v42, %v5113_v55 }
 0x385   : > { %v5304_v39 = vmax.f32 %v5302_v0, %v5303_v13  ;;  %v3533_v29 = vsel %vm3492_vm5, %v3404_v9, %v3060_v51  ;;  %v2259_v5 = vsel %vm265_vm0, %v763_v7, %v12846_v61  ;;  %v764_v7 = vld [vmem:[#allocation2 + $0x2b8] sm:$0xff] }
 0x386   : > { %4861 = vst.msk [vmem:[#allocation3 + $0x30] sm:$0xff] %vm4854_vm7, %v4732_v45  ;;  %2713 = vrot.lane.b32.xlu1 %v10173_v54, %s7998_s24  ;;  %2711 = vrot.lane.b32.xlu0 %v10161_v20, %s7998_s24  ;;  %v10252_v13 = vsel %vm2326_vm3, %v2259_v5, %v10045_v23 }
 0x387   : > { %5454 = vst.msk [vmem:[#allocation4 + $0x19] sm:$0xff] %vm4854_vm7, %v5304_v39  ;;  %7595 = vmatprep.mubr.msk.f32.mxu0 %vm3632_vm6, %v3533_v29 }
 0x388   : > { %v10236_v31 = vpop.permute.xlu1 %1940  ;;  %v3062_v47 = vpop.permute.xlu0 %3061 }
 0x389   : > { %v3534_v28 = vsel %vm3492_vm5, %v3405_v48, %v3062_v47 }
 0x38a   : > { %1978 = vrot.lane.b32.xlu1 %v1064_v17, %s7997_s23  ;;  %3099 = vrot.lane.b32.xlu0 %v10240_v8, %s7999_s25  ;;  %v5305_v17 = vsel %vm4854_vm7, %v5239_v35, -inf  ;;  %v765_v35 = vld [vmem:[#allocation2 + $0x2c0] sm:$0xff] }
 0x38b   : > { %v7549_v58 = vpop.f32.mrf.mxu0  ;;  %7596 = vmatmul.mubr.msk.f32.gmra.mxu0 %vm3632_vm6, %v3534_v28  ;;  %v1066_v28 = vld [vmem:[#allocation2 + $0x3ea] sm:$0xff] }
 0x38c   : > { %v4133_v32 = vadd.f32 %v7549_v58, %v10086_v46  ;;  %v2678_v26 = vpop.permute.xlu1 %2677  ;;  %v2676_v0 = vpop.permute.xlu0 %2675 }
 0x38d   : > { %v4989_v9 = vld [vmem:[#allocation3 + $0x30] ss:$2 sm:$0xff]  ;;  %v5117_v45 = vld [vmem:[#allocation3 + $0x31] ss:$2 sm:$0xff]  ;;  %v4127_v51 = vpop.f32.mrf.mxu0  ;;  %v3406_v23 = vsel %vm3363_vm4, %v9741_v53, %v2676_v0  ;;  %v12847_v53 = vld [vmem:[#allocation39_spill] sm:$0xff] }
 0x38e   : > { %v5241_v33 = vmax.f32 %v4989_v9, %v5117_v45  ;;  %v4735_v39 = vmax.f32 %v4133_v32, 0.0  ;;  %v4128_v29 = vadd.f32 %v10086_v46, %v4127_v51  ;;  %1980 = vrot.lane.b32.xlu1 %v1065_v16, %s7997_s23  ;;  %3101 = vrot.lane.b32.xlu0 %v10252_v13, %s7999_s25  ;;  %v2260_v58 = vsel %vm265_vm0, %v764_v7, %v12847_v53  ;;  %v1067_v45 = vld [vmem:[#allocation2 + $0x3f2] sm:$0xff] }
 0x38f   : > { %v3407_v16 = vsel %vm3363_vm4, %v9752_v4, %v2678_v26  ;;  %v10281_v32 = vsel %vm2326_vm3, %v2260_v58, %v10067_v38  ;;  %v12848_v4 = vld [vmem:[#allocation38_spill] sm:$0xff] }
 0x390   : > { %v5306_v59 = vsel %vm4854_vm7, %v5241_v33, -inf  ;;  %4864 = vst.msk [vmem:[#allocation3 + $0x48] sm:$0xff] %vm4854_vm7, %v4735_v39  ;;  %v4734_v60 = vmax.f32 %v4128_v29, 0.0  ;;  %v10263_v48 = vpop.permute.xlu1 %1942  ;;  %v3064_v47 = vpop.permute.xlu0 %3063  ;;  %v2261_v26 = vsel %vm265_vm0, %v765_v35, %v12848_v4 }
 0x391   : > { %v5307_v42 = vmax.f32 %v5305_v17, %v5306_v59  ;;  %v3535_v55 = vsel %vm3492_vm5, %v3406_v23, %v3064_v47  ;;  %v10293_v38 = vsel %vm2326_vm3, %v2261_v26, %v10079_v36  ;;  %v766_v36 = vld [vmem:[#allocation2 + $0x2d0] sm:$0xff] }
 0x392   : > { %4863 = vst.msk [vmem:[#allocation3 + $0x40] sm:$0xff] %vm4854_vm7, %v4734_v60  ;;  %2717 = vrot.lane.b32.xlu1 %v10211_v62, %s7998_s24  ;;  %2715 = vrot.lane.b32.xlu0 %v10199_v1, %s7998_s24 }
 0x393   : > { %7598 = vmatprep.mubr.msk.f32.mxu0 %vm3632_vm6, %v3535_v55  ;;  %5455 = vst.msk [vmem:[#allocation4 + $0x21] sm:$0xff] %vm4854_vm7, %v5307_v42  ;;  %v1068_v55 = vld [vmem:[#allocation2 + $0x3fa] sm:$0xff] }
 0x394   : > { %v10277_v61 = vpop.permute.xlu1 %1944  ;;  %v3066_v5 = vpop.permute.xlu0 %3065 }
 0x395   : > { %v3536_v0 = vsel %vm3492_vm5, %v3407_v16, %v3066_v5  ;;  %v767_v5 = vld [vmem:[#allocation2 + $0x2d8] sm:$0xff] }
 0x396   : > { %1982 = vrot.lane.b32.xlu1 %v1066_v28, %s7997_s23  ;;  %3103 = vrot.lane.b32.xlu0 %v10281_v32, %s7999_s25  ;;  %v12849_v28 = vld [vmem:[#allocation41_spill] sm:$0xff] }
 0x397   : > { %v7552_v9 = vpop.f32.mrf.mxu0  ;;  %7599 = vmatmul.mubr.msk.f32.gmra.mxu0 %vm3632_vm6, %v3536_v0 }
 0x398   : > { %v4143_v51 = vadd.f32 %v7552_v9, %v10086_v46  ;;  %v2682_v33 = vpop.permute.xlu1 %2681  ;;  %v2680_v39 = vpop.permute.xlu0 %2679 }
 0x399   : > { %v4137_v29 = vpop.f32.mrf.mxu0  ;;  %v3408_v23 = vsel %vm3363_vm4, %v9775_v22, %v2680_v39  ;;  %v2262_v22 = vsel %vm265_vm0, %v766_v36, %v12849_v28  ;;  %v3409_v53 = vsel %vm3363_vm4, %v9786_v21, %v2682_v33  ;;  %v12850_v21 = vld [vmem:[#allocation40_spill] sm:$0xff] }
 0x39a   : > { %v4737_v17 = vmax.f32 %v4143_v51, 0.0  ;;  %v4138_v59 = vadd.f32 %v10086_v46, %v4137_v29  ;;  %1984 = vrot.lane.b32.xlu1 %v1067_v45, %s7997_s23  ;;  %3105 = vrot.lane.b32.xlu0 %v10293_v38, %s7999_s25  ;;  %v10319_v35 = vsel %vm2326_vm3, %v2262_v22, %v10106_v52  ;;  %v1069_v45 = vld [vmem:[#allocation2 + $0x402] sm:$0xff]  ;;  %v2263_v4 = vsel %vm265_vm0, %v767_v5, %v12850_v21 }
 0x39b   : > { %v10331_v52 = vsel %vm2326_vm3, %v2263_v4, %v10119_v19  ;;  %v768_v19 = vld [vmem:[#allocation2 + $0x2e0] sm:$0xff]  ;;  %v12852_v4 = vld [vmem:[#allocation42_spill] sm:$0xff] }
 0x39c   : > { %4866 = vst.msk [vmem:[#allocation3 + $0x58] sm:$0xff] %vm4854_vm7, %v4737_v17  ;;  %v4736_v60 = vmax.f32 %v4138_v59, 0.0  ;;  %v10302_v47 = vpop.permute.xlu1 %1946  ;;  %v3068_v7 = vpop.permute.xlu0 %3067 }
 0x39d   : > { %v3537_v42 = vsel %vm3492_vm5, %v3408_v23, %v3068_v7 }
 0x39e   : > { %4865 = vst.msk [vmem:[#allocation3 + $0x50] sm:$0xff] %vm4854_vm7, %v4736_v60  ;;  %2721 = vrot.lane.b32.xlu1 %v10252_v13, %s7998_s24  ;;  %2719 = vrot.lane.b32.xlu0 %v10240_v8, %s7998_s24 }
 0x39f   : > { %7601 = vmatprep.mubr.msk.f32.mxu0 %vm3632_vm6, %v3537_v42  ;;  %v1070_v42 = vld [vmem:[#allocation2 + $0x412] sm:$0xff] }
 0x3a0   : > { %v10315_v58 = vpop.permute.xlu1 %1948  ;;  %v3070_v16 = vpop.permute.xlu0 %3069 }
 0x3a1   : > { %v3538_v0 = vsel %vm3492_vm5, %v3409_v53, %v3070_v16  ;;  %v769_v16 = vld [vmem:[#allocation2 + $0x2e8] sm:$0xff] }
 0x3a2   : > { %1986 = vrot.lane.b32.xlu1 %v1068_v55, %s7997_s23  ;;  %3107 = vrot.lane.b32.xlu0 %v10319_v35, %s7999_s25  ;;  %v12851_v55 = vld [vmem:[#allocation43_spill] sm:$0xff] }
 0x3a3   : > { %v7555_v9 = vpop.f32.mrf.mxu0  ;;  %7602 = vmatmul.mubr.msk.f32.gmra.mxu0 %vm3632_vm6, %v3538_v0  ;;  %v4991_v0 = vld [vmem:[#allocation3 + $0x40] ss:$2 sm:$0xff] }
 0x3a4   : > { %v4153_v26 = vadd.f32 %v7555_v9, %v10086_v46  ;;  %v2686_v51 = vpop.permute.xlu1 %2685  ;;  %v2684_v33 = vpop.permute.xlu0 %2683  ;;  %v5119_v9 = vld [vmem:[#allocation3 + $0x41] ss:$2 sm:$0xff] }
 0x3a5   : > { %v4147_v39 = vpop.f32.mrf.mxu0  ;;  %v3410_v59 = vsel %vm3363_vm4, %v9809_v37, %v2684_v33  ;;  %v2264_v37 = vsel %vm265_vm0, %v768_v19, %v12851_v55  ;;  %v3411_v28 = vsel %vm3363_vm4, %v9820_v41, %v2686_v51  ;;  %v1071_v41 = vld [vmem:[#allocation2 + $0x41a] sm:$0xff]  ;;  %v5242_v51 = vmax.f32 %v4991_v0, %v5119_v9 }
 0x3a6   : > { %v4739_v29 = vmax.f32 %v4153_v26, 0.0  ;;  %v4148_v17 = vadd.f32 %v10086_v46, %v4147_v39  ;;  %1988 = vrot.lane.b32.xlu1 %v1069_v45, %s7997_s23  ;;  %3109 = vrot.lane.b32.xlu0 %v10331_v52, %s7999_s25  ;;  %v10357_v5 = vsel %vm2326_vm3, %v2264_v37, %v10144_v3  ;;  %v2265_v26 = vsel %vm265_vm0, %v769_v16, %v12852_v4  ;;  %v770_v16 = vld [vmem:[#allocation2 + $0x2f8] sm:$0xff] }
 0x3a8   : > { %4868 = vst.msk [vmem:[#allocation3 + $0x68] sm:$0xff] %vm4854_vm7, %v4739_v29  ;;  %v4738_v23 = vmax.f32 %v4148_v17, 0.0  ;;  %v10340_v60 = vpop.permute.xlu1 %1950  ;;  %v3072_v7 = vpop.permute.xlu0 %3071  ;;  %v10369_v29 = vsel %vm2326_vm3, %v2265_v26, %v10157_v24 }
 0x3a9   : > { %v3539_v36 = vsel %vm3492_vm5, %v3410_v59, %v3072_v7 }
 0x3aa   : > { %4867 = vst.msk [vmem:[#allocation3 + $0x60] sm:$0xff] %vm4854_vm7, %v4738_v23  ;;  %2725 = vrot.lane.b32.xlu1 %v10293_v38, %s7998_s24  ;;  %2723 = vrot.lane.b32.xlu0 %v10281_v32, %s7998_s24 }
 0x3ab   : > { %7604 = vmatprep.mubr.msk.f32.mxu0 %vm3632_vm6, %v3539_v36 }
 0x3ac   : > { %v10353_v22 = vpop.permute.xlu1 %1952  ;;  %v3074_v53 = vpop.permute.xlu0 %3073 }
 0x3ad   : > { %v3540_v45 = vsel %vm3492_vm5, %v3411_v28, %v3074_v53 }
 0x3ae   : > { %1990 = vrot.lane.b32.xlu1 %v1070_v42, %s7997_s23  ;;  %3111 = vrot.lane.b32.xlu0 %v10357_v5, %s7999_s25  ;;  %v5308_v42 = vsel %vm4854_vm7, %v5242_v51, -inf  ;;  %v771_v51 = vld [vmem:[#allocation2 + $0x300] sm:$0xff] }
 0x3af   : > { %v7558_v21 = vpop.f32.mrf.mxu0  ;;  %7605 = vmatmul.mubr.msk.f32.gmra.mxu0 %vm3632_vm6, %v3540_v45  ;;  %v12853_v45 = vld [vmem:[#allocation45_spill] sm:$0xff] }
 0x3b0   : > { %v4163_v3 = vadd.f32 %v7558_v21, %v10086_v46  ;;  %v2690_v33 = vpop.permute.xlu1 %2689  ;;  %v2688_v39 = vpop.permute.xlu0 %2687  ;;  %v2266_v21 = vsel %vm265_vm0, %v770_v16, %v12853_v45 }
 0x3b1   : > { %v4995_v17 = vld [vmem:[#allocation3 + $0x60] ss:$2 sm:$0xff]  ;;  %v5123_v59 = vld [vmem:[#allocation3 + $0x61] ss:$2 sm:$0xff]  ;;  %v4157_v23 = vpop.f32.mrf.mxu0  ;;  %v3412_v24 = vsel %vm3363_vm4, %v9843_v18, %v2688_v39  ;;  %v1072_v18 = vld [vmem:[#allocation2 + $0x422] sm:$0xff] }
 0x3b2   : > { %v5244_v7 = vmax.f32 %v4995_v17, %v5123_v59  ;;  %v4741_v19 = vmax.f32 %v4163_v3, 0.0  ;;  %v4158_v36 = vadd.f32 %v10086_v46, %v4157_v23  ;;  %1992 = vrot.lane.b32.xlu1 %v1071_v41, %s7997_s23  ;;  %3113 = vrot.lane.b32.xlu0 %v10369_v29, %s7999_s25  ;;  %v3413_v41 = vsel %vm3363_vm4, %v9890_v30, %v2690_v33  ;;  %v4993_v39 = vld [vmem:[#allocation3 + $0x50] ss:$2 sm:$0xff]  ;;  %v5121_v17 = vld [vmem:[#allocation3 + $0x51] ss:$2 sm:$0xff] }
 0x3b3   : > { %v10398_v3 = vsel %vm2326_vm3, %v2266_v21, %v10182_v57  ;;  %v1073_v30 = vld [vmem:[#allocation2 + $0x42a] sm:$0xff]  ;;  %v12854_v33 = vld [vmem:[#allocation44_spill] sm:$0xff] }
 0x3b4   : > { %v5309_v55 = vsel %vm4854_vm7, %v5244_v7, -inf  ;;  %4870 = vst.msk [vmem:[#allocation3 + $0x78] sm:$0xff] %vm4854_vm7, %v4741_v19  ;;  %v4740_v37 = vmax.f32 %v4158_v36, 0.0  ;;  %v10380_v28 = vpop.permute.xlu1 %1954  ;;  %v3076_v53 = vpop.permute.xlu0 %3075  ;;  %v2267_v7 = vsel %vm265_vm0, %v771_v51, %v12854_v33  ;;  %v5243_v19 = vmax.f32 %v4993_v39, %v5121_v17  ;;  %v772_v51 = vld [vmem:[#allocation2 + $0x308] sm:$0xff] }
 0x3b5   : > { %v5310_v0 = vmax.f32 %v5308_v42, %v5309_v55  ;;  %v3541_v9 = vsel %vm3492_vm5, %v3412_v24, %v3076_v53  ;;  %v10410_v55 = vsel %vm2326_vm3, %v2267_v7, %v10195_v40 }
 0x3b6   : > { %4869 = vst.msk [vmem:[#allocation3 + $0x70] sm:$0xff] %vm4854_vm7, %v4740_v37  ;;  %2729 = vrot.lane.b32.xlu1 %v10331_v52, %s7998_s24  ;;  %2727 = vrot.lane.b32.xlu0 %v10319_v35, %s7998_s24 }
 0x3b7   : > { %5456 = vst.msk [vmem:[#allocation4 + $0x31] sm:$0xff] %vm4854_vm7, %v5310_v0  ;;  %7607 = vmatprep.mubr.msk.f32.mxu0 %vm3632_vm6, %v3541_v9 }
 0x3b8   : > { %v10394_v4 = vpop.permute.xlu1 %1956  ;;  %v3078_v26 = vpop.permute.xlu0 %3077 }
 0x3b9   : > { %v3542_v59 = vsel %vm3492_vm5, %v3413_v41, %v3078_v26 }
 0x3ba   : > { %1994 = vrot.lane.b32.xlu1 %v1072_v18, %s7997_s23  ;;  %3115 = vrot.lane.b32.xlu0 %v10398_v3, %s7999_s25  ;;  %v5311_v18 = vsel %vm4854_vm7, %v5243_v19, -inf  ;;  %v773_v19 = vld [vmem:[#allocation2 + $0x310] sm:$0xff] }
 0x3bb   : > { %v7561_v23 = vpop.f32.mrf.mxu0  ;;  %7608 = vmatmul.mubr.msk.f32.gmra.mxu0 %vm3632_vm6, %v3542_v59  ;;  %v1074_v59 = vld [vmem:[#allocation2 + $0x43a] sm:$0xff] }
 0x3bc   : > { %v4173_v57 = vadd.f32 %v7561_v23, %v10086_v46  ;;  %v2694_v36 = vpop.permute.xlu1 %2693  ;;  %v2692_v42 = vpop.permute.xlu0 %2691 }
 0x3bd   : > { %v4997_v24 = vld [vmem:[#allocation3 + $0x70] ss:$2 sm:$0xff]  ;;  %v5125_v37 = vld [vmem:[#allocation3 + $0x71] ss:$2 sm:$0xff]  ;;  %v4167_v53 = vpop.f32.mrf.mxu0  ;;  %v3414_v40 = vsel %vm3363_vm4, %v9913_v34, %v2692_v42  ;;  %v12855_v34 = vld [vmem:[#allocation47_spill] sm:$0xff] }
 0x3be   : > { %v5245_v16 = vmax.f32 %v4997_v24, %v5125_v37  ;;  %v4743_v0 = vmax.f32 %v4173_v57, 0.0  ;;  %v4168_v9 = vadd.f32 %v10086_v46, %v4167_v53  ;;  %1996 = vrot.lane.b32.xlu1 %v1073_v30, %s7997_s23  ;;  %3117 = vrot.lane.b32.xlu0 %v10410_v55, %s7999_s25  ;;  %v2268_v23 = vsel %vm265_vm0, %v772_v51, %v12855_v34  ;;  %v1075_v37 = vld [vmem:[#allocation2 + $0x442] sm:$0xff] }
 0x3bf   : > { %v3415_v30 = vsel %vm3363_vm4, %v9924_v56, %v2694_v36  ;;  %v10439_v57 = vsel %vm2326_vm3, %v2268_v23, %v10222_v44  ;;  %v12856_v56 = vld [vmem:[#allocation46_spill] sm:$0xff] }
 0x3c0   : > { %v5312_v45 = vsel %vm4854_vm7, %v5245_v16, -inf  ;;  %4872 = vst.msk [vmem:[#allocation3 + $0x88] sm:$0xff] %vm4854_vm7, %v4743_v0  ;;  %v4742_v21 = vmax.f32 %v4168_v9, 0.0  ;;  %v10421_v41 = vpop.permute.xlu1 %1958  ;;  %v3080_v26 = vpop.permute.xlu0 %3079  ;;  %v2269_v36 = vsel %vm265_vm0, %v773_v19, %v12856_v56 }
 0x3c1   : > { %v5313_v39 = vmax.f32 %v5311_v18, %v5312_v45  ;;  %v3543_v17 = vsel %vm3492_vm5, %v3414_v40, %v3080_v26  ;;  %v10451_v44 = vsel %vm2326_vm3, %v2269_v36, %v10236_v31  ;;  %v774_v31 = vld [vmem:[#allocation2 + $0x320] sm:$0xff] }
 0x3c2   : > { %4871 = vst.msk [vmem:[#allocation3 + $0x80] sm:$0xff] %vm4854_vm7, %v4742_v21  ;;  %2733 = vrot.lane.b32.xlu1 %v10369_v29, %s7998_s24  ;;  %2731 = vrot.lane.b32.xlu0 %v10357_v5, %s7998_s24 }
 0x3c3   : > { %7610 = vmatprep.mubr.msk.f32.mxu0 %vm3632_vm6, %v3543_v17  ;;  %5457 = vst.msk [vmem:[#allocation4 + $0x39] sm:$0xff] %vm4854_vm7, %v5313_v39  ;;  %v1076_v17 = vld [vmem:[#allocation2 + $0x44a] sm:$0xff] }
 0x3c4   : > { %v10435_v33 = vpop.permute.xlu1 %1960  ;;  %v3082_v7 = vpop.permute.xlu0 %3081 }
 0x3c5   : > { %v3544_v42 = vsel %vm3492_vm5, %v3415_v30, %v3082_v7  ;;  %v775_v7 = vld [vmem:[#allocation2 + $0x328] sm:$0xff] }
 0x3c6   : > { %1998 = vrot.lane.b32.xlu1 %v1074_v59, %s7997_s23  ;;  %3119 = vrot.lane.b32.xlu0 %v10439_v57, %s7999_s25  ;;  %v12857_v59 = vld [vmem:[#allocation49_spill] sm:$0xff] }
 0x3c7   : > { %v7564_v24 = vpop.f32.mrf.mxu0  ;;  %7611 = vmatmul.mubr.msk.f32.gmra.mxu0 %vm3632_vm6, %v3544_v42 }
 0x3c8   : > { %v4183_v53 = vadd.f32 %v7564_v24, %v10086_v46  ;;  %v2698_v16 = vpop.permute.xlu1 %2697  ;;  %v2696_v0 = vpop.permute.xlu0 %2695 }
 0x3c9   : > { %v4177_v9 = vpop.f32.mrf.mxu0  ;;  %v3416_v40 = vsel %vm3363_vm4, %v9947_v43, %v2696_v0  ;;  %v2270_v43 = vsel %vm265_vm0, %v774_v31, %v12857_v59  ;;  %v3417_v34 = vsel %vm3363_vm4, %v9958_v2, %v2698_v16  ;;  %v12858_v2 = vld [vmem:[#allocation48_spill] sm:$0xff] }
 0x3ca   : > { %v4745_v18 = vmax.f32 %v4183_v53, 0.0  ;;  %v4178_v45 = vadd.f32 %v10086_v46, %v4177_v9  ;;  %2000 = vrot.lane.b32.xlu1 %v1075_v37, %s7997_s23  ;;  %3121 = vrot.lane.b32.xlu0 %v10451_v44, %s7999_s25  ;;  %v10477_v19 = vsel %vm2326_vm3, %v2270_v43, %v10263_v48  ;;  %v1077_v37 = vld [vmem:[#allocation2 + $0x452] sm:$0xff]  ;;  %v2271_v56 = vsel %vm265_vm0, %v775_v7, %v12858_v2 }
 0x3cb   : > { %v10489_v48 = vsel %vm2326_vm3, %v2271_v56, %v10277_v61  ;;  %v776_v61 = vld [vmem:[#allocation2 + $0x330] sm:$0xff] }
 0x3cc   : > { %4874 = vst.msk [vmem:[#allocation3 + $0x98] sm:$0xff] %vm4854_vm7, %v4745_v18  ;;  %v4744_v21 = vmax.f32 %v4178_v45, 0.0  ;;  %v10460_v26 = vpop.permute.xlu1 %1962  ;;  %v3084_v51 = vpop.permute.xlu0 %3083  ;;  %v12860_v56 = vld [vmem:[#allocation50_spill] sm:$0xff] }
 0x3cd   : > { %v3545_v39 = vsel %vm3492_vm5, %v3416_v40, %v3084_v51 }
 0x3ce   : > { %4873 = vst.msk [vmem:[#allocation3 + $0x90] sm:$0xff] %vm4854_vm7, %v4744_v21  ;;  %2737 = vrot.lane.b32.xlu1 %v10410_v55, %s7998_s24  ;;  %2735 = vrot.lane.b32.xlu0 %v10398_v3, %s7998_s24 }
 0x3cf   : > { %7613 = vmatprep.mubr.msk.f32.mxu0 %vm3632_vm6, %v3545_v39  ;;  %v1078_v39 = vld [vmem:[#allocation2 + $0x462] sm:$0xff] }
 0x3d0   : > { %v10473_v23 = vpop.permute.xlu1 %1964  ;;  %v3086_v30 = vpop.permute.xlu0 %3085 }
 0x3d1   : > { %v3546_v42 = vsel %vm3492_vm5, %v3417_v34, %v3086_v30  ;;  %v777_v30 = vld [vmem:[#allocation2 + $0x338] sm:$0xff] }
 0x3d2   : > { %2002 = vrot.lane.b32.xlu1 %v1076_v17, %s7997_s23  ;;  %3123 = vrot.lane.b32.xlu0 %v10477_v19, %s7999_s25  ;;  %v12859_v17 = vld [vmem:[#allocation51_spill] sm:$0xff] }
 0x3d3   : > { %v7567_v24 = vpop.f32.mrf.mxu0  ;;  %7614 = vmatmul.mubr.msk.f32.gmra.mxu0 %vm3632_vm6, %v3546_v42  ;;  %v4999_v42 = vld [vmem:[#allocation3 + $0x80] ss:$2 sm:$0xff] }
 0x3d4   : > { %v4193_v36 = vadd.f32 %v7567_v24, %v10086_v46  ;;  %v2702_v53 = vpop.permute.xlu1 %2701  ;;  %v2700_v16 = vpop.permute.xlu0 %2699  ;;  %v5127_v24 = vld [vmem:[#allocation3 + $0x81] ss:$2 sm:$0xff] }
 0x3d5   : > { %v4187_v0 = vpop.f32.mrf.mxu0  ;;  %v3418_v45 = vsel %vm3363_vm4, %v9981_v6, %v2700_v16  ;;  %v2272_v6 = vsel %vm265_vm0, %v776_v61, %v12859_v17  ;;  %v3419_v59 = vsel %vm3363_vm4, %v9992_v49, %v2702_v53  ;;  %v1079_v49 = vld [vmem:[#allocation2 + $0x46a] sm:$0xff]  ;;  %v5246_v53 = vmax.f32 %v4999_v42, %v5127_v24 }
 0x3d6   : > { %v4747_v9 = vmax.f32 %v4193_v36, 0.0  ;;  %v4188_v18 = vadd.f32 %v10086_v46, %v4187_v0  ;;  %2004 = vrot.lane.b32.xlu1 %v1077_v37, %s7997_s23  ;;  %3125 = vrot.lane.b32.xlu0 %v10489_v48, %s7999_s25  ;;  %v10515_v7 = vsel %vm2326_vm3, %v2272_v6, %v10302_v47  ;;  %v2273_v36 = vsel %vm265_vm0, %v777_v30, %v12860_v56  ;;  %v778_v30 = vld [vmem:[#allocation2 + $0x348] sm:$0xff] }
 0x3d8   : > { %4876 = vst.msk [vmem:[#allocation3 + $0xa8] sm:$0xff] %vm4854_vm7, %v4747_v9  ;;  %v4746_v40 = vmax.f32 %v4188_v18, 0.0  ;;  %v10498_v21 = vpop.permute.xlu1 %1966  ;;  %v3088_v51 = vpop.permute.xlu0 %3087  ;;  %v10527_v9 = vsel %vm2326_vm3, %v2273_v36, %v10315_v58 }
 0x3d9   : > { %v3547_v31 = vsel %vm3492_vm5, %v3418_v45, %v3088_v51 }
 0x3da   : > { %4875 = vst.msk [vmem:[#allocation3 + $0xa0] sm:$0xff] %vm4854_vm7, %v4746_v40  ;;  %2741 = vrot.lane.b32.xlu1 %v10451_v44, %s7998_s24  ;;  %2739 = vrot.lane.b32.xlu0 %v10439_v57, %s7998_s24 }
 0x3db   : > { %7616 = vmatprep.mubr.msk.f32.mxu0 %vm3632_vm6, %v3547_v31 }
 0x3dc   : > { %v10511_v43 = vpop.permute.xlu1 %1968  ;;  %v3090_v34 = vpop.permute.xlu0 %3089 }
 0x3dd   : > { %v3548_v37 = vsel %vm3492_vm5, %v3419_v59, %v3090_v34 }
 0x3de   : > { %2006 = vrot.lane.b32.xlu1 %v1078_v39, %s7997_s23  ;;  %3127 = vrot.lane.b32.xlu0 %v10515_v7, %s7999_s25  ;;  %v5314_v39 = vsel %vm4854_vm7, %v5246_v53, -inf  ;;  %v779_v53 = vld [vmem:[#allocation2 + $0x350] sm:$0xff] }
 0x3df   : > { %v7570_v2 = vpop.f32.mrf.mxu0  ;;  %7617 = vmatmul.mubr.msk.f32.gmra.mxu0 %vm3632_vm6, %v3548_v37  ;;  %v12861_v37 = vld [vmem:[#allocation53_spill] sm:$0xff] }
 0x3e0   : > { %v4203_v47 = vadd.f32 %v7570_v2, %v10086_v46  ;;  %v2706_v16 = vpop.permute.xlu1 %2705  ;;  %v2704_v0 = vpop.permute.xlu0 %2703  ;;  %v2274_v2 = vsel %vm265_vm0, %v778_v30, %v12861_v37 }
 0x3e1   : > { %v5003_v18 = vld [vmem:[#allocation3 + $0xa0] ss:$2 sm:$0xff]  ;;  %v5131_v45 = vld [vmem:[#allocation3 + $0xa1] ss:$2 sm:$0xff]  ;;  %v4197_v40 = vpop.f32.mrf.mxu0  ;;  %v3420_v58 = vsel %vm3363_vm4, %v10015_v15, %v2704_v0  ;;  %v5001_v0 = vld [vmem:[#allocation3 + $0x90] ss:$2 sm:$0xff] }
 0x3e2   : > { %v5248_v51 = vmax.f32 %v5003_v18, %v5131_v45  ;;  %v4749_v61 = vmax.f32 %v4203_v47, 0.0  ;;  %v4198_v31 = vadd.f32 %v10086_v46, %v4197_v40  ;;  %2008 = vrot.lane.b32.xlu1 %v1079_v49, %s7997_s23  ;;  %3129 = vrot.lane.b32.xlu0 %v10527_v9, %s7999_s25  ;;  %v1080_v15 = vld [vmem:[#allocation2 + $0x472] sm:$0xff]  ;;  %v3421_v49 = vsel %vm3363_vm4, %v10026_v11, %v2706_v16  ;;  %v5129_v18 = vld [vmem:[#allocation3 + $0x91] ss:$2 sm:$0xff] }
 0x3e3   : > { %v10556_v47 = vsel %vm2326_vm3, %v2274_v2, %v10340_v60  ;;  %v1081_v11 = vld [vmem:[#allocation2 + $0x47a] sm:$0xff] }
 0x3e4   : > { %v5315_v17 = vsel %vm4854_vm7, %v5248_v51, -inf  ;;  %4878 = vst.msk [vmem:[#allocation3 + $0xb8] sm:$0xff] %vm4854_vm7, %v4749_v61  ;;  %v4748_v6 = vmax.f32 %v4198_v31, 0.0  ;;  %v10538_v59 = vpop.permute.xlu1 %1970  ;;  %v3092_v34 = vpop.permute.xlu0 %3091  ;;  %v12862_v16 = vld [vmem:[#allocation52_spill] sm:$0xff]  ;;  %v5247_v61 = vmax.f32 %v5001_v0, %v5129_v18 }
 0x3e5   : > { %v5316_v42 = vmax.f32 %v5314_v39, %v5315_v17  ;;  %v3549_v24 = vsel %vm3492_vm5, %v3420_v58, %v3092_v34  ;;  %v2275_v51 = vsel %vm265_vm0, %v779_v53, %v12862_v16  ;;  %v780_v53 = vld [vmem:[#allocation2 + $0x358] sm:$0xff] }
 0x3e6   : > { %4877 = vst.msk [vmem:[#allocation3 + $0xb0] sm:$0xff] %vm4854_vm7, %v4748_v6  ;;  %2745 = vrot.lane.b32.xlu1 %v10489_v48, %s7998_s24  ;;  %2743 = vrot.lane.b32.xlu0 %v10477_v19, %s7998_s24  ;;  %v10568_v17 = vsel %vm2326_vm3, %v2275_v51, %v10353_v22 }
 0x3e7   : > { %5458 = vst.msk [vmem:[#allocation4 + $0x49] sm:$0xff] %vm4854_vm7, %v5316_v42  ;;  %7619 = vmatprep.mubr.msk.f32.mxu0 %vm3632_vm6, %v3549_v24 }
 0x3e8   : > { %v10552_v56 = vpop.permute.xlu1 %1972  ;;  %v3094_v36 = vpop.permute.xlu0 %3093 }
 0x3e9   : > { %v3550_v45 = vsel %vm3492_vm5, %v3421_v49, %v3094_v36 }
 0x3ea   : > { %2010 = vrot.lane.b32.xlu1 %v1080_v15, %s7997_s23  ;;  %3131 = vrot.lane.b32.xlu0 %v10556_v47, %s7999_s25  ;;  %v5317_v15 = vsel %vm4854_vm7, %v5247_v61, -inf  ;;  %v781_v61 = vld [vmem:[#allocation2 + $0x360] sm:$0xff] }
 0x3eb   : > { %v7573_v40 = vpop.f32.mrf.mxu0  ;;  %7620 = vmatmul.mubr.msk.f32.gmra.mxu0 %vm3632_vm6, %v3550_v45  ;;  %v1082_v45 = vld [vmem:[#allocation2 + $0x48a] sm:$0xff] }
 0x3ec   : > { %v4213_v60 = vadd.f32 %v7573_v40, %v10086_v46  ;;  %v2710_v31 = vpop.permute.xlu1 %2709  ;;  %v2708_v39 = vpop.permute.xlu0 %2707 }
 0x3ed   : > { %v5005_v58 = vld [vmem:[#allocation3 + $0xb0] ss:$2 sm:$0xff]  ;;  %v5133_v6 = vld [vmem:[#allocation3 + $0xb1] ss:$2 sm:$0xff]  ;;  %v4207_v34 = vpop.f32.mrf.mxu0  ;;  %v3422_v22 = vsel %vm3363_vm4, %v10049_v12, %v2708_v39  ;;  %v12863_v12 = vld [vmem:[#allocation55_spill] sm:$0xff] }
 0x3ee   : > { %v5249_v30 = vmax.f32 %v5005_v58, %v5133_v6  ;;  %v4751_v42 = vmax.f32 %v4213_v60, 0.0  ;;  %v4208_v24 = vadd.f32 %v10086_v46, %v4207_v34  ;;  %2012 = vrot.lane.b32.xlu1 %v1081_v11, %s7997_s23  ;;  %3133 = vrot.lane.b32.xlu0 %v10568_v17, %s7999_s25  ;;  %v2276_v40 = vsel %vm265_vm0, %v780_v53, %v12863_v12  ;;  %v1083_v6 = vld [vmem:[#allocation2 + $0x492] sm:$0xff] }
 0x3ef   : > { %v3423_v11 = vsel %vm3363_vm4, %v10060_v10, %v2710_v31  ;;  %v10597_v60 = vsel %vm2326_vm3, %v2276_v40, %v10380_v28  ;;  %v12864_v10 = vld [vmem:[#allocation54_spill] sm:$0xff] }
 0x3f0   : > { %v5318_v37 = vsel %vm4854_vm7, %v5249_v30, -inf  ;;  %4880 = vst.msk [vmem:[#allocation3 + $0xc8] sm:$0xff] %vm4854_vm7, %v4751_v42  ;;  %v4750_v2 = vmax.f32 %v4208_v24, 0.0  ;;  %v10579_v49 = vpop.permute.xlu1 %1974  ;;  %v3096_v36 = vpop.permute.xlu0 %3095  ;;  %v2277_v31 = vsel %vm265_vm0, %v781_v61, %v12864_v10  ;;  %v782_v53 = vld [vmem:[#allocation2 + $0x370] sm:$0xff] }
 0x3f1   : > { %v5319_v0 = vmax.f32 %v5317_v15, %v5318_v37  ;;  %v3551_v18 = vsel %vm3492_vm5, %v3422_v22, %v3096_v36  ;;  %v10609_v28 = vsel %vm2326_vm3, %v2277_v31, %v10394_v4  ;;  %v10611_v37 = vld [vmem:[#allocation8] ss:$0 sm:$0xff] }
 0x3f2   : > { %4879 = vst.msk [vmem:[#allocation3 + $0xc0] sm:$0xff] %vm4854_vm7, %v4750_v2  ;;  %2749 = vrot.lane.b32.xlu1 %v10527_v9, %s7998_s24  ;;  %2747 = vrot.lane.b32.xlu0 %v10515_v7, %s7998_s24 }
 0x3f3   : > { %7622 = vmatprep.mubr.msk.f32.mxu0 %vm3632_vm6, %v3551_v18  ;;  %5459 = vst.msk [vmem:[#allocation4 + $0x51] sm:$0xff] %vm4854_vm7, %v5319_v0  ;;  %v1084_v18 = vld [vmem:[#allocation2 + $0x49a] sm:$0xff] }
 0x3f4   : > { %v10593_v16 = vpop.permute.xlu1 %1976  ;;  %v3098_v51 = vpop.permute.xlu0 %3097 }
 0x3f5   : > { %v3552_v39 = vsel %vm3492_vm5, %v3423_v11, %v3098_v51  ;;  %v783_v51 = vld [vmem:[#allocation2 + $0x378] sm:$0xff] }
 0x3f6   : > { %2014 = vrot.lane.b32.xlu1 %v1082_v45, %s7997_s23  ;;  %3135 = vrot.lane.b32.xlu0 %v10597_v60, %s7999_s25  ;;  %v12865_v45 = vld [vmem:[#allocation57_spill] sm:$0xff] }
 0x3f7   : > { %v7576_v58 = vpop.f32.mrf.mxu0  ;;  %7623 = vmatmul.mubr.msk.f32.gmra.mxu0 %vm3632_vm6, %v3552_v39 }
 0x3f8   : > { %v4223_v34 = vadd.f32 %v7576_v58, %v10086_v46  ;;  %v2714_v30 = vpop.permute.xlu1 %2713  ;;  %v2712_v42 = vpop.permute.xlu0 %2711 }
 0x3f9   : > { %v4217_v24 = vpop.f32.mrf.mxu0  ;;  %v3424_v46 = vsel %vm3363_vm4, %v10083_v63, %v2712_v42  ;;  %v2278_v63 = vsel %vm265_vm0, %v782_v53, %v12865_v45  ;;  %v3425_v12 = vsel %vm3363_vm4, %v10097_v27, %v2714_v30  ;;  %v12866_v27 = vld [vmem:[#allocation56_spill] sm:$0xff] }
 0x3fa   : > { %v4753_v15 = vmax.f32 %v4223_v34, 0.0  ;;  %v4218_v22 = vadd.f32 %v10611_v37, %v4217_v24  ;;  %2016 = vrot.lane.b32.xlu1 %v1083_v6, %s7997_s23  ;;  %3137 = vrot.lane.b32.xlu0 %v10609_v28, %s7999_s25  ;;  %v10637_v61 = vsel %vm2326_vm3, %v2278_v63, %v10421_v41  ;;  %v1085_v6 = vld [vmem:[#allocation2 + $0x4a2] sm:$0xff]  ;;  %v2279_v10 = vsel %vm265_vm0, %v783_v51, %v12866_v27 }
 0x3fb   : > { %v10649_v41 = vsel %vm2326_vm3, %v2279_v10, %v10435_v33  ;;  %v784_v33 = vld [vmem:[#allocation2 + $0x380] sm:$0xff]  ;;  %v12868_v10 = vld [vmem:[#allocation58_spill] sm:$0xff] }
 0x3fc   : > { %4882 = vst.msk [vmem:[#allocation3 + $0xd8] sm:$0xff] %vm4854_vm7, %v4753_v15  ;;  %v4752_v2 = vmax.f32 %v4218_v22, 0.0  ;;  %v10620_v36 = vpop.permute.xlu1 %1978  ;;  %v3100_v4 = vpop.permute.xlu0 %3099 }
 0x3fd   : > { %v3553_v0 = vsel %vm3492_vm5, %v3424_v46, %v3100_v4 }
 0x3fe   : > { %4881 = vst.msk [vmem:[#allocation3 + $0xd0] sm:$0xff] %vm4854_vm7, %v4752_v2  ;;  %2753 = vrot.lane.b32.xlu1 %v10568_v17, %s7998_s24  ;;  %2751 = vrot.lane.b32.xlu0 %v10556_v47, %s7998_s24 }
 0x3ff   : > { %7625 = vmatprep.mubr.msk.f32.mxu0 %vm3632_vm6, %v3553_v0  ;;  %v1086_v0 = vld [vmem:[#allocation2 + $0x4b2] sm:$0xff] }
 0x400   : > { %v10633_v40 = vpop.permute.xlu1 %1980  ;;  %v3102_v11 = vpop.permute.xlu0 %3101 }
 0x401   : > { %v3554_v39 = vsel %vm3492_vm5, %v3425_v12, %v3102_v11  ;;  %v785_v11 = vld [vmem:[#allocation2 + $0x388] sm:$0xff] }
 0x402   : > { %2018 = vrot.lane.b32.xlu1 %v1084_v18, %s7997_s23  ;;  %3139 = vrot.lane.b32.xlu0 %v10637_v61, %s7999_s25  ;;  %v12867_v18 = vld [vmem:[#allocation59_spill] sm:$0xff] }
 0x403   : > { %v7579_v58 = vpop.f32.mrf.mxu0  ;;  %7626 = vmatmul.mubr.msk.f32.gmra.mxu0 %vm3632_vm6, %v3554_v39  ;;  %v5007_v39 = vld [vmem:[#allocation3 + $0xc0] ss:$2 sm:$0xff] }
 0x404   : > { %v4233_v31 = vadd.f32 %v10611_v37, %v7579_v58  ;;  %v2718_v34 = vpop.permute.xlu1 %2717  ;;  %v2716_v30 = vpop.permute.xlu0 %2715  ;;  %v5135_v58 = vld [vmem:[#allocation3 + $0xc1] ss:$2 sm:$0xff] }
 0x405   : > { %v4227_v42 = vpop.f32.mrf.mxu0  ;;  %v3426_v22 = vsel %vm3363_vm4, %v10123_v14, %v2716_v30  ;;  %v2280_v14 = vsel %vm265_vm0, %v784_v33, %v12867_v18  ;;  %v3427_v45 = vsel %vm3363_vm4, %v10135_v25, %v2718_v34  ;;  %v1087_v25 = vld [vmem:[#allocation2 + $0x4ba] sm:$0xff]  ;;  %v5250_v34 = vmax.f32 %v5007_v39, %v5135_v58 }
 0x406   : > { %v4755_v24 = vmax.f32 %v4233_v31, 0.0  ;;  %v4228_v15 = vadd.f32 %v10611_v37, %v4227_v42  ;;  %2020 = vrot.lane.b32.xlu1 %v1085_v6, %s7997_s23  ;;  %3141 = vrot.lane.b32.xlu0 %v10649_v41, %s7999_s25  ;;  %v10675_v51 = vsel %vm2326_vm3, %v2280_v14, %v10460_v26  ;;  %v2281_v31 = vsel %vm265_vm0, %v785_v11, %v12868_v10  ;;  %v786_v11 = vld [vmem:[#allocation2 + $0x398] sm:$0xff] }
 0x408   : > { %4884 = vst.msk [vmem:[#allocation3 + $0xe8] sm:$0xff] %vm4854_vm7, %v4755_v24  ;;  %v4754_v46 = vmax.f32 %v4228_v15, 0.0  ;;  %v10658_v2 = vpop.permute.xlu1 %1982  ;;  %v3104_v4 = vpop.permute.xlu0 %3103  ;;  %v10687_v24 = vsel %vm2326_vm3, %v2281_v31, %v10473_v23 }
 0x409   : > { %v3555_v53 = vsel %vm3492_vm5, %v3426_v22, %v3104_v4 }
 0x40a   : > { %4883 = vst.msk [vmem:[#allocation3 + $0xe0] sm:$0xff] %vm4854_vm7, %v4754_v46  ;;  %2757 = vrot.lane.b32.xlu1 %v10609_v28, %s7998_s24  ;;  %2755 = vrot.lane.b32.xlu0 %v10597_v60, %s7998_s24 }
 0x40b   : > { %7628 = vmatprep.mubr.msk.f32.mxu0 %vm3632_vm6, %v3555_v53 }
 0x40c   : > { %v10671_v63 = vpop.permute.xlu1 %1984  ;;  %v3106_v12 = vpop.permute.xlu0 %3105 }
 0x40d   : > { %v3556_v6 = vsel %vm3492_vm5, %v3427_v45, %v3106_v12 }
 0x40e   : > { %2022 = vrot.lane.b32.xlu1 %v1086_v0, %s7997_s23  ;;  %3143 = vrot.lane.b32.xlu0 %v10675_v51, %s7999_s25  ;;  %v5320_v0 = vsel %vm4854_vm7, %v5250_v34, -inf  ;;  %v787_v34 = vld [vmem:[#allocation2 + $0x3a0] sm:$0xff] }
 0x40f   : > { %v7582_v27 = vpop.f32.mrf.mxu0  ;;  %7629 = vmatmul.mubr.msk.f32.gmra.mxu0 %vm3632_vm6, %v3556_v6  ;;  %v12869_v6 = vld [vmem:[#allocation61_spill] sm:$0xff] }
 0x410   : > { %v4243_v26 = vadd.f32 %v10611_v37, %v7582_v27  ;;  %v2722_v30 = vpop.permute.xlu1 %2721  ;;  %v2720_v42 = vpop.permute.xlu0 %2719  ;;  %v2282_v27 = vsel %vm265_vm0, %v786_v11, %v12869_v6 }
 0x411   : > { %v5011_v15 = vld [vmem:[#allocation3 + $0xe0] ss:$2 sm:$0xff]  ;;  %v5139_v22 = vld [vmem:[#allocation3 + $0xe1] ss:$2 sm:$0xff]  ;;  %v4237_v46 = vpop.f32.mrf.mxu0  ;;  %v3428_v23 = vsel %vm3363_vm4, %v10161_v20, %v2720_v42  ;;  %v1088_v20 = vld [vmem:[#allocation2 + $0x4c2] sm:$0xff] }
 0x412   : > { %v5252_v4 = vmax.f32 %v5011_v15, %v5139_v22  ;;  %v4757_v33 = vmax.f32 %v4243_v26, 0.0  ;;  %v4238_v53 = vadd.f32 %v10611_v37, %v4237_v46  ;;  %2024 = vrot.lane.b32.xlu1 %v1087_v25, %s7997_s23  ;;  %3145 = vrot.lane.b32.xlu0 %v10687_v24, %s7999_s25  ;;  %v3429_v25 = vsel %vm3363_vm4, %v10173_v54, %v2722_v30  ;;  %v5009_v42 = vld [vmem:[#allocation3 + $0xd0] ss:$2 sm:$0xff]  ;;  %v5137_v15 = vld [vmem:[#allocation3 + $0xd1] ss:$2 sm:$0xff] }
 0x413   : > { %v10716_v26 = vsel %vm2326_vm3, %v2282_v27, %v10498_v21  ;;  %v1089_v54 = vld [vmem:[#allocation2 + $0x4ca] sm:$0xff]  ;;  %v12870_v30 = vld [vmem:[#allocation60_spill] sm:$0xff] }
 0x414   : > { %v5321_v18 = vsel %vm4854_vm7, %v5252_v4, -inf  ;;  %4886 = vst.msk [vmem:[#allocation3 + $0xf8] sm:$0xff] %vm4854_vm7, %v4757_v33  ;;  %v4756_v14 = vmax.f32 %v4238_v53, 0.0  ;;  %v10698_v45 = vpop.permute.xlu1 %1986  ;;  %v3108_v12 = vpop.permute.xlu0 %3107  ;;  %v2283_v4 = vsel %vm265_vm0, %v787_v34, %v12870_v30  ;;  %v5251_v33 = vmax.f32 %v5009_v42, %v5137_v15  ;;  %v788_v34 = vld [vmem:[#allocation2 + $0x3a8] sm:$0xff] }
 0x415   : > { %v5322_v39 = vmax.f32 %v5320_v0, %v5321_v18  ;;  %v3557_v58 = vsel %vm3492_vm5, %v3428_v23, %v3108_v12  ;;  %v10728_v18 = vsel %vm2326_vm3, %v2283_v4, %v10511_v43 }
 0x416   : > { %4885 = vst.msk [vmem:[#allocation3 + $0xf0] sm:$0xff] %vm4854_vm7, %v4756_v14  ;;  %2761 = vrot.lane.b32.xlu1 %v10649_v41, %s7998_s24  ;;  %2759 = vrot.lane.b32.xlu0 %v10637_v61, %s7998_s24 }
 0x417   : > { %5460 = vst.msk [vmem:[#allocation4 + $0x61] sm:$0xff] %vm4854_vm7, %v5322_v39  ;;  %7631 = vmatprep.mubr.msk.f32.mxu0 %vm3632_vm6, %v3557_v58 }
 0x418   : > { %v10712_v10 = vpop.permute.xlu1 %1988  ;;  %v3110_v31 = vpop.permute.xlu0 %3109 }
 0x419   : > { %v3558_v22 = vsel %vm3492_vm5, %v3429_v25, %v3110_v31 }
 0x41a   : > { %2026 = vrot.lane.b32.xlu1 %v1088_v20, %s7997_s23  ;;  %3147 = vrot.lane.b32.xlu0 %v10716_v26, %s7999_s25  ;;  %v5323_v20 = vsel %vm4854_vm7, %v5251_v33, -inf  ;;  %v789_v33 = vld [vmem:[#allocation2 + $0x3b0] sm:$0xff] }
 0x41b   : > { %v7585_v46 = vpop.f32.mrf.mxu0  ;;  %7632 = vmatmul.mubr.msk.f32.gmra.mxu0 %vm3632_vm6, %v3558_v22  ;;  %v1090_v22 = vld [vmem:[#allocation2 + $0x4da] sm:$0xff] }
 0x41c   : > { %v4253_v21 = vadd.f32 %v10611_v37, %v7585_v46  ;;  %v2726_v53 = vpop.permute.xlu1 %2725  ;;  %v2724_v0 = vpop.permute.xlu0 %2723 }
 0x41d   : > { %v5013_v23 = vld [vmem:[#allocation3 + $0xf0] ss:$2 sm:$0xff]  ;;  %v5141_v14 = vld [vmem:[#allocation3 + $0xf1] ss:$2 sm:$0xff]  ;;  %v4247_v12 = vpop.f32.mrf.mxu0  ;;  %v3430_v43 = vsel %vm3363_vm4, %v10199_v1, %v2724_v0  ;;  %v12871_v1 = vld [vmem:[#allocation63_spill] sm:$0xff] }
 0x41e   : > { %v5253_v11 = vmax.f32 %v5013_v23, %v5141_v14  ;;  %v4759_v39 = vmax.f32 %v4253_v21, 0.0  ;;  %v4248_v58 = vadd.f32 %v10611_v37, %v4247_v12  ;;  %2028 = vrot.lane.b32.xlu1 %v1089_v54, %s7997_s23  ;;  %3149 = vrot.lane.b32.xlu0 %v10728_v18, %s7999_s25  ;;  %v2284_v46 = vsel %vm265_vm0, %v788_v34, %v12871_v1  ;;  %v1091_v14 = vld [vmem:[#allocation2 + $0x4e2] sm:$0xff] }
 0x41f   : > { %v3431_v54 = vsel %vm3363_vm4, %v10211_v62, %v2726_v53  ;;  %v10757_v21 = vsel %vm2326_vm3, %v2284_v46, %v10538_v59  ;;  %v12872_v62 = vld [vmem:[#allocation62_spill] sm:$0xff] }
 0x420   : > { %v5324_v6 = vsel %vm4854_vm7, %v5253_v11, -inf  ;;  %4888 = vst.msk [vmem:[#allocation3 + $0x108] sm:$0xff] %vm4854_vm7, %v4759_v39  ;;  %v4758_v27 = vmax.f32 %v4248_v58, 0.0  ;;  %v10739_v25 = vpop.permute.xlu1 %1990  ;;  %v3112_v31 = vpop.permute.xlu0 %3111  ;;  %v2285_v53 = vsel %vm265_vm0, %v789_v33, %v12872_v62 }
 0x421   : > { %v5325_v42 = vmax.f32 %v5323_v20, %v5324_v6  ;;  %v3559_v15 = vsel %vm3492_vm5, %v3430_v43, %v3112_v31  ;;  %v10769_v59 = vsel %vm2326_vm3, %v2285_v53, %v10552_v56  ;;  %v790_v56 = vld [vmem:[#allocation2 + $0x3c0] sm:$0xff] }
 0x422   : > { %4887 = vst.msk [vmem:[#allocation3 + $0x100] sm:$0xff] %vm4854_vm7, %v4758_v27  ;;  %2765 = vrot.lane.b32.xlu1 %v10687_v24, %s7998_s24  ;;  %2763 = vrot.lane.b32.xlu0 %v10675_v51, %s7998_s24 }
 0x423   : > { %7634 = vmatprep.mubr.msk.f32.mxu0 %vm3632_vm6, %v3559_v15  ;;  %5461 = vst.msk [vmem:[#allocation4 + $0x69] sm:$0xff] %vm4854_vm7, %v5325_v42  ;;  %v1092_v15 = vld [vmem:[#allocation2 + $0x4ea] sm:$0xff] }
 0x424   : > { %v10753_v30 = vpop.permute.xlu1 %1992  ;;  %v3114_v4 = vpop.permute.xlu0 %3113 }
 0x425   : > { %v3560_v0 = vsel %vm3492_vm5, %v3431_v54, %v3114_v4  ;;  %v791_v4 = vld [vmem:[#allocation2 + $0x3c8] sm:$0xff] }
 0x426   : > { %2030 = vrot.lane.b32.xlu1 %v1090_v22, %s7997_s23  ;;  %3151 = vrot.lane.b32.xlu0 %v10757_v21, %s7999_s25  ;;  %v12873_v22 = vld [vmem:[#allocation65_spill] sm:$0xff] }
 0x427   : > { %v7588_v23 = vpop.f32.mrf.mxu0  ;;  %7635 = vmatmul.mubr.msk.f32.gmra.mxu0 %vm3632_vm6, %v3560_v0 }
 0x428   : > { %v4263_v12 = vadd.f32 %v10611_v37, %v7588_v23  ;;  %v2730_v11 = vpop.permute.xlu1 %2729  ;;  %v2728_v39 = vpop.permute.xlu0 %2727 }
 0x429   : > { %v4257_v58 = vpop.f32.mrf.mxu0  ;;  %v3432_v43 = vsel %vm3363_vm4, %v10240_v8, %v2728_v39  ;;  %v2286_v8 = vsel %vm265_vm0, %v790_v56, %v12873_v22  ;;  %v3433_v1 = vsel %vm3363_vm4, %v10252_v13, %v2730_v11  ;;  %v12874_v13 = vld [vmem:[#allocation64_spill] sm:$0xff] }
 0x42a   : > { %v4761_v20 = vmax.f32 %v4263_v12, 0.0  ;;  %v4258_v6 = vadd.f32 %v10611_v37, %v4257_v58  ;;  %2032 = vrot.lane.b32.xlu1 %v1091_v14, %s7997_s23  ;;  %3153 = vrot.lane.b32.xlu0 %v10769_v59, %s7999_s25  ;;  %v10795_v33 = vsel %vm2326_vm3, %v2286_v8, %v10579_v49  ;;  %v1093_v14 = vld [vmem:[#allocation2 + $0x4f2] sm:$0xff]  ;;  %v2287_v62 = vsel %vm265_vm0, %v791_v4, %v12874_v13 }
 0x42b   : > { %v10807_v49 = vsel %vm2326_vm3, %v2287_v62, %v10593_v16  ;;  %v792_v16 = vld [vmem:[#allocation2 + $0x3d0] sm:$0xff] }
 0x42c   : > { %4890 = vst.msk [vmem:[#allocation3 + $0x118] sm:$0xff] %vm4854_vm7, %v4761_v20  ;;  %v4760_v27 = vmax.f32 %v4258_v6, 0.0  ;;  %v10778_v31 = vpop.permute.xlu1 %1994  ;;  %v3116_v34 = vpop.permute.xlu0 %3115  ;;  %v12876_v62 = vld [vmem:[#allocation66_spill] sm:$0xff] }
 0x42d   : > { %v3561_v42 = vsel %vm3492_vm5, %v3432_v43, %v3116_v34 }
 0x42e   : > { %4889 = vst.msk [vmem:[#allocation3 + $0x110] sm:$0xff] %vm4854_vm7, %v4760_v27  ;;  %2769 = vrot.lane.b32.xlu1 %v10728_v18, %s7998_s24  ;;  %2767 = vrot.lane.b32.xlu0 %v10716_v26, %s7998_s24 }
 0x42f   : > { %7637 = vmatprep.mubr.msk.f32.mxu0 %vm3632_vm6, %v3561_v42  ;;  %v1094_v42 = vld [vmem:[#allocation2 + $0x502] sm:$0xff] }
 0x430   : > { %v10791_v46 = vpop.permute.xlu1 %1996  ;;  %v3118_v54 = vpop.permute.xlu0 %3117 }
 0x431   : > { %v3562_v0 = vsel %vm3492_vm5, %v3433_v1, %v3118_v54  ;;  %v793_v54 = vld [vmem:[#allocation2 + $0x3d8] sm:$0xff] }
 0x432   : > { %2034 = vrot.lane.b32.xlu1 %v1092_v15, %s7997_s23  ;;  %3155 = vrot.lane.b32.xlu0 %v10795_v33, %s7999_s25  ;;  %v12875_v15 = vld [vmem:[#allocation67_spill] sm:$0xff] }
 0x433   : > { %v7591_v23 = vpop.f32.mrf.mxu0  ;;  %7638 = vmatmul.mubr.msk.f32.gmra.mxu0 %vm3632_vm6, %v3562_v0  ;;  %v5015_v0 = vld [vmem:[#allocation3 + $0x100] ss:$2 sm:$0xff] }
 0x434   : > { %v4273_v53 = vadd.f32 %v10611_v37, %v7591_v23  ;;  %v2734_v12 = vpop.permute.xlu1 %2733  ;;  %v2732_v11 = vpop.permute.xlu0 %2731  ;;  %v5143_v23 = vld [vmem:[#allocation3 + $0x101] ss:$2 sm:$0xff] }
 0x435   : > { %v4267_v39 = vpop.f32.mrf.mxu0  ;;  %v3434_v6 = vsel %vm3363_vm4, %v10281_v32, %v2732_v11  ;;  %v2288_v32 = vsel %vm265_vm0, %v792_v16, %v12875_v15  ;;  %v3435_v22 = vsel %vm3363_vm4, %v10293_v38, %v2734_v12  ;;  %v1095_v38 = vld [vmem:[#allocation2 + $0x50a] sm:$0xff]  ;;  %v5254_v12 = vmax.f32 %v5015_v0, %v5143_v23 }
 0x436   : > { %v4763_v58 = vmax.f32 %v4273_v53, 0.0  ;;  %v4268_v20 = vadd.f32 %v10611_v37, %v4267_v39  ;;  %2036 = vrot.lane.b32.xlu1 %v1093_v14, %s7997_s23  ;;  %3157 = vrot.lane.b32.xlu0 %v10807_v49, %s7999_s25  ;;  %v10833_v4 = vsel %vm2326_vm3, %v2288_v32, %v10620_v36  ;;  %v2289_v53 = vsel %vm265_vm0, %v793_v54, %v12876_v62  ;;  %v794_v54 = vld [vmem:[#allocation2 + $0x3e8] sm:$0xff] }
 0x438   : > { %4892 = vst.msk [vmem:[#allocation3 + $0x128] sm:$0xff] %vm4854_vm7, %v4763_v58  ;;  %v4762_v43 = vmax.f32 %v4268_v20, 0.0  ;;  %v10816_v27 = vpop.permute.xlu1 %1998  ;;  %v3120_v34 = vpop.permute.xlu0 %3119  ;;  %v10845_v58 = vsel %vm2326_vm3, %v2289_v53, %v10633_v40 }
 0x439   : > { %v3563_v56 = vsel %vm3492_vm5, %v3434_v6, %v3120_v34 }
 0x43a   : > { %4891 = vst.msk [vmem:[#allocation3 + $0x120] sm:$0xff] %vm4854_vm7, %v4762_v43  ;;  %2773 = vrot.lane.b32.xlu1 %v10769_v59, %s7998_s24  ;;  %2771 = vrot.lane.b32.xlu0 %v10757_v21, %s7998_s24 }
 0x43b   : > { %7640 = vmatprep.mubr.msk.f32.mxu0 %vm3632_vm6, %v3563_v56 }
 0x43c   : > { %v10829_v8 = vpop.permute.xlu1 %2000  ;;  %v3122_v1 = vpop.permute.xlu0 %3121 }
 0x43d   : > { %v3564_v14 = vsel %vm3492_vm5, %v3435_v22, %v3122_v1 }
 0x43e   : > { %2038 = vrot.lane.b32.xlu1 %v1094_v42, %s7997_s23  ;;  %3159 = vrot.lane.b32.xlu0 %v10833_v4, %s7999_s25  ;;  %v5326_v42 = vsel %vm4854_vm7, %v5254_v12, -inf  ;;  %v795_v12 = vld [vmem:[#allocation2 + $0x3f0] sm:$0xff] }
 0x43f   : > { %v7594_v13 = vpop.f32.mrf.mxu0  ;;  %7641 = vmatmul.mubr.msk.f32.gmra.mxu0 %vm3632_vm6, %v3564_v14  ;;  %v12877_v14 = vld [vmem:[#allocation69_spill] sm:$0xff] }
 0x440   : > { %v4283_v36 = vadd.f32 %v10611_v37, %v7594_v13  ;;  %v2738_v11 = vpop.permute.xlu1 %2737  ;;  %v2736_v39 = vpop.permute.xlu0 %2735  ;;  %v2290_v13 = vsel %vm265_vm0, %v794_v54, %v12877_v14 }
 0x441   : > { %v5019_v20 = vld [vmem:[#allocation3 + $0x120] ss:$2 sm:$0xff]  ;;  %v5147_v6 = vld [vmem:[#allocation3 + $0x121] ss:$2 sm:$0xff]  ;;  %v4277_v43 = vpop.f32.mrf.mxu0  ;;  %v3436_v40 = vsel %vm3363_vm4, %v10319_v35, %v2736_v39  ;;  %v5017_v39 = vld [vmem:[#allocation3 + $0x110] ss:$2 sm:$0xff] }
 0x442   : > { %v5256_v34 = vmax.f32 %v5019_v20, %v5147_v6  ;;  %v4765_v16 = vmax.f32 %v4283_v36, 0.0  ;;  %v4278_v56 = vadd.f32 %v10611_v37, %v4277_v43  ;;  %2040 = vrot.lane.b32.xlu1 %v1095_v38, %s7997_s23  ;;  %3161 = vrot.lane.b32.xlu0 %v10845_v58, %s7999_s25  ;;  %v1096_v35 = vld [vmem:[#allocation2 + $0x512] sm:$0xff]  ;;  %v3437_v38 = vsel %vm3363_vm4, %v10331_v52, %v2738_v11  ;;  %v5145_v20 = vld [vmem:[#allocation3 + $0x111] ss:$2 sm:$0xff] }
 0x443   : > { %v10874_v36 = vsel %vm2326_vm3, %v2290_v13, %v10658_v2  ;;  %v1097_v52 = vld [vmem:[#allocation2 + $0x51a] sm:$0xff] }
 0x444   : > { %v5327_v15 = vsel %vm4854_vm7, %v5256_v34, -inf  ;;  %4894 = vst.msk [vmem:[#allocation3 + $0x138] sm:$0xff] %vm4854_vm7, %v4765_v16  ;;  %v4764_v32 = vmax.f32 %v4278_v56, 0.0  ;;  %v10856_v22 = vpop.permute.xlu1 %2002  ;;  %v3124_v1 = vpop.permute.xlu0 %3123  ;;  %v12878_v11 = vld [vmem:[#allocation68_spill] sm:$0xff]  ;;  %v5255_v16 = vmax.f32 %v5017_v39, %v5145_v20 }
 0x445   : > { %v5328_v0 = vmax.f32 %v5326_v42, %v5327_v15  ;;  %v3565_v23 = vsel %vm3492_vm5, %v3436_v40, %v3124_v1  ;;  %v2291_v34 = vsel %vm265_vm0, %v795_v12, %v12878_v11  ;;  %v796_v12 = vld [vmem:[#allocation2 + $0x3f8] sm:$0xff] }
 0x446   : > { %4893 = vst.msk [vmem:[#allocation3 + $0x130] sm:$0xff] %vm4854_vm7, %v4764_v32  ;;  %2777 = vrot.lane.b32.xlu1 %v10807_v49, %s7998_s24  ;;  %2775 = vrot.lane.b32.xlu0 %v10795_v33, %s7998_s24  ;;  %v10886_v15 = vsel %vm2326_vm3, %v2291_v34, %v10671_v63 }
 0x447   : > { %5462 = vst.msk [vmem:[#allocation4 + $0x79] sm:$0xff] %vm4854_vm7, %v5328_v0  ;;  %7643 = vmatprep.mubr.msk.f32.mxu0 %vm3632_vm6, %v3565_v23 }
 0x448   : > { %v10870_v62 = vpop.permute.xlu1 %2004  ;;  %v3126_v53 = vpop.permute.xlu0 %3125 }
 0x449   : > { %v3566_v6 = vsel %vm3492_vm5, %v3437_v38, %v3126_v53 }
 0x44a   : > { %2042 = vrot.lane.b32.xlu1 %v1096_v35, %s7997_s23  ;;  %3163 = vrot.lane.b32.xlu0 %v10874_v36, %s7999_s25  ;;  %v5329_v35 = vsel %vm4854_vm7, %v5255_v16, -inf  ;;  %v797_v16 = vld [vmem:[#allocation2 + $0x400] sm:$0xff] }
 0x44b   : > { %v7597_v43 = vpop.f32.mrf.mxu0  ;;  %7644 = vmatmul.mubr.msk.f32.gmra.mxu0 %vm3632_vm6, %v3566_v6  ;;  %v1098_v6 = vld [vmem:[#allocation2 + $0x52a] sm:$0xff] }
 0x44c   : > { %v4293_v2 = vadd.f32 %v10611_v37, %v7597_v43  ;;  %v2742_v56 = vpop.permute.xlu1 %2741  ;;  %v2740_v42 = vpop.permute.xlu0 %2739 }
 0x44d   : > { %v5021_v40 = vld [vmem:[#allocation3 + $0x130] ss:$2 sm:$0xff]  ;;  %v5149_v32 = vld [vmem:[#allocation3 + $0x131] ss:$2 sm:$0xff]  ;;  %v4287_v1 = vpop.f32.mrf.mxu0  ;;  %v3438_v63 = vsel %vm3363_vm4, %v10357_v5, %v2740_v42  ;;  %v12879_v5 = vld [vmem:[#allocation71_spill] sm:$0xff] }
 0x44e   : > { %v5257_v54 = vmax.f32 %v5021_v40, %v5149_v32  ;;  %v4767_v0 = vmax.f32 %v4293_v2, 0.0  ;;  %v4288_v23 = vadd.f32 %v10611_v37, %v4287_v1  ;;  %2044 = vrot.lane.b32.xlu1 %v1097_v52, %s7997_s23  ;;  %3165 = vrot.lane.b32.xlu0 %v10886_v15, %s7999_s25  ;;  %v2292_v43 = vsel %vm265_vm0, %v796_v12, %v12879_v5  ;;  %v1099_v32 = vld [vmem:[#allocation2 + $0x532] sm:$0xff] }
 0x44f   : > { %v3439_v52 = vsel %vm3363_vm4, %v10369_v29, %v2742_v56  ;;  %v10915_v2 = vsel %vm2326_vm3, %v2292_v43, %v10698_v45  ;;  %v12880_v29 = vld [vmem:[#allocation70_spill] sm:$0xff] }
 0x450   : > { %v5330_v14 = vsel %vm4854_vm7, %v5257_v54, -inf  ;;  %4896 = vst.msk [vmem:[#allocation3 + $0x148] sm:$0xff] %vm4854_vm7, %v4767_v0  ;;  %v4766_v13 = vmax.f32 %v4288_v23, 0.0  ;;  %v10897_v38 = vpop.permute.xlu1 %2006  ;;  %v3128_v53 = vpop.permute.xlu0 %3127  ;;  %v2293_v56 = vsel %vm265_vm0, %v797_v16, %v12880_v29 }
 0x451   : > { %v5331_v39 = vmax.f32 %v5329_v35, %v5330_v14  ;;  %v3567_v20 = vsel %vm3492_vm5, %v3438_v63, %v3128_v53  ;;  %v10927_v45 = vsel %vm2326_vm3, %v2293_v56, %v10712_v10  ;;  %v798_v10 = vld [vmem:[#allocation2 + $0x410] sm:$0xff] }
 0x452   : > { %4895 = vst.msk [vmem:[#allocation3 + $0x140] sm:$0xff] %vm4854_vm7, %v4766_v13  ;;  %2781 = vrot.lane.b32.xlu1 %v10845_v58, %s7998_s24  ;;  %2779 = vrot.lane.b32.xlu0 %v10833_v4, %s7998_s24 }
 0x453   : > { %7646 = vmatprep.mubr.msk.f32.mxu0 %vm3632_vm6, %v3567_v20  ;;  %5463 = vst.msk [vmem:[#allocation4 + $0x81] sm:$0xff] %vm4854_vm7, %v5331_v39  ;;  %v1100_v20 = vld [vmem:[#allocation2 + $0x53a] sm:$0xff] }
 0x454   : > { %v10911_v11 = vpop.permute.xlu1 %2008  ;;  %v3130_v34 = vpop.permute.xlu0 %3129 }
 0x455   : > { %v3568_v42 = vsel %vm3492_vm5, %v3439_v52, %v3130_v34  ;;  %v799_v34 = vld [vmem:[#allocation2 + $0x418] sm:$0xff] }
 0x456   : > { %2046 = vrot.lane.b32.xlu1 %v1098_v6, %s7997_s23  ;;  %3167 = vrot.lane.b32.xlu0 %v10915_v2, %s7999_s25  ;;  %v12881_v6 = vld [vmem:[#allocation73_spill] sm:$0xff] }
 0x457   : > { %v7600_v40 = vpop.f32.mrf.mxu0  ;;  %7647 = vmatmul.mubr.msk.f32.gmra.mxu0 %vm3632_vm6, %v3568_v42 }
 0x458   : > { %v4303_v1 = vadd.f32 %v10611_v37, %v7600_v40  ;;  %v2746_v54 = vpop.permute.xlu1 %2745  ;;  %v2744_v0 = vpop.permute.xlu0 %2743 }
 0x459   : > { %v4297_v23 = vpop.f32.mrf.mxu0  ;;  %v3440_v63 = vsel %vm3363_vm4, %v10398_v3, %v2744_v0  ;;  %v2294_v3 = vsel %vm265_vm0, %v798_v10, %v12881_v6  ;;  %v3441_v5 = vsel %vm3363_vm4, %v10410_v55, %v2746_v54  ;;  %v12882_v55 = vld [vmem:[#allocation72_spill] sm:$0xff]  ;;  %v12884_v6 = vld [vmem:[#allocation75_spill] sm:$0xff] }
 0x45a   : > { %v4769_v35 = vmax.f32 %v4303_v1, 0.0  ;;  %v4298_v14 = vadd.f32 %v10611_v37, %v4297_v23  ;;  %2048 = vrot.lane.b32.xlu1 %v1099_v32, %s7997_s23  ;;  %3169 = vrot.lane.b32.xlu0 %v10927_v45, %s7999_s25  ;;  %v10953_v16 = vsel %vm2326_vm3, %v2294_v3, %v10739_v25  ;;  %v1101_v32 = vld [vmem:[#allocation2 + $0x542] sm:$0xff]  ;;  %v2295_v29 = vsel %vm265_vm0, %v799_v34, %v12882_v55  ;;  %v5151_v55 = vld [vmem:[#allocation3 + $0x141] ss:$2 sm:$0xff] }
 0x45b   : > { %v10965_v25 = vsel %vm2326_vm3, %v2295_v29, %v10753_v30  ;;  %v801_v30 = vld [vmem:[#allocation2 + $0x428] sm:$0xff]  ;;  %v800_v10 = vld [vmem:[#allocation2 + $0x420] sm:$0xff] }
 0x45c   : > { %4898 = vst.msk [vmem:[#allocation3 + $0x158] sm:$0xff] %vm4854_vm7, %v4769_v35  ;;  %v4768_v13 = vmax.f32 %v4298_v14, 0.0  ;;  %v10936_v53 = vpop.permute.xlu1 %2010  ;;  %v3132_v12 = vpop.permute.xlu0 %3131  ;;  %v2296_v3 = vsel %vm265_vm0, %v800_v10, %v12884_v6  ;;  %v12885_v10 = vld [vmem:[#allocation76_spill] sm:$0xff] }
 0x45d   : > { %v3569_v39 = vsel %vm3492_vm5, %v3440_v63, %v3132_v12 }
 0x45e   : > { %4897 = vst.msk [vmem:[#allocation3 + $0x150] sm:$0xff] %vm4854_vm7, %v4768_v13  ;;  %2785 = vrot.lane.b32.xlu1 %v10886_v15, %s7998_s24  ;;  %2783 = vrot.lane.b32.xlu0 %v10874_v36, %s7998_s24 }
 0x45f   : > { %7649 = vmatprep.mubr.msk.f32.mxu0 %vm3632_vm6, %v3569_v39 }
 0x460   : > { %v10949_v43 = vpop.permute.xlu1 %2012  ;;  %v3134_v52 = vpop.permute.xlu0 %3133 }
 0x461   : > { %v3570_v42 = vsel %vm3492_vm5, %v3441_v5, %v3134_v52 }
 0x462   : > { %2050 = vrot.lane.b32.xlu1 %v1100_v20, %s7997_s23  ;;  %3171 = vrot.lane.b32.xlu0 %v10953_v16, %s7999_s25  ;;  %v12883_v20 = vld [vmem:[#allocation74_spill] sm:$0xff] }
 0x463   : > { %v7603_v40 = vpop.f32.mrf.mxu0  ;;  %7650 = vmatmul.mubr.msk.f32.gmra.mxu0 %vm3632_vm6, %v3570_v42  ;;  %v10993_v42 = vsel %vm2326_vm3, %v2296_v3, %v10778_v31  ;;  %v802_v31 = vld [vmem:[#allocation2 + $0x438] sm:$0xff] }
 0x464   : > { %v4313_v56 = vadd.f32 %v10611_v37, %v7603_v40  ;;  %v2750_v1 = vpop.permute.xlu1 %2749  ;;  %v2748_v54 = vpop.permute.xlu0 %2747 }
 0x465   : > { %v4307_v0 = vpop.f32.mrf.mxu0  ;;  %v3442_v14 = vsel %vm3363_vm4, %v10439_v57, %v2748_v54  ;;  %v2297_v57 = vsel %vm265_vm0, %v801_v30, %v12883_v20  ;;  %v3443_v5 = vsel %vm3363_vm4, %v10451_v44, %v2750_v1  ;;  %v12886_v20 = vld [vmem:[#allocation77_spill] sm:$0xff] }
 0x466   : > { %v4771_v23 = vmax.f32 %v4313_v56, 0.0  ;;  %v4308_v35 = vadd.f32 %v10611_v37, %v4307_v0  ;;  %2052 = vrot.lane.b32.xlu1 %v1101_v32, %s7997_s23  ;;  %3173 = vrot.lane.b32.xlu0 %v10965_v25, %s7999_s25  ;;  %v10997_v40 = vsel %vm2326_vm3, %v2297_v57, %v10791_v46  ;;  %v5023_v32 = vld [vmem:[#allocation3 + $0x140] ss:$2 sm:$0xff]  ;;  %v803_v56 = vld [vmem:[#allocation2 + $0x440] sm:$0xff]  ;;  %v2298_v57 = vsel %vm265_vm0, %v802_v31, %v12886_v20 }
 0x467   : > { %v5258_v1 = vmax.f32 %v5023_v32, %v5151_v55 }
 0x468   : > { %4900 = vst.msk [vmem:[#allocation3 + $0x168] sm:$0xff] %vm4854_vm7, %v4771_v23  ;;  %v4770_v63 = vmax.f32 %v4308_v35, 0.0  ;;  %v10974_v13 = vpop.permute.xlu1 %2014  ;;  %v3136_v12 = vpop.permute.xlu0 %3135 }
 0x469   : > { %v3571_v39 = vsel %vm3492_vm5, %v3442_v14, %v3136_v12  ;;  %v5332_v6 = vsel %vm4854_vm7, %v5258_v1, -inf }
 0x46a   : > { %4899 = vst.msk [vmem:[#allocation3 + $0x160] sm:$0xff] %vm4854_vm7, %v4770_v63  ;;  %2789 = vrot.lane.b32.xlu1 %v10927_v45, %s7998_s24  ;;  %2787 = vrot.lane.b32.xlu0 %v10915_v2, %s7998_s24 }
 0x46b   : > { %7652 = vmatprep.mubr.msk.f32.mxu0 %vm3632_vm6, %v3571_v39  ;;  %v2299_v39 = vsel %vm265_vm0, %v803_v56, %v12885_v10 }
 0x46c   : > { %v10989_v52 = vpop.permute.xlu1 %2016  ;;  %v3138_v34 = vpop.permute.xlu0 %3137 }
 0x46d   : > { %v3572_v29 = vsel %vm3492_vm5, %v3443_v5, %v3138_v34 }
 0x46e   : > { %3177 = vrot.lane.b32.xlu1 %v10997_v40, %s7999_s25  ;;  %3175 = vrot.lane.b32.xlu0 %v10993_v42, %s7999_s25 }
 0x46f   : > { %v7606_v44 = vpop.f32.mrf.mxu0  ;;  %7653 = vmatmul.mubr.msk.f32.gmra.mxu0 %vm3632_vm6, %v3572_v29  ;;  %v11024_v29 = vsel %vm2326_vm3, %v2298_v57, %v10816_v27 }
 0x470   : > { %v4323_v54 = vadd.f32 %v10611_v37, %v7606_v44  ;;  %v2754_v46 = vpop.permute.xlu1 %2753  ;;  %v2752_v0 = vpop.permute.xlu0 %2751  ;;  %v11028_v44 = vsel %vm2326_vm3, %v2299_v39, %v10829_v8 }
 0x471   : > { %v5027_v23 = vld [vmem:[#allocation3 + $0x160] ss:$2 sm:$0xff]  ;;  %v5155_v35 = vld [vmem:[#allocation3 + $0x161] ss:$2 sm:$0xff]  ;;  %v4317_v14 = vpop.f32.mrf.mxu0  ;;  %v3444_v5 = vsel %vm3363_vm4, %v10477_v19, %v2752_v0  ;;  %v3445_v27 = vsel %vm3363_vm4, %v10489_v48, %v2754_v46  ;;  %v5025_v0 = vld [vmem:[#allocation3 + $0x150] ss:$2 sm:$0xff] }
 0x472   : > { %v5260_v63 = vmax.f32 %v5027_v23, %v5155_v35  ;;  %v4773_v12 = vmax.f32 %v4323_v54, 0.0  ;;  %v4318_v30 = vadd.f32 %v10611_v37, %v4317_v14  ;;  %2793 = vrot.lane.b32.xlu1 %v10965_v25, %s7998_s24  ;;  %2791 = vrot.lane.b32.xlu0 %v10953_v16, %s7998_s24  ;;  %v805_v19 = vld [vmem:[#allocation2 + $0x450] sm:$0xff]  ;;  %v804_v54 = vld [vmem:[#allocation2 + $0x448] sm:$0xff] }
 0x473   : > { %v5153_v23 = vld [vmem:[#allocation3 + $0x151] ss:$2 sm:$0xff]  ;;  %v12888_v46 = vld [vmem:[#allocation79_spill] sm:$0xff] }
 0x474   : > { %v5333_v3 = vsel %vm4854_vm7, %v5260_v63, -inf  ;;  %4902 = vst.msk [vmem:[#allocation3 + $0x178] sm:$0xff] %vm4854_vm7, %v4773_v12  ;;  %v4772_v34 = vmax.f32 %v4318_v30, 0.0  ;;  %v11020_v32 = vpop.permute.xlu1 %2018  ;;  %v3140_v55 = vpop.permute.xlu0 %3139  ;;  %v12887_v63 = vld [vmem:[#allocation78_spill] sm:$0xff]  ;;  %v2300_v12 = vsel %vm265_vm0, %v804_v54, %v12888_v46  ;;  %v5259_v30 = vmax.f32 %v5025_v0, %v5153_v23  ;;  %v806_v23 = vld [vmem:[#allocation2 + $0x460] sm:$0xff] }
 0x475   : > { %v5334_v56 = vmax.f32 %v5332_v6, %v5333_v3  ;;  %v3573_v31 = vsel %vm3492_vm5, %v3444_v5, %v3140_v55  ;;  %v2301_v48 = vsel %vm265_vm0, %v805_v19, %v12887_v63  ;;  %v11055_v57 = vsel %vm2326_vm3, %v2300_v12, %v10856_v22  ;;  %v807_v0 = vld [vmem:[#allocation2 + $0x468] sm:$0xff] }
 0x476   : > { %4901 = vst.msk [vmem:[#allocation3 + $0x170] sm:$0xff] %vm4854_vm7, %v4772_v34  ;;  %3181 = vrot.lane.b32.xlu1 %v11028_v44, %s7999_s25  ;;  %3179 = vrot.lane.b32.xlu0 %v11024_v29, %s7999_s25  ;;  %v11059_v6 = vsel %vm2326_vm3, %v2301_v48, %v10870_v62  ;;  %v5335_v22 = vsel %vm4854_vm7, %v5259_v30, -inf  ;;  %v12890_v48 = vld [vmem:[#allocation81_spill] sm:$0xff] }
 0x477   : > { %5464 = vst.msk [vmem:[#allocation4 + $0x91] sm:$0xff] %vm4854_vm7, %v5334_v56  ;;  %7655 = vmatprep.mubr.msk.f32.mxu0 %vm3632_vm6, %v3573_v31  ;;  %v2302_v46 = vsel %vm265_vm0, %v806_v23, %v12890_v48 }
 0x478   : > { %v11040_v8 = vpop.permute.xlu1 %2020  ;;  %v3142_v1 = vpop.permute.xlu0 %3141 }
 0x479   : > { %v3574_v35 = vsel %vm3492_vm5, %v3445_v27, %v3142_v1 }
 0x47a   : > { %2797 = vrot.lane.b32.xlu1 %v10997_v40, %s7998_s24  ;;  %2795 = vrot.lane.b32.xlu0 %v10993_v42, %s7998_s24 }
 0x47b   : > { %v7609_v14 = vpop.f32.mrf.mxu0  ;;  %7656 = vmatmul.mubr.msk.f32.gmra.mxu0 %vm3632_vm6, %v3574_v35 }
 0x47c   : > { %v4333_v10 = vadd.f32 %v10611_v37, %v7609_v14  ;;  %v2758_v39 = vpop.permute.xlu1 %2757  ;;  %v2756_v20 = vpop.permute.xlu0 %2755 }
 0x47d   : > { %v5029_v3 = vld [vmem:[#allocation3 + $0x170] ss:$2 sm:$0xff]  ;;  %v5157_v5 = vld [vmem:[#allocation3 + $0x171] ss:$2 sm:$0xff]  ;;  %v4327_v34 = vpop.f32.mrf.mxu0  ;;  %v3446_v62 = vsel %vm3363_vm4, %v10515_v7, %v2756_v20  ;;  %v3447_v12 = vsel %vm3363_vm4, %v10527_v9, %v2758_v39  ;;  %v11091_v20 = vsel %vm2326_vm3, %v2302_v46, %v10897_v38 }
 0x47e   : > { %v5261_v55 = vmax.f32 %v5029_v3, %v5157_v5  ;;  %v4775_v56 = vmax.f32 %v4333_v10, 0.0  ;;  %v4328_v31 = vadd.f32 %v10611_v37, %v4327_v34  ;;  %3185 = vrot.lane.b32.xlu1 %v11059_v6, %s7999_s25  ;;  %3183 = vrot.lane.b32.xlu0 %v11055_v57, %s7999_s25  ;;  %v12889_v7 = vld [vmem:[#allocation80_spill] sm:$0xff] }
 0x47f   : > { %v2303_v63 = vsel %vm265_vm0, %v807_v0, %v12889_v7 }
 0x480   : > { %v5336_v19 = vsel %vm4854_vm7, %v5261_v55, -inf  ;;  %4904 = vst.msk [vmem:[#allocation3 + $0x188] sm:$0xff] %vm4854_vm7, %v4775_v56  ;;  %v4774_v27 = vmax.f32 %v4328_v31, 0.0  ;;  %v11071_v1 = vpop.permute.xlu1 %2022  ;;  %v3144_v54 = vpop.permute.xlu0 %3143  ;;  %v11095_v3 = vsel %vm2326_vm3, %v2303_v63, %v10911_v11  ;;  %v809_v55 = vld [vmem:[#allocation2 + $0x478] sm:$0xff]  ;;  %v808_v56 = vld [vmem:[#allocation2 + $0x470] sm:$0xff] }
 0x481   : > { %v5337_v35 = vmax.f32 %v5335_v22, %v5336_v19  ;;  %v3575_v14 = vsel %vm3492_vm5, %v3446_v62, %v3144_v54  ;;  %v12891_v19 = vld [vmem:[#allocation82_spill] sm:$0xff] }
 0x482   : > { %4903 = vst.msk [vmem:[#allocation3 + $0x180] sm:$0xff] %vm4854_vm7, %v4774_v27  ;;  %2801 = vrot.lane.b32.xlu1 %v11028_v44, %s7998_s24  ;;  %2799 = vrot.lane.b32.xlu0 %v11024_v29, %s7998_s24  ;;  %v2305_v62 = vsel %vm265_vm0, %v809_v55, %v12891_v19  ;;  %v12892_v27 = vld [vmem:[#allocation83_spill] sm:$0xff] }
 0x483   : > { %7658 = vmatprep.mubr.msk.f32.mxu0 %vm3632_vm6, %v3575_v14  ;;  %5465 = vst.msk [vmem:[#allocation4 + $0x99] sm:$0xff] %vm4854_vm7, %v5337_v35  ;;  %v2304_v54 = vsel %vm265_vm0, %v808_v56, %v12892_v27  ;;  %v11124_v63 = vsel %vm2326_vm3, %v2305_v62, %v10949_v43  ;;  %v811_v43 = vld [vmem:[#allocation2 + $0x490] sm:$0xff] }
 0x484   : > { %v11087_v30 = vpop.permute.xlu1 %2024  ;;  %v3146_v10 = vpop.permute.xlu0 %3145  ;;  %v11120_v7 = vsel %vm2326_vm3, %v2304_v54, %v10936_v53 }
 0x485   : > { %v3576_v5 = vsel %vm3492_vm5, %v3447_v12, %v3146_v10  ;;  %v810_v12 = vld [vmem:[#allocation2 + $0x488] sm:$0xff] }
 0x486   : > { %3189 = vrot.lane.b32.xlu1 %v11095_v3, %s7999_s25  ;;  %3187 = vrot.lane.b32.xlu0 %v11091_v20, %s7999_s25 }
 0x487   : > { %v7612_v9 = vpop.f32.mrf.mxu0  ;;  %7659 = vmatmul.mubr.msk.f32.gmra.mxu0 %vm3632_vm6, %v3576_v5 }
 0x488   : > { %v4343_v39 = vadd.f32 %v10611_v37, %v7612_v9  ;;  %v2762_v34 = vpop.permute.xlu1 %2761  ;;  %v2760_v38 = vpop.permute.xlu0 %2759  ;;  %v12893_v9 = vld [vmem:[#allocation84_spill] sm:$0xff] }
 0x489   : > { %v4337_v31 = vpop.f32.mrf.mxu0  ;;  %v3448_v0 = vsel %vm3363_vm4, %v10556_v47, %v2760_v38  ;;  %v3449_v47 = vsel %vm3363_vm4, %v10568_v17, %v2762_v34  ;;  %v12894_v17 = vld [vmem:[#allocation85_spill] sm:$0xff] }
 0x48a   : > { %v4777_v11 = vmax.f32 %v4343_v39, 0.0  ;;  %v4338_v22 = vadd.f32 %v10611_v37, %v4337_v31  ;;  %2805 = vrot.lane.b32.xlu1 %v11059_v6, %s7998_s24  ;;  %2803 = vrot.lane.b32.xlu0 %v11055_v57, %s7998_s24  ;;  %v2307_v39 = vsel %vm265_vm0, %v811_v43, %v12893_v9  ;;  %v2306_v34 = vsel %vm265_vm0, %v810_v12, %v12894_v17  ;;  %v5031_v9 = vld [vmem:[#allocation3 + $0x180] ss:$2 sm:$0xff] }
 0x48b   : > { %v11150_v31 = vsel %vm2326_vm3, %v2306_v34, %v10974_v13  ;;  %v815_v34 = vld [vmem:[#allocation2 + $0x4b8] sm:$0xff] }
 0x48c   : > { %4906 = vst.msk [vmem:[#allocation3 + $0x198] sm:$0xff] %vm4854_vm7, %v4777_v11  ;;  %v4776_v23 = vmax.f32 %v4338_v22, 0.0  ;;  %v11116_v35 = vpop.permute.xlu1 %2026  ;;  %v3148_v14 = vpop.permute.xlu0 %3147  ;;  %v11154_v11 = vsel %vm2326_vm3, %v2307_v39, %v10989_v52  ;;  %v5159_v39 = vld [vmem:[#allocation3 + $0x181] ss:$2 sm:$0xff] }
 0x48d   : > { %v3577_v48 = vsel %vm3492_vm5, %v3448_v0, %v3148_v14  ;;  %v813_v0 = vld [vmem:[#allocation2 + $0x4a0] sm:$0xff] }
 0x48e   : > { %4905 = vst.msk [vmem:[#allocation3 + $0x190] sm:$0xff] %vm4854_vm7, %v4776_v23  ;;  %3193 = vrot.lane.b32.xlu1 %v11124_v63, %s7999_s25  ;;  %3191 = vrot.lane.b32.xlu0 %v11120_v7, %s7999_s25  ;;  %v812_v23 = vld [vmem:[#allocation2 + $0x498] sm:$0xff] }
 0x48f   : > { %7661 = vmatprep.mubr.msk.f32.mxu0 %vm3632_vm6, %v3577_v48  ;;  %v12896_v48 = vld [vmem:[#allocation87_spill] sm:$0xff] }
 0x490   : > { %v11135_v53 = vpop.permute.xlu1 %2028  ;;  %v3150_v46 = vpop.permute.xlu0 %3149 }
 0x491   : > { %v3578_v10 = vsel %vm3492_vm5, %v3449_v47, %v3150_v46  ;;  %v2308_v47 = vsel %vm265_vm0, %v812_v23, %v12896_v48  ;;  %v12897_v23 = vld [vmem:[#allocation88_spill] sm:$0xff] }
 0x492   : > { %2809 = vrot.lane.b32.xlu1 %v11095_v3, %s7998_s24  ;;  %2807 = vrot.lane.b32.xlu0 %v11091_v20, %s7998_s24 }
 0x493   : > { %v7615_v5 = vpop.f32.mrf.mxu0  ;;  %7662 = vmatmul.mubr.msk.f32.gmra.mxu0 %vm3632_vm6, %v3578_v10  ;;  %v11183_v10 = vsel %vm2326_vm3, %v2308_v47, %v11020_v32  ;;  %v814_v32 = vld [vmem:[#allocation2 + $0x4b0] sm:$0xff] }
 0x494   : > { %v4353_v38 = vadd.f32 %v10611_v37, %v7615_v5  ;;  %v2766_v55 = vpop.permute.xlu1 %2765  ;;  %v2764_v56 = vpop.permute.xlu0 %2763 }
 0x495   : > { %v4347_v22 = vpop.f32.mrf.mxu0  ;;  %v3450_v13 = vsel %vm3363_vm4, %v10597_v60, %v2764_v56  ;;  %v3451_v46 = vsel %vm3363_vm4, %v10609_v28, %v2766_v55  ;;  %v11195_v55 = vld [vmem:[#allocation8] ss:$0 sm:$0xff] }
 0x496   : > { %v4779_v19 = vmax.f32 %v4353_v38, 0.0  ;;  %v4348_v62 = vadd.f32 %v10611_v37, %v4347_v22  ;;  %3197 = vrot.lane.b32.xlu1 %v11154_v11, %s7999_s25  ;;  %3195 = vrot.lane.b32.xlu0 %v11150_v31, %s7999_s25  ;;  %v12895_v37 = vld [vmem:[#allocation86_spill] sm:$0xff]  ;;  %v5262_v38 = vmax.f32 %v5031_v9, %v5159_v39 }
 0x497   : > { %v2309_v60 = vsel %vm265_vm0, %v813_v0, %v12895_v37  ;;  %v12898_v37 = vld [vmem:[#allocation89_spill] sm:$0xff] }
 0x498   : > { %4908 = vst.msk [vmem:[#allocation3 + $0x1a8] sm:$0xff] %vm4854_vm7, %v4779_v19  ;;  %v4778_v27 = vmax.f32 %v4348_v62, 0.0  ;;  %v11164_v54 = vpop.permute.xlu1 %2030  ;;  %v3152_v52 = vpop.permute.xlu0 %3151  ;;  %v11187_v5 = vsel %vm2326_vm3, %v2309_v60, %v11040_v8  ;;  %v2310_v60 = vsel %vm265_vm0, %v814_v32, %v12898_v37  ;;  %v5338_v48 = vsel %vm4854_vm7, %v5262_v38, -inf }
 0x499   : > { %v3579_v14 = vsel %vm3492_vm5, %v3450_v13, %v3152_v52 }
 0x49a   : > { %4907 = vst.msk [vmem:[#allocation3 + $0x1a0] sm:$0xff] %vm4854_vm7, %v4778_v27  ;;  %2813 = vrot.lane.b32.xlu1 %v11124_v63, %s7998_s24  ;;  %2811 = vrot.lane.b32.xlu0 %v11120_v7, %s7998_s24 }
 0x49b   : > { %7664 = vmatprep.mubr.msk.f32.mxu0 %vm3632_vm6, %v3579_v14  ;;  %v2311_v14 = vsel %vm265_vm0, %v815_v34, %v12897_v23 }
 0x49c   : > { %v11179_v43 = vpop.permute.xlu1 %2032  ;;  %v3154_v12 = vpop.permute.xlu0 %3153 }
 0x49d   : > { %v3580_v17 = vsel %vm3492_vm5, %v3451_v46, %v3154_v12 }
 0x49e   : > { %3201 = vrot.lane.b32.xlu1 %v11187_v5, %s7999_s25  ;;  %3199 = vrot.lane.b32.xlu0 %v11183_v10, %s7999_s25 }
 0x49f   : > { %v7618_v28 = vpop.f32.mrf.mxu0  ;;  %7665 = vmatmul.mubr.msk.f32.gmra.mxu0 %vm3632_vm6, %v3580_v17  ;;  %v11216_v17 = vsel %vm2326_vm3, %v2310_v60, %v11071_v1 }
 0x4a0   : > { %v4363_v8 = vadd.f32 %v11195_v55, %v7618_v28  ;;  %v2770_v56 = vpop.permute.xlu1 %2769  ;;  %v2768_v22 = vpop.permute.xlu0 %2767  ;;  %v11220_v28 = vsel %vm2326_vm3, %v2311_v14, %v11087_v30 }
 0x4a1   : > { %v5035_v19 = vld [vmem:[#allocation3 + $0x1a0] ss:$2 sm:$0xff]  ;;  %v5163_v62 = vld [vmem:[#allocation3 + $0x1a1] ss:$2 sm:$0xff]  ;;  %v4357_v13 = vpop.f32.mrf.mxu0  ;;  %v3452_v46 = vsel %vm3363_vm4, %v10637_v61, %v2768_v22  ;;  %v817_v61 = vld [vmem:[#allocation2 + $0x4c8] sm:$0xff]  ;;  %v3453_v1 = vsel %vm3363_vm4, %v10649_v41, %v2770_v56 }
 0x4a2   : > { %v5264_v27 = vmax.f32 %v5035_v19, %v5163_v62  ;;  %v4781_v52 = vmax.f32 %v4363_v8, 0.0  ;;  %v4358_v0 = vadd.f32 %v11195_v55, %v4357_v13  ;;  %2817 = vrot.lane.b32.xlu1 %v11154_v11, %s7998_s24  ;;  %2815 = vrot.lane.b32.xlu0 %v11150_v31, %s7998_s24  ;;  %v816_v8 = vld [vmem:[#allocation2 + $0x4c0] sm:$0xff]  ;;  %v12900_v56 = vld [vmem:[#allocation91_spill] sm:$0xff] }
 0x4a3   : > { %v5033_v22 = vld [vmem:[#allocation3 + $0x190] ss:$2 sm:$0xff]  ;;  %v5161_v19 = vld [vmem:[#allocation3 + $0x191] ss:$2 sm:$0xff] }
 0x4a4   : > { %v5339_v47 = vsel %vm4854_vm7, %v5264_v27, -inf  ;;  %4910 = vst.msk [vmem:[#allocation3 + $0x1b8] sm:$0xff] %vm4854_vm7, %v4781_v52  ;;  %v4780_v12 = vmax.f32 %v4358_v0, 0.0  ;;  %v11212_v9 = vpop.permute.xlu1 %2034  ;;  %v3156_v39 = vpop.permute.xlu0 %3155  ;;  %v12899_v27 = vld [vmem:[#allocation90_spill] sm:$0xff]  ;;  %v2312_v52 = vsel %vm265_vm0, %v816_v8, %v12900_v56  ;;  %v5263_v0 = vmax.f32 %v5033_v22, %v5161_v19  ;;  %v819_v22 = vld [vmem:[#allocation2 + $0x4e0] sm:$0xff]  ;;  %v818_v19 = vld [vmem:[#allocation2 + $0x4d8] sm:$0xff] }
 0x4a5   : > { %v5340_v34 = vmax.f32 %v5338_v48, %v5339_v47  ;;  %v3581_v32 = vsel %vm3492_vm5, %v3452_v46, %v3156_v39  ;;  %v2313_v41 = vsel %vm265_vm0, %v817_v61, %v12899_v27  ;;  %v11247_v60 = vsel %vm2326_vm3, %v2312_v52, %v11116_v35 }
 0x4a6   : > { %4909 = vst.msk [vmem:[#allocation3 + $0x1b0] sm:$0xff] %vm4854_vm7, %v4780_v12  ;;  %3205 = vrot.lane.b32.xlu1 %v11220_v28, %s7999_s25  ;;  %3203 = vrot.lane.b32.xlu0 %v11216_v17, %s7999_s25  ;;  %v11251_v48 = vsel %vm2326_vm3, %v2313_v41, %v11135_v53  ;;  %v5341_v35 = vsel %vm4854_vm7, %v5263_v0, -inf  ;;  %v12902_v41 = vld [vmem:[#allocation93_spill] sm:$0xff] }
 0x4a7   : > { %5466 = vst.msk [vmem:[#allocation4 + $0xa9] sm:$0xff] %vm4854_vm7, %v5340_v34  ;;  %7667 = vmatprep.mubr.msk.f32.mxu0 %vm3632_vm6, %v3581_v32  ;;  %v2314_v56 = vsel %vm265_vm0, %v818_v19, %v12902_v41 }
 0x4a8   : > { %v11232_v30 = vpop.permute.xlu1 %2036  ;;  %v3158_v38 = vpop.permute.xlu0 %3157 }
 0x4a9   : > { %v3582_v62 = vsel %vm3492_vm5, %v3453_v1, %v3158_v38 }
 0x4aa   : > { %2821 = vrot.lane.b32.xlu1 %v11187_v5, %s7998_s24  ;;  %2819 = vrot.lane.b32.xlu0 %v11183_v10, %s7998_s24 }
 0x4ab   : > { %v7621_v13 = vpop.f32.mrf.mxu0  ;;  %7668 = vmatmul.mubr.msk.f32.gmra.mxu0 %vm3632_vm6, %v3582_v62 }
 0x4ac   : > { %v4373_v23 = vadd.f32 %v11195_v55, %v7621_v13  ;;  %v2774_v14 = vpop.permute.xlu1 %2773  ;;  %v2772_v37 = vpop.permute.xlu0 %2771 }
 0x4ad   : > { %v5037_v47 = vld [vmem:[#allocation3 + $0x1b0] ss:$2 sm:$0xff]  ;;  %v5165_v46 = vld [vmem:[#allocation3 + $0x1b1] ss:$2 sm:$0xff]  ;;  %v4367_v12 = vpop.f32.mrf.mxu0  ;;  %v3454_v53 = vsel %vm3363_vm4, %v10675_v51, %v2772_v37  ;;  %v3455_v52 = vsel %vm3363_vm4, %v10687_v24, %v2774_v14  ;;  %v11281_v37 = vsel %vm2326_vm3, %v2314_v56, %v11164_v54 }
 0x4ae   : > { %v5265_v39 = vmax.f32 %v5037_v47, %v5165_v46  ;;  %v4783_v34 = vmax.f32 %v4373_v23, 0.0  ;;  %v4368_v32 = vadd.f32 %v11195_v55, %v4367_v12  ;;  %3209 = vrot.lane.b32.xlu1 %v11251_v48, %s7999_s25  ;;  %3207 = vrot.lane.b32.xlu0 %v11247_v60, %s7999_s25  ;;  %v12901_v51 = vld [vmem:[#allocation92_spill] sm:$0xff] }
 0x4af   : > { %v2315_v27 = vsel %vm265_vm0, %v819_v22, %v12901_v51 }
 0x4b0   : > { %v5342_v61 = vsel %vm4854_vm7, %v5265_v39, -inf  ;;  %4912 = vst.msk [vmem:[#allocation3 + $0x1c8] sm:$0xff] %vm4854_vm7, %v4783_v34  ;;  %v4782_v1 = vmax.f32 %v4368_v32, 0.0  ;;  %v11263_v38 = vpop.permute.xlu1 %2038  ;;  %v3160_v8 = vpop.permute.xlu0 %3159  ;;  %v11285_v47 = vsel %vm2326_vm3, %v2315_v27, %v11179_v43  ;;  %v821_v39 = vld [vmem:[#allocation2 + $0x4f0] sm:$0xff]  ;;  %v820_v34 = vld [vmem:[#allocation2 + $0x4e8] sm:$0xff] }
 0x4b1   : > { %v5343_v62 = vmax.f32 %v5341_v35, %v5342_v61  ;;  %v3583_v13 = vsel %vm3492_vm5, %v3454_v53, %v3160_v8  ;;  %v12903_v61 = vld [vmem:[#allocation94_spill] sm:$0xff] }
 0x4b2   : > { %4911 = vst.msk [vmem:[#allocation3 + $0x1c0] sm:$0xff] %vm4854_vm7, %v4782_v1  ;;  %2825 = vrot.lane.b32.xlu1 %v11220_v28, %s7998_s24  ;;  %2823 = vrot.lane.b32.xlu0 %v11216_v17, %s7998_s24  ;;  %v2317_v53 = vsel %vm265_vm0, %v821_v39, %v12903_v61  ;;  %v12904_v1 = vld [vmem:[#allocation95_spill] sm:$0xff] }
 0x4b3   : > { %7670 = vmatprep.mubr.msk.f32.mxu0 %vm3632_vm6, %v3583_v13  ;;  %5467 = vst.msk [vmem:[#allocation4 + $0xb1] sm:$0xff] %vm4854_vm7, %v5343_v62  ;;  %v2316_v8 = vsel %vm265_vm0, %v820_v34, %v12904_v1  ;;  %v11312_v27 = vsel %vm2326_vm3, %v2317_v53, %v11232_v30  ;;  %v822_v30 = vld [vmem:[#allocation2 + $0x500] sm:$0xff] }
 0x4b4   : > { %v2041_v0 = vpop.permute.xlu1 %2040  ;;  %v3162_v23 = vpop.permute.xlu0 %3161  ;;  %v11308_v51 = vsel %vm2326_vm3, %v2316_v8, %v11212_v9 }
 0x4b5   : > { %v3584_v46 = vsel %vm3492_vm5, %v3455_v52, %v3162_v23  ;;  %v823_v52 = vld [vmem:[#allocation2 + $0x508] sm:$0xff] }
 0x4b6   : > { %3213 = vrot.lane.b32.xlu1 %v11285_v47, %s7999_s25  ;;  %3211 = vrot.lane.b32.xlu0 %v11281_v37, %s7999_s25 }
 0x4b7   : > { %v7624_v12 = vpop.f32.mrf.mxu0  ;;  %7671 = vmatmul.mubr.msk.f32.gmra.mxu0 %vm3632_vm6, %v3584_v46 }
 0x4b8   : > { %v4383_v24 = vadd.f32 %v11195_v55, %v7624_v12  ;;  %v2778_v14 = vpop.permute.xlu1 %2777  ;;  %v2776_v54 = vpop.permute.xlu0 %2775  ;;  %v12905_v12 = vld [vmem:[#allocation96_spill] sm:$0xff] }
 0x4b9   : > { %v4377_v32 = vpop.f32.mrf.mxu0  ;;  %v3456_v22 = vsel %vm3363_vm4, %v10716_v26, %v2776_v54  ;;  %v3457_v26 = vsel %vm3363_vm4, %v10728_v18, %v2778_v14  ;;  %v12906_v54 = vld [vmem:[#allocation97_spill] sm:$0xff] }
 0x4ba   : > { %v4785_v43 = vmax.f32 %v4383_v24, 0.0  ;;  %v4378_v35 = vadd.f32 %v11195_v55, %v4377_v32  ;;  %2829 = vrot.lane.b32.xlu1 %v11251_v48, %s7998_s24  ;;  %2827 = vrot.lane.b32.xlu0 %v11247_v60, %s7998_s24  ;;  %v2319_v24 = vsel %vm265_vm0, %v823_v52, %v12905_v12  ;;  %v2318_v18 = vsel %vm265_vm0, %v822_v30, %v12906_v54  ;;  %v5167_v12 = vld [vmem:[#allocation3 + $0x1c1] ss:$2 sm:$0xff] }
 0x4bb   : > { %v2455_v32 = vsel %vm2326_vm3, %v2318_v18, %v11263_v38  ;;  %v824_v38 = vld [vmem:[#allocation2 + $0x510] sm:$0xff] }
 0x4bc   : > { %4914 = vst.msk [vmem:[#allocation3 + $0x1d8] sm:$0xff] %vm4854_vm7, %v4785_v43  ;;  %v4784_v19 = vmax.f32 %v4378_v35, 0.0  ;;  %v2043_v62 = vpop.permute.xlu1 %2042  ;;  %v3164_v13 = vpop.permute.xlu0 %3163  ;;  %v2456_v43 = vsel %vm2326_vm3, %v2319_v24, %v2041_v0 }
 0x4bd   : > { %v3585_v41 = vsel %vm3492_vm5, %v3456_v22, %v3164_v13  ;;  %v825_v13 = vld [vmem:[#allocation2 + $0x518] sm:$0xff] }
 0x4be   : > { %4913 = vst.msk [vmem:[#allocation3 + $0x1d0] sm:$0xff] %vm4854_vm7, %v4784_v19  ;;  %3217 = vrot.lane.b32.xlu1 %v11312_v27, %s7999_s25  ;;  %3215 = vrot.lane.b32.xlu0 %v11308_v51, %s7999_s25 }
 0x4bf   : > { %7673 = vmatprep.mubr.msk.f32.mxu0 %vm3632_vm6, %v3585_v41  ;;  %v12907_v41 = vld [vmem:[#allocation98_spill] sm:$0xff] }
 0x4c0   : > { %v2045_v9 = vpop.permute.xlu1 %2044  ;;  %v3166_v56 = vpop.permute.xlu0 %3165 }
 0x4c1   : > { %v3586_v23 = vsel %vm3492_vm5, %v3457_v26, %v3166_v56  ;;  %v12908_v26 = vld [vmem:[#allocation99_spill] sm:$0xff] }
 0x4c2   : > { %2833 = vrot.lane.b32.xlu1 %v11285_v47, %s7998_s24  ;;  %2831 = vrot.lane.b32.xlu0 %v11281_v37, %s7998_s24  ;;  %v2320_v56 = vsel %vm265_vm0, %v824_v38, %v12908_v26  ;;  %v12909_v38 = vld [vmem:[#allocation100_spill] sm:$0xff] }
 0x4c3   : > { %v7627_v46 = vpop.f32.mrf.mxu0  ;;  %7674 = vmatmul.mubr.msk.f32.gmra.mxu0 %vm3632_vm6, %v3586_v23  ;;  %v2457_v24 = vsel %vm2326_vm3, %v2320_v56, %v2043_v62 }
 0x4c4   : > { %v4393_v14 = vadd.f32 %v11195_v55, %v7627_v46  ;;  %v2782_v39 = vpop.permute.xlu1 %2781  ;;  %v2780_v34 = vpop.permute.xlu0 %2779  ;;  %v5039_v46 = vld [vmem:[#allocation3 + $0x1c0] ss:$2 sm:$0xff] }
 0x4c5   : > { %v4387_v35 = vpop.f32.mrf.mxu0  ;;  %v3458_v1 = vsel %vm3363_vm4, %v10757_v21, %v2780_v34  ;;  %v2321_v21 = vsel %vm265_vm0, %v825_v13, %v12907_v41  ;;  %v3459_v52 = vsel %vm3363_vm4, %v10769_v59, %v2782_v39  ;;  %v827_v34 = vld [vmem:[#allocation2 + $0x530] sm:$0xff]  ;;  %v5266_v59 = vmax.f32 %v5039_v46, %v5167_v12  ;;  %v12910_v41 = vld [vmem:[#allocation101_spill] sm:$0xff] }
 0x4c6   : > { %v4787_v61 = vmax.f32 %v4393_v14, 0.0  ;;  %v4388_v53 = vadd.f32 %v11195_v55, %v4387_v35  ;;  %3221 = vrot.lane.b32.xlu1 %v2456_v43, %s7999_s25  ;;  %3219 = vrot.lane.b32.xlu0 %v2455_v32, %s7999_s25  ;;  %v2458_v54 = vsel %vm2326_vm3, %v2321_v21, %v2045_v9  ;;  %v826_v35 = vld [vmem:[#allocation2 + $0x528] sm:$0xff] }
 0x4c7   : > { %v2322_v21 = vsel %vm265_vm0, %v826_v35, %v12910_v41  ;;  %v5344_v26 = vsel %vm4854_vm7, %v5266_v59, -inf }
 0x4c8   : > { %4916 = vst.msk [vmem:[#allocation3 + $0x1e8] sm:$0xff] %vm4854_vm7, %v4787_v61  ;;  %v4786_v8 = vmax.f32 %v4388_v53, 0.0  ;;  %v2047_v22 = vpop.permute.xlu1 %2046  ;;  %v3168_v19 = vpop.permute.xlu0 %3167 }
 0x4c9   : > { %v3587_v0 = vsel %vm3492_vm5, %v3458_v1, %v3168_v19 }
 0x4ca   : > { %4915 = vst.msk [vmem:[#allocation3 + $0x1e0] sm:$0xff] %vm4854_vm7, %v4786_v8  ;;  %2837 = vrot.lane.b32.xlu1 %v11312_v27, %s7998_s24  ;;  %2835 = vrot.lane.b32.xlu0 %v11308_v51, %s7998_s24 }
 0x4cb   : > { %7676 = vmatprep.mubr.msk.f32.mxu0 %vm3632_vm6, %v3587_v0  ;;  %v2323_v0 = vsel %vm265_vm0, %v827_v34, %v12909_v38  ;;  %v5169_v34 = vld [vmem:[#allocation3 + $0x1d1] ss:$2 sm:$0xff] }
 0x4cc   : > { %v2049_v30 = vpop.permute.xlu1 %2048  ;;  %v3170_v23 = vpop.permute.xlu0 %3169 }
 0x4cd   : > { %v3588_v18 = vsel %vm3492_vm5, %v3459_v52, %v3170_v23 }
 0x4ce   : > { %3225 = vrot.lane.b32.xlu1 %v2458_v54, %s7999_s25  ;;  %3223 = vrot.lane.b32.xlu0 %v2457_v24, %s7999_s25 }
 0x4cf   : > { %v7630_v14 = vpop.f32.mrf.mxu0  ;;  %7677 = vmatmul.mubr.msk.f32.gmra.mxu0 %vm3632_vm6, %v3588_v18  ;;  %v2460_v18 = vsel %vm2326_vm3, %v2323_v0, %v2049_v30  ;;  %v829_v30 = vld [vmem:[#allocation2 + $0x540] sm:$0xff] }
 0x4d0   : > { %v4403_v39 = vadd.f32 %v11195_v55, %v7630_v14  ;;  %v2786_v61 = vpop.permute.xlu1 %2785  ;;  %v2784_v53 = vpop.permute.xlu0 %2783 }
 0x4d1   : > { %v5043_v1 = vld [vmem:[#allocation3 + $0x1e0] ss:$2 sm:$0xff]  ;;  %v5171_v62 = vld [vmem:[#allocation3 + $0x1e1] ss:$2 sm:$0xff]  ;;  %v4397_v8 = vpop.f32.mrf.mxu0  ;;  %v3460_v52 = vsel %vm3363_vm4, %v10795_v33, %v2784_v53  ;;  %v5041_v33 = vld [vmem:[#allocation3 + $0x1d0] ss:$2 sm:$0xff]  ;;  %v3461_v35 = vsel %vm3363_vm4, %v10807_v49, %v2786_v61 }
 0x4d2   : > { %v5268_v9 = vmax.f32 %v5043_v1, %v5171_v62  ;;  %v4789_v19 = vmax.f32 %v4403_v39, 0.0  ;;  %v4398_v13 = vadd.f32 %v11195_v55, %v4397_v8  ;;  %2841 = vrot.lane.b32.xlu1 %v2456_v43, %s7998_s24  ;;  %2839 = vrot.lane.b32.xlu0 %v2455_v32, %s7998_s24  ;;  %v2459_v32 = vsel %vm2326_vm3, %v2322_v21, %v2047_v22  ;;  %v828_v39 = vld [vmem:[#allocation2 + $0x538] sm:$0xff]  ;;  %v12911_v8 = vld [vmem:[#allocation102_spill] sm:$0xff] }
 0x4d3   : > { %v5267_v1 = vmax.f32 %v5041_v33, %v5169_v34  ;;  %v5524_v34 = vld [vmem:[#allocation4 + $0x19] sm:$0xff] }
 0x4d4   : > { %v5345_v56 = vsel %vm4854_vm7, %v5268_v9, -inf  ;;  %4918 = vst.msk [vmem:[#allocation3 + $0x1f8] sm:$0xff] %vm4854_vm7, %v4789_v19  ;;  %v4788_v23 = vmax.f32 %v4398_v13, 0.0  ;;  %v2051_v46 = vpop.permute.xlu1 %2050  ;;  %v3172_v43 = vpop.permute.xlu0 %3171  ;;  %v2325_v9 = vsel %vm265_vm0, %v829_v30, %v12911_v8  ;;  %v12912_v19 = vld [vmem:[#allocation103_spill] sm:$0xff]  ;;  %v5526_v30 = vld [vmem:[#allocation4 + $0x31] sm:$0xff] }
 0x4d5   : > { %v5346_v12 = vmax.f32 %v5344_v26, %v5345_v56  ;;  %v3589_v14 = vsel %vm3492_vm5, %v3460_v52, %v3172_v43  ;;  %v2324_v49 = vsel %vm265_vm0, %v828_v39, %v12912_v19  ;;  %v5347_v43 = vsel %vm4854_vm7, %v5267_v1, -inf }
 0x4d6   : > { %4917 = vst.msk [vmem:[#allocation3 + $0x1f0] sm:$0xff] %vm4854_vm7, %v4788_v23  ;;  %3229 = vrot.lane.b32.xlu1 %v2460_v18, %s7999_s25  ;;  %3227 = vrot.lane.b32.xlu0 %v2459_v32, %s7999_s25  ;;  %v5525_v23 = vld [vmem:[#allocation4 + $0x21] sm:$0xff] }
 0x4d7   : > { %5468 = vst.msk [vmem:[#allocation4 + $0xc1] sm:$0xff] %vm4854_vm7, %v5346_v12  ;;  %7679 = vmatprep.mubr.msk.f32.mxu0 %vm3632_vm6, %v3589_v14  ;;  %v7832_v39 = vpack.i.bf16 %v5525_v23, %v5524_v34  ;;  %v5564_v23 = vld [vmem:[#allocation4 + $0x4a] sm:$0xff]  ;;  %v5565_v34 = vld [vmem:[#allocation4 + $0x52] sm:$0xff] }
 0x4d8   : > { %v2053_v22 = vpop.permute.xlu1 %2052  ;;  %v3174_v59 = vpop.permute.xlu0 %3173 }
 0x4d9   : > { %v3590_v53 = vsel %vm3492_vm5, %v3461_v35, %v3174_v59 }
 0x4da   : > { %2845 = vrot.lane.b32.xlu1 %v2458_v54, %s7998_s24  ;;  %2843 = vrot.lane.b32.xlu0 %v2457_v24, %s7998_s24  ;;  %v2461_v54 = vsel %vm2326_vm3, %v2324_v49, %v2051_v46  ;;  %v2462_v24 = vsel %vm2326_vm3, %v2325_v9, %v2053_v22 }
 0x4db   : > { %v7633_v62 = vpop.f32.mrf.mxu0  ;;  %7680 = vmatmul.mubr.msk.f32.gmra.mxu0 %vm3632_vm6, %v3590_v53 }
 0x4dc   : > { %v4413_v61 = vadd.f32 %v11195_v55, %v7633_v62  ;;  %v2790_v13 = vpop.permute.xlu1 %2789  ;;  %v2788_v38 = vpop.permute.xlu0 %2787  ;;  %v5562_v62 = vld [vmem:[#allocation4 + $0x32] sm:$0xff] }
 0x4dd   : > { %v5045_v0 = vld [vmem:[#allocation3 + $0x1f0] ss:$2 sm:$0xff]  ;;  %v5173_v41 = vld [vmem:[#allocation3 + $0x1f1] ss:$2 sm:$0xff]  ;;  %v4407_v21 = vpop.f32.mrf.mxu0  ;;  %v3463_v46 = vsel %vm3363_vm4, %v10845_v58, %v2790_v13  ;;  %v3462_v32 = vsel %vm3363_vm4, %v10833_v4, %v2788_v38  ;;  %v5561_v4 = vld [vmem:[#allocation4 + $0x22] sm:$0xff] }
 0x4de   : > { %v5269_v26 = vmax.f32 %v5045_v0, %v5173_v41  ;;  %v4791_v56 = vmax.f32 %v4413_v61, 0.0  ;;  %v4408_v52 = vadd.f32 %v11195_v55, %v4407_v21  ;;  %3233 = vrot.lane.b32.xlu1 %v2462_v24, %s7999_s25  ;;  %3231 = vrot.lane.b32.xlu0 %v2461_v54, %s7999_s25  ;;  %v5560_v58 = vld [vmem:[#allocation4 + $0x1a] sm:$0xff] }
 0x4df   : > { %v7837_v8 = vpack.i.bf16 %v5561_v4, %v5560_v58  ;;  %v5563_v24 = vld [vmem:[#allocation4 + $0x3a] sm:$0xff] }
 0x4e0   : > { %v5348_v12 = vsel %vm4854_vm7, %v5269_v26, -inf  ;;  %4920 = vst.msk [vmem:[#allocation3 + $0x208] sm:$0xff] %vm4854_vm7, %v4791_v56  ;;  %v4790_v18 = vmax.f32 %v4408_v52, 0.0  ;;  %v3178_v14 = vpop.permute.xlu1 %3177  ;;  %v3176_v33 = vpop.permute.xlu0 %3175 }
 0x4e1   : > { %v5349_v35 = vmax.f32 %v5347_v43, %v5348_v12  ;;  %v3592_v22 = vsel %vm3492_vm5, %v3463_v46, %v3178_v14  ;;  %v3591_v59 = vsel %vm3492_vm5, %v3462_v32, %v3176_v33  ;;  %v5528_v43 = vld [vmem:[#allocation4 + $0x49] sm:$0xff] }
 0x4e2   : > { %4919 = vst.msk [vmem:[#allocation3 + $0x200] sm:$0xff] %vm4854_vm7, %v4790_v18  ;;  %7682 = vmatprep.mubr.msk.f32.mxu0 %vm3632_vm6, %v3591_v59  ;;  %5638 = vrot.lane.b32.xlu1 %v5526_v30, %s8000_s26 }
 0x4e3   : > { %7833 = vrot.lane.b32.xlu0 %v7832_v39, %s8000_s26  ;;  %7683 = vmatmul.mubr.msk.f32.gmra.mxu0 %vm3632_vm6, %v3592_v22  ;;  %5469 = vst.msk [vmem:[#allocation4 + $0xc9] sm:$0xff] %vm4854_vm7, %v5349_v35  ;;  %v5529_v35 = vld [vmem:[#allocation4 + $0x51] sm:$0xff]  ;;  %v5566_v39 = vld [vmem:[#allocation4 + $0x62] sm:$0xff] }
 0x4e4   : > { %v2794_v53 = vpop.permute.xlu1 %2793  ;;  %v2792_v1 = vpop.permute.xlu0 %2791 }
 0x4e5   : > { %v3465_v19 = vsel %vm3363_vm4, %v10886_v15, %v2794_v53  ;;  %v3464_v49 = vsel %vm3363_vm4, %v10874_v36, %v2792_v1  ;;  %v5527_v15 = vld [vmem:[#allocation4 + $0x39] sm:$0xff]  ;;  %v5530_v53 = vld [vmem:[#allocation4 + $0x61] sm:$0xff] }
 0x4e6   : > { %5782 = vrot.lane.b32.xlu1 %v5562_v62, %s8001_s27 }
 0x4e7   : > { %v7636_v9 = vpop.f32.mrf.mxu0  ;;  %7838 = vrot.lane.b32.xlu0 %v7837_v8, %s8001_s27 }
 0x4e8   : > { %v4423_v61 = vadd.f32 %v11195_v55, %v7636_v9  ;;  %v3182_v13 = vpop.permute.xlu1 %3181  ;;  %v3180_v38 = vpop.permute.xlu0 %3179 }
 0x4e9   : > { %v3594_v0 = vsel %vm3492_vm5, %v3465_v19, %v3182_v13  ;;  %v3593_v41 = vsel %vm3492_vm5, %v3464_v49, %v3180_v38  ;;  %v4417_v54 = vpop.f32.mrf.mxu0  ;;  %v5567_v13 = vld [vmem:[#allocation4 + $0x6a] sm:$0xff] }
 0x4ea   : > { %v4793_v21 = vmax.f32 %v4423_v61, 0.0  ;;  %v4418_v26 = vadd.f32 %v11195_v55, %v4417_v54  ;;  %7685 = vmatprep.mubr.msk.f32.mxu0 %vm3632_vm6, %v3593_v41  ;;  %5784 = vrot.lane.b32.xlu1 %v5563_v24, %s8001_s27  ;;  %v5531_v38 = vld [vmem:[#allocation4 + $0x69] sm:$0xff]  ;;  %v5568_v54 = vld [vmem:[#allocation4 + $0x7a] sm:$0xff] }
 0x4eb   : > { %5640 = vrot.lane.b32.xlu0 %v5527_v15, %s8000_s26  ;;  %7686 = vmatmul.mubr.msk.f32.gmra.mxu0 %vm3632_vm6, %v3594_v0  ;;  %v5047_v0 = vld [vmem:[#allocation3 + $0x200] ss:$2 sm:$0xff]  ;;  %v5175_v41 = vld [vmem:[#allocation3 + $0x201] ss:$2 sm:$0xff] }
 0x4ec   : > { %4922 = vst.msk [vmem:[#allocation3 + $0x218] sm:$0xff] %vm4854_vm7, %v4793_v21  ;;  %v4792_v36 = vmax.f32 %v4418_v26, 0.0  ;;  %v2798_v56 = vpop.permute.xlu1 %2797  ;;  %v2796_v52 = vpop.permute.xlu0 %2795  ;;  %v5532_v24 = vld [vmem:[#allocation4 + $0x79] sm:$0xff]  ;;  %v5270_v26 = vmax.f32 %v5047_v0, %v5175_v41 }
 0x4ed   : > { %v3467_v12 = vsel %vm3363_vm4, %v10927_v45, %v2798_v56  ;;  %v3466_v46 = vsel %vm3363_vm4, %v10915_v2, %v2796_v52 }
 0x4ee   : > { %4921 = vst.msk [vmem:[#allocation3 + $0x210] sm:$0xff] %vm4854_vm7, %v4792_v36  ;;  %5786 = vrot.lane.b32.xlu1 %v5564_v23, %s8001_s27 }
 0x4ef   : > { %5642 = vrot.lane.b32.xlu0 %v5528_v43, %s8000_s26 }
 0x4f0   : > { %v3186_v32 = vpop.permute.xlu1 %3185  ;;  %v3184_v18 = vpop.permute.xlu0 %3183 }
 0x4f1   : > { %v3596_v14 = vsel %vm3492_vm5, %v3467_v12, %v3186_v32  ;;  %v3595_v33 = vsel %vm3492_vm5, %v3466_v46, %v3184_v18 }
 0x4f2   : > { %7688 = vmatprep.mubr.msk.f32.mxu0 %vm3632_vm6, %v3595_v33  ;;  %5788 = vrot.lane.b32.xlu1 %v5565_v34, %s8001_s27 }
 0x4f3   : > { %v7639_v22 = vpop.f32.mrf.mxu0  ;;  %5644 = vrot.lane.b32.xlu0 %v5529_v35, %s8000_s26  ;;  %7689 = vmatmul.mubr.msk.f32.gmra.mxu0 %vm3632_vm6, %v3596_v14  ;;  %v5569_v14 = vld [vmem:[#allocation4 + $0x82] sm:$0xff] }
 0x4f4   : > { %v4433_v45 = vadd.f32 %v11195_v55, %v7639_v22  ;;  %v2802_v2 = vpop.permute.xlu1 %2801  ;;  %v2800_v59 = vpop.permute.xlu0 %2799 }
 0x4f5   : > { %v4427_v30 = vpop.f32.mrf.mxu0  ;;  %v3469_v1 = vsel %vm3363_vm4, %v10965_v25, %v2802_v2  ;;  %v3468_v62 = vsel %vm3363_vm4, %v10953_v16, %v2800_v59 }
 0x4f6   : > { %v4795_v58 = vmax.f32 %v4433_v45, 0.0  ;;  %v4428_v4 = vadd.f32 %v11195_v55, %v4427_v30  ;;  %5790 = vrot.lane.b32.xlu1 %v5566_v39, %s8001_s27  ;;  %v5570_v39 = vld [vmem:[#allocation4 + $0x92] sm:$0xff] }
 0x4f7   : > { %5646 = vrot.lane.b32.xlu0 %v5530_v53, %s8000_s26  ;;  %v5177_v53 = vld [vmem:[#allocation3 + $0x211] ss:$2 sm:$0xff] }
 0x4f8   : > { %4924 = vst.msk [vmem:[#allocation3 + $0x228] sm:$0xff] %vm4854_vm7, %v4795_v58  ;;  %v4794_v8 = vmax.f32 %v4428_v4, 0.0  ;;  %v3190_v9 = vpop.permute.xlu1 %3189  ;;  %v3188_v19 = vpop.permute.xlu0 %3187  ;;  %v5534_v58 = vld [vmem:[#allocation4 + $0x91] sm:$0xff] }
 0x4f9   : > { %v3598_v49 = vsel %vm3492_vm5, %v3469_v1, %v3190_v9  ;;  %v3597_v61 = vsel %vm3492_vm5, %v3468_v62, %v3188_v19  ;;  %v5049_v4 = vld [vmem:[#allocation3 + $0x210] ss:$2 sm:$0xff] }
 0x4fa   : > { %4923 = vst.msk [vmem:[#allocation3 + $0x220] sm:$0xff] %vm4854_vm7, %v4794_v8  ;;  %7691 = vmatprep.mubr.msk.f32.mxu0 %vm3632_vm6, %v3597_v61  ;;  %5792 = vrot.lane.b32.xlu1 %v5567_v13, %s8001_s27  ;;  %v5571_v61 = vld [vmem:[#allocation4 + $0x9a] sm:$0xff] }
 0x4fb   : > { %5648 = vrot.lane.b32.xlu0 %v5531_v38, %s8000_s26  ;;  %7692 = vmatmul.mubr.msk.f32.gmra.mxu0 %vm3632_vm6, %v3598_v49  ;;  %v5535_v13 = vld [vmem:[#allocation4 + $0x99] sm:$0xff]  ;;  %v5271_v38 = vmax.f32 %v5049_v4, %v5177_v53 }
 0x4fc   : > { %v2806_v16 = vpop.permute.xlu1 %2805  ;;  %v2804_v25 = vpop.permute.xlu0 %2803 }
 0x4fd   : > { %v3471_v15 = vsel %vm3363_vm4, %v10997_v40, %v2806_v16  ;;  %v3470_v36 = vsel %vm3363_vm4, %v10993_v42, %v2804_v25  ;;  %v5533_v42 = vld [vmem:[#allocation4 + $0x81] sm:$0xff]  ;;  %v5350_v40 = vsel %vm4854_vm7, %v5270_v26, -inf }
 0x4fe   : > { %5794 = vrot.lane.b32.xlu1 %v5568_v54, %s8001_s27 }
 0x4ff   : > { %v7642_v21 = vpop.f32.mrf.mxu0  ;;  %5650 = vrot.lane.b32.xlu0 %v5532_v24, %s8000_s26  ;;  %v5572_v24 = vld [vmem:[#allocation4 + $0xaa] sm:$0xff] }
 0x500   : > { %v4443_v56 = vadd.f32 %v11195_v55, %v7642_v21  ;;  %v3194_v52 = vpop.permute.xlu1 %3193  ;;  %v3192_v23 = vpop.permute.xlu0 %3191 }
 0x501   : > { %v5051_v43 = vld [vmem:[#allocation3 + $0x220] ss:$2 sm:$0xff]  ;;  %v5179_v12 = vld [vmem:[#allocation3 + $0x221] ss:$2 sm:$0xff]  ;;  %v3600_v46 = vsel %vm3492_vm5, %v3471_v15, %v3194_v52  ;;  %v3599_v32 = vsel %vm3492_vm5, %v3470_v36, %v3192_v23  ;;  %v4437_v18 = vpop.f32.mrf.mxu0 }
 0x502   : > { %v5272_v33 = vmax.f32 %v5051_v43, %v5179_v12  ;;  %v4797_v34 = vmax.f32 %v4443_v56, 0.0  ;;  %v4438_v35 = vadd.f32 %v11195_v55, %v4437_v18  ;;  %7694 = vmatprep.mubr.msk.f32.mxu0 %vm3632_vm6, %v3599_v32  ;;  %5796 = vrot.lane.b32.xlu1 %v5569_v14, %s8001_s27  ;;  %v5536_v36 = vld [vmem:[#allocation4 + $0xa9] sm:$0xff]  ;;  %v5353_v56 = vsel %vm4854_vm7, %v5271_v38, -inf  ;;  %v5522_v38 = vld [vmem:[#allocation4 + $0x1] sm:$0xff] }
 0x503   : > { %5652 = vrot.lane.b32.xlu0 %v5533_v42, %s8000_s26  ;;  %7695 = vmatmul.mubr.msk.f32.gmra.mxu0 %vm3632_vm6, %v3600_v46  ;;  %v5574_v42 = vld [vmem:[#allocation4 + $0xc2] sm:$0xff] }
 0x504   : > { %v5351_v22 = vsel %vm4854_vm7, %v5272_v33, -inf  ;;  %4926 = vst.msk [vmem:[#allocation3 + $0x238] sm:$0xff] %vm4854_vm7, %v4797_v34  ;;  %v4796_v45 = vmax.f32 %v4438_v35, 0.0  ;;  %v2810_v2 = vpop.permute.xlu1 %2809  ;;  %v2808_v59 = vpop.permute.xlu0 %2807  ;;  %v5573_v34 = vld [vmem:[#allocation4 + $0xb2] sm:$0xff] }
 0x505   : > { %v5352_v30 = vmax.f32 %v5350_v40, %v5351_v22  ;;  %v3473_v1 = vsel %vm3363_vm4, %v11028_v44, %v2810_v2  ;;  %v3472_v62 = vsel %vm3363_vm4, %v11024_v29, %v2808_v59  ;;  %v5537_v35 = vld [vmem:[#allocation4 + $0xb1] sm:$0xff]  ;;  %v5538_v40 = vld [vmem:[#allocation4 + $0xc1] sm:$0xff] }
 0x506   : > { %4925 = vst.msk [vmem:[#allocation3 + $0x230] sm:$0xff] %vm4854_vm7, %v4796_v45  ;;  %5798 = vrot.lane.b32.xlu1 %v5570_v39, %s8001_s27  ;;  %v6261_v45 = vld [vmem:[%s12695_s3 + $0x78] sm:$0xff] }
 0x507   : > { %5470 = vst.msk [vmem:[#allocation4 + $0xd9] sm:$0xff] %vm4854_vm7, %v5352_v30  ;;  %5654 = vrot.lane.b32.xlu0 %v5534_v58, %s8000_s26  ;;  %6354 = vmatpush1.msra.mxu1 %v6261_v45 }
 0x508   : > { %v3198_v8 = vpop.permute.xlu1 %3197  ;;  %v3196_v9 = vpop.permute.xlu0 %3195  ;;  %6355 = vmatprep.subr.mxu1 %v12814_v50 }
 0x509   : > { %v3602_v19 = vsel %vm3492_vm5, %v3473_v1, %v3198_v8  ;;  %v3601_v49 = vsel %vm3492_vm5, %v3472_v62, %v3196_v9  ;;  %v5575_v62 = vld [vmem:[#allocation4 + $0xca] sm:$0xff] }
 0x50a   : > { %7697 = vmatprep.mubr.msk.f32.mxu0 %vm3632_vm6, %v3601_v49  ;;  %5800 = vrot.lane.b32.xlu1 %v5571_v61, %s8001_s27  ;;  %v5539_v9 = vld [vmem:[#allocation4 + $0xc9] sm:$0xff] }
 0x50b   : > { %v7645_v16 = vpop.f32.mrf.mxu0  ;;  %5656 = vrot.lane.b32.xlu0 %v5535_v13, %s8000_s26  ;;  %7698 = vmatmul.mubr.msk.f32.gmra.mxu0 %vm3632_vm6, %v3602_v19  ;;  %v6259_v19 = vld [vmem:[%s12695_s3 + $0x68] sm:$0xff] }
 0x50c   : > { %v4453_v29 = vadd.f32 %v11195_v55, %v7645_v16  ;;  %v2814_v44 = vpop.permute.xlu1 %2813  ;;  %v2812_v25 = vpop.permute.xlu0 %2811  ;;  %v5523_v16 = vld [vmem:[#allocation4 + $0x9] sm:$0xff] }
 0x50d   : > { %v5053_v0 = vld [vmem:[#allocation3 + $0x230] ss:$2 sm:$0xff]  ;;  %v5181_v41 = vld [vmem:[#allocation3 + $0x231] ss:$2 sm:$0xff]  ;;  %v4447_v54 = vpop.f32.mrf.mxu0  ;;  %v3475_v23 = vsel %vm3363_vm4, %v11059_v6, %v2814_v44  ;;  %v3474_v43 = vsel %vm3363_vm4, %v11055_v57, %v2812_v25 }
 0x50e   : > { %v5273_v21 = vmax.f32 %v5053_v0, %v5181_v41  ;;  %v4799_v26 = vmax.f32 %v4453_v29, 0.0  ;;  %v4448_v15 = vadd.f32 %v11195_v55, %v4447_v54  ;;  %5802 = vrot.lane.b32.xlu1 %v5572_v24, %s8001_s27  ;;  %v6258_v44 = vld [vmem:[%s12695_s3 + $0x60] sm:$0xff]  ;;  %v5540_v25 = vld [vmem:[#allocation4 + $0xd9] sm:$0xff]  ;;  %v7842_v0 = vpack.i.bf16 %v5523_v16, %v5522_v38 }
 0x50f   : > { %5658 = vrot.lane.b32.xlu0 %v5536_v36, %s8000_s26 }
 0x510   : > { %v5354_v52 = vsel %vm4854_vm7, %v5273_v21, -inf  ;;  %4928 = vst.msk [vmem:[#allocation3 + $0x248] sm:$0xff] %vm4854_vm7, %v4799_v26  ;;  %v4798_v12 = vmax.f32 %v4448_v15, 0.0  ;;  %v3202_v46 = vpop.permute.xlu1 %3201  ;;  %v3200_v32 = vpop.permute.xlu0 %3199  ;;  %v5558_v26 = vld [vmem:[#allocation4 + $0x2] sm:$0xff]  ;;  %v5559_v15 = vld [vmem:[#allocation4 + $0xa] sm:$0xff] }
 0x511   : > { %v5355_v18 = vmax.f32 %v5353_v56, %v5354_v52  ;;  %v3604_v14 = vsel %vm3492_vm5, %v3475_v23, %v3202_v46  ;;  %v3603_v33 = vsel %vm3492_vm5, %v3474_v43, %v3200_v32  ;;  %v6257_v23 = vld [vmem:[%s12695_s3 + $0x58] sm:$0xff]  ;;  %v6256_v43 = vld [vmem:[%s12695_s3 + $0x50] sm:$0xff] }
 0x512   : > { %4927 = vst.msk [vmem:[#allocation3 + $0x240] sm:$0xff] %vm4854_vm7, %v4798_v12  ;;  %7700 = vmatprep.mubr.msk.f32.mxu0 %vm3632_vm6, %v3603_v33  ;;  %5804 = vrot.lane.b32.xlu1 %v5573_v34, %s8001_s27 }
 0x513   : > { %5471 = vst.msk [vmem:[#allocation4 + $0xe1] sm:$0xff] %vm4854_vm7, %v5355_v18  ;;  %5660 = vrot.lane.b32.xlu0 %v5537_v35, %s8000_s26  ;;  %7701 = vmatmul.mubr.msk.f32.gmra.mxu0 %vm3632_vm6, %v3604_v14  ;;  %v6255_v14 = vld [vmem:[%s12695_s3 + $0x48] sm:$0xff]  ;;  %v6254_v35 = vld [vmem:[%s12695_s3 + $0x40] sm:$0xff] }
 0x514   : > { %v2818_v57 = vpop.permute.xlu1 %2817  ;;  %v2816_v6 = vpop.permute.xlu0 %2815 }
 0x515   : > { %v3477_v2 = vsel %vm3363_vm4, %v11095_v3, %v2818_v57  ;;  %v3476_v59 = vsel %vm3363_vm4, %v11091_v20, %v2816_v6  ;;  %v6260_v3 = vld [vmem:[%s12695_s3 + $0x70] sm:$0xff] }
 0x516   : > { %5806 = vrot.lane.b32.xlu1 %v5574_v42, %s8001_s27  ;;  %6356 = vmatpush1.msra.mxu1 %v6260_v3 }
 0x517   : > { %v7648_v22 = vpop.f32.mrf.mxu0  ;;  %5662 = vrot.lane.b32.xlu0 %v5538_v40, %s8000_s26  ;;  %6357 = vmatprep.subr.mxu1 %v12814_v50 }
 0x518   : > { %v4463_v30 = vadd.f32 %v11195_v55, %v7648_v22  ;;  %v3206_v39 = vpop.permute.xlu1 %3205  ;;  %v3204_v58 = vpop.permute.xlu0 %3203  ;;  %6358 = vmatpush1.msra.mxu1 %v6259_v19 }
 0x519   : > { %v3606_v4 = vsel %vm3492_vm5, %v3477_v2, %v3206_v39  ;;  %v3605_v53 = vsel %vm3492_vm5, %v3476_v59, %v3204_v58  ;;  %v4457_v1 = vpop.f32.mrf.mxu0  ;;  %6359 = vmatprep.subr.mxu1 %v12814_v50  ;;  %v6253_v59 = vld [vmem:[%s12695_s3 + $0x38] sm:$0xff] }
 0x51a   : > { %v4801_v8 = vmax.f32 %v4463_v30, 0.0  ;;  %v4458_v20 = vadd.f32 %v11195_v55, %v4457_v1  ;;  %7703 = vmatprep.mubr.msk.f32.mxu0 %vm3632_vm6, %v3605_v53  ;;  %5808 = vrot.lane.b32.xlu1 %v5575_v62, %s8001_s27  ;;  %v5576_v29 = vld [vmem:[#allocation4 + $0xda] sm:$0xff]  ;;  %v6250_v1 = vld [vmem:[%s12695_s3 + $0x20] sm:$0xff] }
 0x51b   : > { %5664 = vrot.lane.b32.xlu0 %v5539_v9, %s8000_s26  ;;  %7704 = vmatmul.mubr.msk.f32.gmra.mxu0 %vm3632_vm6, %v3606_v4  ;;  %v5541_v52 = vld [vmem:[#allocation4 + $0xe1] sm:$0xff]  ;;  %v6251_v4 = vld [vmem:[%s12695_s3 + $0x28] sm:$0xff] }
 0x51c   : > { %4930 = vst.msk [vmem:[#allocation3 + $0x258] sm:$0xff] %vm4854_vm7, %v4801_v8  ;;  %v4800_v49 = vmax.f32 %v4458_v20, 0.0  ;;  %v2822_v61 = vpop.permute.xlu1 %2821  ;;  %v2820_v13 = vpop.permute.xlu0 %2819  ;;  %6360 = vmatpush1.msra.mxu1 %v6258_v44  ;;  %v5055_v39 = vld [vmem:[#allocation3 + $0x240] ss:$2 sm:$0xff]  ;;  %v5183_v58 = vld [vmem:[#allocation3 + $0x241] ss:$2 sm:$0xff] }
 0x51d   : > { %v3479_v41 = vsel %vm3363_vm4, %v11124_v63, %v2822_v61  ;;  %v3478_v54 = vsel %vm3363_vm4, %v11120_v7, %v2820_v13  ;;  %6361 = vmatprep.subr.mxu1 %v12814_v50  ;;  %v7847_v63 = vpack.i.bf16 %v5559_v15, %v5558_v26  ;;  %v5274_v62 = vmax.f32 %v5055_v39, %v5183_v58  ;;  %v11606_v44 = vld [vmem:[#allocation8] ss:$0 sm:$0xff]  ;;  %v6247_v15 = vld [vmem:[%s12695_s3 + $0x8] sm:$0xff] }
 0x51e   : > { %4929 = vst.msk [vmem:[#allocation3 + $0x250] sm:$0xff] %vm4854_vm7, %v4800_v49  ;;  %5810 = vrot.lane.b32.xlu1 %v5576_v29, %s8001_s27  ;;  %6362 = vmatpush1.msra.mxu1 %v6257_v23 }
 0x51f   : > { %5666 = vrot.lane.b32.xlu0 %v5540_v25, %s8000_s26  ;;  %6363 = vmatprep.subr.mxu1 %v12814_v50  ;;  %v6248_v25 = vld [vmem:[%s12695_s3 + $0x10] sm:$0xff] }
 0x520   : > { %v3210_v24 = vpop.permute.xlu1 %3209  ;;  %v3208_v21 = vpop.permute.xlu0 %3207  ;;  %6364 = vmatpush1.msra.mxu1 %v6256_v43 }
 0x521   : > { %v3608_v36 = vsel %vm3492_vm5, %v3479_v41, %v3210_v24  ;;  %v3607_v56 = vsel %vm3492_vm5, %v3478_v54, %v3208_v21  ;;  %6365 = vmatprep.subr.mxu1 %v12814_v50 }
 0x522   : > { %7706 = vmatprep.mubr.msk.f32.mxu0 %vm3632_vm6, %v3607_v56  ;;  %5668 = vrot.lane.b32.xlu1 %v5541_v52, %s8000_s26 }
 0x523   : > { %v7651_v7 = vpop.f32.mrf.mxu0  ;;  %7707 = vmatmul.mubr.msk.f32.gmra.mxu0 %vm3632_vm6, %v3608_v36  ;;  %7843 = vrot.lane.b32.xlu0 %v7842_v0, %s8000_s26  ;;  %v5356_v0 = vsel %vm4854_vm7, %v5274_v62, -inf  ;;  %v6246_v36 = vld [vmem:[%s12695_s3] sm:$0xff] }
 0x524   : > { %v4473_v12 = vadd.f32 %v11195_v55, %v7651_v7  ;;  %v2826_v46 = vpop.permute.xlu1 %2825  ;;  %v2824_v32 = vpop.permute.xlu0 %2823  ;;  %6366 = vmatpush1.msra.mxu1 %v6255_v14 }
 0x525   : > { %v4467_v18 = vpop.f32.mrf.mxu0  ;;  %v3481_v57 = vsel %vm3363_vm4, %v11154_v11, %v2826_v46  ;;  %v3480_v6 = vsel %vm3363_vm4, %v11150_v31, %v2824_v32  ;;  %6367 = vmatprep.subr.mxu1 %v12814_v50  ;;  %v6252_v31 = vld [vmem:[%s12695_s3 + $0x30] sm:$0xff]  ;;  %v5057_v56 = vld [vmem:[#allocation3 + $0x250] ss:$2 sm:$0xff]  ;;  %v5185_v52 = vld [vmem:[#allocation3 + $0x251] ss:$2 sm:$0xff] }
 0x526   : > { %v4803_v33 = vmax.f32 %v4473_v12, 0.0  ;;  %v4468_v34 = vadd.f32 %v11195_v55, %v4467_v18  ;;  %6368 = vmatpush1.msra.mxu1 %v6254_v35  ;;  %v6277_v32 = vld [vmem:[%s12695_s3 + $0xf8] sm:$0xff] }
 0x527   : > { %7848 = vrot.lane.b32.xlu0 %v7847_v63, %s8001_s27  ;;  %6369 = vmatprep.subr.mxu1 %v12814_v50 }
 0x528   : > { %4932 = vst.msk [vmem:[#allocation3 + $0x268] sm:$0xff] %vm4854_vm7, %v4803_v33  ;;  %v4802_v42 = vmax.f32 %v4468_v34, 0.0  ;;  %v3214_v40 = vpop.permute.xlu1 %3213  ;;  %v3212_v22 = vpop.permute.xlu0 %3211  ;;  %6370 = vmatpush1.msra.mxu1 %v6253_v59  ;;  %v6274_v59 = vld [vmem:[%s12695_s3 + $0xe0] sm:$0xff] }
 0x529   : > { %v3610_v45 = vsel %vm3492_vm5, %v3481_v57, %v3214_v40  ;;  %v3609_v2 = vsel %vm3492_vm5, %v3480_v6, %v3212_v22  ;;  %6371 = vmatprep.subr.mxu1 %v12814_v50 }
 0x52a   : > { %4931 = vst.msk [vmem:[#allocation3 + $0x260] sm:$0xff] %vm4854_vm7, %v4802_v42  ;;  %7709 = vmatprep.mubr.msk.f32.mxu0 %vm3632_vm6, %v3609_v2  ;;  %6372 = vmatpush1.msra.mxu1 %v6252_v31  ;;  %v6275_v42 = vld [vmem:[%s12695_s3 + $0xe8] sm:$0xff] }
 0x52b   : > { %7710 = vmatmul.mubr.msk.f32.gmra.mxu0 %vm3632_vm6, %v3610_v45  ;;  %6373 = vmatprep.subr.mxu1 %v12814_v50 }
 0x52c   : > { %v2830_v11 = vpop.permute.xlu1 %2829  ;;  %v2828_v30 = vpop.permute.xlu0 %2827  ;;  %6374 = vmatpush1.msra.mxu1 %v6251_v4 }
 0x52d   : > { %v3483_v3 = vsel %vm3363_vm4, %v11187_v5, %v2830_v11  ;;  %v3482_v8 = vsel %vm3363_vm4, %v11183_v10, %v2828_v30  ;;  %6375 = vmatprep.subr.mxu1 %v12814_v50  ;;  %v6249_v5 = vld [vmem:[%s12695_s3 + $0x18] sm:$0xff] }
 0x52e   : > { %6376 = vmatpush1.msra.mxu1 %v6250_v1 }
 0x52f   : > { %v7654_v53 = vpop.f32.mrf.mxu0  ;;  %6377 = vmatprep.subr.mxu1 %v12814_v50 }
 0x530   : > { %v4483_v20 = vadd.f32 %v11195_v55, %v7654_v53  ;;  %v3218_v9 = vpop.permute.xlu1 %3217  ;;  %v3216_v19 = vpop.permute.xlu0 %3215  ;;  %6378 = vmatpush1.msra.mxu1 %v6249_v5 }
 0x531   : > { %v5059_v49 = vld [vmem:[#allocation3 + $0x260] ss:$2 sm:$0xff]  ;;  %v5187_v61 = vld [vmem:[#allocation3 + $0x261] ss:$2 sm:$0xff]  ;;  %v3612_v13 = vsel %vm3492_vm5, %v3483_v3, %v3218_v9  ;;  %v3611_v38 = vsel %vm3492_vm5, %v3482_v8, %v3216_v19  ;;  %v4477_v16 = vpop.f32.mrf.mxu0  ;;  %6379 = vmatprep.subr.mxu1 %v12814_v50  ;;  %v6270_v19 = vld [vmem:[%s12695_s3 + $0xc0] sm:$0xff] }
 0x532   : > { %v5276_v29 = vmax.f32 %v5059_v49, %v5187_v61  ;;  %v4805_v10 = vmax.f32 %v4483_v20, 0.0  ;;  %v4478_v55 = vadd.f32 %v11606_v44, %v4477_v16  ;;  %7712 = vmatprep.mubr.msk.f32.mxu0 %vm3632_vm6, %v3611_v38  ;;  %6380 = vmatpush1.msra.mxu1 %v6248_v25  ;;  %v6273_v3 = vld [vmem:[%s12695_s3 + $0xd8] sm:$0xff]  ;;  %v6271_v20 = vld [vmem:[%s12695_s3 + $0xc8] sm:$0xff] }
 0x533   : > { %7713 = vmatmul.mubr.msk.f32.gmra.mxu0 %vm3632_vm6, %v3612_v13  ;;  %6381 = vmatprep.subr.mxu1 %v12814_v50 }
 0x534   : > { %v5357_v41 = vsel %vm4854_vm7, %v5276_v29, -inf  ;;  %4934 = vst.msk [vmem:[#allocation3 + $0x278] sm:$0xff] %vm4854_vm7, %v4805_v10  ;;  %v4804_v54 = vmax.f32 %v4478_v55, 0.0  ;;  %v2834_v24 = vpop.permute.xlu1 %2833  ;;  %v2832_v21 = vpop.permute.xlu0 %2831  ;;  %6382 = vmatpush1.msra.mxu1 %v6247_v15  ;;  %v6269_v55 = vld [vmem:[%s12695_s3 + $0xb8] sm:$0xff] }
 0x535   : > { %v5358_v26 = vmax.f32 %v5356_v0, %v5357_v41  ;;  %v3485_v23 = vsel %vm3363_vm4, %v11220_v28, %v2834_v24  ;;  %v3484_v7 = vsel %vm3363_vm4, %v11216_v17, %v2832_v21  ;;  %6383 = vmatprep.subr.mxu1 %v12814_v50  ;;  %v5275_v28 = vmax.f32 %v5057_v56, %v5185_v52  ;;  %v6276_v17 = vld [vmem:[%s12695_s3 + $0xf0] sm:$0xff]  ;;  %v6267_v24 = vld [vmem:[%s12695_s3 + $0xa8] sm:$0xff]  ;;  %v6266_v21 = vld [vmem:[%s12695_s3 + $0xa0] sm:$0xff] }
 0x536   : > { %4933 = vst.msk [vmem:[#allocation3 + $0x270] sm:$0xff] %vm4854_vm7, %v4804_v54  ;;  %6384 = vmatpush1.msra.mxu1 %v6246_v36 }
 0x537   : > { %5472 = vst.msk [vmem:[#allocation4 + $0xf1] sm:$0xff] %vm4854_vm7, %v5358_v26  ;;  %6385 = vmatprep.subr.mxu1 %v12814_v50  ;;  %v5359_v2 = vsel %vm4854_vm7, %v5275_v28, -inf }
 0x538   : > { %v3222_v63 = vpop.permute.xlu1 %3221  ;;  %v3220_v43 = vpop.permute.xlu0 %3219  ;;  %6386 = vmatpush2.msra.mxu1 %v6277_v32  ;;  %v6263_v32 = vld [vmem:[%s12695_s3 + $0x88] sm:$0xff] }
 0x539   : > { %v3614_v12 = vsel %vm3492_vm5, %v3485_v23, %v3222_v63  ;;  %v3613_v46 = vsel %vm3492_vm5, %v3484_v7, %v3220_v43  ;;  %6387 = vmatprep.subr.mxu1 %v12814_v50  ;;  %v6265_v7 = vld [vmem:[%s12695_s3 + $0x98] sm:$0xff] }
 0x53a   : > { %7715 = vmatprep.mubr.msk.f32.mxu0 %vm3632_vm6, %v3613_v46  ;;  %6388 = vmatpush2.msra.mxu1 %v6276_v17  ;;  %v5490_v17 = vld [vmem:[#allocation4 + $0x30] sm:$0xff] }
 0x53b   : > { %v7657_v18 = vpop.f32.mrf.mxu0  ;;  %7716 = vmatmul.mubr.msk.f32.gmra.mxu0 %vm3632_vm6, %v3614_v12  ;;  %6389 = vmatprep.subr.mxu1 %v12814_v50 }
 0x53c   : > { %v4493_v14 = vadd.f32 %v11606_v44, %v7657_v18  ;;  %v2838_v33 = vpop.permute.xlu1 %2837  ;;  %v2836_v34 = vpop.permute.xlu0 %2835  ;;  %6390 = vmatpush2.msra.mxu1 %v6275_v42 }
 0x53d   : > { %v5061_v35 = vld [vmem:[#allocation3 + $0x270] ss:$2 sm:$0xff]  ;;  %v5189_v57 = vld [vmem:[#allocation3 + $0x271] ss:$2 sm:$0xff]  ;;  %v4487_v6 = vpop.f32.mrf.mxu0  ;;  %v3487_v11 = vsel %vm3363_vm4, %v11251_v48, %v2838_v33  ;;  %v3486_v30 = vsel %vm3363_vm4, %v11247_v60, %v2836_v34  ;;  %6391 = vmatprep.subr.mxu1 %v12814_v50  ;;  %v6272_v60 = vld [vmem:[%s12695_s3 + $0xd0] sm:$0xff] }
 0x53e   : > { %v5277_v40 = vmax.f32 %v5061_v35, %v5189_v57  ;;  %v4807_v22 = vmax.f32 %v4493_v14, 0.0  ;;  %v4488_v45 = vadd.f32 %v11606_v44, %v4487_v6  ;;  %6392 = vmatpush2.msra.mxu1 %v6274_v59  ;;  %v6262_v34 = vld [vmem:[%s12695_s3 + $0x80] sm:$0xff] }
 0x53f   : > { %6393 = vmatprep.subr.mxu1 %v12814_v50 }
 0x540   : > { %v5360_v31 = vsel %vm4854_vm7, %v5277_v40, -inf  ;;  %4936 = vst.msk [vmem:[#allocation3 + $0x288] sm:$0xff] %vm4854_vm7, %v4807_v22  ;;  %v4806_v39 = vmax.f32 %v4488_v45, 0.0  ;;  %v3226_v58 = vpop.permute.xlu1 %3225  ;;  %v3224_v4 = vpop.permute.xlu0 %3223  ;;  %6394 = vmatpush2.msra.mxu1 %v6273_v3  ;;  %v5488_v22 = vld [vmem:[#allocation4 + $0x18] sm:$0xff]  ;;  %v5489_v45 = vld [vmem:[#allocation4 + $0x20] sm:$0xff] }
 0x541   : > { %v5361_v53 = vmax.f32 %v5359_v2, %v5360_v31  ;;  %v3616_v1 = vsel %vm3492_vm5, %v3487_v11, %v3226_v58  ;;  %v3615_v62 = vsel %vm3492_vm5, %v3486_v30, %v3224_v4  ;;  %6395 = vmatprep.subr.mxu1 %v12814_v50 }
 0x542   : > { %4935 = vst.msk [vmem:[#allocation3 + $0x280] sm:$0xff] %vm4854_vm7, %v4806_v39  ;;  %7718 = vmatprep.mubr.msk.f32.mxu0 %vm3632_vm6, %v3615_v62  ;;  %6396 = vmatpush2.msra.mxu1 %v6272_v60 }
 0x543   : > { %5473 = vst.msk [vmem:[#allocation4 + $0xf9] sm:$0xff] %vm4854_vm7, %v5361_v53  ;;  %7719 = vmatmul.mubr.msk.f32.gmra.mxu0 %vm3632_vm6, %v3616_v1  ;;  %6397 = vmatprep.subr.mxu1 %v12814_v50  ;;  %v5542_v1 = vld [vmem:[#allocation4 + $0xf1] sm:$0xff] }
 0x544   : > { %v2842_v48 = vpop.permute.xlu1 %2841  ;;  %v2840_v8 = vpop.permute.xlu0 %2839  ;;  %6398 = vmatpush2.msra.mxu1 %v6271_v20 }
 0x545   : > { %v3489_v49 = vsel %vm3363_vm4, %v11285_v47, %v2842_v48  ;;  %v3488_v61 = vsel %vm3363_vm4, %v11281_v37, %v2840_v8  ;;  %6399 = vmatprep.subr.mxu1 %v12814_v50  ;;  %v6268_v37 = vld [vmem:[%s12695_s3 + $0xb0] sm:$0xff] }
 0x546   : > { %6400 = vmatpush2.msra.mxu1 %v6270_v19 }
 0x547   : > { %v7660_v9 = vpop.f32.mrf.mxu0  ;;  %6401 = vmatprep.subr.mxu1 %v12814_v50 }
 0x548   : > { %v4503_v13 = vadd.f32 %v11606_v44, %v7660_v9  ;;  %v3230_v38 = vpop.permute.xlu1 %3229  ;;  %v3228_v16 = vpop.permute.xlu0 %3227  ;;  %6402 = vmatpush2.msra.mxu1 %v6269_v55 }
 0x549   : > { %v3618_v5 = vsel %vm3492_vm5, %v3489_v49, %v3230_v38  ;;  %v3617_v29 = vsel %vm3492_vm5, %v3488_v61, %v3228_v16  ;;  %v4497_v10 = vpop.f32.mrf.mxu0  ;;  %6403 = vmatprep.subr.mxu1 %v12814_v50  ;;  %v5063_v58 = vld [vmem:[#allocation3 + $0x280] ss:$2 sm:$0xff]  ;;  %v5191_v4 = vld [vmem:[#allocation3 + $0x281] ss:$2 sm:$0xff] }
 0x54a   : > { %v4809_v47 = vmax.f32 %v4503_v13, 0.0  ;;  %v4498_v25 = vadd.f32 %v11606_v44, %v4497_v10  ;;  %7721 = vmatprep.mubr.msk.f32.mxu0 %vm3632_vm6, %v3617_v29  ;;  %6404 = vmatpush2.msra.mxu1 %v6268_v37  ;;  %v5278_v8 = vmax.f32 %v5063_v58, %v5191_v4  ;;  %v5578_v38 = vld [vmem:[#allocation4 + $0xf2] sm:$0xff]  ;;  %v5577_v10 = vld [vmem:[#allocation4 + $0xe2] sm:$0xff] }
 0x54b   : > { %7722 = vmatmul.mubr.msk.f32.gmra.mxu0 %vm3632_vm6, %v3618_v5  ;;  %6405 = vmatprep.subr.mxu1 %v12814_v50 }
 0x54c   : > { %4938 = vst.msk [vmem:[#allocation3 + $0x298] sm:$0xff] %vm4854_vm7, %v4809_v47  ;;  %v4808_v0 = vmax.f32 %v4498_v25, 0.0  ;;  %v2846_v41 = vpop.permute.xlu1 %2845  ;;  %v2844_v54 = vpop.permute.xlu0 %2843  ;;  %6406 = vmatpush2.msra.mxu1 %v6267_v24  ;;  %v5362_v55 = vsel %vm4854_vm7, %v5278_v8, -inf  ;;  %v5493_v24 = vld [vmem:[#allocation4 + $0x50] sm:$0xff] }
 0x54d   : > { %v3491_v26 = vsel %vm3363_vm4, %v11312_v27, %v2846_v41  ;;  %v3490_v15 = vsel %vm3363_vm4, %v11308_v51, %v2844_v54  ;;  %6407 = vmatprep.subr.mxu1 %v12814_v50  ;;  %v6264_v51 = vld [vmem:[%s12695_s3 + $0x90] sm:$0xff] }
 0x54e   : > { %4937 = vst.msk [vmem:[#allocation3 + $0x290] sm:$0xff] %vm4854_vm7, %v4808_v0  ;;  %6408 = vmatpush2.msra.mxu1 %v6266_v21 }
 0x54f   : > { %6409 = vmatprep.subr.mxu1 %v12814_v50 }
 0x550   : > { %v3234_v36 = vpop.permute.xlu1 %3233  ;;  %v3232_v56 = vpop.permute.xlu0 %3231  ;;  %6410 = vmatpush2.msra.mxu1 %v6265_v7 }
 0x551   : > { %v3620_v52 = vsel %vm3492_vm5, %v3491_v26, %v3234_v36  ;;  %v3619_v23 = vsel %vm3492_vm5, %v3490_v15, %v3232_v56  ;;  %6411 = vmatprep.subr.mxu1 %v12814_v50  ;;  %v5579_v15 = vld [vmem:[#allocation4 + $0xfa] sm:$0xff]  ;;  %v5492_v36 = vld [vmem:[#allocation4 + $0x48] sm:$0xff] }
 0x552   : > { %7724 = vmatprep.mubr.msk.f32.mxu0 %vm3632_vm6, %v3619_v23  ;;  %6412 = vmatpush2.msra.mxu1 %v6264_v51  ;;  %v5543_v23 = vld [vmem:[#allocation4 + $0xf9] sm:$0xff] }
 0x553   : > { %v7663_v27 = vpop.f32.mrf.mxu0  ;;  %7725 = vmatmul.mubr.msk.f32.gmra.mxu0 %vm3632_vm6, %v3620_v52  ;;  %6413 = vmatprep.subr.mxu1 %v12814_v50 }
 0x554   : > { %v4513_v63 = vadd.f32 %v11606_v44, %v7663_v27  ;;  %v5639_v43 = vpop.permute.xlu1 %5638  ;;  %6414 = vmatpush2.msra.mxu1 %v6263_v32 }
 0x555   : > { %v4507_v12 = vpop.f32.mrf.mxu0  ;;  %v7834_v46 = vpop.permute.xlu0 %7833  ;;  %v5886_v57 = vsel %vm4854_vm7, %v5490_v17, %v5639_v43  ;;  %6415 = vmatprep.subr.mxu1 %v12814_v50  ;;  %v5491_v50 = vld [vmem:[#allocation4 + $0x38] sm:$0xff] }
 0x556   : > { %v4811_v28 = vmax.f32 %v4513_v63, 0.0  ;;  %v4508_v18 = vadd.f32 %v11606_v44, %v4507_v12  ;;  %v7836_v14 = vunpack.i.h.bf16 %v7834_v46  ;;  %v7835_v33 = vunpack.i.l.bf16 %v7834_v46  ;;  %6416 = vmatpush2.msra.mxu1 %v6262_v34  ;;  %v5065_v21 = vld [vmem:[#allocation3 + $0x290] ss:$2 sm:$0xff]  ;;  %v5193_v26 = vld [vmem:[#allocation3 + $0x291] ss:$2 sm:$0xff] }
 0x557   : > { %v5279_v51 = vmax.f32 %v5065_v21, %v5193_v26 }
 0x558   : > { %4940 = vst.msk [vmem:[#allocation3 + $0x2a8] sm:$0xff] %vm4854_vm7, %v4811_v28  ;;  %v4810_v35 = vmax.f32 %v4508_v18, 0.0  ;;  %v5783_v6 = vpop.permute.xlu1 %5782  ;;  %v5884_v31 = vsel %vm4854_vm7, %v5488_v22, %v7835_v33  ;;  %v5885_v11 = vsel %vm4854_vm7, %v5489_v45, %v7836_v14 }
 0x559   : > { %v11740_v42 = vsel %vm5918_vm9, %v5886_v57, %v5783_v6  ;;  %v7839_v40 = vpop.permute.xlu0 %7838  ;;  %v5365_v33 = vsel %vm4854_vm7, %v5279_v51, -inf }
 0x55a   : > { %4939 = vst.msk [vmem:[#allocation3 + $0x2a0] sm:$0xff] %vm4854_vm7, %v4810_v35  ;;  %v7841_v2 = vunpack.i.h.bf16 %v7839_v40  ;;  %v7840_v59 = vunpack.i.l.bf16 %v7839_v40  ;;  %6085 = vrot.lane.b32.xlu0 %v11740_v42, %s8001_s27 }
 0x55c   : > { %v11749_v30 = vsel %vm5918_vm9, %v5884_v31, %v7840_v59  ;;  %v11752_v39 = vsel %vm5918_vm9, %v5885_v11, %v7841_v2  ;;  %v5785_v3 = vpop.permute.xlu1 %5784  ;;  %v5494_v59 = vld [vmem:[#allocation4 + $0x60] sm:$0xff] }
 0x55d   : > { %v5641_v53 = vpop.permute.xlu0 %5640  ;;  %v7852_v62 = vpack.i.bf16 %v11752_v39, %v11749_v30 }
 0x55e   : > { %v5887_v60 = vsel %vm4854_vm7, %v5491_v50, %v5641_v53  ;;  %5670 = vrot.lane.b32.xlu0 %v5542_v1, %s8000_s26 }
 0x55f   : > { %v7666_v48 = vpop.f32.mrf.mxu0  ;;  %7853 = vrot.lane.b32.xlu1 %v7852_v62, %s8002_s29  ;;  %v11761_v49 = vsel %vm5918_vm9, %v5887_v60, %v5785_v3 }
 0x560   : > { %v4523_v20 = vadd.f32 %v11606_v44, %v7666_v48  ;;  %v7857_v25 = vpack.i.bf16 %v11761_v49, %v11740_v42  ;;  %v5787_v0 = vpop.permute.xlu1 %5786  ;;  %v5495_v48 = vld [vmem:[#allocation4 + $0x68] sm:$0xff] }
 0x561   : > { %v5067_v9 = vld [vmem:[#allocation3 + $0x2a0] ss:$2 sm:$0xff]  ;;  %v5195_v19 = vld [vmem:[#allocation3 + $0x2a1] ss:$2 sm:$0xff]  ;;  %v4517_v61 = vpop.f32.mrf.mxu0  ;;  %v5643_v13 = vpop.permute.xlu0 %5642 }
 0x562   : > { %v5280_v16 = vmax.f32 %v5067_v9, %v5195_v19  ;;  %v4813_v5 = vmax.f32 %v4523_v20, 0.0  ;;  %v4518_v29 = vadd.f32 %v11606_v44, %v4517_v61  ;;  %5814 = vrot.lane.b32.xlu0 %v5578_v38, %s8001_s27  ;;  %v5888_v7 = vsel %vm4854_vm7, %v5492_v36, %v5643_v13 }
 0x563   : > { %5812 = vrot.lane.b32.xlu1 %v5577_v10, %s8001_s27  ;;  %v11788_v14 = vsel %vm5918_vm9, %v5888_v7, %v5787_v0 }
 0x564   : > { %v5363_v47 = vsel %vm4854_vm7, %v5280_v16, -inf  ;;  %4942 = vst.msk [vmem:[#allocation3 + $0x2b8] sm:$0xff] %vm4854_vm7, %v4813_v5  ;;  %v4812_v37 = vmax.f32 %v4518_v29, 0.0  ;;  %v5789_v56 = vpop.permute.xlu1 %5788 }
 0x565   : > { %v5364_v41 = vmax.f32 %v5362_v55, %v5363_v47  ;;  %v5645_v54 = vpop.permute.xlu0 %5644 }
 0x566   : > { %4941 = vst.msk [vmem:[#allocation3 + $0x2b0] sm:$0xff] %vm4854_vm7, %v4812_v37  ;;  %7858 = vrot.lane.b32.xlu0 %v7857_v25, %s8002_s29  ;;  %v5889_v52 = vsel %vm4854_vm7, %v5493_v24, %v5645_v54 }
 0x567   : > { %5474 = vst.msk [vmem:[#allocation4 + $0x109] sm:$0xff] %vm4854_vm7, %v5364_v41  ;;  %6087 = vrot.lane.b32.xlu1 %v11761_v49, %s8001_s27  ;;  %v11782_v32 = vsel %vm5918_vm9, %v5889_v52, %v5789_v56 }
 0x568   : > { %v5791_v4 = vpop.permute.xlu1 %5790  ;;  %v7862_v62 = vpack.i.bf16 %v11782_v32, %v11788_v14 }
 0x569   : > { %v5647_v22 = vpop.permute.xlu0 %5646 }
 0x56a   : > { %5816 = vrot.lane.b32.xlu0 %v5579_v15, %s8001_s27  ;;  %v5890_v53 = vsel %vm4854_vm7, %v5494_v59, %v5647_v22 }
 0x56b   : > { %v7669_v27 = vpop.f32.mrf.mxu0  ;;  %5672 = vrot.lane.b32.xlu1 %v5543_v23, %s8000_s26  ;;  %v11808_v3 = vsel %vm5918_vm9, %v5890_v53, %v5791_v4 }
 0x56c   : > { %v4533_v63 = vadd.f32 %v11606_v44, %v7669_v27  ;;  %v5793_v20 = vpop.permute.xlu1 %5792 }
 0x56d   : > { %v5069_v43 = vld [vmem:[#allocation3 + $0x2b0] ss:$2 sm:$0xff]  ;;  %v5197_v12 = vld [vmem:[#allocation3 + $0x2b1] ss:$2 sm:$0xff]  ;;  %v4527_v46 = vpop.f32.mrf.mxu0  ;;  %v5649_v60 = vpop.permute.xlu0 %5648 }
 0x56e   : > { %v5281_v28 = vmax.f32 %v5069_v43, %v5197_v12  ;;  %v4815_v18 = vmax.f32 %v4533_v63, 0.0  ;;  %v4528_v17 = vadd.f32 %v11606_v44, %v4527_v46  ;;  %6091 = vrot.lane.b32.xlu0 %v11782_v32, %s8001_s27  ;;  %v5544_v6 = vld [vmem:[#allocation4 + $0x109] sm:$0xff]  ;;  %v5891_v9 = vsel %vm4854_vm7, %v5495_v48, %v5649_v60 }
 0x56f   : > { %6089 = vrot.lane.b32.xlu1 %v11788_v14, %s8001_s27  ;;  %v11818_v5 = vsel %vm5918_vm9, %v5891_v9, %v5793_v20 }
 0x570   : > { %v5366_v34 = vsel %vm4854_vm7, %v5281_v28, -inf  ;;  %4944 = vst.msk [vmem:[#allocation3 + $0x2c8] sm:$0xff] %vm4854_vm7, %v4815_v18  ;;  %v4814_v35 = vmax.f32 %v4528_v17, 0.0  ;;  %v5795_v27 = vpop.permute.xlu1 %5794 }
 0x571   : > { %v5367_v57 = vmax.f32 %v5365_v33, %v5366_v34  ;;  %v5651_v10 = vpop.permute.xlu0 %5650 }
 0x572   : > { %4943 = vst.msk [vmem:[#allocation3 + $0x2c0] sm:$0xff] %vm4854_vm7, %v4814_v35 }
 0x573   : > { %5475 = vst.msk [vmem:[#allocation4 + $0x111] sm:$0xff] %vm4854_vm7, %v5367_v57  ;;  %5674 = vrot.lane.b32.xlu1 %v5544_v6, %s8000_s26 }
 0x574   : > { %v11836_v18 = vpop.permute.xlu1 %5796 }
 0x575   : > { %v11825_v21 = vpop.permute.xlu0 %5652 }
 0x577   : > { %v7672_v40 = vpop.f32.mrf.mxu0 }
 0x578   : > { %v4543_v45 = vadd.f32 %v11606_v44, %v7672_v40 }
 0x579   : > { %v4537_v2 = vpop.f32.mrf.mxu0  ;;  %v5071_v55 = vld [vmem:[#allocation3 + $0x2c0] ss:$2 sm:$0xff]  ;;  %v5199_v47 = vld [vmem:[#allocation3 + $0x2c1] ss:$2 sm:$0xff]  ;;  %v11833_v51 = vpop.permute.xlu0 %5654 }
 0x57a   : > { %v4817_v31 = vmax.f32 %v4543_v45, 0.0  ;;  %v4538_v11 = vadd.f32 %v11606_v44, %v4537_v2  ;;  %v5545_v50 = vld [vmem:[#allocation4 + $0x111] sm:$0xff]  ;;  %v5282_v37 = vmax.f32 %v5071_v55, %v5199_v47 }
 0x57b   : > { %v5580_v58 = vld [vmem:[#allocation4 + $0x10a] sm:$0xff]  ;;  %5676 = vrot.lane.b32.xlu0 %v5545_v50, %s8000_s26  ;;  %v5581_v8 = vld [vmem:[#allocation4 + $0x112] sm:$0xff] }
 0x57c   : > { %5818 = vrot.lane.b32.xlu1 %v5580_v58, %s8001_s27  ;;  %4946 = vst.msk [vmem:[#allocation3 + $0x2d8] sm:$0xff] %vm4854_vm7, %v4817_v31  ;;  %v4816_v1 = vmax.f32 %v4538_v11, 0.0  ;;  %v5368_v56 = vsel %vm4854_vm7, %v5282_v37, -inf  ;;  %v11846_v11 = vpop.permute.xlu1 %5798 }
 0x57d   : > { %v11838_v35 = vpop.permute.xlu0 %5656 }
 0x57e   : > { %4945 = vst.msk [vmem:[#allocation3 + $0x2d0] sm:$0xff] %vm4854_vm7, %v4816_v1 }
 0x57f   : > { %6093 = vrot.lane.b32.xlu0 %v11808_v3, %s8001_s27 }
 0x580   : > { %7863 = vrot.lane.b32.xlu1 %v7862_v62, %s8002_s29  ;;  %v11854_v48 = vpop.permute.xlu1 %5800 }
 0x581   : > { %v11849_v58 = vpop.permute.xlu0 %5658 }
 0x583   : > { %v7675_v19 = vpop.f32.mrf.mxu0 }
 0x584   : > { %5820 = vrot.lane.b32.xlu1 %v5581_v8, %s8001_s27  ;;  %v4553_v61 = vadd.f32 %v11606_v44, %v7675_v19  ;;  %v5496_v8 = vld [vmem:[#allocation4 + $0x78] sm:$0xff]  ;;  %v11869_v37 = vpop.permute.xlu1 %5802 }
 0x585   : > { %v4547_v13 = vpop.f32.mrf.mxu0  ;;  %v5073_v63 = vld [vmem:[#allocation3 + $0x2d0] ss:$2 sm:$0xff]  ;;  %v5201_v43 = vld [vmem:[#allocation3 + $0x2d1] ss:$2 sm:$0xff]  ;;  %v11856_v20 = vpop.permute.xlu0 %5660 }
 0x586   : > { %v4819_v38 = vmax.f32 %v4553_v61, 0.0  ;;  %v4548_v16 = vadd.f32 %v11606_v44, %v4547_v13  ;;  %v5283_v46 = vmax.f32 %v5073_v63, %v5201_v43  ;;  %v5892_v61 = vsel %vm4854_vm7, %v5496_v8, %v5651_v10 }
 0x588   : > { %6095 = vrot.lane.b32.xlu1 %v11818_v5, %s8001_s27  ;;  %4948 = vst.msk [vmem:[#allocation3 + $0x2e8] sm:$0xff] %vm4854_vm7, %v4819_v38  ;;  %v4818_v29 = vmax.f32 %v4548_v16, 0.0  ;;  %v5371_v45 = vsel %vm4854_vm7, %v5283_v46, -inf  ;;  %v7867_v16 = vpack.i.bf16 %v11818_v5, %v11808_v3 }
 0x589   : > { %v11874_v10 = vpop.permute.xlu0 %5662 }
 0x58a   : > { %4947 = vst.msk [vmem:[#allocation3 + $0x2e0] sm:$0xff] %vm4854_vm7, %v4818_v29 }
 0x58f   : > { %v7678_v25 = vpop.f32.mrf.mxu0 }
 0x590   : > { %v4563_v0 = vadd.f32 %v11606_v44, %v7678_v25  ;;  %v11867_v25 = vsel %vm5918_vm9, %v5892_v61, %v5795_v27 }
 0x591   : > { %v5075_v41 = vld [vmem:[#allocation3 + $0x2e0] ss:$2 sm:$0xff]  ;;  %v5203_v54 = vld [vmem:[#allocation3 + $0x2e1] ss:$2 sm:$0xff]  ;;  %v4557_v24 = vpop.f32.mrf.mxu0 }
 0x592   : > { %v5284_v26 = vmax.f32 %v5075_v41, %v5203_v54  ;;  %v4821_v15 = vmax.f32 %v4563_v0, 0.0  ;;  %v4558_v36 = vadd.f32 %v11606_v44, %v4557_v24  ;;  %v5497_v41 = vld [vmem:[#allocation4 + $0x80] sm:$0xff] }
 0x593   : > { %v5893_v24 = vsel %vm4854_vm7, %v5497_v41, %v11825_v21 }
 0x594   : > { %v5369_v52 = vsel %vm4854_vm7, %v5284_v26, -inf  ;;  %4950 = vst.msk [vmem:[#allocation3 + $0x2f8] sm:$0xff] %vm4854_vm7, %v4821_v15  ;;  %v4820_v23 = vmax.f32 %v4558_v36, 0.0  ;;  %v11882_v36 = vpop.permute.xlu1 %5804  ;;  %v11889_v43 = vsel %vm5918_vm9, %v5893_v24, %v11836_v18 }
 0x595   : > { %v5370_v7 = vmax.f32 %v5368_v56, %v5369_v52 }
 0x596   : > { %4949 = vst.msk [vmem:[#allocation3 + $0x2f0] sm:$0xff] %vm4854_vm7, %v4820_v23 }
 0x597   : > { %5476 = vst.msk [vmem:[#allocation4 + $0x121] sm:$0xff] %vm4854_vm7, %v5370_v7  ;;  %v11884_v7 = vpop.permute.xlu0 %5664 }
 0x59b   : > { %v7681_v12 = vpop.f32.mrf.mxu0 }
 0x59c   : > { %v4573_v28 = vadd.f32 %v11606_v44, %v7681_v12 }
 0x59d   : > { %v5077_v17 = vld [vmem:[#allocation3 + $0x2f0] ss:$2 sm:$0xff]  ;;  %v5205_v33 = vld [vmem:[#allocation3 + $0x2f1] ss:$2 sm:$0xff]  ;;  %v4567_v34 = vpop.f32.mrf.mxu0 }
 0x59e   : > { %v5285_v57 = vmax.f32 %v5077_v17, %v5205_v33  ;;  %v4823_v6 = vmax.f32 %v4573_v28, 0.0  ;;  %v4568_v40 = vadd.f32 %v11606_v44, %v4567_v34  ;;  %v5546_v22 = vld [vmem:[#allocation4 + $0x121] sm:$0xff]  ;;  %v11895_v33 = vpop.permute.xlu1 %5806 }
 0x59f   : > { %5678 = vrot.lane.b32.xlu0 %v5546_v22, %s8000_s26 }
 0x5a0   : > { %v5372_v2 = vsel %vm4854_vm7, %v5285_v57, -inf  ;;  %4952 = vst.msk [vmem:[#allocation3 + $0x308] sm:$0xff] %vm4854_vm7, %v4823_v6  ;;  %v4822_v59 = vmax.f32 %v4568_v40, 0.0  ;;  %v11897_v57 = vpop.permute.xlu0 %5666 }
 0x5a1   : > { %v5373_v31 = vmax.f32 %v5371_v45, %v5372_v2 }
 0x5a2   : > { %4951 = vst.msk [vmem:[#allocation3 + $0x300] sm:$0xff] %vm4854_vm7, %v4822_v59 }
 0x5a3   : > { %5477 = vst.msk [vmem:[#allocation4 + $0x129] sm:$0xff] %vm4854_vm7, %v5373_v31  ;;  %v7684_v50 = vpop.f32.mrf.mxu0 }
 0x5a4   : > { %v4583_v4 = vadd.f32 %v11606_v44, %v7684_v50 }
 0x5a5   : > { %v4577_v53 = vpop.f32.mrf.mxu0 }
 0x5a6   : > { %v4825_v1 = vmax.f32 %v4583_v4, 0.0  ;;  %v4578_v62 = vadd.f32 %v11606_v44, %v4577_v53 }
 0x5a8   : > { %4954 = vst.msk [vmem:[#allocation3 + $0x318] sm:$0xff] %vm4854_vm7, %v4825_v1  ;;  %v4824_v60 = vmax.f32 %v4578_v62, 0.0  ;;  %v11905_v1 = vpop.permute.xlu0 %7843  ;;  %v11907_v62 = vpop.permute.xlu1 %5808 }
 0x5a9   : > { %v5079_v56 = vld [vmem:[#allocation3 + $0x300] ss:$2 sm:$0xff]  ;;  %v5207_v52 = vld [vmem:[#allocation3 + $0x301] ss:$2 sm:$0xff] }
 0x5aa   : > { %4953 = vst.msk [vmem:[#allocation3 + $0x310] sm:$0xff] %vm4854_vm7, %v4824_v60  ;;  %v5582_v9 = vld [vmem:[#allocation4 + $0x122] sm:$0xff]  ;;  %v5583_v54 = vld [vmem:[#allocation4 + $0x12a] sm:$0xff]  ;;  %v5286_v21 = vmax.f32 %v5079_v56, %v5207_v52 }
 0x5ab   : > { %v5547_v19 = vld [vmem:[#allocation4 + $0x129] sm:$0xff]  ;;  %5822 = vrot.lane.b32.xlu0 %v5582_v9, %s8001_s27  ;;  %v7687_v13 = vpop.f32.mrf.mxu0  ;;  %v5486_v56 = vld [vmem:[#allocation4] sm:$0xff] }
 0x5ac   : > { %5680 = vrot.lane.b32.xlu1 %v5547_v19, %s8000_s26  ;;  %v4593_v38 = vadd.f32 %v11606_v44, %v7687_v13  ;;  %v5374_v18 = vsel %vm4854_vm7, %v5286_v21, -inf  ;;  %v11914_v41 = vpop.permute.xlu0 %7848 }
 0x5ad   : > { %v4587_v29 = vpop.f32.mrf.mxu0 }
 0x5ae   : > { %v4827_v55 = vmax.f32 %v4593_v38, 0.0  ;;  %v4588_v47 = vadd.f32 %v11606_v44, %v4587_v29 }
 0x5af   : > { %7868 = vrot.lane.b32.xlu0 %v7867_v16, %s8002_s29 }
 0x5b0   : > { %6097 = vrot.lane.b32.xlu1 %v11867_v25, %s8001_s27  ;;  %4956 = vst.msk [vmem:[#allocation3 + $0x328] sm:$0xff] %vm4854_vm7, %v4827_v55  ;;  %v4826_v0 = vmax.f32 %v4588_v47, 0.0 }
 0x5b1   : > { %v5081_v22 = vld [vmem:[#allocation3 + $0x310] ss:$2 sm:$0xff]  ;;  %v5209_v45 = vld [vmem:[#allocation3 + $0x311] ss:$2 sm:$0xff] }
 0x5b2   : > { %4955 = vst.msk [vmem:[#allocation3 + $0x320] sm:$0xff] %vm4854_vm7, %v4826_v0  ;;  %v5287_v4 = vmax.f32 %v5081_v22, %v5209_v45  ;;  %v7872_v45 = vpack.i.bf16 %v11889_v43, %v11867_v25 }
 0x5b3   : > { %5824 = vrot.lane.b32.xlu0 %v5583_v54, %s8001_s27  ;;  %v7690_v26 = vpop.f32.mrf.mxu0  ;;  %v11916_v54 = vpop.permute.xlu1 %5810 }
 0x5b4   : > { %v4603_v15 = vadd.f32 %v11606_v44, %v7690_v26  ;;  %v5377_v61 = vsel %vm4854_vm7, %v5287_v4, -inf  ;;  %v7845_v26 = vunpack.i.l.bf16 %v11905_v1  ;;  %v5487_v4 = vld [vmem:[#allocation4 + $0x8] sm:$0xff] }
 0x5b5   : > { %v4597_v23 = vpop.f32.mrf.mxu0 }
 0x5b6   : > { %v4829_v27 = vmax.f32 %v4603_v15, 0.0  ;;  %v4598_v63 = vadd.f32 %v11606_v44, %v4597_v23 }
 0x5b7   : > { %6099 = vrot.lane.b32.xlu0 %v11889_v43, %s8001_s27 }
 0x5b8   : > { %4958 = vst.msk [vmem:[#allocation3 + $0x338] sm:$0xff] %vm4854_vm7, %v4829_v27  ;;  %v4828_v12 = vmax.f32 %v4598_v63, 0.0  ;;  %v11926_v27 = vpop.permute.xlu1 %5668  ;;  %v7850_v63 = vunpack.i.l.bf16 %v11914_v41 }
 0x5b9   : > { %v5083_v46 = vld [vmem:[#allocation3 + $0x320] ss:$2 sm:$0xff]  ;;  %v5211_v28 = vld [vmem:[#allocation3 + $0x321] ss:$2 sm:$0xff] }
 0x5ba   : > { %v5288_v17 = vmax.f32 %v5083_v46, %v5211_v28  ;;  %4957 = vst.msk [vmem:[#allocation3 + $0x330] sm:$0xff] %vm4854_vm7, %v4828_v12  ;;  %v5498_v12 = vld [vmem:[#allocation4 + $0x90] sm:$0xff] }
 0x5bb   : > { %v7693_v34 = vpop.f32.mrf.mxu0 }
 0x5bc   : > { %v5375_v6 = vsel %vm4854_vm7, %v5288_v17, -inf  ;;  %v4613_v40 = vadd.f32 %v11606_v44, %v7693_v34 }
 0x5bd   : > { %v5376_v2 = vmax.f32 %v5374_v18, %v5375_v6  ;;  %v4607_v59 = vpop.f32.mrf.mxu0  ;;  %v5882_v18 = vsel %vm4854_vm7, %v5486_v56, %v7845_v26  ;;  %v5894_v6 = vsel %vm4854_vm7, %v5498_v12, %v11833_v51 }
 0x5be   : > { %v4831_v31 = vmax.f32 %v4613_v40, 0.0  ;;  %v4608_v50 = vadd.f32 %v11606_v44, %v4607_v59 }
 0x5bf   : > { %5478 = vst.msk [vmem:[#allocation4 + $0x139] sm:$0xff] %vm4854_vm7, %v5376_v2  ;;  %v7846_v2 = vunpack.i.h.bf16 %v11905_v1 }
 0x5c0   : > { %4960 = vst.msk [vmem:[#allocation3 + $0x348] sm:$0xff] %vm4854_vm7, %v4831_v31  ;;  %v4830_v53 = vmax.f32 %v4608_v50, 0.0  ;;  %v5919_v31 = vsel %vm5918_vm9, %v5882_v18, %v7850_v63  ;;  %v11943_v50 = vsel %vm5918_vm9, %v5894_v6, %v11846_v11 }
 0x5c1   : > { %v5085_v60 = vld [vmem:[#allocation3 + $0x330] ss:$2 sm:$0xff]  ;;  %v5213_v8 = vld [vmem:[#allocation3 + $0x331] ss:$2 sm:$0xff] }
 0x5c2   : > { %v5289_v9 = vmax.f32 %v5085_v60, %v5213_v8  ;;  %4959 = vst.msk [vmem:[#allocation3 + $0x340] sm:$0xff] %vm4854_vm7, %v4830_v53  ;;  %v7851_v53 = vunpack.i.h.bf16 %v11914_v41  ;;  %v5506_v60 = vld [vmem:[#allocation4 + $0xf0] sm:$0xff] }
 0x5c3   : > { %v7696_v19 = vpop.f32.mrf.mxu0 }
 0x5c4   : > { %v5378_v13 = vsel %vm4854_vm7, %v5289_v9, -inf  ;;  %v4623_v38 = vadd.f32 %v11606_v44, %v7696_v19 }
 0x5c5   : > { %v5379_v16 = vmax.f32 %v5377_v61, %v5378_v13  ;;  %v4617_v29 = vpop.f32.mrf.mxu0 }
 0x5c6   : > { %v4833_v55 = vmax.f32 %v4623_v38, 0.0  ;;  %v4618_v47 = vadd.f32 %v11606_v44, %v4617_v29  ;;  %v5548_v0 = vld [vmem:[#allocation4 + $0x139] sm:$0xff] }
 0x5c7   : > { %5479 = vst.msk [vmem:[#allocation4 + $0x141] sm:$0xff] %vm4854_vm7, %v5379_v16  ;;  %5682 = vrot.lane.b32.xlu1 %v5548_v0, %s8000_s26  ;;  %v5499_v0 = vld [vmem:[#allocation4 + $0x98] sm:$0xff] }
 0x5c8   : > { %4962 = vst.msk [vmem:[#allocation3 + $0x358] sm:$0xff] %vm4854_vm7, %v4833_v55  ;;  %v4832_v24 = vmax.f32 %v4618_v47, 0.0  ;;  %v5883_v47 = vsel %vm4854_vm7, %v5487_v4, %v7846_v2 }
 0x5c9   : > { %v5087_v13 = vld [vmem:[#allocation3 + $0x340] ss:$2 sm:$0xff]  ;;  %v5215_v38 = vld [vmem:[#allocation3 + $0x341] ss:$2 sm:$0xff]  ;;  %v5920_v12 = vsel %vm5918_vm9, %v5883_v47, %v7851_v53 }
 0x5ca   : > { %4961 = vst.msk [vmem:[#allocation3 + $0x350] sm:$0xff] %vm4854_vm7, %v4832_v24 }
 0x5cb   : > { %v7699_v15 = vpop.f32.mrf.mxu0 }
 0x5cc   : > { %v4633_v52 = vadd.f32 %v11606_v44, %v7699_v15  ;;  %v11924_v23 = vpop.permute.xlu0 %6085  ;;  %v5895_v15 = vsel %vm4854_vm7, %v5499_v0, %v11838_v35 }
 0x5cd   : > { %v4627_v21 = vpop.f32.mrf.mxu0  ;;  %v11973_v18 = vsel %vm5918_vm9, %v5895_v15, %v11854_v48  ;;  %v5507_v48 = vld [vmem:[#allocation4 + $0xf8] sm:$0xff] }
 0x5ce   : > { %v4835_v46 = vmax.f32 %v4633_v52, 0.0  ;;  %v4628_v28 = vadd.f32 %v11606_v44, %v4627_v21  ;;  %v5549_v17 = vld [vmem:[#allocation4 + $0x141] sm:$0xff]  ;;  %v5290_v52 = vmax.f32 %v5087_v13, %v5215_v38 }
 0x5cf   : > { %v5584_v34 = vld [vmem:[#allocation4 + $0x13a] sm:$0xff]  ;;  %5684 = vrot.lane.b32.xlu0 %v5549_v17, %s8000_s26  ;;  %v5585_v26 = vld [vmem:[#allocation4 + $0x142] sm:$0xff] }
 0x5d0   : > { %5826 = vrot.lane.b32.xlu1 %v5584_v34, %s8001_s27  ;;  %4964 = vst.msk [vmem:[#allocation3 + $0x368] sm:$0xff] %vm4854_vm7, %v4835_v46  ;;  %v4834_v40 = vmax.f32 %v4628_v28, 0.0  ;;  %v5671_v22 = vpop.permute.xlu0 %5670 }
 0x5d1   : > { %v7854_v59 = vpop.permute.xlu1 %7853  ;;  %v5902_v1 = vsel %vm4854_vm7, %v5506_v60, %v5671_v22  ;;  %v5380_v22 = vsel %vm4854_vm7, %v5290_v52, -inf }
 0x5d2   : > { %4963 = vst.msk [vmem:[#allocation3 + $0x360] sm:$0xff] %vm4854_vm7, %v4834_v40  ;;  %v7855_v51 = vunpack.i.l.bf16 %v7854_v59  ;;  %v7856_v56 = vunpack.i.h.bf16 %v7854_v59 }
 0x5d3   : > { %v7702_v8 = vpop.f32.mrf.mxu0  ;;  %6101 = vrot.lane.b32.xlu0 %v11943_v50, %s8001_s27 }
 0x5d4   : > { %7873 = vrot.lane.b32.xlu1 %v7872_v45, %s8002_s29  ;;  %v4643_v9 = vadd.f32 %v11606_v44, %v7702_v8  ;;  %v5815_v19 = vpop.permute.xlu0 %5814  ;;  %v6214_v61 = vsel %vm5918_vm9, %v7855_v51, %v11924_v23  ;;  %v6182_v11 = vsel %vm6181_vm10, %v5919_v31, %v7855_v51  ;;  %v6183_v40 = vsel %vm6181_vm10, %v5920_v12, %v7856_v56  ;;  %v5089_v31 = vld [vmem:[#allocation3 + $0x350] ss:$2 sm:$0xff]  ;;  %v5217_v51 = vld [vmem:[#allocation3 + $0x351] ss:$2 sm:$0xff] }
 0x5d5   : > { %v11955_v16 = vsel %vm5918_vm9, %v5902_v1, %v5815_v19  ;;  %v11957_v29 = vpop.permute.xlu1 %5812  ;;  %6417 = vmatprep.mubr.f32.mxu1 %v6214_v61  ;;  %v4637_v55 = vpop.f32.mrf.mxu0 }
 0x5d6   : > { %v4837_v41 = vmax.f32 %v4643_v9, 0.0  ;;  %v4638_v24 = vadd.f32 %v11606_v44, %v4637_v55  ;;  %6418 = vmatmul.mubr.f32.vlgmr.msra.gmra.mxu1 %v6182_v11  ;;  %v5291_v11 = vmax.f32 %v5089_v31, %v5217_v51 }
 0x5d8   : > { %5828 = vrot.lane.b32.xlu1 %v5585_v26, %s8001_s27  ;;  %4966 = vst.msk [vmem:[#allocation3 + $0x378] sm:$0xff] %vm4854_vm7, %v4837_v41  ;;  %v4836_v63 = vmax.f32 %v4638_v24, 0.0  ;;  %v7859_v21 = vpop.permute.xlu0 %7858  ;;  %v5383_v52 = vsel %vm4854_vm7, %v5291_v11, -inf  ;;  %v7877_v11 = vpack.i.bf16 %v11973_v18, %v11943_v50 }
 0x5d9   : > { %v5091_v46 = vld [vmem:[#allocation3 + $0x360] ss:$2 sm:$0xff]  ;;  %v5219_v28 = vld [vmem:[#allocation3 + $0x361] ss:$2 sm:$0xff]  ;;  %v11966_v17 = vpop.permute.xlu1 %6087  ;;  %v7860_v19 = vunpack.i.l.bf16 %v7859_v21  ;;  %v7861_v24 = vunpack.i.h.bf16 %v7859_v21 }
 0x5da   : > { %v5292_v34 = vmax.f32 %v5091_v46, %v5219_v28  ;;  %4965 = vst.msk [vmem:[#allocation3 + $0x370] sm:$0xff] %vm4854_vm7, %v4836_v63  ;;  %v6215_v35 = vsel %vm5918_vm9, %v7856_v56, %v11966_v17 }
 0x5db   : > { %6422 = vmatprep.mubr.f32.mxu1 %v6215_v35  ;;  %v7705_v6 = vpop.f32.mrf.mxu0  ;;  %v6184_v56 = vsel %vm6181_vm10, %v11749_v30, %v7860_v19  ;;  %v12002_v35 = vld [vmem:[#allocation8] ss:$0 sm:$0xff] }
 0x5dc   : > { %6103 = vrot.lane.b32.xlu1 %v11973_v18, %s8001_s27  ;;  %v5381_v45 = vsel %vm4854_vm7, %v5292_v34, -inf  ;;  %v4653_v2 = vadd.f32 %v11606_v44, %v7705_v6  ;;  %6423 = vmatmul.mubr.f32.gmra.mxu1 %v6183_v40  ;;  %v5817_v59 = vpop.permute.xlu0 %5816 }
 0x5dd   : > { %v5382_v4 = vmax.f32 %v5380_v22, %v5381_v45  ;;  %v5673_v53 = vpop.permute.xlu1 %5672  ;;  %v4647_v60 = vpop.f32.mrf.mxu0 }
 0x5de   : > { %v4839_v8 = vmax.f32 %v4653_v2, 0.0  ;;  %v5903_v1 = vsel %vm4854_vm7, %v5507_v48, %v5673_v53  ;;  %v4648_v9 = vadd.f32 %v11606_v44, %v4647_v60  ;;  %v5508_v2 = vld [vmem:[#allocation4 + $0x108] sm:$0xff] }
 0x5df   : > { %5480 = vst.msk [vmem:[#allocation4 + $0x151] sm:$0xff] %vm4854_vm7, %v5382_v4  ;;  %v11985_v61 = vsel %vm5918_vm9, %v5903_v1, %v5817_v59  ;;  %v5500_v48 = vld [vmem:[#allocation4 + $0xa8] sm:$0xff] }
 0x5e0   : > { %4968 = vst.msk [vmem:[#allocation3 + $0x388] sm:$0xff] %vm4854_vm7, %v4839_v8  ;;  %v4838_v13 = vmax.f32 %v4648_v9, 0.0  ;;  %v11988_v47 = vpop.permute.xlu0 %6091  ;;  %v5896_v9 = vsel %vm4854_vm7, %v5500_v48, %v11849_v58 }
 0x5e1   : > { %v5093_v38 = vld [vmem:[#allocation3 + $0x370] ss:$2 sm:$0xff]  ;;  %v5221_v55 = vld [vmem:[#allocation3 + $0x371] ss:$2 sm:$0xff]  ;;  %v11990_v0 = vpop.permute.xlu1 %6089  ;;  %v6217_v21 = vsel %vm5918_vm9, %v7861_v24, %v11988_v47 }
 0x5e2   : > { %v5293_v41 = vmax.f32 %v5093_v38, %v5221_v55  ;;  %4967 = vst.msk [vmem:[#allocation3 + $0x380] sm:$0xff] %vm4854_vm7, %v4838_v13  ;;  %v6216_v26 = vsel %vm5918_vm9, %v7860_v19, %v11990_v0 }
 0x5e3   : > { %6427 = vmatprep.mubr.f32.mxu1 %v6216_v26  ;;  %v7708_v15 = vpop.f32.mrf.mxu0  ;;  %v5509_v26 = vld [vmem:[#allocation4 + $0x110] sm:$0xff] }
 0x5e4   : > { %v5384_v63 = vsel %vm4854_vm7, %v5293_v41, -inf  ;;  %v4663_v12 = vadd.f32 %v11606_v44, %v7708_v15  ;;  %6428 = vmatmul.mubr.f32.gmra.mxu1 %v6184_v56  ;;  %v6185_v44 = vsel %vm6181_vm10, %v11752_v39, %v7861_v24  ;;  %v12026_v41 = vsel %vm5918_vm9, %v5896_v9, %v11869_v37 }
 0x5e5   : > { %v5385_v46 = vmax.f32 %v5383_v52, %v5384_v63  ;;  %6432 = vmatprep.mubr.f32.mxu1 %v6217_v21  ;;  %v4657_v28 = vpop.f32.mrf.mxu0  ;;  %v5675_v22 = vpop.permute.xlu1 %5674  ;;  %v5501_v52 = vld [vmem:[#allocation4 + $0xb0] sm:$0xff] }
 0x5e6   : > { %v4841_v34 = vmax.f32 %v4663_v12, 0.0  ;;  %v4658_v6 = vadd.f32 %v12002_v35, %v4657_v28  ;;  %v5550_v40 = vld [vmem:[#allocation4 + $0x151] sm:$0xff]  ;;  %v5904_v31 = vsel %vm4854_vm7, %v5508_v2, %v5675_v22 }
 0x5e7   : > { %5481 = vst.msk [vmem:[#allocation4 + $0x159] sm:$0xff] %vm4854_vm7, %v5385_v46  ;;  %5686 = vrot.lane.b32.xlu0 %v5550_v40, %s8000_s26 }
 0x5e8   : > { %4970 = vst.msk [vmem:[#allocation3 + $0x398] sm:$0xff] %vm4854_vm7, %v4841_v34  ;;  %v4840_v30 = vmax.f32 %v4658_v6, 0.0  ;;  %6433 = vmatmul.mubr.f32.gmra.mxu1 %v6185_v44 }
 0x5e9   : > { %v5095_v46 = vld [vmem:[#allocation3 + $0x380] ss:$2 sm:$0xff]  ;;  %v5223_v28 = vld [vmem:[#allocation3 + $0x381] ss:$2 sm:$0xff] }
 0x5ea   : > { %4969 = vst.msk [vmem:[#allocation3 + $0x390] sm:$0xff] %vm4854_vm7, %v4840_v30  ;;  %v5897_v30 = vsel %vm4854_vm7, %v5501_v52, %v11856_v20 }
 0x5eb   : > { %v7711_v45 = vpop.f32.mrf.mxu0 }
 0x5ec   : > { %v4673_v59 = vadd.f32 %v12002_v35, %v7711_v45  ;;  %v5294_v45 = vmax.f32 %v5095_v46, %v5223_v28 }
 0x5ed   : > { %v5677_v51 = vpop.permute.xlu0 %5676  ;;  %v4667_v39 = vpop.f32.mrf.mxu0 }
 0x5ee   : > { %v5819_v4 = vpop.permute.xlu1 %5818  ;;  %v4843_v53 = vmax.f32 %v4673_v59, 0.0  ;;  %v5586_v8 = vld [vmem:[#allocation4 + $0x152] sm:$0xff]  ;;  %v4668_v19 = vadd.f32 %v12002_v35, %v4667_v39  ;;  %v5905_v63 = vsel %vm4854_vm7, %v5509_v26, %v5677_v51  ;;  %v5587_v44 = vld [vmem:[#allocation4 + $0x15a] sm:$0xff] }
 0x5ef   : > { %v12014_v60 = vsel %vm5918_vm9, %v5904_v31, %v5819_v4  ;;  %v5551_v1 = vld [vmem:[#allocation4 + $0x159] sm:$0xff]  ;;  %5830 = vrot.lane.b32.xlu0 %v5586_v8, %s8001_s27  ;;  %v12055_v4 = vsel %vm5918_vm9, %v5897_v30, %v11882_v36  ;;  %v5386_v8 = vsel %vm4854_vm7, %v5294_v45, -inf }
 0x5f0   : > { %5688 = vrot.lane.b32.xlu1 %v5551_v1, %s8000_s26  ;;  %4972 = vst.msk [vmem:[#allocation3 + $0x3a8] sm:$0xff] %vm4854_vm7, %v4843_v53  ;;  %v4842_v13 = vmax.f32 %v4668_v19, 0.0 }
 0x5f1   : > { %v12029_v58 = vpop.permute.xlu0 %6093  ;;  %v5097_v1 = vld [vmem:[#allocation3 + $0x390] ss:$2 sm:$0xff]  ;;  %v5225_v9 = vld [vmem:[#allocation3 + $0x391] ss:$2 sm:$0xff] }
 0x5f2   : > { %v7864_v38 = vpop.permute.xlu1 %7863  ;;  %4971 = vst.msk [vmem:[#allocation3 + $0x3a0] sm:$0xff] %vm4854_vm7, %v4842_v13 }
 0x5f3   : > { %v7865_v55 = vunpack.i.l.bf16 %v7864_v38  ;;  %v7714_v24 = vpop.f32.mrf.mxu0  ;;  %7878 = vrot.lane.b32.xlu0 %v7877_v11, %s8002_s29 }
 0x5f4   : > { %6105 = vrot.lane.b32.xlu1 %v12026_v41, %s8001_s27  ;;  %v4683_v15 = vadd.f32 %v12002_v35, %v7714_v24 }
 0x5f5   : > { %v6218_v56 = vsel %vm5918_vm9, %v7865_v55, %v12029_v58  ;;  %v6186_v37 = vsel %vm6181_vm10, %v11740_v42, %v7865_v55  ;;  %v4677_v21 = vpop.f32.mrf.mxu0  ;;  %v7866_v42 = vunpack.i.h.bf16 %v7864_v38  ;;  %v5295_v55 = vmax.f32 %v5097_v1, %v5225_v9 }
 0x5f6   : > { %v5821_v12 = vpop.permute.xlu1 %5820  ;;  %6437 = vmatprep.mubr.f32.mxu1 %v6218_v56  ;;  %v4845_v34 = vmax.f32 %v4683_v15, 0.0  ;;  %v4678_v40 = vadd.f32 %v12002_v35, %v4677_v21 }
 0x5f7   : > { %v12041_v6 = vsel %vm5918_vm9, %v5905_v63, %v5821_v12  ;;  %6438 = vmatmul.mubr.f32.gmra.mxu1 %v6186_v37  ;;  %5832 = vrot.lane.b32.xlu0 %v5587_v44, %s8001_s27  ;;  %v6187_v53 = vsel %vm6181_vm10, %v11761_v49, %v7866_v42  ;;  %v5389_v37 = vsel %vm4854_vm7, %v5295_v55, -inf }
 0x5f8   : > { %4974 = vst.msk [vmem:[#allocation3 + $0x3b8] sm:$0xff] %vm4854_vm7, %v4845_v34  ;;  %v4844_v22 = vmax.f32 %v4678_v40, 0.0 }
 0x5f9   : > { %v5099_v59 = vld [vmem:[#allocation3 + $0x3a0] ss:$2 sm:$0xff]  ;;  %v5227_v31 = vld [vmem:[#allocation3 + $0x3a1] ss:$2 sm:$0xff] }
 0x5fa   : > { %v12048_v2 = vpop.permute.xlu1 %6095  ;;  %4973 = vst.msk [vmem:[#allocation3 + $0x3b0] sm:$0xff] %vm4854_vm7, %v4844_v22  ;;  %v5296_v20 = vmax.f32 %v5099_v59, %v5227_v31  ;;  %v5502_v22 = vld [vmem:[#allocation4 + $0xc0] sm:$0xff] }
 0x5fb   : > { %v6219_v51 = vsel %vm5918_vm9, %v7866_v42, %v12048_v2  ;;  %v7717_v48 = vpop.f32.mrf.mxu0  ;;  %6107 = vrot.lane.b32.xlu0 %v12055_v4, %s8001_s27 }
 0x5fc   : > { %6442 = vmatprep.mubr.f32.mxu1 %v6219_v51  ;;  %v4693_v39 = vadd.f32 %v12002_v35, %v7717_v48  ;;  %v5387_v19 = vsel %vm4854_vm7, %v5296_v20, -inf  ;;  %v5898_v20 = vsel %vm4854_vm7, %v5502_v22, %v11874_v10 }
 0x5fd   : > { %6443 = vmatmul.mubr.f32.gmra.mxu1 %v6187_v53  ;;  %v4687_v36 = vpop.f32.mrf.mxu0  ;;  %v5388_v11 = vmax.f32 %v5386_v8, %v5387_v19  ;;  %v7882_v53 = vpack.i.bf16 %v12055_v4, %v12026_v41 }
 0x5fe   : > { %v4847_v13 = vmax.f32 %v4693_v39, 0.0  ;;  %v4688_v38 = vadd.f32 %v12002_v35, %v4687_v36  ;;  %v12088_v39 = vsel %vm5918_vm9, %v5898_v20, %v11895_v33  ;;  %v5503_v36 = vld [vmem:[#allocation4 + $0xc8] sm:$0xff] }
 0x5ff   : > { %5482 = vst.msk [vmem:[#allocation4 + $0x169] sm:$0xff] %vm4854_vm7, %v5388_v11  ;;  %v5899_v33 = vsel %vm4854_vm7, %v5503_v36, %v11884_v7 }
 0x600   : > { %4976 = vst.msk [vmem:[#allocation3 + $0x3c8] sm:$0xff] %vm4854_vm7, %v4847_v13  ;;  %v4846_v49 = vmax.f32 %v4688_v38, 0.0 }
 0x601   : > { %v5101_v24 = vld [vmem:[#allocation3 + $0x3b0] ss:$2 sm:$0xff]  ;;  %v5229_v26 = vld [vmem:[#allocation3 + $0x3b1] ss:$2 sm:$0xff] }
 0x602   : > { %v5297_v15 = vmax.f32 %v5101_v24, %v5229_v26  ;;  %4975 = vst.msk [vmem:[#allocation3 + $0x3c0] sm:$0xff] %vm4854_vm7, %v4846_v49 }
 0x603   : > { %v7720_v56 = vpop.f32.mrf.mxu0 }
 0x604   : > { %v5390_v52 = vsel %vm4854_vm7, %v5297_v15, -inf  ;;  %v4703_v63 = vadd.f32 %v12002_v35, %v7720_v56 }
 0x605   : > { %v5391_v12 = vmax.f32 %v5389_v37, %v5390_v52  ;;  %v4697_v21 = vpop.f32.mrf.mxu0 }
 0x606   : > { %v4849_v46 = vmax.f32 %v4703_v63, 0.0  ;;  %v4698_v28 = vadd.f32 %v12002_v35, %v4697_v21  ;;  %v5552_v34 = vld [vmem:[#allocation4 + $0x169] sm:$0xff] }
 0x607   : > { %5483 = vst.msk [vmem:[#allocation4 + $0x171] sm:$0xff] %vm4854_vm7, %v5391_v12  ;;  %5690 = vrot.lane.b32.xlu1 %v5552_v34, %s8000_s26 }
 0x608   : > { %4978 = vst.msk [vmem:[#allocation3 + $0x3d8] sm:$0xff] %vm4854_vm7, %v4849_v46  ;;  %v4848_v40 = vmax.f32 %v4698_v28, 0.0 }
 0x609   : > { %v5103_v1 = vld [vmem:[#allocation3 + $0x3c0] ss:$2 sm:$0xff]  ;;  %v5231_v9 = vld [vmem:[#allocation3 + $0x3c1] ss:$2 sm:$0xff] }
 0x60a   : > { %4977 = vst.msk [vmem:[#allocation3 + $0x3d0] sm:$0xff] %vm4854_vm7, %v4848_v40  ;;  %v5298_v55 = vmax.f32 %v5103_v1, %v5231_v9  ;;  %v5504_v1 = vld [vmem:[#allocation4 + $0xd8] sm:$0xff] }
 0x60b   : > { %v7723_v44 = vpop.f32.mrf.mxu0  ;;  %v5900_v36 = vsel %vm4854_vm7, %v5504_v1, %v11897_v57  ;;  %v5556_v57 = vld [vmem:[#allocation4 + $0x199] sm:$0xff] }
 0x60c   : > { %v4713_v30 = vadd.f32 %v12002_v35, %v7723_v44  ;;  %v5392_v7 = vsel %vm4854_vm7, %v5298_v55, -inf  ;;  %v5592_v55 = vld [vmem:[#allocation4 + $0x19a] sm:$0xff] }
 0x60d   : > { %v4707_v42 = vpop.f32.mrf.mxu0 }
 0x60e   : > { %v4851_v45 = vmax.f32 %v4713_v30, 0.0  ;;  %v4708_v59 = vadd.f32 %v12002_v35, %v4707_v42  ;;  %v5553_v31 = vld [vmem:[#allocation4 + $0x171] sm:$0xff] }
 0x60f   : > { %v5588_v51 = vld [vmem:[#allocation4 + $0x16a] sm:$0xff]  ;;  %5692 = vrot.lane.b32.xlu0 %v5553_v31, %s8000_s26  ;;  %v5589_v38 = vld [vmem:[#allocation4 + $0x172] sm:$0xff] }
 0x610   : > { %5834 = vrot.lane.b32.xlu1 %v5588_v51, %s8001_s27  ;;  %4980 = vst.msk [vmem:[#allocation3 + $0x3e8] sm:$0xff] %vm4854_vm7, %v4851_v45  ;;  %v4850_v48 = vmax.f32 %v4708_v59, 0.0 }
 0x611   : > { %v12099_v15 = vpop.permute.xlu0 %5678  ;;  %v5105_v52 = vld [vmem:[#allocation3 + $0x3d0] ss:$2 sm:$0xff]  ;;  %v5233_v63 = vld [vmem:[#allocation3 + $0x3d1] ss:$2 sm:$0xff] }
 0x612   : > { %4979 = vst.msk [vmem:[#allocation3 + $0x3e0] sm:$0xff] %vm4854_vm7, %v4850_v48  ;;  %v5299_v28 = vmax.f32 %v5105_v52, %v5233_v63 }
 0x613   : > { %v7726_v8 = vpop.f32.mrf.mxu0  ;;  %6109 = vrot.lane.b32.xlu0 %v12088_v39, %s8001_s27 }
 0x614   : > { %7883 = vrot.lane.b32.xlu1 %v7882_v53, %s8002_s29  ;;  %v4723_v10 = vadd.f32 %v12002_v35, %v7726_v8  ;;  %v5395_v22 = vsel %vm4854_vm7, %v5299_v28, -inf }
 0x615   : > { %v4717_v19 = vpop.f32.mrf.mxu0 }
 0x616   : > { %v4853_v11 = vmax.f32 %v4723_v10, 0.0  ;;  %v4718_v13 = vadd.f32 %v12002_v35, %v4717_v19  ;;  %v12104_v35 = vsel %vm5918_vm9, %v5899_v33, %v11907_v62  ;;  %v5505_v33 = vld [vmem:[#allocation4 + $0xe0] sm:$0xff] }
 0x618   : > { %5836 = vrot.lane.b32.xlu1 %v5589_v38, %s8001_s27  ;;  %4982 = vst.msk [vmem:[#allocation3 + $0x3f8] sm:$0xff] %vm4854_vm7, %v4853_v11  ;;  %v4852_v49 = vmax.f32 %v4718_v13, 0.0  ;;  %v6281_v11 = vld [vmem:[%s12695_s3 + $0x118] sm:$0xff]  ;;  %v7887_v13 = vpack.i.bf16 %v12104_v35, %v12088_v39 }
 0x619   : > { %v5107_v24 = vld [vmem:[#allocation3 + $0x3e0] ss:$2 sm:$0xff]  ;;  %v5235_v26 = vld [vmem:[#allocation3 + $0x3e1] ss:$2 sm:$0xff]  ;;  %7727 = vmatprep.subr.mxu1 %v6281_v11 }
 0x61a   : > { %v5300_v56 = vmax.f32 %v5107_v24, %v5235_v26  ;;  %4981 = vst.msk [vmem:[#allocation3 + $0x3f0] sm:$0xff] %vm4854_vm7, %v4852_v49  ;;  %7728 = vmatpush3.msra.mxu1 %v6281_v11  ;;  %v5901_v49 = vsel %vm4854_vm7, %v5505_v33, %v11926_v27  ;;  %v5557_v24 = vld [vmem:[#allocation4 + $0x1a1] sm:$0xff] }
 0x61c   : > { %6111 = vrot.lane.b32.xlu1 %v12104_v35, %s8001_s27  ;;  %v5393_v37 = vsel %vm4854_vm7, %v5300_v56, -inf  ;;  %v5593_v56 = vld [vmem:[#allocation4 + $0x1a2] sm:$0xff] }
 0x61d   : > { %v5394_v12 = vmax.f32 %v5392_v7, %v5393_v37  ;;  %v12110_v21 = vpop.permute.xlu0 %5822 }
 0x61e   : > { %v12112_v46 = vpop.permute.xlu1 %5680 }
 0x61f   : > { %5484 = vst.msk [vmem:[#allocation4 + $0x181] sm:$0xff] %vm4854_vm7, %v5394_v12 }
 0x621   : > { %v5109_v34 = vld [vmem:[#allocation3 + $0x3f0] ss:$2 sm:$0xff]  ;;  %v5237_v62 = vld [vmem:[#allocation3 + $0x3f1] ss:$2 sm:$0xff]  ;;  %v7869_v40 = vpop.permute.xlu0 %7868 }
 0x622   : > { %v5301_v44 = vmax.f32 %v5109_v34, %v5237_v62  ;;  %v7870_v30 = vunpack.i.l.bf16 %v7869_v40  ;;  %v12115_v42 = vpop.permute.xlu1 %6097  ;;  %v7871_v53 = vunpack.i.h.bf16 %v7869_v40 }
 0x624   : > { %v5396_v45 = vsel %vm4854_vm7, %v5301_v44, -inf  ;;  %v6220_v59 = vsel %vm5918_vm9, %v7870_v30, %v12115_v42  ;;  %v6188_v31 = vsel %vm6181_vm10, %v11788_v14, %v7870_v30  ;;  %v6189_v14 = vsel %vm6181_vm10, %v11782_v32, %v7871_v53  ;;  %v5510_v44 = vld [vmem:[#allocation4 + $0x120] sm:$0xff] }
 0x625   : > { %v5397_v51 = vmax.f32 %v5395_v22, %v5396_v45  ;;  %v12123_v20 = vpop.permute.xlu0 %5824  ;;  %6447 = vmatprep.mubr.f32.mxu1 %v6220_v59  ;;  %v12144_v32 = vsel %vm5918_vm9, %v5900_v36, %v11916_v54  ;;  %v12155_v54 = vsel %vm5918_vm9, %v5901_v49, %v11957_v29  ;;  %v5906_v22 = vsel %vm4854_vm7, %v5510_v44, %v12099_v15  ;;  %v5511_v59 = vld [vmem:[#allocation4 + $0x128] sm:$0xff]  ;;  %v5512_v15 = vld [vmem:[#allocation4 + $0x138] sm:$0xff]  ;;  %v5517_v44 = vld [vmem:[#allocation4 + $0x170] sm:$0xff] }
 0x626   : > { %6448 = vmatmul.mubr.f32.gmra.mxu1 %v6188_v31  ;;  %v5554_v48 = vld [vmem:[#allocation4 + $0x181] sm:$0xff]  ;;  %v12197_v45 = vsel %vm5918_vm9, %v5906_v22, %v12110_v21 }
 0x627   : > { %5485 = vst.msk [vmem:[#allocation4 + $0x189] sm:$0xff] %vm4854_vm7, %v5397_v51  ;;  %5694 = vrot.lane.b32.xlu0 %v5554_v48, %s8000_s26 }
 0x629   : > { %v12127_v8 = vpop.permute.xlu0 %6099 }
 0x62a   : > { %v6221_v10 = vsel %vm5918_vm9, %v7871_v53, %v12127_v8 }
 0x62b   : > { %6452 = vmatprep.mubr.f32.mxu1 %v6221_v10  ;;  %v5514_v10 = vld [vmem:[#allocation4 + $0x150] sm:$0xff] }
 0x62c   : > { %6453 = vmatmul.mubr.f32.gmra.mxu1 %v6189_v14 }
 0x62e   : > { %v5590_v9 = vld [vmem:[#allocation4 + $0x182] sm:$0xff]  ;;  %v5591_v38 = vld [vmem:[#allocation4 + $0x18a] sm:$0xff] }
 0x62f   : > { %v5555_v19 = vld [vmem:[#allocation4 + $0x189] sm:$0xff]  ;;  %5838 = vrot.lane.b32.xlu0 %v5590_v9, %s8001_s27 }
 0x630   : > { %5696 = vrot.lane.b32.xlu1 %v5555_v19, %s8000_s26 }
 0x633   : > { %7888 = vrot.lane.b32.xlu0 %v7887_v13, %s8002_s29 }
 0x634   : > { %6113 = vrot.lane.b32.xlu1 %v12144_v32, %s8001_s27 }
 0x637   : > { %5840 = vrot.lane.b32.xlu0 %v5591_v38, %s8001_s27 }
 0x638   : > { %5698 = vrot.lane.b32.xlu1 %v5556_v57, %s8000_s26  ;;  %v5515_v57 = vld [vmem:[#allocation4 + $0x158] sm:$0xff] }
 0x639   : > { %v5683_v26 = vpop.permute.xlu1 %5682 }
 0x63a   : > { %v5908_v21 = vsel %vm4854_vm7, %v5512_v15, %v5683_v26 }
 0x63b   : > { %6115 = vrot.lane.b32.xlu0 %v12155_v54, %s8001_s27 }
 0x63c   : > { %5842 = vrot.lane.b32.xlu1 %v5592_v55, %s8001_s27 }
 0x63f   : > { %5700 = vrot.lane.b32.xlu0 %v5557_v24, %s8000_s26 }
 0x640   : > { %6019 = vrot.lane.b32.xlu1 %v12144_v32, %s8002_s29 }
 0x641   : > { %v5685_v7 = vpop.permute.xlu0 %5684 }
 0x642   : > { %v5827_v37 = vpop.permute.xlu1 %5826 }
 0x643   : > { %6117 = vrot.lane.b32.xlu0 %v11955_v16, %s8001_s27  ;;  %v12215_v51 = vsel %vm5918_vm9, %v5908_v21, %v5827_v37 }
 0x644   : > { %5844 = vrot.lane.b32.xlu1 %v5593_v56, %s8001_s27 }
 0x645   : > { %v12166_v52 = vpop.permute.xlu0 %6101 }
 0x646   : > { %v7874_v27 = vpop.permute.xlu1 %7873 }
 0x647   : > { %v7875_v29 = vunpack.i.l.bf16 %v7874_v27  ;;  %6021 = vrot.lane.b32.xlu0 %v12155_v54, %s8002_s29  ;;  %v7876_v34 = vunpack.i.h.bf16 %v7874_v27 }
 0x648   : > { %6119 = vrot.lane.b32.xlu1 %v11985_v61, %s8001_s27 }
 0x649   : > { %v6222_v63 = vsel %vm5918_vm9, %v7875_v29, %v12166_v52  ;;  %v6190_v12 = vsel %vm6181_vm10, %v11808_v3, %v7875_v29  ;;  %v6280_v3 = vld [vmem:[%s12695_s3 + $0x110] sm:$0xff]  ;;  %v6191_v30 = vsel %vm6181_vm10, %v11818_v5, %v7876_v34  ;;  %v5907_v5 = vsel %vm4854_vm7, %v5511_v59, %v12112_v46  ;;  %v5516_v29 = vld [vmem:[#allocation4 + $0x168] sm:$0xff] }
 0x64a   : > { %v5829_v28 = vpop.permute.xlu1 %5828  ;;  %6457 = vmatprep.mubr.f32.mxu1 %v6222_v63  ;;  %7729 = vmatprep.subr.mxu1 %v6280_v3  ;;  %v12207_v31 = vsel %vm5918_vm9, %v5907_v5, %v12123_v20  ;;  %v5513_v46 = vld [vmem:[#allocation4 + $0x140] sm:$0xff] }
 0x64b   : > { %6458 = vmatmul.mubr.f32.gmra.mxu1 %v6190_v12  ;;  %6023 = vrot.lane.b32.xlu0 %v11955_v16, %s8002_s29  ;;  %v5909_v20 = vsel %vm4854_vm7, %v5513_v46, %v5685_v7  ;;  %v6279_v7 = vld [vmem:[%s12695_s3 + $0x108] sm:$0xff]  ;;  %v6278_v46 = vld [vmem:[%s12695_s3 + $0x100] sm:$0xff] }
 0x64c   : > { %6121 = vrot.lane.b32.xlu1 %v12014_v60, %s8001_s27  ;;  %7730 = vmatpush3.msra.mxu1 %v6280_v3  ;;  %v12223_v53 = vsel %vm5918_vm9, %v5909_v20, %v5829_v28 }
 0x64d   : > { %7731 = vmatprep.subr.mxu1 %v6279_v7 }
 0x64e   : > { %v12180_v62 = vpop.permute.xlu1 %6103  ;;  %7732 = vmatpush3.msra.mxu1 %v6279_v7 }
 0x64f   : > { %v6223_v40 = vsel %vm5918_vm9, %v7876_v34, %v12180_v62  ;;  %6025 = vrot.lane.b32.xlu0 %v11985_v61, %s8002_s29  ;;  %7733 = vmatprep.subr.mxu1 %v6278_v46 }
 0x650   : > { %6123 = vrot.lane.b32.xlu1 %v12041_v6, %s8001_s27  ;;  %6462 = vmatprep.mubr.f32.mxu1 %v6223_v40 }
 0x651   : > { %6463 = vmatmul.mubr.f32.gmra.mxu1 %v6191_v30 }
 0x652   : > { %7734 = vmatpush3.msra.mxu1 %v6278_v46 }
 0x653   : > { %6027 = vrot.lane.b32.xlu0 %v12014_v60, %s8002_s29 }
 0x654   : > { %6125 = vrot.lane.b32.xlu1 %v12197_v45, %s8001_s27 }
 0x657   : > { %6029 = vrot.lane.b32.xlu0 %v12041_v6, %s8002_s29 }
 0x658   : > { %6127 = vrot.lane.b32.xlu1 %v12207_v31, %s8001_s27 }
 0x659   : > { %v5687_v48 = vpop.permute.xlu0 %5686 }
 0x65a   : > { %v5910_v14 = vsel %vm4854_vm7, %v5514_v10, %v5687_v48 }
 0x65b   : > { %6031 = vrot.lane.b32.xlu0 %v12197_v45, %s8002_s29 }
 0x65c   : > { %6129 = vrot.lane.b32.xlu1 %v12215_v51, %s8001_s27 }
 0x65f   : > { %6033 = vrot.lane.b32.xlu0 %v12207_v31, %s8002_s29 }
 0x660   : > { %6131 = vrot.lane.b32.xlu1 %v12223_v53, %s8001_s27 }
 0x661   : > { %v5831_v1 = vpop.permute.xlu0 %5830 }
 0x662   : > { %v5689_v9 = vpop.permute.xlu1 %5688  ;;  %v12231_v19 = vsel %vm5918_vm9, %v5910_v14, %v5831_v1 }
 0x663   : > { %6035 = vrot.lane.b32.xlu0 %v12215_v51, %s8002_s29  ;;  %v5911_v55 = vsel %vm4854_vm7, %v5515_v57, %v5689_v9 }
 0x664   : > { %6133 = vrot.lane.b32.xlu1 %v12231_v19, %s8001_s27 }
 0x665   : > { %v7879_v36 = vpop.permute.xlu0 %7878 }
 0x666   : > { %v7880_v11 = vunpack.i.l.bf16 %v7879_v36  ;;  %v12237_v13 = vpop.permute.xlu1 %6105  ;;  %v7881_v26 = vunpack.i.h.bf16 %v7879_v36 }
 0x667   : > { %6037 = vrot.lane.b32.xlu0 %v12223_v53, %s8002_s29 }
 0x668   : > { %v6224_v38 = vsel %vm5918_vm9, %v7880_v11, %v12237_v13  ;;  %v6192_v33 = vsel %vm6181_vm10, %v11867_v25, %v7880_v11  ;;  %v6193_v37 = vsel %vm6181_vm10, %v11889_v43, %v7881_v26  ;;  %v5518_v11 = vld [vmem:[#allocation4 + $0x180] sm:$0xff] }
 0x669   : > { %v5833_v49 = vpop.permute.xlu0 %5832  ;;  %6467 = vmatprep.mubr.f32.mxu1 %v6224_v38 }
 0x66a   : > { %v12247_v24 = vsel %vm5918_vm9, %v5911_v55, %v5833_v49  ;;  %6468 = vmatmul.mubr.f32.gmra.mxu1 %v6192_v33 }
 0x66b   : > { %6039 = vrot.lane.b32.xlu0 %v12231_v19, %s8002_s29  ;;  %6135 = vrot.lane.b32.xlu1 %v12247_v24, %s8001_s27 }
 0x66d   : > { %v12253_v56 = vpop.permute.xlu0 %6107 }
 0x66e   : > { %v6225_v25 = vsel %vm5918_vm9, %v7881_v26, %v12253_v56 }
 0x66f   : > { %6041 = vrot.lane.b32.xlu0 %v12247_v24, %s8002_s29  ;;  %6472 = vmatprep.mubr.f32.mxu1 %v6225_v25 }
 0x670   : > { %6473 = vmatmul.mubr.f32.gmra.mxu1 %v6193_v37  ;;  %v5519_v37 = vld [vmem:[#allocation4 + $0x188] sm:$0xff] }
 0x679   : > { %v5691_v27 = vpop.permute.xlu1 %5690 }
 0x67a   : > { %v5912_v63 = vsel %vm4854_vm7, %v5516_v29, %v5691_v27 }
 0x681   : > { %v5693_v12 = vpop.permute.xlu0 %5692 }
 0x682   : > { %v5835_v28 = vpop.permute.xlu1 %5834  ;;  %v5913_v59 = vsel %vm4854_vm7, %v5517_v44, %v5693_v12  ;;  %v5520_v44 = vld [vmem:[#allocation4 + $0x198] sm:$0xff] }
 0x683   : > { %v12266_v34 = vsel %vm5918_vm9, %v5912_v63, %v5835_v28 }
 0x684   : > { %6043 = vrot.lane.b32.xlu0 %v12266_v34, %s8002_s29  ;;  %6137 = vrot.lane.b32.xlu1 %v12266_v34, %s8001_s27 }
 0x685   : > { %v12272_v3 = vpop.permute.xlu0 %6109 }
 0x686   : > { %v7884_v40 = vpop.permute.xlu1 %7883 }
 0x687   : > { %v7885_v43 = vunpack.i.l.bf16 %v7884_v40  ;;  %v7886_v21 = vunpack.i.h.bf16 %v7884_v40 }
 0x689   : > { %v6226_v30 = vsel %vm5918_vm9, %v7885_v43, %v12272_v3  ;;  %v6194_v22 = vsel %vm6181_vm10, %v11943_v50, %v7885_v43  ;;  %v6195_v48 = vsel %vm6181_vm10, %v11973_v18, %v7886_v21 }
 0x68a   : > { %v5837_v5 = vpop.permute.xlu1 %5836  ;;  %6477 = vmatprep.mubr.f32.mxu1 %v6226_v30 }
 0x68b   : > { %v12280_v15 = vsel %vm5918_vm9, %v5913_v59, %v5837_v5  ;;  %6478 = vmatmul.mubr.f32.gmra.mxu1 %v6194_v22 }
 0x68c   : > { %6045 = vrot.lane.b32.xlu0 %v12280_v15, %s8002_s29  ;;  %6139 = vrot.lane.b32.xlu1 %v12280_v15, %s8001_s27 }
 0x68e   : > { %v12289_v50 = vpop.permute.xlu1 %6111 }
 0x68f   : > { %v6227_v20 = vsel %vm5918_vm9, %v7886_v21, %v12289_v50 }
 0x690   : > { %6482 = vmatprep.mubr.f32.mxu1 %v6227_v20 }
 0x691   : > { %6483 = vmatmul.mubr.f32.gmra.mxu1 %v6195_v48  ;;  %v5521_v48 = vld [vmem:[#allocation4 + $0x1a0] sm:$0xff] }
 0x696   : > { %v12295_v10 = vpop.f32.mrf.mxu1 }
 0x698   : > { %v6421_v14 = vpop.f32.mrf.mxu1 }
 0x699   : > { %v5695_v9 = vpop.permute.xlu0 %5694 }
 0x69a   : > { %v5914_v57 = vsel %vm4854_vm7, %v5518_v11, %v5695_v9 }
 0x69c   : > { %v12297_v1 = vpop.f32.mrf.mxu1 }
 0x69e   : > { %v6426_v36 = vpop.f32.mrf.mxu1 }
 0x6a1   : > { %v5839_v38 = vpop.permute.xlu0 %5838 }
 0x6a2   : > { %v5697_v33 = vpop.permute.xlu1 %5696  ;;  %v5951_v55 = vsel %vm5918_vm9, %v5914_v57, %v5839_v38 }
 0x6a3   : > { %6047 = vrot.lane.b32.xlu0 %v5951_v55, %s8002_s29  ;;  %6141 = vrot.lane.b32.xlu1 %v5951_v55, %s8001_s27  ;;  %v5915_v12 = vsel %vm4854_vm7, %v5519_v37, %v5697_v33 }
 0x6a4   : > { %v12303_v18 = vpop.f32.mrf.mxu1 }
 0x6a5   : > { %v7889_v49 = vpop.permute.xlu0 %7888 }
 0x6a6   : > { %v12305_v26 = vpop.permute.xlu1 %6113  ;;  %v7890_v25 = vunpack.i.l.bf16 %v7889_v49  ;;  %v6431_v7 = vpop.f32.mrf.mxu1  ;;  %v7891_v22 = vunpack.i.h.bf16 %v7889_v49 }
 0x6a8   : > { %v12307_v27 = vpop.f32.mrf.mxu1  ;;  %v6228_v29 = vsel %vm5918_vm9, %v7890_v25, %v12305_v26  ;;  %v6196_v63 = vsel %vm6181_vm10, %v12026_v41, %v7890_v25  ;;  %v6197_v20 = vsel %vm6181_vm10, %v12055_v4, %v7891_v22 }
 0x6a9   : > { %v5841_v28 = vpop.permute.xlu0 %5840  ;;  %6487 = vmatprep.mubr.f32.mxu1 %v6228_v29 }
 0x6aa   : > { %v5699_v40 = vpop.permute.xlu1 %5698  ;;  %v5952_v43 = vsel %vm5918_vm9, %v5915_v12, %v5841_v28  ;;  %v6436_v30 = vpop.f32.mrf.mxu1  ;;  %6488 = vmatmul.mubr.f32.gmra.mxu1 %v6196_v63 }
 0x6ab   : > { %6049 = vrot.lane.b32.xlu0 %v5952_v43, %s8002_s29  ;;  %6143 = vrot.lane.b32.xlu1 %v5952_v43, %s8001_s27  ;;  %v5916_v59 = vsel %vm4854_vm7, %v5520_v44, %v5699_v40 }
 0x6ad   : > { %v12318_v5 = vpop.permute.xlu0 %6115 }
 0x6ae   : > { %v5843_v41 = vpop.permute.xlu1 %5842  ;;  %v6229_v46 = vsel %vm5918_vm9, %v7891_v22, %v12318_v5 }
 0x6af   : > { %v5953_v21 = vsel %vm5918_vm9, %v5916_v59, %v5843_v41  ;;  %6492 = vmatprep.mubr.f32.mxu1 %v6229_v46 }
 0x6b0   : > { %6145 = vrot.lane.b32.xlu1 %v5953_v21, %s8001_s27  ;;  %6493 = vmatmul.mubr.f32.gmra.mxu1 %v6197_v20 }
 0x6b1   : > { %v5701_v14 = vpop.permute.xlu0 %5700 }
 0x6b2   : > { %v6020_v9 = vpop.permute.xlu1 %6019  ;;  %v5917_v36 = vsel %vm4854_vm7, %v5521_v48, %v5701_v14 }
 0x6b3   : > { %v6198_v4 = vsel %vm6181_vm10, %v12088_v39, %v6020_v9 }
 0x6b5   : > { %v12327_v11 = vpop.permute.xlu0 %6117 }
 0x6b6   : > { %v5845_v57 = vpop.permute.xlu1 %5844  ;;  %v6230_v55 = vsel %vm5918_vm9, %v6020_v9, %v12327_v11 }
 0x6b7   : > { %v5954_v38 = vsel %vm5918_vm9, %v5917_v36, %v5845_v57  ;;  %v12330_v33 = vpop.f32.mrf.mxu1  ;;  %6497 = vmatprep.mubr.f32.mxu1 %v6230_v55 }
 0x6b8   : > { %6147 = vrot.lane.b32.xlu1 %v5954_v38, %s8001_s27  ;;  %6498 = vmatmul.mubr.f32.gmra.mxu1 %v6198_v4 }
 0x6b9   : > { %v6441_v49 = vpop.f32.mrf.mxu1  ;;  %v6022_v25 = vpop.permute.xlu0 %6021 }
 0x6ba   : > { %v12337_v7 = vpop.permute.xlu1 %6119  ;;  %v6199_v29 = vsel %vm6181_vm10, %v12104_v35, %v6022_v25 }
 0x6bb   : > { %v6231_v37 = vsel %vm5918_vm9, %v6022_v25, %v12337_v7 }
 0x6bc   : > { %6502 = vmatprep.mubr.f32.mxu1 %v6231_v37 }
 0x6bd   : > { %v12343_v63 = vpop.f32.mrf.mxu1  ;;  %6503 = vmatmul.mubr.f32.gmra.mxu1 %v6199_v29  ;;  %v6024_v12 = vpop.permute.xlu0 %6023 }
 0x6be   : > { %v12345_v28 = vpop.permute.xlu1 %6121  ;;  %v6200_v43 = vsel %vm6181_vm10, %v12144_v32, %v6024_v12 }
 0x6bf   : > { %v6446_v40 = vpop.f32.mrf.mxu1  ;;  %v6232_v39 = vsel %vm5918_vm9, %v6024_v12, %v12345_v28 }
 0x6c0   : > { %6507 = vmatprep.mubr.f32.mxu1 %v6232_v39 }
 0x6c1   : > { %6508 = vmatmul.mubr.f32.gmra.mxu1 %v6200_v43  ;;  %v6026_v44 = vpop.permute.xlu0 %6025 }
 0x6c2   : > { %v12351_v30 = vpop.permute.xlu1 %6123  ;;  %v6201_v22 = vsel %vm6181_vm10, %v12155_v54, %v6026_v44 }
 0x6c3   : > { %v6233_v35 = vsel %vm5918_vm9, %v6026_v44, %v12351_v30 }
 0x6c4   : > { %6512 = vmatprep.mubr.f32.mxu1 %v6233_v35 }
 0x6c5   : > { %6513 = vmatmul.mubr.f32.gmra.mxu1 %v6201_v22  ;;  %v6028_v59 = vpop.permute.xlu0 %6027 }
 0x6c6   : > { %v12357_v41 = vpop.permute.xlu1 %6125  ;;  %v6202_v32 = vsel %vm6181_vm10, %v11955_v16, %v6028_v59 }
 0x6c7   : > { %v6234_v21 = vsel %vm5918_vm9, %v6028_v59, %v12357_v41 }
 0x6c8   : > { %6517 = vmatprep.mubr.f32.mxu1 %v6234_v21 }
 0x6c9   : > { %6518 = vmatmul.mubr.f32.gmra.mxu1 %v6202_v32  ;;  %v6030_v46 = vpop.permute.xlu0 %6029 }
 0x6ca   : > { %v12363_v20 = vpop.permute.xlu1 %6127  ;;  %v6203_v54 = vsel %vm6181_vm10, %v11985_v61, %v6030_v46 }
 0x6cb   : > { %v6235_v48 = vsel %vm5918_vm9, %v6030_v46, %v12363_v20 }
 0x6cc   : > { %6522 = vmatprep.mubr.f32.mxu1 %v6235_v48 }
 0x6cd   : > { %6523 = vmatmul.mubr.f32.gmra.mxu1 %v6203_v54  ;;  %v6032_v14 = vpop.permute.xlu0 %6031 }
 0x6ce   : > { %v12369_v9 = vpop.permute.xlu1 %6129  ;;  %v6204_v16 = vsel %vm6181_vm10, %v12014_v60, %v6032_v14 }
 0x6cf   : > { %v6236_v36 = vsel %vm5918_vm9, %v6032_v14, %v12369_v9 }
 0x6d0   : > { %6527 = vmatprep.mubr.f32.mxu1 %v6236_v36 }
 0x6d1   : > { %6528 = vmatmul.mubr.f32.gmra.mxu1 %v6204_v16  ;;  %v6034_v57 = vpop.permute.xlu0 %6033 }
 0x6d2   : > { %v12375_v38 = vpop.permute.xlu1 %6131  ;;  %v6205_v61 = vsel %vm6181_vm10, %v12041_v6, %v6034_v57 }
 0x6d3   : > { %v6237_v55 = vsel %vm5918_vm9, %v6034_v57, %v12375_v38 }
 0x6d4   : > { %6532 = vmatprep.mubr.f32.mxu1 %v6237_v55 }
 0x6d5   : > { %6533 = vmatmul.mubr.f32.gmra.mxu1 %v6205_v61  ;;  %v6036_v4 = vpop.permute.xlu0 %6035 }
 0x6d6   : > { %v12381_v49 = vpop.permute.xlu1 %6133  ;;  %v6206_v60 = vsel %vm6181_vm10, %v12197_v45, %v6036_v4 }
 0x6d7   : > { %v6238_v25 = vsel %vm5918_vm9, %v6036_v4, %v12381_v49 }
 0x6d8   : > { %6537 = vmatprep.mubr.f32.mxu1 %v6238_v25 }
 0x6d9   : > { %6538 = vmatmul.mubr.f32.gmra.mxu1 %v6206_v60  ;;  %v6038_v37 = vpop.permute.xlu0 %6037 }
 0x6da   : > { %v6207_v6 = vsel %vm6181_vm10, %v12207_v31, %v6038_v37 }
 0x6dd   : > { %v12387_v29 = vpop.permute.xlu1 %6135  ;;  %v6040_v45 = vpop.permute.xlu0 %6039 }
 0x6de   : > { %v6239_v12 = vsel %vm5918_vm9, %v6038_v37, %v12387_v29  ;;  %v6208_v59 = vsel %vm6181_vm10, %v12215_v51, %v6040_v45 }
 0x6df   : > { %6542 = vmatprep.mubr.f32.mxu1 %v6239_v12 }
 0x6e0   : > { %6543 = vmatmul.mubr.f32.gmra.mxu1 %v6207_v6 }
 0x6e1   : > { %v6042_v21 = vpop.permute.xlu0 %6041 }
 0x6e2   : > { %v6209_v46 = vsel %vm6181_vm10, %v12223_v53, %v6042_v21 }
 0x6e6   : > { %v12393_v40 = vpop.f32.mrf.mxu1 }
 0x6e8   : > { %v6451_v39 = vpop.f32.mrf.mxu1 }
 0x6ec   : > { %v12395_v43 = vpop.f32.mrf.mxu1 }
 0x6ee   : > { %v6456_v44 = vpop.f32.mrf.mxu1 }
 0x6f6   : > { %v12397_v35 = vpop.permute.xlu1 %6137  ;;  %v6044_v16 = vpop.permute.xlu0 %6043 }
 0x6f7   : > { %v6240_v22 = vsel %vm5918_vm9, %v6040_v45, %v12397_v35  ;;  %v6210_v55 = vsel %vm6181_vm10, %v12231_v19, %v6044_v16 }
 0x6f8   : > { %6547 = vmatprep.mubr.f32.mxu1 %v6240_v22 }
 0x6f9   : > { %6548 = vmatmul.mubr.f32.gmra.mxu1 %v6208_v59 }
 0x6fe   : > { %v12403_v31 = vpop.permute.xlu1 %6139  ;;  %v6046_v61 = vpop.permute.xlu0 %6045 }
 0x6ff   : > { %v6241_v32 = vsel %vm5918_vm9, %v6042_v21, %v12403_v31  ;;  %v6211_v25 = vsel %vm6181_vm10, %v12247_v24, %v6046_v61 }
 0x700   : > { %6552 = vmatprep.mubr.f32.mxu1 %v6241_v32 }
 0x701   : > { %6553 = vmatmul.mubr.f32.gmra.mxu1 %v6209_v46 }
 0x70b   : > { %v12409_v48 = vpop.f32.mrf.mxu1 }
 0x70d   : > { %v6461_v54 = vpop.f32.mrf.mxu1 }
 0x711   : > { %v12411_v14 = vpop.f32.mrf.mxu1 }
 0x713   : > { %v6466_v36 = vpop.f32.mrf.mxu1 }
 0x715   : > { %v6142_v51 = vpop.permute.xlu1 %6141  ;;  %v6048_v60 = vpop.permute.xlu0 %6047 }
 0x716   : > { %v6242_v57 = vsel %vm5918_vm9, %v6044_v16, %v6142_v51  ;;  %v6212_v6 = vsel %vm6181_vm10, %v12266_v34, %v6048_v60 }
 0x717   : > { %6557 = vmatprep.mubr.f32.mxu1 %v6242_v57 }
 0x718   : > { %6558 = vmatmul.mubr.f32.gmra.mxu1 %v6210_v55 }
 0x71d   : > { %v6144_v4 = vpop.permute.xlu1 %6143  ;;  %v6050_v19 = vpop.permute.xlu0 %6049 }
 0x71e   : > { %v6243_v53 = vsel %vm5918_vm9, %v6046_v61, %v6144_v4  ;;  %v6213_v24 = vsel %vm6181_vm10, %v12280_v15, %v6050_v19 }
 0x71f   : > { %6562 = vmatprep.mubr.f32.mxu1 %v6243_v53 }
 0x720   : > { %6563 = vmatmul.mubr.f32.gmra.mxu1 %v6211_v25 }
 0x722   : > { %v6146_v37 = vpop.permute.xlu1 %6145 }
 0x723   : > { %v6244_v12 = vsel %vm5918_vm9, %v6048_v60, %v6146_v37 }
 0x724   : > { %6567 = vmatprep.mubr.f32.mxu1 %v6244_v12 }
 0x725   : > { %6568 = vmatmul.mubr.f32.gmra.mxu1 %v6212_v6 }
 0x72a   : > { %v6148_v39 = vpop.permute.xlu1 %6147  ;;  %v12422_v44 = vpop.f32.mrf.mxu1 }
 0x72b   : > { %v6245_v45 = vsel %vm5918_vm9, %v6050_v19, %v6148_v39 }
 0x72c   : > { %6572 = vmatprep.mubr.f32.mxu1 %v6245_v45  ;;  %v6471_v22 = vpop.f32.mrf.mxu1 }
 0x72d   : > { %6573 = vmatmul.mubr.f32.gmra.mxu1 %v6213_v24 }
 0x72e   : > { %7735 = vmatprep.mubr.msk.f32.mxu1 %vm4854_vm7, %v11924_v23 }
 0x730   : > { %v12429_v59 = vpop.f32.mrf.mxu1 }
 0x731   : > { %7736 = vmatmul.mubr.msk.f32.vlgmr.msra.gmra.mxu1 %vm4854_vm7, %v11966_v17 }
 0x732   : > { %7738 = vmatprep.mubr.msk.f32.mxu1 %vm4854_vm7, %v11990_v0  ;;  %v6476_v34 = vpop.f32.mrf.mxu1 }
 0x735   : > { %7739 = vmatmul.mubr.msk.f32.gmra.mxu1 %vm4854_vm7, %v11988_v47 }
 0x736   : > { %7741 = vmatprep.mubr.msk.f32.mxu1 %vm4854_vm7, %v12029_v58 }
 0x739   : > { %7742 = vmatmul.mubr.msk.f32.gmra.mxu1 %vm4854_vm7, %v12048_v2 }
 0x73a   : > { %7744 = vmatprep.mubr.msk.f32.mxu1 %vm4854_vm7, %v12115_v42 }
 0x73d   : > { %7745 = vmatmul.mubr.msk.f32.gmra.mxu1 %vm4854_vm7, %v12127_v8 }
 0x73e   : > { %7747 = vmatprep.mubr.msk.f32.mxu1 %vm4854_vm7, %v12166_v52 }
 0x741   : > { %7748 = vmatmul.mubr.msk.f32.gmra.mxu1 %vm4854_vm7, %v12180_v62 }
 0x742   : > { %7750 = vmatprep.mubr.msk.f32.mxu1 %vm4854_vm7, %v12237_v13 }
 0x745   : > { %7751 = vmatmul.mubr.msk.f32.gmra.mxu1 %vm4854_vm7, %v12253_v56 }
 0x746   : > { %7753 = vmatprep.mubr.msk.f32.mxu1 %vm4854_vm7, %v12272_v3 }
 0x749   : > { %7754 = vmatmul.mubr.msk.f32.gmra.mxu1 %vm4854_vm7, %v12289_v50 }
 0x74a   : > { %7756 = vmatprep.mubr.msk.f32.mxu1 %vm4854_vm7, %v12305_v26 }
 0x74b   : > { %v12459_v23 = vpop.f32.mrf.mxu1 }
 0x74d   : > { %v6481_v17 = vpop.f32.mrf.mxu1  ;;  %7757 = vmatmul.mubr.msk.f32.gmra.mxu1 %vm4854_vm7, %v12318_v5 }
 0x74e   : > { %7759 = vmatprep.mubr.msk.f32.mxu1 %vm4854_vm7, %v12327_v11 }
 0x751   : > { %v12465_v47 = vpop.f32.mrf.mxu1  ;;  %7760 = vmatmul.mubr.msk.f32.gmra.mxu1 %vm4854_vm7, %v12337_v7 }
 0x752   : > { %7762 = vmatprep.mubr.msk.f32.mxu1 %vm4854_vm7, %v12345_v28 }
 0x753   : > { %v6486_v0 = vpop.f32.mrf.mxu1 }
 0x755   : > { %7763 = vmatmul.mubr.msk.f32.gmra.mxu1 %vm4854_vm7, %v12351_v30 }
 0x756   : > { %7765 = vmatprep.mubr.msk.f32.mxu1 %vm4854_vm7, %v12357_v41 }
 0x759   : > { %7766 = vmatmul.mubr.msk.f32.gmra.mxu1 %vm4854_vm7, %v12363_v20 }
 0x75a   : > { %7768 = vmatprep.mubr.msk.f32.mxu1 %vm4854_vm7, %v12369_v9 }
 0x75d   : > { %7769 = vmatmul.mubr.msk.f32.gmra.mxu1 %vm4854_vm7, %v12375_v38 }
 0x75e   : > { %7771 = vmatprep.mubr.msk.f32.mxu1 %vm4854_vm7, %v12381_v49 }
 0x761   : > { %7772 = vmatmul.mubr.msk.f32.gmra.mxu1 %vm4854_vm7, %v12387_v29 }
 0x762   : > { %7774 = vmatprep.mubr.msk.f32.mxu1 %vm4854_vm7, %v12397_v35 }
 0x765   : > { %7775 = vmatmul.mubr.msk.f32.gmra.mxu1 %vm4854_vm7, %v12403_v31 }
 0x766   : > { %7777 = vmatprep.mubr.msk.f32.mxu1 %vm4854_vm7, %v6142_v51 }
 0x769   : > { %7778 = vmatmul.mubr.msk.f32.gmra.mxu1 %vm4854_vm7, %v6144_v4  ;;  %v12529_v4 = vld [vmem:[#allocation10] ss:$0 sm:$0xff] }
 0x76a   : > { %7780 = vmatprep.mubr.msk.f32.mxu1 %vm4854_vm7, %v6146_v37  ;;  %v12492_v58 = vpop.f32.mrf.mxu1  ;;  %v6425_v25 = vadd.f32 %v12529_v4, %v12297_v1  ;;  %v6420_v37 = vadd.f32 %v12529_v4, %v12295_v10  ;;  %v6435_v19 = vadd.f32 %v12529_v4, %v12307_v27  ;;  %v6430_v22 = vadd.f32 %v12529_v4, %v12303_v18 }
 0x76b   : > { %v6445_v0 = vadd.f32 %v12529_v4, %v12343_v63  ;;  %v6440_v27 = vadd.f32 %v12529_v4, %v12330_v33 }
 0x76c   : > { %v6491_v2 = vpop.f32.mrf.mxu1 }
 0x76d   : > { %7781 = vmatmul.mubr.msk.f32.gmra.mxu1 %vm4854_vm7, %v6148_v39 }
 0x770   : > { %v12495_v42 = vpop.f32.mrf.mxu1 }
 0x772   : > { %v6496_v8 = vpop.f32.mrf.mxu1 }
 0x778   : > { %v12497_v52 = vpop.f32.mrf.mxu1 }
 0x77a   : > { %v6501_v62 = vpop.f32.mrf.mxu1 }
 0x77d   : > { %v12499_v13 = vpop.f32.mrf.mxu1 }
 0x77f   : > { %v6506_v56 = vpop.f32.mrf.mxu1 }
 0x781   : > { %v12501_v3 = vpop.f32.mrf.mxu1 }
 0x783   : > { %v6511_v15 = vpop.f32.mrf.mxu1 }
 0x784   : > { %v6455_v15 = vadd.f32 %v12529_v4, %v12395_v43 }
 0x785   : > { %v12503_v50 = vpop.f32.mrf.mxu1 }
 0x787   : > { %v6516_v26 = vpop.f32.mrf.mxu1 }
 0x789   : > { %v12505_v5 = vpop.f32.mrf.mxu1 }
 0x78b   : > { %v6521_v11 = vpop.f32.mrf.mxu1 }
 0x78d   : > { %v12507_v7 = vpop.f32.mrf.mxu1 }
 0x78f   : > { %v6526_v28 = vpop.f32.mrf.mxu1 }
 0x790   : > { %v6450_v28 = vadd.f32 %v12529_v4, %v12393_v40 }
 0x791   : > { %v12509_v30 = vpop.f32.mrf.mxu1 }
 0x793   : > { %v6531_v41 = vpop.f32.mrf.mxu1 }
 0x795   : > { %v12511_v20 = vpop.f32.mrf.mxu1 }
 0x797   : > { %v6536_v9 = vpop.f32.mrf.mxu1 }
 0x799   : > { %v12513_v38 = vpop.f32.mrf.mxu1 }
 0x79b   : > { %v6541_v49 = vpop.f32.mrf.mxu1 }
 0x79c   : > { %v6465_v49 = vadd.f32 %v12529_v4, %v12411_v14 }
 0x7a0   : > { %v12515_v29 = vpop.f32.mrf.mxu1 }
 0x7a2   : > { %v6546_v35 = vpop.f32.mrf.mxu1 }
 0x7b9   : > { %v12517_v21 = vpop.f32.mrf.mxu1 }
 0x7bb   : > { %v6551_v31 = vpop.f32.mrf.mxu1 }
 0x7c1   : > { %v12519_v32 = vpop.f32.mrf.mxu1 }
 0x7c3   : > { %v6556_v46 = vpop.f32.mrf.mxu1 }
 0x7c4   : > { %v6460_v46 = vadd.f32 %v12529_v4, %v12409_v48  ;;  %v6470_v48 = vadd.f32 %v12529_v4, %v12422_v44  ;;  %v6480_v44 = vadd.f32 %v12529_v4, %v12459_v23  ;;  %v6490_v23 = vadd.f32 %v12529_v4, %v12492_v58 }
 0x7c5   : > { %v6500_v58 = vadd.f32 %v12529_v4, %v12497_v52  ;;  %v6510_v52 = vadd.f32 %v12529_v4, %v12501_v3  ;;  %v6520_v3 = vadd.f32 %v12529_v4, %v12505_v5  ;;  %v6530_v5 = vadd.f32 %v12529_v4, %v12509_v30 }
 0x7c6   : > { %v6540_v30 = vadd.f32 %v12529_v4, %v12513_v38  ;;  %v6550_v38 = vadd.f32 %v12529_v4, %v12517_v21 }
 0x7d8   : > { %v12521_v54 = vpop.f32.mrf.mxu1 }
 0x7d9   : > { %v6560_v21 = vadd.f32 %v12529_v4, %v12521_v54 }
 0x7da   : > { %v6561_v36 = vpop.f32.mrf.mxu1 }
 0x7e0   : > { %v12523_v16 = vpop.f32.mrf.mxu1 }
 0x7e2   : > { %v6566_v51 = vpop.f32.mrf.mxu1 }
 0x7e5   : > { %v12525_v57 = vpop.f32.mrf.mxu1 }
 0x7e6   : > { %v6570_v54 = vadd.f32 %v12529_v4, %v12525_v57 }
 0x7e7   : > { %v6571_v55 = vpop.f32.mrf.mxu1 }
 0x7ed   : > { %v12527_v61 = vpop.f32.mrf.mxu1 }
 0x7ef   : > { %v6576_v53 = vpop.f32.mrf.mxu1 }
 0x7f1   : > { %v7737_v60 = vpop.f32.mrf.mxu1 }
 0x7f2   : > { %v6650_v12 = vadd.f32 %v7737_v60, %v6425_v25  ;;  %v6475_v25 = vadd.f32 %v12529_v4, %v12429_v59 }
 0x7f3   : > { %v6644_v6 = vpop.f32.mrf.mxu1 }
 0x7f4   : > { %v6804_v39 = vmax.f32 %v6650_v12, 0.0  ;;  %v6645_v45 = vadd.f32 %v6644_v6, %v6420_v37 }
 0x7f5   : > { %v7740_v24 = vpop.f32.mrf.mxu1 }
 0x7f6   : > { %6836 = vst.msk [vmem:[#allocation5 + $0x8] sm:$0xff] %vm5918_vm9, %v6804_v39  ;;  %v6803_v34 = vmax.f32 %v6645_v45, 0.0  ;;  %v6660_v17 = vadd.f32 %v7740_v24, %v6435_v19  ;;  %v6485_v45 = vadd.f32 %v12529_v4, %v12465_v47 }
 0x7f7   : > { %v6654_v1 = vpop.f32.mrf.mxu1 }
 0x7f8   : > { %6835 = vst.msk [vmem:[#allocation5] sm:$0xff] %vm5918_vm9, %v6803_v34  ;;  %v6806_v10 = vmax.f32 %v6660_v17, 0.0  ;;  %v6655_v2 = vadd.f32 %v6654_v1, %v6430_v22 }
 0x7f9   : > { %v7743_v8 = vpop.f32.mrf.mxu1 }
 0x7fa   : > { %6838 = vst.msk [vmem:[#allocation5 + $0x18] sm:$0xff] %vm5918_vm9, %v6806_v10  ;;  %v6805_v62 = vmax.f32 %v6655_v2, 0.0  ;;  %v6670_v18 = vadd.f32 %v7743_v8, %v6445_v0 }
 0x7fb   : > { %v6664_v56 = vpop.f32.mrf.mxu1 }
 0x7fc   : > { %6837 = vst.msk [vmem:[#allocation5 + $0x10] sm:$0xff] %vm5918_vm9, %v6805_v62  ;;  %v6808_v26 = vmax.f32 %v6670_v18, 0.0  ;;  %v6665_v63 = vadd.f32 %v6664_v56, %v6440_v27  ;;  %v6495_v62 = vadd.f32 %v12529_v4, %v12495_v42 }
 0x7fd   : > { %v7746_v11 = vpop.f32.mrf.mxu1 }
 0x7fe   : > { %6840 = vst.msk [vmem:[#allocation5 + $0x28] sm:$0xff] %vm5918_vm9, %v6808_v26  ;;  %v6807_v41 = vmax.f32 %v6665_v63, 0.0  ;;  %v6680_v33 = vadd.f32 %v7746_v11, %v6455_v15 }
 0x7ff   : > { %v6674_v9 = vpop.f32.mrf.mxu1 }
 0x800   : > { %6839 = vst.msk [vmem:[#allocation5 + $0x20] sm:$0xff] %vm5918_vm9, %v6807_v41  ;;  %v6810_v35 = vmax.f32 %v6680_v33, 0.0  ;;  %v6675_v43 = vadd.f32 %v6674_v9, %v6450_v28  ;;  %v6505_v41 = vadd.f32 %v12529_v4, %v12499_v13 }
 0x801   : > { %v7749_v31 = vpop.f32.mrf.mxu1 }
 0x802   : > { %6842 = vst.msk [vmem:[#allocation5 + $0x38] sm:$0xff] %vm5918_vm9, %v6810_v35  ;;  %v6809_v36 = vmax.f32 %v6675_v43, 0.0  ;;  %v6690_v40 = vadd.f32 %v7749_v31, %v6465_v49 }
 0x803   : > { %v6684_v51 = vpop.f32.mrf.mxu1  ;;  %v6907_v55 = vld [vmem:[#allocation5 + $0x2] ss:$4 sm:$0xff]  ;;  %v6923_v53 = vld [vmem:[#allocation5 + $0x3] ss:$4 sm:$0xff] }
 0x804   : > { %6841 = vst.msk [vmem:[#allocation5 + $0x30] sm:$0xff] %vm5918_vm9, %v6809_v36  ;;  %v6812_v14 = vmax.f32 %v6690_v40, 0.0  ;;  %v6685_v60 = vadd.f32 %v6684_v51, %v6460_v46  ;;  %v6938_v37 = vmax.f32 %v6907_v55, %v6923_v53  ;;  %v6515_v55 = vadd.f32 %v12529_v4, %v12503_v50 }
 0x805   : > { %v7752_v12 = vpop.f32.mrf.mxu1 }
 0x806   : > { %6844 = vst.msk [vmem:[#allocation5 + $0x48] sm:$0xff] %vm5918_vm9, %v6812_v14  ;;  %v6811_v6 = vmax.f32 %v6685_v60, 0.0  ;;  %v6700_v19 = vadd.f32 %v7752_v12, %v6475_v25  ;;  %v7003_v39 = vcombine.high %v6938_v37, %v6938_v37  ;;  %v7019_v34 = vsel %vm6970_vm11, %v6938_v37, -inf }
 0x807   : > { %v6694_v24 = vpop.f32.mrf.mxu1 }
 0x808   : > { %6843 = vst.msk [vmem:[#allocation5 + $0x40] sm:$0xff] %vm5918_vm9, %v6811_v6  ;;  %v6814_v59 = vmax.f32 %v6700_v19, 0.0  ;;  %v6695_v22 = vadd.f32 %v6694_v24, %v6470_v48  ;;  %v7020_v17 = vsel %vm6970_vm11, %v7003_v39, -inf  ;;  %v6525_v6 = vadd.f32 %v12529_v4, %v12507_v7 }
 0x809   : > { %v7755_v1 = vpop.f32.mrf.mxu1  ;;  %v7021_v0 = vmax.f32 %v7019_v34, %v7020_v17 }
 0x80a   : > { %6846 = vst.msk [vmem:[#allocation5 + $0x58] sm:$0xff] %vm5918_vm9, %v6814_v59  ;;  %v6813_v10 = vmax.f32 %v6695_v22, 0.0  ;;  %v6710_v2 = vadd.f32 %v7755_v1, %v6485_v45 }
 0x80b   : > { %v6704_v8 = vpop.f32.mrf.mxu1  ;;  %7051 = vrot.lane.b32.xlu0 %v7021_v0, %s8001_s27  ;;  %v6909_v47 = vld [vmem:[#allocation5 + $0x22] ss:$4 sm:$0xff]  ;;  %v6925_v27 = vld [vmem:[#allocation5 + $0x23] ss:$4 sm:$0xff] }
 0x80c   : > { %6845 = vst.msk [vmem:[#allocation5 + $0x50] sm:$0xff] %vm5918_vm9, %v6813_v10  ;;  %v6816_v18 = vmax.f32 %v6710_v2, 0.0  ;;  %v6705_v56 = vadd.f32 %v6704_v8, %v6480_v44  ;;  %v6939_v15 = vmax.f32 %v6909_v47, %v6925_v27  ;;  %v6535_v44 = vadd.f32 %v12529_v4, %v12511_v20 }
 0x80d   : > { %v7758_v26 = vpop.f32.mrf.mxu1 }
 0x80e   : > { %6848 = vst.msk [vmem:[#allocation5 + $0x68] sm:$0xff] %vm5918_vm9, %v6816_v18  ;;  %v6815_v63 = vmax.f32 %v6705_v56, 0.0  ;;  %v6720_v11 = vadd.f32 %v7758_v26, %v6495_v62  ;;  %v7004_v28 = vcombine.high %v6939_v15, %v6939_v15  ;;  %v7022_v49 = vsel %vm6970_vm11, %v6939_v15, -inf }
 0x80f   : > { %v6714_v33 = vpop.f32.mrf.mxu1  ;;  %v6545_v56 = vadd.f32 %v12529_v4, %v12515_v29 }
 0x810   : > { %6847 = vst.msk [vmem:[#allocation5 + $0x60] sm:$0xff] %vm5918_vm9, %v6815_v63  ;;  %v6818_v42 = vmax.f32 %v6720_v11, 0.0  ;;  %v6715_v9 = vadd.f32 %v6714_v33, %v6490_v23  ;;  %v7023_v35 = vsel %vm6970_vm11, %v7004_v28, -inf }
 0x811   : > { %v7761_v43 = vpop.f32.mrf.mxu1  ;;  %v7024_v31 = vmax.f32 %v7022_v49, %v7023_v35  ;;  %v6555_v49 = vadd.f32 %v12529_v4, %v12519_v32 }
 0x812   : > { %6850 = vst.msk [vmem:[#allocation5 + $0x78] sm:$0xff] %vm5918_vm9, %v6818_v42  ;;  %v6817_v46 = vmax.f32 %v6715_v9, 0.0  ;;  %v6730_v36 = vadd.f32 %v7761_v43, %v6505_v41 }
 0x813   : > { %v6724_v40 = vpop.f32.mrf.mxu1  ;;  %7053 = vrot.lane.b32.xlu1 %v7024_v31, %s8001_s27  ;;  %v6911_v13 = vld [vmem:[#allocation5 + $0x42] ss:$4 sm:$0xff]  ;;  %v6927_v51 = vld [vmem:[#allocation5 + $0x43] ss:$4 sm:$0xff] }
 0x814   : > { %6849 = vst.msk [vmem:[#allocation5 + $0x70] sm:$0xff] %vm5918_vm9, %v6817_v46  ;;  %v6820_v53 = vmax.f32 %v6730_v36, 0.0  ;;  %v6725_v25 = vadd.f32 %v6724_v40, %v6500_v58  ;;  %v6940_v14 = vmax.f32 %v6911_v13, %v6927_v51  ;;  %v6565_v13 = vadd.f32 %v12529_v4, %v12523_v16 }
 0x815   : > { %v7764_v60 = vpop.f32.mrf.mxu1 }
 0x816   : > { %6852 = vst.msk [vmem:[#allocation5 + $0x88] sm:$0xff] %vm5918_vm9, %v6820_v53  ;;  %v6819_v37 = vmax.f32 %v6725_v25, 0.0  ;;  %v6740_v12 = vadd.f32 %v7764_v60, %v6515_v55  ;;  %v7005_v48 = vcombine.high %v6940_v14, %v6940_v14  ;;  %v7025_v45 = vsel %vm6970_vm11, %v6940_v14, -inf }
 0x817   : > { %v6734_v19 = vpop.f32.mrf.mxu1 }
 0x818   : > { %6851 = vst.msk [vmem:[#allocation5 + $0x80] sm:$0xff] %vm5918_vm9, %v6819_v37  ;;  %v6822_v50 = vmax.f32 %v6740_v12, 0.0  ;;  %v6735_v39 = vadd.f32 %v6734_v19, %v6510_v52  ;;  %v7026_v24 = vsel %vm6970_vm11, %v7005_v48, -inf }
 0x819   : > { %v7767_v59 = vpop.f32.mrf.mxu1  ;;  %v7027_v22 = vmax.f32 %v7025_v45, %v7026_v24 }
 0x81a   : > { %6854 = vst.msk [vmem:[#allocation5 + $0x98] sm:$0xff] %vm5918_vm9, %v6822_v50  ;;  %v6821_v34 = vmax.f32 %v6735_v39, 0.0  ;;  %v6750_v17 = vadd.f32 %v7767_v59, %v6525_v6  ;;  %v6575_v6 = vadd.f32 %v12529_v4, %v12527_v61 }
 0x81b   : > { %v6744_v1 = vpop.f32.mrf.mxu1  ;;  %7055 = vrot.lane.b32.xlu0 %v7027_v22, %s8001_s27  ;;  %v6913_v7 = vld [vmem:[#allocation5 + $0x62] ss:$4 sm:$0xff]  ;;  %v6929_v0 = vld [vmem:[#allocation5 + $0x63] ss:$4 sm:$0xff] }
 0x81c   : > { %6853 = vst.msk [vmem:[#allocation5 + $0x90] sm:$0xff] %vm5918_vm9, %v6821_v34  ;;  %v6824_v10 = vmax.f32 %v6750_v17, 0.0  ;;  %v6745_v2 = vadd.f32 %v6744_v1, %v6520_v3  ;;  %v6941_v8 = vmax.f32 %v6913_v7, %v6929_v0 }
 0x81d   : > { %v7770_v47 = vpop.f32.mrf.mxu1 }
 0x81e   : > { %6856 = vst.msk [vmem:[#allocation5 + $0xa8] sm:$0xff] %vm5918_vm9, %v6824_v10  ;;  %v6823_v27 = vmax.f32 %v6745_v2, 0.0  ;;  %v6760_v62 = vadd.f32 %v7770_v47, %v6535_v44  ;;  %v7006_v18 = vcombine.high %v6941_v8, %v6941_v8  ;;  %v7028_v23 = vsel %vm6970_vm11, %v6941_v8, -inf }
 0x81f   : > { %v6754_v15 = vpop.f32.mrf.mxu1 }
 0x820   : > { %6855 = vst.msk [vmem:[#allocation5 + $0xa0] sm:$0xff] %vm5918_vm9, %v6823_v27  ;;  %v6826_v20 = vmax.f32 %v6760_v62, 0.0  ;;  %v6755_v26 = vadd.f32 %v6754_v15, %v6530_v5  ;;  %v7029_v63 = vsel %vm6970_vm11, %v7006_v18, -inf }
 0x821   : > { %v7773_v11 = vpop.f32.mrf.mxu1  ;;  %v7030_v28 = vmax.f32 %v7028_v23, %v7029_v63  ;;  %v6883_v23 = vld [vmem:[#allocation5 + $0x1] ss:$4 sm:$0xff] }
 0x822   : > { %6858 = vst.msk [vmem:[#allocation5 + $0xb8] sm:$0xff] %vm5918_vm9, %v6826_v20  ;;  %v6825_v41 = vmax.f32 %v6755_v26, 0.0  ;;  %v6770_v33 = vadd.f32 %v7773_v11, %v6545_v56  ;;  %v6867_v26 = vld [vmem:[#allocation5] ss:$4 sm:$0xff] }
 0x823   : > { %v6764_v42 = vpop.f32.mrf.mxu1  ;;  %7057 = vrot.lane.b32.xlu1 %v7030_v28, %s8001_s27  ;;  %v6915_v29 = vld [vmem:[#allocation5 + $0x82] ss:$4 sm:$0xff]  ;;  %v6931_v9 = vld [vmem:[#allocation5 + $0x83] ss:$4 sm:$0xff]  ;;  %v6898_v63 = vmax.f32 %v6867_v26, %v6883_v23  ;;  %v6869_v28 = vld [vmem:[#allocation5 + $0x20] ss:$4 sm:$0xff] }
 0x824   : > { %6857 = vst.msk [vmem:[#allocation5 + $0xb0] sm:$0xff] %vm5918_vm9, %v6825_v41  ;;  %v6828_v35 = vmax.f32 %v6770_v33, 0.0  ;;  %v6765_v43 = vadd.f32 %v6764_v42, %v6540_v30  ;;  %v6942_v31 = vmax.f32 %v6915_v29, %v6931_v9  ;;  %v6885_v30 = vld [vmem:[#allocation5 + $0x21] ss:$4 sm:$0xff] }
 0x825   : > { %v7776_v58 = vpop.f32.mrf.mxu1  ;;  %v6954_v11 = vcombine.high %v6898_v63, %v6898_v63  ;;  %v6899_v33 = vmax.f32 %v6869_v28, %v6885_v30  ;;  %v6971_v42 = vsel %vm6970_vm11, %v6898_v63, -inf }
 0x826   : > { %6860 = vst.msk [vmem:[#allocation5 + $0xc8] sm:$0xff] %vm5918_vm9, %v6828_v35  ;;  %v6827_v46 = vmax.f32 %v6765_v43, 0.0  ;;  %v6780_v36 = vadd.f32 %v7776_v58, %v6555_v49  ;;  %v7007_v40 = vcombine.high %v6942_v31, %v6942_v31  ;;  %v7031_v53 = vsel %vm6970_vm11, %v6942_v31, -inf  ;;  %v6871_v43 = vld [vmem:[#allocation5 + $0x40] ss:$4 sm:$0xff] }
 0x827   : > { %v6774_v51 = vpop.f32.mrf.mxu1  ;;  %v6972_v41 = vsel %vm6970_vm11, %v6954_v11, -inf  ;;  %v6955_v49 = vcombine.high %v6899_v33, %v6899_v33  ;;  %v6887_v31 = vld [vmem:[#allocation5 + $0x41] ss:$4 sm:$0xff] }
 0x828   : > { %6859 = vst.msk [vmem:[#allocation5 + $0xc0] sm:$0xff] %vm5918_vm9, %v6827_v46  ;;  %v6830_v32 = vmax.f32 %v6780_v36, 0.0  ;;  %v6775_v55 = vadd.f32 %v6774_v51, %v6550_v38  ;;  %v7032_v25 = vsel %vm6970_vm11, %v7007_v40, -inf  ;;  %v6973_v29 = vmax.f32 %v6971_v42, %v6972_v41 }
 0x829   : > { %v7779_v14 = vpop.f32.mrf.mxu1  ;;  %v7033_v60 = vmax.f32 %v7031_v53, %v7032_v25  ;;  %v6975_v58 = vsel %vm6970_vm11, %v6955_v49, -inf  ;;  %v6900_v38 = vmax.f32 %v6871_v43, %v6887_v31  ;;  %v6974_v46 = vsel %vm6970_vm11, %v6899_v33, -inf }
 0x82a   : > { %6862 = vst.msk [vmem:[#allocation5 + $0xd8] sm:$0xff] %vm5918_vm9, %v6830_v32  ;;  %v6829_v52 = vmax.f32 %v6775_v55, 0.0  ;;  %v6790_v37 = vadd.f32 %v7779_v14, %v6565_v13  ;;  %v6976_v36 = vmax.f32 %v6974_v46, %v6975_v58  ;;  %v6873_v32 = vld [vmem:[#allocation5 + $0x60] ss:$4 sm:$0xff]  ;;  %v6889_v55 = vld [vmem:[#allocation5 + $0x61] ss:$4 sm:$0xff] }
 0x82b   : > { %v6784_v12 = vpop.f32.mrf.mxu1  ;;  %7059 = vrot.lane.b32.xlu0 %v7033_v60, %s8001_s27  ;;  %v6917_v16 = vld [vmem:[#allocation5 + $0xa2] ss:$4 sm:$0xff]  ;;  %v6933_v48 = vld [vmem:[#allocation5 + $0xa3] ss:$4 sm:$0xff]  ;;  %v6956_v13 = vcombine.high %v6900_v38, %v6900_v38  ;;  %v6901_v25 = vmax.f32 %v6873_v32, %v6889_v55  ;;  %v6977_v14 = vsel %vm6970_vm11, %v6900_v38, -inf }
 0x82c   : > { %6861 = vst.msk [vmem:[#allocation5 + $0xd0] sm:$0xff] %vm5918_vm9, %v6829_v52  ;;  %v6832_v19 = vmax.f32 %v6790_v37, 0.0  ;;  %v6785_v50 = vadd.f32 %v6784_v12, %v6560_v21  ;;  %v6943_v39 = vmax.f32 %v6917_v16, %v6933_v48  ;;  %v6875_v12 = vld [vmem:[#allocation5 + $0x80] ss:$4 sm:$0xff]  ;;  %v6891_v16 = vld [vmem:[#allocation5 + $0x81] ss:$4 sm:$0xff] }
 0x82d   : > { %v7782_v45 = vpop.f32.mrf.mxu1  ;;  %v6978_v53 = vsel %vm6970_vm11, %v6956_v13, -inf  ;;  %v6957_v52 = vcombine.high %v6901_v25, %v6901_v25 }
 0x82e   : > { %6864 = vst.msk [vmem:[#allocation5 + $0xe8] sm:$0xff] %vm5918_vm9, %v6832_v19  ;;  %v6831_v24 = vmax.f32 %v6785_v50, 0.0  ;;  %v6800_v59 = vadd.f32 %v7782_v45, %v6575_v6  ;;  %v7008_v22 = vcombine.high %v6943_v39, %v6943_v39  ;;  %v7034_v61 = vsel %vm6970_vm11, %v6943_v39, -inf }
 0x82f   : > { %v6794_v3 = vpop.f32.mrf.mxu1  ;;  %v6979_v60 = vmax.f32 %v6977_v14, %v6978_v53  ;;  %v6981_v48 = vsel %vm6970_vm11, %v6957_v52, -inf  ;;  %v6902_v6 = vmax.f32 %v6875_v12, %v6891_v16  ;;  %v6980_v19 = vsel %vm6970_vm11, %v6901_v25, -inf }
 0x830   : > { %6863 = vst.msk [vmem:[#allocation5 + $0xe0] sm:$0xff] %vm5918_vm9, %v6831_v24  ;;  %v6834_v34 = vmax.f32 %v6800_v59, 0.0  ;;  %v6795_v17 = vadd.f32 %v6794_v3, %v6570_v54  ;;  %v7035_v1 = vsel %vm6970_vm11, %v7008_v22, -inf  ;;  %v6982_v50 = vmax.f32 %v6980_v19, %v6981_v48  ;;  %v6877_v24 = vld [vmem:[#allocation5 + $0xa0] ss:$4 sm:$0xff] }
 0x831   : > { %v7036_v7 = vmax.f32 %v7034_v61, %v7035_v1  ;;  %v6958_v45 = vcombine.high %v6902_v6, %v6902_v6  ;;  %v6893_v59 = vld [vmem:[#allocation5 + $0xa1] ss:$4 sm:$0xff] }
 0x832   : > { %6866 = vst.msk [vmem:[#allocation5 + $0xf8] sm:$0xff] %vm5918_vm9, %v6834_v34  ;;  %v6833_v0 = vmax.f32 %v6795_v17, 0.0  ;;  %v6903_v3 = vmax.f32 %v6877_v24, %v6893_v59  ;;  %v6983_v34 = vsel %vm6970_vm11, %v6902_v6, -inf }
 0x833   : > { %7061 = vrot.lane.b32.xlu1 %v7036_v7, %s8001_s27  ;;  %v6919_v57 = vld [vmem:[#allocation5 + $0xc2] ss:$4 sm:$0xff]  ;;  %v6935_v4 = vld [vmem:[#allocation5 + $0xc3] ss:$4 sm:$0xff]  ;;  %v6984_v22 = vsel %vm6970_vm11, %v6958_v45, -inf }
 0x834   : > { %6865 = vst.msk [vmem:[#allocation5 + $0xf0] sm:$0xff] %vm5918_vm9, %v6833_v0  ;;  %v6944_v44 = vmax.f32 %v6919_v57, %v6935_v4  ;;  %v6985_v17 = vmax.f32 %v6983_v34, %v6984_v22  ;;  %v6959_v1 = vcombine.high %v6903_v3, %v6903_v3  ;;  %v6879_v0 = vld [vmem:[#allocation5 + $0xc0] ss:$4 sm:$0xff]  ;;  %v6895_v57 = vld [vmem:[#allocation5 + $0xc1] ss:$4 sm:$0xff] }
 0x836   : > { %v7009_v10 = vcombine.high %v6944_v44, %v6944_v44  ;;  %v7037_v2 = vsel %vm6970_vm11, %v6944_v44, -inf  ;;  %v6987_v4 = vsel %vm6970_vm11, %v6959_v1, -inf  ;;  %v6904_v44 = vmax.f32 %v6879_v0, %v6895_v57 }
 0x838   : > { %v7038_v8 = vsel %vm6970_vm11, %v7009_v10, -inf  ;;  %v6986_v10 = vsel %vm6970_vm11, %v6903_v3, -inf }
 0x839   : > { %v7039_v47 = vmax.f32 %v7037_v2, %v7038_v8  ;;  %v6988_v2 = vmax.f32 %v6986_v10, %v6987_v4 }
 0x83b   : > { %7063 = vrot.lane.b32.xlu0 %v7039_v47, %s8001_s27  ;;  %v6921_v5 = vld [vmem:[#allocation5 + $0xe2] ss:$4 sm:$0xff]  ;;  %v6937_v27 = vld [vmem:[#allocation5 + $0xe3] ss:$4 sm:$0xff]  ;;  %v6960_v47 = vcombine.high %v6904_v44, %v6904_v44 }
 0x83c   : > { %v6945_v62 = vmax.f32 %v6921_v5, %v6937_v27  ;;  %v6881_v27 = vld [vmem:[#allocation5 + $0xe0] ss:$4 sm:$0xff] }
 0x83e   : > { %v7010_v18 = vcombine.high %v6945_v62, %v6945_v62  ;;  %v7040_v56 = vsel %vm6970_vm11, %v6945_v62, -inf  ;;  %v6897_v62 = vld [vmem:[#allocation5 + $0xe1] ss:$4 sm:$0xff] }
 0x840   : > { %v7041_v15 = vsel %vm6970_vm11, %v7010_v18, -inf  ;;  %v6990_v18 = vsel %vm6970_vm11, %v6960_v47, -inf }
 0x841   : > { %v7042_v20 = vmax.f32 %v7040_v56, %v7041_v15  ;;  %v6905_v56 = vmax.f32 %v6881_v27, %v6897_v62  ;;  %v6989_v15 = vsel %vm6970_vm11, %v6904_v44, -inf }
 0x843   : > { %7065 = vrot.lane.b32.xlu1 %v7042_v20, %s8001_s27  ;;  %v6991_v20 = vmax.f32 %v6989_v15, %v6990_v18  ;;  %v6961_v23 = vcombine.high %v6905_v56, %v6905_v56  ;;  %v6992_v28 = vsel %vm6970_vm11, %v6905_v56, -inf }
 0x845   : > { %v6993_v11 = vsel %vm6970_vm11, %v6961_v23, -inf }
 0x846   : > { %v6994_v30 = vmax.f32 %v6992_v28, %v6993_v11 }
 0x87d   : > { %v7052_v9 = vpop.permute.xlu0 %7051 }
 0x87e   : > { %v7075_v35 = vsel %vm5918_vm9, %v6973_v29, %v7052_v9 }
 0x87f   : > { %7083 = vst [vmem:[%s12657_s15] sm:$0xf] %v7075_v35 }
 0x885   : > { %v7054_v40 = vpop.permute.xlu1 %7053 }
 0x886   : > { %v7076_v51 = vsel %vm5918_vm9, %v6976_v36, %v7054_v40 }
 0x887   : > { %7084 = vst [vmem:[%s12657_s15 + $0x4] sm:$0xf] %v7076_v51 }
 0x88d   : > { %v7056_v21 = vpop.permute.xlu0 %7055 }
 0x88e   : > { %v7077_v37 = vsel %vm5918_vm9, %v6979_v60, %v7056_v21 }
 0x88f   : > { %7085 = vst [vmem:[%s12657_s15 + $0x8] sm:$0xf] %v7077_v37 }
 0x895   : > { %v7058_v39 = vpop.permute.xlu1 %7057 }
 0x896   : > { %v7078_v54 = vsel %vm5918_vm9, %v6982_v50, %v7058_v39 }
 0x897   : > { %7086 = vst [vmem:[%s12657_s15 + $0xc] sm:$0xf] %v7078_v54 }
 0x89d   : > { %v7060_v61 = vpop.permute.xlu0 %7059 }
 0x89e   : > { %v7079_v7 = vsel %vm5918_vm9, %v6985_v17, %v7060_v61 }
 0x89f   : > { %7087 = vst [vmem:[%s12657_s15 + $0x10] sm:$0xf] %v7079_v7 }
 0x8a5   : > { %v7062_v8 = vpop.permute.xlu1 %7061 }
 0x8a6   : > { %v7080_v5 = vsel %vm5918_vm9, %v6988_v2, %v7062_v8 }
 0x8a7   : > { %7088 = vst [vmem:[%s12657_s15 + $0x14] sm:$0xf] %v7080_v5 }
 0x8ad   : > { %v7064_v26 = vpop.permute.xlu0 %7063 }
 0x8ae   : > { %v7081_v63 = vsel %vm5918_vm9, %v6991_v20, %v7064_v26 }
 0x8af   : > { %7089 = vst [vmem:[%s12657_s15 + $0x18] sm:$0xf] %v7081_v63 }
 0x8b5   : > { %v7066_v41 = vpop.permute.xlu1 %7065 }
 0x8b6   : > { %v7082_v33 = vsel %vm5918_vm9, %v6994_v30, %v7066_v41 }
 0x8b7   : > { %7090 = vst [vmem:[%s12657_s15 + $0x1c] sm:$0xf] %v7082_v33 }
 0x8b8 PF: > { %s17_s18 = sadd.s32 1, %s7988_s18  }
 0x8b9   : > { %p14_p8 = scmp.ge.s32.totalorder %s17_s18, 4  }
 0x8bb   :  { %16 = sbr.rel (!%p14_p8) target bundleno = 2 (0x2), region = 243 }
 0x8c0   :  { %7112 = vsyncpa [#allocation7], 1 }
 0x8c1   :  { %7114 = vsyncpa [#allocation7 + $0x1], 1 }
 0x8c2   :  { %7115 = vsyncpa [#allocation9], 1 }

</bundles_post_ra>
